<compile_context>
chip_gen: v7x
topology: tpu7x:2x2x1
jax: 0.10.0
libtpu: 0.0.40
codegen_flags: <defaults>
</compile_context>

<pallas_src>
import numpy as np
import jax
import jax.numpy as jnp
from jax.experimental import pallas as pl
from jax.experimental.pallas import tpu as pltpu


LP = 128  # lane padding for the 4x4 / 2x2 levels


def _rup8(n):
    return ((n + 7) // 8) * 8


def _flat(n, h, w, H, W):
    return (n * H + h) * W + w


# ----------------------- host-side constant builders (numpy) -----------------------

def make_conv_masks(N, H, W, pad_to):
    """Border-validity masks for the 9 taps of a 3x3 'same' conv -> [9, 1, pad_to].
    Entries beyond the real N*H*W positions stay 0 (also kills lane-padding leaks)."""
    out = np.zeros((9, 1, pad_to), np.float32)
    for t in range(9):
        dy, dx = t // 3 - 1, t % 3 - 1
        for n in range(N):
            for h in range(H):
                for w in range(W):
                    if 0 <= h + dy < H and 0 <= w + dx < W:
                        out[t, 0, _flat(n, h, w, H, W)] = 1.0
    return out


def make_pool_sel(N, H, W, pad_src, pad_dst):
    """MaxPool2d(2,2) output-pick matrix (applied after the roll+max)."""
    Ho, Wo = H // 2, W // 2
    S = np.zeros((pad_src, pad_dst), np.float32)
    for n in range(N):
        for i in range(Ho):
            for j in range(Wo):
                S[_flat(n, 2 * i, 2 * j, H, W), _flat(n, i, j, Ho, Wo)] = 1.0
    return S


def make_up_sel(N, Hs, Ws, Ht, Wt, pad_src, pad_dst):
    """Nearest-neighbour upsample (torch 'nearest': src = floor(dst * in / out))."""
    S = np.zeros((pad_src, pad_dst), np.float32)
    for n in range(N):
        for i in range(Ht):
            for j in range(Wt):
                S[_flat(n, i * Hs // Ht, j * Ws // Wt, Hs, Ws),
                  _flat(n, i, j, Ht, Wt)] = 1.0
    return S


def build_constants(N, H, W):
    H2, W2, H3, W3, H4, W4 = H // 2, W // 2, H // 4, W // 4, H // 8, W // 8
    M1, M2 = N * H * W, N * H2 * W2
    assert M1 % 128 == 0 and M2 % 128 == 0
    assert N * H3 * W3 <= LP and N * H4 * W4 <= LP
    raw = {
        'mask1': make_conv_masks(N, H, W, M1),
        'mask2': make_conv_masks(N, H2, W2, M2),
        'mask3': make_conv_masks(N, H3, W3, LP),
        'mask4': make_conv_masks(N, H4, W4, LP),
        'pool1': make_pool_sel(N, H, W, M1, M2),
        'pool2': make_pool_sel(N, H2, W2, M2, LP),
        'pool3': make_pool_sel(N, H3, W3, LP, LP),
        'up_4_3': make_up_sel(N, H4, W4, H3, W3, LP, LP),
        'up_3_2': make_up_sel(N, H3, W3, H2, W2, LP, M2),
        'up_3_1': make_up_sel(N, H3, W3, H, W, LP, M1),
        'up_2_1': make_up_sel(N, H2, W2, H, W, M2, M1),
    }
    consts = {}
    for k, v in raw.items():
        # 0/1 selection matrices are exact in bf16; masks stay f32 (they multiply
        # f32 activations before the bf16 cast).
        consts[k] = jnp.asarray(v, jnp.float32 if k.startswith('mask') else jnp.bfloat16)
    return consts


def _cat_layout(c16, c32, c64):
    """Channel layout of torch.cat((up4, up3, up2, out1)) for module_5, with each
    chunk start aligned to 8 rows (pad channels carry zero weights)."""
    sizes = [c64, c32, c16, c16]
    offs, o = [], 0
    for s in sizes:
        offs.append(o)
        o += _rup8(s)
    return sizes, offs, o          # o == padded cat width (40 for div=0.25)


# ----------------------- parameters (packed for the fused kernel) ------------------

def init_params(key, div=0.25):
    c16, c32, c64, c128 = int(div * 16), int(div * 32), int(div * 64), int(div * 128)
    keys = iter(jax.random.split(key, 64))

    def pack_taps(w9, cin_pad):
        # w9: [9, cout, cin] -> [cout, 9*cin_pad] bf16, tap-major, zero pad columns.
        _, cout, cin = w9.shape
        wp = jnp.zeros((cout, 9 * cin_pad), jnp.float32)
        for t in range(9):
            wp = wp.at[:, t * cin_pad:t * cin_pad + cin].set(w9[t])
        return wp.astype(jnp.bfloat16)

    p = {}

    def add3(name, cin, cout):
        w = jax.random.normal(next(keys), (9, cout, cin), jnp.float32) / np.sqrt(9.0 * cin)
        b = jax.random.normal(next(keys), (cout, 1), jnp.float32) * 0.01
        p[name + '_w'] = pack_taps(w, _rup8(cin))
        p[name + '_b'] = b

    add3('m1a', 1, c16); add3('m1b', c16, c16)
    add3('m2a', c16, c32); add3('m2b', c32, c32)
    add3('m3a', c32, c64); add3('m3b', c64, c64); add3('m3c', c64, c64)
    add3('m4a', c64, c128); add3('m4b', c128, c128); add3('m4c', c128, c128)

    # conv_4 (1x1)
    w = jax.random.normal(next(keys), (c64, c128), jnp.float32) / np.sqrt(float(c128))
    p['c4_w'] = w.astype(jnp.bfloat16)
    p['c4_b'] = jax.random.normal(next(keys), (c64, 1), jnp.float32) * 0.01

    add3('c3', c64, c32)     # conv_3 (3x3)
    add3('c2', c32, c16)     # conv_2 (3x3)

    # module_5 first conv: cin = cat(c64, c32, c16, c16) = c128, repacked to the
    # 8-row-aligned cat layout used by the in-kernel cat buffer.
    w = jax.random.normal(next(keys), (9, c64, c128), jnp.float32) / np.sqrt(9.0 * c128)
    sizes, offs, cat_pad = _cat_layout(c16, c32, c64)
    wcat = jnp.zeros((9, c64, cat_pad), jnp.float32)
    src = 0
    for s, o in zip(sizes, offs):
        wcat = wcat.at[:, :, o:o + s].set(w[:, :, src:src + s])
        src += s
    p['m5a_w'] = pack_taps(wcat, cat_pad)
    p['m5a_b'] = jax.random.normal(next(keys), (c64, 1), jnp.float32) * 0.01

    add3('m5b', c64, c16); add3('m5c', c16, c16)

    # fused 1x1 heads, no bias / activation: rows 0..49 = U, 50..99 = V, rest zero.
    wU = jax.random.normal(next(keys), (50, c16), jnp.float32) / np.sqrt(float(c16))
    wV = jax.random.normal(next(keys), (50, c16), jnp.float32) / np.sqrt(float(c16))
    wH = jnp.zeros((104, c16), jnp.float32).at[0:50].set(wU).at[50:100].set(wV)
    p['head_w'] = wH.astype(jnp.bfloat16)
    return p


# ----------------------- fused forward (single pallas_call) -----------------------

def build_forward(params, N, H, W, div=0.25):
    assert H % 8 == 0 and W % 8 == 0, "three 2x2 max-pools need H, W divisible by 8"
    c16, c32, c64, c128 = int(div * 16), int(div * 32), int(div * 64), int(div * 128)
    consts = build_constants(N, H, W)
    pnames, cnames = list(params.keys()), list(consts.keys())
    n_p, n_c = len(pnames), len(cnames)
    M1 = N * H * W
    W1, W2, W3, W4 = W, W // 2, W // 4, W // 8
    _, cat_offs, cat_pad = _cat_layout(c16, c32, c64)
    X9_ROWS = 9 * max(_rup8(c128), cat_pad)          # 360 for div=0.25

    def kernel(*refs):
        x_ref = refs[0]
        p = {k: refs[1 + i] for i, k in enumerate(pnames)}
        c = {k: refs[1 + n_p + i] for i, k in enumerate(cnames)}
        out_ref = refs[1 + n_p + n_c]
        x9 = refs[2 + n_p + n_c]          # [X9_ROWS, M1] f32 stacked-tap scratch
        cat = refs[3 + n_p + n_c]         # [cat_pad, M1] f32 module_5 input buffer
        f32, bf16 = jnp.float32, jnp.bfloat16

        # Kill uninitialized-VMEM garbage once: padded rows only ever meet zero
        # weight columns, but 0 * NaN would still poison the accumulation.
        x9[...] = jnp.zeros((X9_ROWS, M1), f32)
        cat[...] = jnp.zeros((cat_pad, M1), f32)

        # hoist mask loads (each reused by several convs)
        mask1, mask2 = c['mask1'][...], c['mask2'][...]
        mask3, mask4 = c['mask3'][...], c['mask4'][...]

        def conv3x3(x, name, mask, w_res, cin, relu=True):
            """3x3 'same' conv: 8 lane-rolls + masks -> stacked operand -> 1 matmul."""
            m = x.shape[1]
            cin_pad = _rup8(cin)
            for t in range(9):
                dy, dx = t // 3 - 1, t % 3 - 1
                off = dy * w_res + dx
                if off == 0:
                    xs = x
                else:
                    # roll: xs[:, m'] = x[:, m' + off]; wrap / out-of-image masked 0
                    xs = pltpu.roll(x, shift=(-off) % m, axis=1) * mask[t]
                x9[t * cin_pad:t * cin_pad + cin, 0:m] = xs
            ops = x9[0:9 * cin_pad, 0:m].astype(bf16)
            acc = jnp.dot(p[name + '_w'][...], ops, preferred_element_type=f32)
            acc = acc + p[name + '_b'][...]
            return jnp.maximum(acc, 0.0) if relu else acc

        def maxpool(x, w_real, sel):
            """MaxPool2d(2,2): roll+max on XLU/VPU, then one 0/1 pick matmul."""
            m = x.shape[1]
            y = jnp.maximum(x, pltpu.roll(x, shift=(-1) % m, axis=1))
            z = jnp.maximum(y, pltpu.roll(y, shift=(-w_real) % m, axis=1))
            return jnp.dot(z.astype(bf16), c[sel][...], preferred_element_type=f32)

        def upsample(x, sel):
            return jnp.dot(x.astype(bf16), c[sel][...], preferred_element_type=f32)

        x = x_ref[...]

        # ---------------- encoder ----------------
        t = conv3x3(x, 'm1a', mask1, W1, 1)
        out1 = conv3x3(t, 'm1b', mask1, W1, c16)                 # [c16, M1]
        cat[cat_offs[3]:cat_offs[3] + c16, :] = out1             # module_5 chunk 4
        t = maxpool(out1, W1, 'pool1')
        t = conv3x3(t, 'm2a', mask2, W2, c16)
        out2 = conv3x3(t, 'm2b', mask2, W2, c32)                 # [c32, M1/4]
        t = maxpool(out2, W2, 'pool2')
        t = conv3x3(t, 'm3a', mask3, W3, c32)
        t = conv3x3(t, 'm3b', mask3, W3, c64)
        out3 = conv3x3(t, 'm3c', mask3, W3, c64)                 # [c64, 128] 4x4-pad
        t = maxpool(out3, W3, 'pool3')
        t = conv3x3(t, 'm4a', mask4, W4, c64)
        t = conv3x3(t, 'm4b', mask4, W4, c128)
        out4 = conv3x3(t, 'm4c', mask4, W4, c128)                # [c128, 128] 2x2-pad

        # ---------------- decoder ----------------
        conv4 = jnp.dot(p['c4_w'][...], out4.astype(bf16), preferred_element_type=f32)
        conv4 = jnp.maximum(conv4 + p['c4_b'][...], 0.0)         # conv_4 (1x1)
        up_conv4 = upsample(conv4, 'up_4_3')                     # 2x2 -> 4x4
        cat[cat_offs[0]:cat_offs[0] + c64, :] = upsample(up_conv4, 'up_3_1')
        es1 = up_conv4 + out3
        conv3_o = conv3x3(es1, 'c3', mask3, W3, c64)             # conv_3
        up_conv3 = upsample(conv3_o, 'up_3_2')                   # 4x4 -> 8x8
        cat[cat_offs[1]:cat_offs[1] + c32, :] = upsample(up_conv3, 'up_2_1')
        es2 = up_conv3 + out2
        conv2_o = conv3x3(es2, 'c2', mask2, W2, c32)             # conv_2
        cat[cat_offs[2]:cat_offs[2] + c16, :] = upsample(conv2_o, 'up_2_1')

        # module_5 (the torch.cat is already materialized, 8-row aligned, in `cat`)
        t = conv3x3(cat[...], 'm5a', mask1, W1, cat_pad)
        t = conv3x3(t, 'm5b', mask1, W1, c64)
        pre = conv3x3(t, 'm5c', mask1, W1, c16)                  # [c16, M1]

        # fused 1x1 heads (U rows 0..49, V rows 50..99, zero pad to 104 rows).
        out_ref[...] = jnp.dot(p['head_w'][...], pre.astype(bf16),
                               preferred_element_type=f32)

    call = pl.pallas_call(
        kernel,
        out_shape=jax.ShapeDtypeStruct((104, M1), jnp.float32),
        scratch_shapes=[pltpu.VMEM((X9_ROWS, M1), jnp.float32),
                        pltpu.VMEM((cat_pad, M1), jnp.float32)],
        compiler_params=pltpu.CompilerParams(vmem_limit_bytes=8 * 1024 * 1024),
    )

    flat_params = [params[k] for k in pnames]
    flat_consts = [consts[k] for k in cnames]

    def forward(x_nchw):
        cin = x_nchw.shape[1]
        # NCHW -> channel-major [C, N*H*W]
        x_cm = jnp.transpose(x_nchw.astype(jnp.float32), (1, 0, 2, 3)).reshape(cin, M1)
        out = call(x_cm, *flat_params, *flat_consts)

        def to_nchw(rows):
            return jnp.transpose(rows.reshape(50, N, H, W), (1, 0, 2, 3))

        # The final F.interpolate back to the input spatial size is an identity here
        # (module_5 already runs at the input resolution), so it is skipped.
        return to_nchw(out[0:50]), to_nchw(out[50:100])

    return forward


# ----------------------- main -----------------------

if __name__ == "__main__":
    key = jax.random.PRNGKey(0)
    kp, kx = jax.random.split(key)

    N, H, W = 2, 16, 16
    params = init_params(kp)
    fwd = jax.jit(build_forward(params, N, H, W))

    # batch=2, channels=1 (module_1 expects a single input channel), 16x16 spatial
    x = jax.random.normal(kx, (N, 1, H, W), jnp.float32)

    out_u, out_v = fwd(x)
    jax.block_until_ready((out_u, out_v))

    assert out_u.shape == (N, 50, H, W), out_u.shape
    assert out_v.shape == (N, 50, H, W), out_v.shape
    assert bool(jnp.isfinite(out_u).all()) and bool(jnp.isfinite(out_v).all())
    print("KERNEL_OK")
</pallas_src>

<mosaic_0001>
module attributes {stable_mosaic.version = 11 : i64} {
  func.func @kernel(%arg0: memref<1x512xf32, #tpu.memory_space<vmem>>, %arg1: memref<4x72xbf16, #tpu.memory_space<vmem>>, %arg2: memref<4x1xf32, #tpu.memory_space<vmem>>, %arg3: memref<4x72xbf16, #tpu.memory_space<vmem>>, %arg4: memref<4x1xf32, #tpu.memory_space<vmem>>, %arg5: memref<8x72xbf16, #tpu.memory_space<vmem>>, %arg6: memref<8x1xf32, #tpu.memory_space<vmem>>, %arg7: memref<8x72xbf16, #tpu.memory_space<vmem>>, %arg8: memref<8x1xf32, #tpu.memory_space<vmem>>, %arg9: memref<16x72xbf16, #tpu.memory_space<vmem>>, %arg10: memref<16x1xf32, #tpu.memory_space<vmem>>, %arg11: memref<16x144xbf16, #tpu.memory_space<vmem>>, %arg12: memref<16x1xf32, #tpu.memory_space<vmem>>, %arg13: memref<16x144xbf16, #tpu.memory_space<vmem>>, %arg14: memref<16x1xf32, #tpu.memory_space<vmem>>, %arg15: memref<32x144xbf16, #tpu.memory_space<vmem>>, %arg16: memref<32x1xf32, #tpu.memory_space<vmem>>, %arg17: memref<32x288xbf16, #tpu.memory_space<vmem>>, %arg18: memref<32x1xf32, #tpu.memory_space<vmem>>, %arg19: memref<32x288xbf16, #tpu.memory_space<vmem>>, %arg20: memref<32x1xf32, #tpu.memory_space<vmem>>, %arg21: memref<16x32xbf16, #tpu.memory_space<vmem>>, %arg22: memref<16x1xf32, #tpu.memory_space<vmem>>, %arg23: memref<8x144xbf16, #tpu.memory_space<vmem>>, %arg24: memref<8x1xf32, #tpu.memory_space<vmem>>, %arg25: memref<4x72xbf16, #tpu.memory_space<vmem>>, %arg26: memref<4x1xf32, #tpu.memory_space<vmem>>, %arg27: memref<16x360xbf16, #tpu.memory_space<vmem>>, %arg28: memref<16x1xf32, #tpu.memory_space<vmem>>, %arg29: memref<4x144xbf16, #tpu.memory_space<vmem>>, %arg30: memref<4x1xf32, #tpu.memory_space<vmem>>, %arg31: memref<4x72xbf16, #tpu.memory_space<vmem>>, %arg32: memref<4x1xf32, #tpu.memory_space<vmem>>, %arg33: memref<104x4xbf16, #tpu.memory_space<vmem>>, %arg34: memref<9x1x512xf32, #tpu.memory_space<vmem>>, %arg35: memref<9x1x128xf32, #tpu.memory_space<vmem>>, %arg36: memref<9x1x128xf32, #tpu.memory_space<vmem>>, %arg37: memref<9x1x128xf32, #tpu.memory_space<vmem>>, %arg38: memref<512x128xbf16, #tpu.memory_space<vmem>>, %arg39: memref<128x128xbf16, #tpu.memory_space<vmem>>, %arg40: memref<128x128xbf16, #tpu.memory_space<vmem>>, %arg41: memref<128x128xbf16, #tpu.memory_space<vmem>>, %arg42: memref<128x128xbf16, #tpu.memory_space<vmem>>, %arg43: memref<128x512xbf16, #tpu.memory_space<vmem>>, %arg44: memref<128x512xbf16, #tpu.memory_space<vmem>>, %arg45: memref<104x512xf32, #tpu.memory_space<vmem>>, %arg46: memref<360x512xf32, #tpu.memory_space<vmem>>, %arg47: memref<40x512xf32, #tpu.memory_space<vmem>>) attributes {dimension_semantics = [], scalar_prefetch = 0 : i64, scratch_operands = 2 : i64, tpu.core_type = #tpu.core_type<tc>} {
    %cst = arith.constant 0.000000e+00 : f32
    %0 = vector.broadcast %cst : f32 to vector<360x512xf32>
    %c0 = arith.constant 0 : index
    %c0_0 = arith.constant 0 : index
    %1 = vector.load %arg46[%c0, %c0_0] : memref<360x512xf32, #tpu.memory_space<vmem>>, vector<360x512xf32>
    tpu.vector_store %arg46[%c0, %c0_0], %0 {strides = array<i32>} : memref<360x512xf32, #tpu.memory_space<vmem>>, vector<360x512xf32>,
    %cst_1 = arith.constant 0.000000e+00 : f32
    %2 = vector.broadcast %cst_1 : f32 to vector<40x512xf32>
    %c0_2 = arith.constant 0 : index
    %c0_3 = arith.constant 0 : index
    %3 = vector.load %arg47[%c0_2, %c0_3] : memref<40x512xf32, #tpu.memory_space<vmem>>, vector<40x512xf32>
    tpu.vector_store %arg47[%c0_2, %c0_3], %2 {strides = array<i32>} : memref<40x512xf32, #tpu.memory_space<vmem>>, vector<40x512xf32>,
    %c0_4 = arith.constant 0 : index
    %c0_5 = arith.constant 0 : index
    %c0_6 = arith.constant 0 : index
    %4 = vector.load %arg34[%c0_4, %c0_5, %c0_6] : memref<9x1x512xf32, #tpu.memory_space<vmem>>, vector<9x1x512xf32>
    %c0_7 = arith.constant 0 : index
    %c0_8 = arith.constant 0 : index
    %c0_9 = arith.constant 0 : index
    %5 = vector.load %arg35[%c0_7, %c0_8, %c0_9] : memref<9x1x128xf32, #tpu.memory_space<vmem>>, vector<9x1x128xf32>
    %c0_10 = arith.constant 0 : index
    %c0_11 = arith.constant 0 : index
    %c0_12 = arith.constant 0 : index
    %6 = vector.load %arg36[%c0_10, %c0_11, %c0_12] : memref<9x1x128xf32, #tpu.memory_space<vmem>>, vector<9x1x128xf32>
    %c0_13 = arith.constant 0 : index
    %c0_14 = arith.constant 0 : index
    %c0_15 = arith.constant 0 : index
    %7 = vector.load %arg37[%c0_13, %c0_14, %c0_15] : memref<9x1x128xf32, #tpu.memory_space<vmem>>, vector<9x1x128xf32>
    %c0_16 = arith.constant 0 : index
    %c0_17 = arith.constant 0 : index
    %8 = vector.load %arg0[%c0_16, %c0_17] : memref<1x512xf32, #tpu.memory_space<vmem>>, vector<1x512xf32>
    %c17_i32 = arith.constant 17 : i32
    %9 = tpu.dynamic_rotate %8 by %c17_i32 dim 1 : vector<1x512xf32>, i32 -> vector<1x512xf32>
    %10 = vector.extract_strided_slice %4 {offsets = [0, 0, 0], sizes = [1, 1, 512], strides = [1, 1, 1]} : vector<9x1x512xf32> to vector<1x1x512xf32>
    %11 = vector.shape_cast %10 : vector<1x1x512xf32> to vector<1x512xf32>
    %12 = arith.mulf %9, %11 : vector<1x512xf32>
    %c0_18 = arith.constant 0 : index
    %c0_19 = arith.constant 0 : index
    %13 = vector.load %arg46[%c0_18, %c0_19] : memref<360x512xf32, #tpu.memory_space<vmem>>, vector<1x512xf32>
    tpu.vector_store %arg46[%c0_18, %c0_19], %12 {strides = array<i32>} : memref<360x512xf32, #tpu.memory_space<vmem>>, vector<1x512xf32>,
    %c16_i32 = arith.constant 16 : i32
    %14 = tpu.dynamic_rotate %8 by %c16_i32 dim 1 : vector<1x512xf32>, i32 -> vector<1x512xf32>
    %15 = vector.extract_strided_slice %4 {offsets = [1, 0, 0], sizes = [1, 1, 512], strides = [1, 1, 1]} : vector<9x1x512xf32> to vector<1x1x512xf32>
    %16 = vector.shape_cast %15 : vector<1x1x512xf32> to vector<1x512xf32>
    %17 = arith.mulf %14, %16 : vector<1x512xf32>
    %c8 = arith.constant 8 : index
    %c0_20 = arith.constant 0 : index
    %18 = vector.load %arg46[%c8, %c0_20] : memref<360x512xf32, #tpu.memory_space<vmem>>, vector<1x512xf32>
    tpu.vector_store %arg46[%c8, %c0_20], %17 {strides = array<i32>} : memref<360x512xf32, #tpu.memory_space<vmem>>, vector<1x512xf32>,
    %c15_i32 = arith.constant 15 : i32
    %19 = tpu.dynamic_rotate %8 by %c15_i32 dim 1 : vector<1x512xf32>, i32 -> vector<1x512xf32>
    %20 = vector.extract_strided_slice %4 {offsets = [2, 0, 0], sizes = [1, 1, 512], strides = [1, 1, 1]} : vector<9x1x512xf32> to vector<1x1x512xf32>
    %21 = vector.shape_cast %20 : vector<1x1x512xf32> to vector<1x512xf32>
    %22 = arith.mulf %19, %21 : vector<1x512xf32>
    %c16 = arith.constant 16 : index
    %c0_21 = arith.constant 0 : index
    %23 = vector.load %arg46[%c16, %c0_21] : memref<360x512xf32, #tpu.memory_space<vmem>>, vector<1x512xf32>
    tpu.vector_store %arg46[%c16, %c0_21], %22 {strides = array<i32>} : memref<360x512xf32, #tpu.memory_space<vmem>>, vector<1x512xf32>,
    %c1_i32 = arith.constant 1 : i32
    %24 = tpu.dynamic_rotate %8 by %c1_i32 dim 1 : vector<1x512xf32>, i32 -> vector<1x512xf32>
    %25 = vector.extract_strided_slice %4 {offsets = [3, 0, 0], sizes = [1, 1, 512], strides = [1, 1, 1]} : vector<9x1x512xf32> to vector<1x1x512xf32>
    %26 = vector.shape_cast %25 : vector<1x1x512xf32> to vector<1x512xf32>
    %27 = arith.mulf %24, %26 : vector<1x512xf32>
    %c24 = arith.constant 24 : index
    %c0_22 = arith.constant 0 : index
    %28 = vector.load %arg46[%c24, %c0_22] : memref<360x512xf32, #tpu.memory_space<vmem>>, vector<1x512xf32>
    tpu.vector_store %arg46[%c24, %c0_22], %27 {strides = array<i32>} : memref<360x512xf32, #tpu.memory_space<vmem>>, vector<1x512xf32>,
    %c32 = arith.constant 32 : index
    %c0_23 = arith.constant 0 : index
    %29 = vector.load %arg46[%c32, %c0_23] : memref<360x512xf32, #tpu.memory_space<vmem>>, vector<1x512xf32>
    tpu.vector_store %arg46[%c32, %c0_23], %8 {strides = array<i32>} : memref<360x512xf32, #tpu.memory_space<vmem>>, vector<1x512xf32>,
    %c511_i32 = arith.constant 511 : i32
    %30 = tpu.dynamic_rotate %8 by %c511_i32 dim 1 : vector<1x512xf32>, i32 -> vector<1x512xf32>
    %31 = vector.extract_strided_slice %4 {offsets = [5, 0, 0], sizes = [1, 1, 512], strides = [1, 1, 1]} : vector<9x1x512xf32> to vector<1x1x512xf32>
    %32 = vector.shape_cast %31 : vector<1x1x512xf32> to vector<1x512xf32>
    %33 = arith.mulf %30, %32 : vector<1x512xf32>
    %c40 = arith.constant 40 : index
    %c0_24 = arith.constant 0 : index
    %34 = vector.load %arg46[%c40, %c0_24] : memref<360x512xf32, #tpu.memory_space<vmem>>, vector<1x512xf32>
    tpu.vector_store %arg46[%c40, %c0_24], %33 {strides = array<i32>} : memref<360x512xf32, #tpu.memory_space<vmem>>, vector<1x512xf32>,
    %c497_i32 = arith.constant 497 : i32
    %35 = tpu.dynamic_rotate %8 by %c497_i32 dim 1 : vector<1x512xf32>, i32 -> vector<1x512xf32>
    %36 = vector.extract_strided_slice %4 {offsets = [6, 0, 0], sizes = [1, 1, 512], strides = [1, 1, 1]} : vector<9x1x512xf32> to vector<1x1x512xf32>
    %37 = vector.shape_cast %36 : vector<1x1x512xf32> to vector<1x512xf32>
    %38 = arith.mulf %35, %37 : vector<1x512xf32>
    %c48 = arith.constant 48 : index
    %c0_25 = arith.constant 0 : index
    %39 = vector.load %arg46[%c48, %c0_25] : memref<360x512xf32, #tpu.memory_space<vmem>>, vector<1x512xf32>
    tpu.vector_store %arg46[%c48, %c0_25], %38 {strides = array<i32>} : memref<360x512xf32, #tpu.memory_space<vmem>>, vector<1x512xf32>,
    %c496_i32 = arith.constant 496 : i32
    %40 = tpu.dynamic_rotate %8 by %c496_i32 dim 1 : vector<1x512xf32>, i32 -> vector<1x512xf32>
    %41 = vector.extract_strided_slice %4 {offsets = [7, 0, 0], sizes = [1, 1, 512], strides = [1, 1, 1]} : vector<9x1x512xf32> to vector<1x1x512xf32>
    %42 = vector.shape_cast %41 : vector<1x1x512xf32> to vector<1x512xf32>
    %43 = arith.mulf %40, %42 : vector<1x512xf32>
    %c56 = arith.constant 56 : index
    %c0_26 = arith.constant 0 : index
    %44 = vector.load %arg46[%c56, %c0_26] : memref<360x512xf32, #tpu.memory_space<vmem>>, vector<1x512xf32>
    tpu.vector_store %arg46[%c56, %c0_26], %43 {strides = array<i32>} : memref<360x512xf32, #tpu.memory_space<vmem>>, vector<1x512xf32>,
    %c495_i32 = arith.constant 495 : i32
    %45 = tpu.dynamic_rotate %8 by %c495_i32 dim 1 : vector<1x512xf32>, i32 -> vector<1x512xf32>
    %46 = vector.extract_strided_slice %4 {offsets = [8, 0, 0], sizes = [1, 1, 512], strides = [1, 1, 1]} : vector<9x1x512xf32> to vector<1x1x512xf32>
    %47 = vector.shape_cast %46 : vector<1x1x512xf32> to vector<1x512xf32>
    %48 = arith.mulf %45, %47 : vector<1x512xf32>
    %c64 = arith.constant 64 : index
    %c0_27 = arith.constant 0 : index
    %49 = vector.load %arg46[%c64, %c0_27] : memref<360x512xf32, #tpu.memory_space<vmem>>, vector<1x512xf32>
    tpu.vector_store %arg46[%c64, %c0_27], %48 {strides = array<i32>} : memref<360x512xf32, #tpu.memory_space<vmem>>, vector<1x512xf32>,
    %c0_28 = arith.constant 0 : index
    %c0_29 = arith.constant 0 : index
    %50 = vector.load %arg46[%c0_28, %c0_29] : memref<360x512xf32, #tpu.memory_space<vmem>>, vector<72x512xf32>
    %51 = arith.truncf %50 : vector<72x512xf32> to vector<72x512xbf16>
    %c0_30 = arith.constant 0 : index
    %c0_31 = arith.constant 0 : index
    %52 = vector.load %arg1[%c0_30, %c0_31] : memref<4x72xbf16, #tpu.memory_space<vmem>>, vector<4x72xbf16>
    %cst_32 = arith.constant dense<0.000000e+00> : vector<4x512xf32>
    %53 = tpu.matmul %52, %51, %cst_32 {dimension_numbers = #tpu.dot_dimension_numbers<[1], [0], [0], [1], [0, 0, 1, 1], [], []>} : vector<4x72xbf16>, vector<72x512xbf16>, vector<4x512xf32> -> vector<4x512xf32>
    %c0_33 = arith.constant 0 : index
    %c0_34 = arith.constant 0 : index
    %54 = vector.load %arg2[%c0_33, %c0_34] : memref<4x1xf32, #tpu.memory_space<vmem>>, vector<4x1xf32>
    %55 = vector.broadcast %54 : vector<4x1xf32> to vector<4x512xf32>
    %56 = arith.addf %53, %55 : vector<4x512xf32>
    %cst_35 = arith.constant 0.000000e+00 : f32
    %57 = vector.broadcast %cst_35 : f32 to vector<4x512xf32>
    %58 = arith.maximumf %56, %57 : vector<4x512xf32>
    %c17_i32_36 = arith.constant 17 : i32
    %59 = tpu.dynamic_rotate %58 by %c17_i32_36 dim 1 : vector<4x512xf32>, i32 -> vector<4x512xf32>
    %60 = vector.extract_strided_slice %4 {offsets = [0, 0, 0], sizes = [1, 1, 512], strides = [1, 1, 1]} : vector<9x1x512xf32> to vector<1x1x512xf32>
    %61 = vector.shape_cast %60 : vector<1x1x512xf32> to vector<1x512xf32>
    %62 = vector.broadcast %61 : vector<1x512xf32> to vector<4x512xf32>
    %63 = arith.mulf %59, %62 : vector<4x512xf32>
    %c0_37 = arith.constant 0 : index
    %c0_38 = arith.constant 0 : index
    %64 = vector.load %arg46[%c0_37, %c0_38] : memref<360x512xf32, #tpu.memory_space<vmem>>, vector<4x512xf32>
    tpu.vector_store %arg46[%c0_37, %c0_38], %63 {strides = array<i32>} : memref<360x512xf32, #tpu.memory_space<vmem>>, vector<4x512xf32>,
    %c16_i32_39 = arith.constant 16 : i32
    %65 = tpu.dynamic_rotate %58 by %c16_i32_39 dim 1 : vector<4x512xf32>, i32 -> vector<4x512xf32>
    %66 = vector.extract_strided_slice %4 {offsets = [1, 0, 0], sizes = [1, 1, 512], strides = [1, 1, 1]} : vector<9x1x512xf32> to vector<1x1x512xf32>
    %67 = vector.shape_cast %66 : vector<1x1x512xf32> to vector<1x512xf32>
    %68 = vector.broadcast %67 : vector<1x512xf32> to vector<4x512xf32>
    %69 = arith.mulf %65, %68 : vector<4x512xf32>
    %c8_40 = arith.constant 8 : index
    %c0_41 = arith.constant 0 : index
    %70 = vector.load %arg46[%c8_40, %c0_41] : memref<360x512xf32, #tpu.memory_space<vmem>>, vector<4x512xf32>
    tpu.vector_store %arg46[%c8_40, %c0_41], %69 {strides = array<i32>} : memref<360x512xf32, #tpu.memory_space<vmem>>, vector<4x512xf32>,
    %c15_i32_42 = arith.constant 15 : i32
    %71 = tpu.dynamic_rotate %58 by %c15_i32_42 dim 1 : vector<4x512xf32>, i32 -> vector<4x512xf32>
    %72 = vector.extract_strided_slice %4 {offsets = [2, 0, 0], sizes = [1, 1, 512], strides = [1, 1, 1]} : vector<9x1x512xf32> to vector<1x1x512xf32>
    %73 = vector.shape_cast %72 : vector<1x1x512xf32> to vector<1x512xf32>
    %74 = vector.broadcast %73 : vector<1x512xf32> to vector<4x512xf32>
    %75 = arith.mulf %71, %74 : vector<4x512xf32>
    %c16_43 = arith.constant 16 : index
    %c0_44 = arith.constant 0 : index
    %76 = vector.load %arg46[%c16_43, %c0_44] : memref<360x512xf32, #tpu.memory_space<vmem>>, vector<4x512xf32>
    tpu.vector_store %arg46[%c16_43, %c0_44], %75 {strides = array<i32>} : memref<360x512xf32, #tpu.memory_space<vmem>>, vector<4x512xf32>,
    %c1_i32_45 = arith.constant 1 : i32
    %77 = tpu.dynamic_rotate %58 by %c1_i32_45 dim 1 : vector<4x512xf32>, i32 -> vector<4x512xf32>
    %78 = vector.extract_strided_slice %4 {offsets = [3, 0, 0], sizes = [1, 1, 512], strides = [1, 1, 1]} : vector<9x1x512xf32> to vector<1x1x512xf32>
    %79 = vector.shape_cast %78 : vector<1x1x512xf32> to vector<1x512xf32>
    %80 = vector.broadcast %79 : vector<1x512xf32> to vector<4x512xf32>
    %81 = arith.mulf %77, %80 : vector<4x512xf32>
    %c24_46 = arith.constant 24 : index
    %c0_47 = arith.constant 0 : index
    %82 = vector.load %arg46[%c24_46, %c0_47] : memref<360x512xf32, #tpu.memory_space<vmem>>, vector<4x512xf32>
    tpu.vector_store %arg46[%c24_46, %c0_47], %81 {strides = array<i32>} : memref<360x512xf32, #tpu.memory_space<vmem>>, vector<4x512xf32>,
    %c32_48 = arith.constant 32 : index
    %c0_49 = arith.constant 0 : index
    %83 = vector.load %arg46[%c32_48, %c0_49] : memref<360x512xf32, #tpu.memory_space<vmem>>, vector<4x512xf32>
    tpu.vector_store %arg46[%c32_48, %c0_49], %58 {strides = array<i32>} : memref<360x512xf32, #tpu.memory_space<vmem>>, vector<4x512xf32>,
    %c511_i32_50 = arith.constant 511 : i32
    %84 = tpu.dynamic_rotate %58 by %c511_i32_50 dim 1 : vector<4x512xf32>, i32 -> vector<4x512xf32>
    %85 = vector.extract_strided_slice %4 {offsets = [5, 0, 0], sizes = [1, 1, 512], strides = [1, 1, 1]} : vector<9x1x512xf32> to vector<1x1x512xf32>
    %86 = vector.shape_cast %85 : vector<1x1x512xf32> to vector<1x512xf32>
    %87 = vector.broadcast %86 : vector<1x512xf32> to vector<4x512xf32>
    %88 = arith.mulf %84, %87 : vector<4x512xf32>
    %c40_51 = arith.constant 40 : index
    %c0_52 = arith.constant 0 : index
    %89 = vector.load %arg46[%c40_51, %c0_52] : memref<360x512xf32, #tpu.memory_space<vmem>>, vector<4x512xf32>
    tpu.vector_store %arg46[%c40_51, %c0_52], %88 {strides = array<i32>} : memref<360x512xf32, #tpu.memory_space<vmem>>, vector<4x512xf32>,
    %c497_i32_53 = arith.constant 497 : i32
    %90 = tpu.dynamic_rotate %58 by %c497_i32_53 dim 1 : vector<4x512xf32>, i32 -> vector<4x512xf32>
    %91 = vector.extract_strided_slice %4 {offsets = [6, 0, 0], sizes = [1, 1, 512], strides = [1, 1, 1]} : vector<9x1x512xf32> to vector<1x1x512xf32>
    %92 = vector.shape_cast %91 : vector<1x1x512xf32> to vector<1x512xf32>
    %93 = vector.broadcast %92 : vector<1x512xf32> to vector<4x512xf32>
    %94 = arith.mulf %90, %93 : vector<4x512xf32>
    %c48_54 = arith.constant 48 : index
    %c0_55 = arith.constant 0 : index
    %95 = vector.load %arg46[%c48_54, %c0_55] : memref<360x512xf32, #tpu.memory_space<vmem>>, vector<4x512xf32>
    tpu.vector_store %arg46[%c48_54, %c0_55], %94 {strides = array<i32>} : memref<360x512xf32, #tpu.memory_space<vmem>>, vector<4x512xf32>,
    %c496_i32_56 = arith.constant 496 : i32
    %96 = tpu.dynamic_rotate %58 by %c496_i32_56 dim 1 : vector<4x512xf32>, i32 -> vector<4x512xf32>
    %97 = vector.extract_strided_slice %4 {offsets = [7, 0, 0], sizes = [1, 1, 512], strides = [1, 1, 1]} : vector<9x1x512xf32> to vector<1x1x512xf32>
    %98 = vector.shape_cast %97 : vector<1x1x512xf32> to vector<1x512xf32>
    %99 = vector.broadcast %98 : vector<1x512xf32> to vector<4x512xf32>
    %100 = arith.mulf %96, %99 : vector<4x512xf32>
    %c56_57 = arith.constant 56 : index
    %c0_58 = arith.constant 0 : index
    %101 = vector.load %arg46[%c56_57, %c0_58] : memref<360x512xf32, #tpu.memory_space<vmem>>, vector<4x512xf32>
    tpu.vector_store %arg46[%c56_57, %c0_58], %100 {strides = array<i32>} : memref<360x512xf32, #tpu.memory_space<vmem>>, vector<4x512xf32>,
    %c495_i32_59 = arith.constant 495 : i32
    %102 = tpu.dynamic_rotate %58 by %c495_i32_59 dim 1 : vector<4x512xf32>, i32 -> vector<4x512xf32>
    %103 = vector.extract_strided_slice %4 {offsets = [8, 0, 0], sizes = [1, 1, 512], strides = [1, 1, 1]} : vector<9x1x512xf32> to vector<1x1x512xf32>
    %104 = vector.shape_cast %103 : vector<1x1x512xf32> to vector<1x512xf32>
    %105 = vector.broadcast %104 : vector<1x512xf32> to vector<4x512xf32>
    %106 = arith.mulf %102, %105 : vector<4x512xf32>
    %c64_60 = arith.constant 64 : index
    %c0_61 = arith.constant 0 : index
    %107 = vector.load %arg46[%c64_60, %c0_61] : memref<360x512xf32, #tpu.memory_space<vmem>>, vector<4x512xf32>
    tpu.vector_store %arg46[%c64_60, %c0_61], %106 {strides = array<i32>} : memref<360x512xf32, #tpu.memory_space<vmem>>, vector<4x512xf32>,
    %c0_62 = arith.constant 0 : index
    %c0_63 = arith.constant 0 : index
    %108 = vector.load %arg46[%c0_62, %c0_63] : memref<360x512xf32, #tpu.memory_space<vmem>>, vector<72x512xf32>
    %109 = arith.truncf %108 : vector<72x512xf32> to vector<72x512xbf16>
    %c0_64 = arith.constant 0 : index
    %c0_65 = arith.constant 0 : index
    %110 = vector.load %arg3[%c0_64, %c0_65] : memref<4x72xbf16, #tpu.memory_space<vmem>>, vector<4x72xbf16>
    %cst_66 = arith.constant dense<0.000000e+00> : vector<4x512xf32>
    %111 = tpu.matmul %110, %109, %cst_66 {dimension_numbers = #tpu.dot_dimension_numbers<[1], [0], [0], [1], [0, 0, 1, 1], [], []>} : vector<4x72xbf16>, vector<72x512xbf16>, vector<4x512xf32> -> vector<4x512xf32>
    %c0_67 = arith.constant 0 : index
    %c0_68 = arith.constant 0 : index
    %112 = vector.load %arg4[%c0_67, %c0_68] : memref<4x1xf32, #tpu.memory_space<vmem>>, vector<4x1xf32>
    %113 = vector.broadcast %112 : vector<4x1xf32> to vector<4x512xf32>
    %114 = arith.addf %111, %113 : vector<4x512xf32>
    %cst_69 = arith.constant 0.000000e+00 : f32
    %115 = vector.broadcast %cst_69 : f32 to vector<4x512xf32>
    %116 = arith.maximumf %114, %115 : vector<4x512xf32>
    %c32_70 = arith.constant 32 : index
    %c0_71 = arith.constant 0 : index
    %117 = vector.load %arg47[%c32_70, %c0_71] : memref<40x512xf32, #tpu.memory_space<vmem>>, vector<4x512xf32>
    tpu.vector_store %arg47[%c32_70, %c0_71], %116 {strides = array<i32>} : memref<40x512xf32, #tpu.memory_space<vmem>>, vector<4x512xf32>,
    %c511_i32_72 = arith.constant 511 : i32
    %118 = tpu.dynamic_rotate %116 by %c511_i32_72 dim 1 : vector<4x512xf32>, i32 -> vector<4x512xf32>
    %119 = arith.maximumf %116, %118 : vector<4x512xf32>
    %c496_i32_73 = arith.constant 496 : i32
    %120 = tpu.dynamic_rotate %119 by %c496_i32_73 dim 1 : vector<4x512xf32>, i32 -> vector<4x512xf32>
    %121 = arith.maximumf %119, %120 : vector<4x512xf32>
    %122 = arith.truncf %121 : vector<4x512xf32> to vector<4x512xbf16>
    %c0_74 = arith.constant 0 : index
    %c0_75 = arith.constant 0 : index
    %123 = vector.load %arg38[%c0_74, %c0_75] : memref<512x128xbf16, #tpu.memory_space<vmem>>, vector<512x128xbf16>
    %cst_76 = arith.constant dense<0.000000e+00> : vector<4x128xf32>
    %124 = tpu.matmul %122, %123, %cst_76 {dimension_numbers = #tpu.dot_dimension_numbers<[1], [0], [0], [1], [0, 0, 1, 1], [], []>} : vector<4x512xbf16>, vector<512x128xbf16>, vector<4x128xf32> -> vector<4x128xf32>
    %c9_i32 = arith.constant 9 : i32
    %125 = tpu.dynamic_rotate %124 by %c9_i32 dim 1 : vector<4x128xf32>, i32 -> vector<4x128xf32>
    %126 = vector.extract_strided_slice %5 {offsets = [0, 0, 0], sizes = [1, 1, 128], strides = [1, 1, 1]} : vector<9x1x128xf32> to vector<1x1x128xf32>
    %127 = vector.shape_cast %126 : vector<1x1x128xf32> to vector<1x128xf32>
    %128 = vector.broadcast %127 : vector<1x128xf32> to vector<4x128xf32>
    %129 = arith.mulf %125, %128 : vector<4x128xf32>
    %c0_77 = arith.constant 0 : index
    %c0_78 = arith.constant 0 : index
    %130 = vector.load %arg46[%c0_77, %c0_78] : memref<360x512xf32, #tpu.memory_space<vmem>>, vector<4x128xf32>
    tpu.vector_store %arg46[%c0_77, %c0_78], %129 {strides = array<i32>} : memref<360x512xf32, #tpu.memory_space<vmem>>, vector<4x128xf32>,
    %c8_i32 = arith.constant 8 : i32
    %131 = tpu.dynamic_rotate %124 by %c8_i32 dim 1 : vector<4x128xf32>, i32 -> vector<4x128xf32>
    %132 = vector.extract_strided_slice %5 {offsets = [1, 0, 0], sizes = [1, 1, 128], strides = [1, 1, 1]} : vector<9x1x128xf32> to vector<1x1x128xf32>
    %133 = vector.shape_cast %132 : vector<1x1x128xf32> to vector<1x128xf32>
    %134 = vector.broadcast %133 : vector<1x128xf32> to vector<4x128xf32>
    %135 = arith.mulf %131, %134 : vector<4x128xf32>
    %c8_79 = arith.constant 8 : index
    %c0_80 = arith.constant 0 : index
    %136 = vector.load %arg46[%c8_79, %c0_80] : memref<360x512xf32, #tpu.memory_space<vmem>>, vector<4x128xf32>
    tpu.vector_store %arg46[%c8_79, %c0_80], %135 {strides = array<i32>} : memref<360x512xf32, #tpu.memory_space<vmem>>, vector<4x128xf32>,
    %c7_i32 = arith.constant 7 : i32
    %137 = tpu.dynamic_rotate %124 by %c7_i32 dim 1 : vector<4x128xf32>, i32 -> vector<4x128xf32>
    %138 = vector.extract_strided_slice %5 {offsets = [2, 0, 0], sizes = [1, 1, 128], strides = [1, 1, 1]} : vector<9x1x128xf32> to vector<1x1x128xf32>
    %139 = vector.shape_cast %138 : vector<1x1x128xf32> to vector<1x128xf32>
    %140 = vector.broadcast %139 : vector<1x128xf32> to vector<4x128xf32>
    %141 = arith.mulf %137, %140 : vector<4x128xf32>
    %c16_81 = arith.constant 16 : index
    %c0_82 = arith.constant 0 : index
    %142 = vector.load %arg46[%c16_81, %c0_82] : memref<360x512xf32, #tpu.memory_space<vmem>>, vector<4x128xf32>
    tpu.vector_store %arg46[%c16_81, %c0_82], %141 {strides = array<i32>} : memref<360x512xf32, #tpu.memory_space<vmem>>, vector<4x128xf32>,
    %c1_i32_83 = arith.constant 1 : i32
    %143 = tpu.dynamic_rotate %124 by %c1_i32_83 dim 1 : vector<4x128xf32>, i32 -> vector<4x128xf32>
    %144 = vector.extract_strided_slice %5 {offsets = [3, 0, 0], sizes = [1, 1, 128], strides = [1, 1, 1]} : vector<9x1x128xf32> to vector<1x1x128xf32>
    %145 = vector.shape_cast %144 : vector<1x1x128xf32> to vector<1x128xf32>
    %146 = vector.broadcast %145 : vector<1x128xf32> to vector<4x128xf32>
    %147 = arith.mulf %143, %146 : vector<4x128xf32>
    %c24_84 = arith.constant 24 : index
    %c0_85 = arith.constant 0 : index
    %148 = vector.load %arg46[%c24_84, %c0_85] : memref<360x512xf32, #tpu.memory_space<vmem>>, vector<4x128xf32>
    tpu.vector_store %arg46[%c24_84, %c0_85], %147 {strides = array<i32>} : memref<360x512xf32, #tpu.memory_space<vmem>>, vector<4x128xf32>,
    %c32_86 = arith.constant 32 : index
    %c0_87 = arith.constant 0 : index
    %149 = vector.load %arg46[%c32_86, %c0_87] : memref<360x512xf32, #tpu.memory_space<vmem>>, vector<4x128xf32>
    tpu.vector_store %arg46[%c32_86, %c0_87], %124 {strides = array<i32>} : memref<360x512xf32, #tpu.memory_space<vmem>>, vector<4x128xf32>,
    %c127_i32 = arith.constant 127 : i32
    %150 = tpu.dynamic_rotate %124 by %c127_i32 dim 1 : vector<4x128xf32>, i32 -> vector<4x128xf32>
    %151 = vector.extract_strided_slice %5 {offsets = [5, 0, 0], sizes = [1, 1, 128], strides = [1, 1, 1]} : vector<9x1x128xf32> to vector<1x1x128xf32>
    %152 = vector.shape_cast %151 : vector<1x1x128xf32> to vector<1x128xf32>
    %153 = vector.broadcast %152 : vector<1x128xf32> to vector<4x128xf32>
    %154 = arith.mulf %150, %153 : vector<4x128xf32>
    %c40_88 = arith.constant 40 : index
    %c0_89 = arith.constant 0 : index
    %155 = vector.load %arg46[%c40_88, %c0_89] : memref<360x512xf32, #tpu.memory_space<vmem>>, vector<4x128xf32>
    tpu.vector_store %arg46[%c40_88, %c0_89], %154 {strides = array<i32>} : memref<360x512xf32, #tpu.memory_space<vmem>>, vector<4x128xf32>,
    %c121_i32 = arith.constant 121 : i32
    %156 = tpu.dynamic_rotate %124 by %c121_i32 dim 1 : vector<4x128xf32>, i32 -> vector<4x128xf32>
    %157 = vector.extract_strided_slice %5 {offsets = [6, 0, 0], sizes = [1, 1, 128], strides = [1, 1, 1]} : vector<9x1x128xf32> to vector<1x1x128xf32>
    %158 = vector.shape_cast %157 : vector<1x1x128xf32> to vector<1x128xf32>
    %159 = vector.broadcast %158 : vector<1x128xf32> to vector<4x128xf32>
    %160 = arith.mulf %156, %159 : vector<4x128xf32>
    %c48_90 = arith.constant 48 : index
    %c0_91 = arith.constant 0 : index
    %161 = vector.load %arg46[%c48_90, %c0_91] : memref<360x512xf32, #tpu.memory_space<vmem>>, vector<4x128xf32>
    tpu.vector_store %arg46[%c48_90, %c0_91], %160 {strides = array<i32>} : memref<360x512xf32, #tpu.memory_space<vmem>>, vector<4x128xf32>,
    %c120_i32 = arith.constant 120 : i32
    %162 = tpu.dynamic_rotate %124 by %c120_i32 dim 1 : vector<4x128xf32>, i32 -> vector<4x128xf32>
    %163 = vector.extract_strided_slice %5 {offsets = [7, 0, 0], sizes = [1, 1, 128], strides = [1, 1, 1]} : vector<9x1x128xf32> to vector<1x1x128xf32>
    %164 = vector.shape_cast %163 : vector<1x1x128xf32> to vector<1x128xf32>
    %165 = vector.broadcast %164 : vector<1x128xf32> to vector<4x128xf32>
    %166 = arith.mulf %162, %165 : vector<4x128xf32>
    %c56_92 = arith.constant 56 : index
    %c0_93 = arith.constant 0 : index
    %167 = vector.load %arg46[%c56_92, %c0_93] : memref<360x512xf32, #tpu.memory_space<vmem>>, vector<4x128xf32>
    tpu.vector_store %arg46[%c56_92, %c0_93], %166 {strides = array<i32>} : memref<360x512xf32, #tpu.memory_space<vmem>>, vector<4x128xf32>,
    %c119_i32 = arith.constant 119 : i32
    %168 = tpu.dynamic_rotate %124 by %c119_i32 dim 1 : vector<4x128xf32>, i32 -> vector<4x128xf32>
    %169 = vector.extract_strided_slice %5 {offsets = [8, 0, 0], sizes = [1, 1, 128], strides = [1, 1, 1]} : vector<9x1x128xf32> to vector<1x1x128xf32>
    %170 = vector.shape_cast %169 : vector<1x1x128xf32> to vector<1x128xf32>
    %171 = vector.broadcast %170 : vector<1x128xf32> to vector<4x128xf32>
    %172 = arith.mulf %168, %171 : vector<4x128xf32>
    %c64_94 = arith.constant 64 : index
    %c0_95 = arith.constant 0 : index
    %173 = vector.load %arg46[%c64_94, %c0_95] : memref<360x512xf32, #tpu.memory_space<vmem>>, vector<4x128xf32>
    tpu.vector_store %arg46[%c64_94, %c0_95], %172 {strides = array<i32>} : memref<360x512xf32, #tpu.memory_space<vmem>>, vector<4x128xf32>,
    %c0_96 = arith.constant 0 : index
    %c0_97 = arith.constant 0 : index
    %174 = vector.load %arg46[%c0_96, %c0_97] : memref<360x512xf32, #tpu.memory_space<vmem>>, vector<72x128xf32>
    %175 = arith.truncf %174 : vector<72x128xf32> to vector<72x128xbf16>
    %c0_98 = arith.constant 0 : index
    %c0_99 = arith.constant 0 : index
    %176 = vector.load %arg5[%c0_98, %c0_99] : memref<8x72xbf16, #tpu.memory_space<vmem>>, vector<8x72xbf16>
    %cst_100 = arith.constant dense<0.000000e+00> : vector<8x128xf32>
    %177 = tpu.matmul %176, %175, %cst_100 {dimension_numbers = #tpu.dot_dimension_numbers<[1], [0], [0], [1], [0, 0, 1, 1], [], []>} : vector<8x72xbf16>, vector<72x128xbf16>, vector<8x128xf32> -> vector<8x128xf32>
    %c0_101 = arith.constant 0 : index
    %c0_102 = arith.constant 0 : index
    %178 = vector.load %arg6[%c0_101, %c0_102] : memref<8x1xf32, #tpu.memory_space<vmem>>, vector<8x1xf32>
    %179 = vector.broadcast %178 : vector<8x1xf32> to vector<8x128xf32>
    %180 = arith.addf %177, %179 : vector<8x128xf32>
    %cst_103 = arith.constant 0.000000e+00 : f32
    %181 = vector.broadcast %cst_103 : f32 to vector<8x128xf32>
    %182 = arith.maximumf %180, %181 : vector<8x128xf32>
    %c9_i32_104 = arith.constant 9 : i32
    %183 = tpu.dynamic_rotate %182 by %c9_i32_104 dim 1 : vector<8x128xf32>, i32 -> vector<8x128xf32>
    %184 = vector.extract_strided_slice %5 {offsets = [0, 0, 0], sizes = [1, 1, 128], strides = [1, 1, 1]} : vector<9x1x128xf32> to vector<1x1x128xf32>
    %185 = vector.shape_cast %184 : vector<1x1x128xf32> to vector<1x128xf32>
    %186 = vector.broadcast %185 : vector<1x128xf32> to vector<8x128xf32>
    %187 = arith.mulf %183, %186 : vector<8x128xf32>
    %c0_105 = arith.constant 0 : index
    %c0_106 = arith.constant 0 : index
    %188 = vector.load %arg46[%c0_105, %c0_106] : memref<360x512xf32, #tpu.memory_space<vmem>>, vector<8x128xf32>
    tpu.vector_store %arg46[%c0_105, %c0_106], %187 {strides = array<i32>} : memref<360x512xf32, #tpu.memory_space<vmem>>, vector<8x128xf32>,
    %c8_i32_107 = arith.constant 8 : i32
    %189 = tpu.dynamic_rotate %182 by %c8_i32_107 dim 1 : vector<8x128xf32>, i32 -> vector<8x128xf32>
    %190 = vector.extract_strided_slice %5 {offsets = [1, 0, 0], sizes = [1, 1, 128], strides = [1, 1, 1]} : vector<9x1x128xf32> to vector<1x1x128xf32>
    %191 = vector.shape_cast %190 : vector<1x1x128xf32> to vector<1x128xf32>
    %192 = vector.broadcast %191 : vector<1x128xf32> to vector<8x128xf32>
    %193 = arith.mulf %189, %192 : vector<8x128xf32>
    %c8_108 = arith.constant 8 : index
    %c0_109 = arith.constant 0 : index
    %194 = vector.load %arg46[%c8_108, %c0_109] : memref<360x512xf32, #tpu.memory_space<vmem>>, vector<8x128xf32>
    tpu.vector_store %arg46[%c8_108, %c0_109], %193 {strides = array<i32>} : memref<360x512xf32, #tpu.memory_space<vmem>>, vector<8x128xf32>,
    %c7_i32_110 = arith.constant 7 : i32
    %195 = tpu.dynamic_rotate %182 by %c7_i32_110 dim 1 : vector<8x128xf32>, i32 -> vector<8x128xf32>
    %196 = vector.extract_strided_slice %5 {offsets = [2, 0, 0], sizes = [1, 1, 128], strides = [1, 1, 1]} : vector<9x1x128xf32> to vector<1x1x128xf32>
    %197 = vector.shape_cast %196 : vector<1x1x128xf32> to vector<1x128xf32>
    %198 = vector.broadcast %197 : vector<1x128xf32> to vector<8x128xf32>
    %199 = arith.mulf %195, %198 : vector<8x128xf32>
    %c16_111 = arith.constant 16 : index
    %c0_112 = arith.constant 0 : index
    %200 = vector.load %arg46[%c16_111, %c0_112] : memref<360x512xf32, #tpu.memory_space<vmem>>, vector<8x128xf32>
    tpu.vector_store %arg46[%c16_111, %c0_112], %199 {strides = array<i32>} : memref<360x512xf32, #tpu.memory_space<vmem>>, vector<8x128xf32>,
    %c1_i32_113 = arith.constant 1 : i32
    %201 = tpu.dynamic_rotate %182 by %c1_i32_113 dim 1 : vector<8x128xf32>, i32 -> vector<8x128xf32>
    %202 = vector.extract_strided_slice %5 {offsets = [3, 0, 0], sizes = [1, 1, 128], strides = [1, 1, 1]} : vector<9x1x128xf32> to vector<1x1x128xf32>
    %203 = vector.shape_cast %202 : vector<1x1x128xf32> to vector<1x128xf32>
    %204 = vector.broadcast %203 : vector<1x128xf32> to vector<8x128xf32>
    %205 = arith.mulf %201, %204 : vector<8x128xf32>
    %c24_114 = arith.constant 24 : index
    %c0_115 = arith.constant 0 : index
    %206 = vector.load %arg46[%c24_114, %c0_115] : memref<360x512xf32, #tpu.memory_space<vmem>>, vector<8x128xf32>
    tpu.vector_store %arg46[%c24_114, %c0_115], %205 {strides = array<i32>} : memref<360x512xf32, #tpu.memory_space<vmem>>, vector<8x128xf32>,
    %c32_116 = arith.constant 32 : index
    %c0_117 = arith.constant 0 : index
    %207 = vector.load %arg46[%c32_116, %c0_117] : memref<360x512xf32, #tpu.memory_space<vmem>>, vector<8x128xf32>
    tpu.vector_store %arg46[%c32_116, %c0_117], %182 {strides = array<i32>} : memref<360x512xf32, #tpu.memory_space<vmem>>, vector<8x128xf32>,
    %c127_i32_118 = arith.constant 127 : i32
    %208 = tpu.dynamic_rotate %182 by %c127_i32_118 dim 1 : vector<8x128xf32>, i32 -> vector<8x128xf32>
    %209 = vector.extract_strided_slice %5 {offsets = [5, 0, 0], sizes = [1, 1, 128], strides = [1, 1, 1]} : vector<9x1x128xf32> to vector<1x1x128xf32>
    %210 = vector.shape_cast %209 : vector<1x1x128xf32> to vector<1x128xf32>
    %211 = vector.broadcast %210 : vector<1x128xf32> to vector<8x128xf32>
    %212 = arith.mulf %208, %211 : vector<8x128xf32>
    %c40_119 = arith.constant 40 : index
    %c0_120 = arith.constant 0 : index
    %213 = vector.load %arg46[%c40_119, %c0_120] : memref<360x512xf32, #tpu.memory_space<vmem>>, vector<8x128xf32>
    tpu.vector_store %arg46[%c40_119, %c0_120], %212 {strides = array<i32>} : memref<360x512xf32, #tpu.memory_space<vmem>>, vector<8x128xf32>,
    %c121_i32_121 = arith.constant 121 : i32
    %214 = tpu.dynamic_rotate %182 by %c121_i32_121 dim 1 : vector<8x128xf32>, i32 -> vector<8x128xf32>
    %215 = vector.extract_strided_slice %5 {offsets = [6, 0, 0], sizes = [1, 1, 128], strides = [1, 1, 1]} : vector<9x1x128xf32> to vector<1x1x128xf32>
    %216 = vector.shape_cast %215 : vector<1x1x128xf32> to vector<1x128xf32>
    %217 = vector.broadcast %216 : vector<1x128xf32> to vector<8x128xf32>
    %218 = arith.mulf %214, %217 : vector<8x128xf32>
    %c48_122 = arith.constant 48 : index
    %c0_123 = arith.constant 0 : index
    %219 = vector.load %arg46[%c48_122, %c0_123] : memref<360x512xf32, #tpu.memory_space<vmem>>, vector<8x128xf32>
    tpu.vector_store %arg46[%c48_122, %c0_123], %218 {strides = array<i32>} : memref<360x512xf32, #tpu.memory_space<vmem>>, vector<8x128xf32>,
    %c120_i32_124 = arith.constant 120 : i32
    %220 = tpu.dynamic_rotate %182 by %c120_i32_124 dim 1 : vector<8x128xf32>, i32 -> vector<8x128xf32>
    %221 = vector.extract_strided_slice %5 {offsets = [7, 0, 0], sizes = [1, 1, 128], strides = [1, 1, 1]} : vector<9x1x128xf32> to vector<1x1x128xf32>
    %222 = vector.shape_cast %221 : vector<1x1x128xf32> to vector<1x128xf32>
    %223 = vector.broadcast %222 : vector<1x128xf32> to vector<8x128xf32>
    %224 = arith.mulf %220, %223 : vector<8x128xf32>
    %c56_125 = arith.constant 56 : index
    %c0_126 = arith.constant 0 : index
    %225 = vector.load %arg46[%c56_125, %c0_126] : memref<360x512xf32, #tpu.memory_space<vmem>>, vector<8x128xf32>
    tpu.vector_store %arg46[%c56_125, %c0_126], %224 {strides = array<i32>} : memref<360x512xf32, #tpu.memory_space<vmem>>, vector<8x128xf32>,
    %c119_i32_127 = arith.constant 119 : i32
    %226 = tpu.dynamic_rotate %182 by %c119_i32_127 dim 1 : vector<8x128xf32>, i32 -> vector<8x128xf32>
    %227 = vector.extract_strided_slice %5 {offsets = [8, 0, 0], sizes = [1, 1, 128], strides = [1, 1, 1]} : vector<9x1x128xf32> to vector<1x1x128xf32>
    %228 = vector.shape_cast %227 : vector<1x1x128xf32> to vector<1x128xf32>
    %229 = vector.broadcast %228 : vector<1x128xf32> to vector<8x128xf32>
    %230 = arith.mulf %226, %229 : vector<8x128xf32>
    %c64_128 = arith.constant 64 : index
    %c0_129 = arith.constant 0 : index
    %231 = vector.load %arg46[%c64_128, %c0_129] : memref<360x512xf32, #tpu.memory_space<vmem>>, vector<8x128xf32>
    tpu.vector_store %arg46[%c64_128, %c0_129], %230 {strides = array<i32>} : memref<360x512xf32, #tpu.memory_space<vmem>>, vector<8x128xf32>,
    %c0_130 = arith.constant 0 : index
    %c0_131 = arith.constant 0 : index
    %232 = vector.load %arg46[%c0_130, %c0_131] : memref<360x512xf32, #tpu.memory_space<vmem>>, vector<72x128xf32>
    %233 = arith.truncf %232 : vector<72x128xf32> to vector<72x128xbf16>
    %c0_132 = arith.constant 0 : index
    %c0_133 = arith.constant 0 : index
    %234 = vector.load %arg7[%c0_132, %c0_133] : memref<8x72xbf16, #tpu.memory_space<vmem>>, vector<8x72xbf16>
    %cst_134 = arith.constant dense<0.000000e+00> : vector<8x128xf32>
    %235 = tpu.matmul %234, %233, %cst_134 {dimension_numbers = #tpu.dot_dimension_numbers<[1], [0], [0], [1], [0, 0, 1, 1], [], []>} : vector<8x72xbf16>, vector<72x128xbf16>, vector<8x128xf32> -> vector<8x128xf32>
    %c0_135 = arith.constant 0 : index
    %c0_136 = arith.constant 0 : index
    %236 = vector.load %arg8[%c0_135, %c0_136] : memref<8x1xf32, #tpu.memory_space<vmem>>, vector<8x1xf32>
    %237 = vector.broadcast %236 : vector<8x1xf32> to vector<8x128xf32>
    %238 = arith.addf %235, %237 : vector<8x128xf32>
    %cst_137 = arith.constant 0.000000e+00 : f32
    %239 = vector.broadcast %cst_137 : f32 to vector<8x128xf32>
    %240 = arith.maximumf %238, %239 : vector<8x128xf32>
    %c127_i32_138 = arith.constant 127 : i32
    %241 = tpu.dynamic_rotate %240 by %c127_i32_138 dim 1 : vector<8x128xf32>, i32 -> vector<8x128xf32>
    %242 = arith.maximumf %240, %241 : vector<8x128xf32>
    %c120_i32_139 = arith.constant 120 : i32
    %243 = tpu.dynamic_rotate %242 by %c120_i32_139 dim 1 : vector<8x128xf32>, i32 -> vector<8x128xf32>
    %244 = arith.maximumf %242, %243 : vector<8x128xf32>
    %245 = arith.truncf %244 : vector<8x128xf32> to vector<8x128xbf16>
    %c0_140 = arith.constant 0 : index
    %c0_141 = arith.constant 0 : index
    %246 = vector.load %arg39[%c0_140, %c0_141] : memref<128x128xbf16, #tpu.memory_space<vmem>>, vector<128x128xbf16>
    %cst_142 = arith.constant dense<0.000000e+00> : vector<8x128xf32>
    %247 = tpu.matmul %245, %246, %cst_142 {dimension_numbers = #tpu.dot_dimension_numbers<[1], [0], [0], [1], [0, 0, 1, 1], [], []>} : vector<8x128xbf16>, vector<128x128xbf16>, vector<8x128xf32> -> vector<8x128xf32>
    %c5_i32 = arith.constant 5 : i32
    %248 = tpu.dynamic_rotate %247 by %c5_i32 dim 1 : vector<8x128xf32>, i32 -> vector<8x128xf32>
    %249 = vector.extract_strided_slice %6 {offsets = [0, 0, 0], sizes = [1, 1, 128], strides = [1, 1, 1]} : vector<9x1x128xf32> to vector<1x1x128xf32>
    %250 = vector.shape_cast %249 : vector<1x1x128xf32> to vector<1x128xf32>
    %251 = vector.broadcast %250 : vector<1x128xf32> to vector<8x128xf32>
    %252 = arith.mulf %248, %251 : vector<8x128xf32>
    %c0_143 = arith.constant 0 : index
    %c0_144 = arith.constant 0 : index
    %253 = vector.load %arg46[%c0_143, %c0_144] : memref<360x512xf32, #tpu.memory_space<vmem>>, vector<8x128xf32>
    tpu.vector_store %arg46[%c0_143, %c0_144], %252 {strides = array<i32>} : memref<360x512xf32, #tpu.memory_space<vmem>>, vector<8x128xf32>,
    %c4_i32 = arith.constant 4 : i32
    %254 = tpu.dynamic_rotate %247 by %c4_i32 dim 1 : vector<8x128xf32>, i32 -> vector<8x128xf32>
    %255 = vector.extract_strided_slice %6 {offsets = [1, 0, 0], sizes = [1, 1, 128], strides = [1, 1, 1]} : vector<9x1x128xf32> to vector<1x1x128xf32>
    %256 = vector.shape_cast %255 : vector<1x1x128xf32> to vector<1x128xf32>
    %257 = vector.broadcast %256 : vector<1x128xf32> to vector<8x128xf32>
    %258 = arith.mulf %254, %257 : vector<8x128xf32>
    %c8_145 = arith.constant 8 : index
    %c0_146 = arith.constant 0 : index
    %259 = vector.load %arg46[%c8_145, %c0_146] : memref<360x512xf32, #tpu.memory_space<vmem>>, vector<8x128xf32>
    tpu.vector_store %arg46[%c8_145, %c0_146], %258 {strides = array<i32>} : memref<360x512xf32, #tpu.memory_space<vmem>>, vector<8x128xf32>,
    %c3_i32 = arith.constant 3 : i32
    %260 = tpu.dynamic_rotate %247 by %c3_i32 dim 1 : vector<8x128xf32>, i32 -> vector<8x128xf32>
    %261 = vector.extract_strided_slice %6 {offsets = [2, 0, 0], sizes = [1, 1, 128], strides = [1, 1, 1]} : vector<9x1x128xf32> to vector<1x1x128xf32>
    %262 = vector.shape_cast %261 : vector<1x1x128xf32> to vector<1x128xf32>
    %263 = vector.broadcast %262 : vector<1x128xf32> to vector<8x128xf32>
    %264 = arith.mulf %260, %263 : vector<8x128xf32>
    %c16_147 = arith.constant 16 : index
    %c0_148 = arith.constant 0 : index
    %265 = vector.load %arg46[%c16_147, %c0_148] : memref<360x512xf32, #tpu.memory_space<vmem>>, vector<8x128xf32>
    tpu.vector_store %arg46[%c16_147, %c0_148], %264 {strides = array<i32>} : memref<360x512xf32, #tpu.memory_space<vmem>>, vector<8x128xf32>,
    %c1_i32_149 = arith.constant 1 : i32
    %266 = tpu.dynamic_rotate %247 by %c1_i32_149 dim 1 : vector<8x128xf32>, i32 -> vector<8x128xf32>
    %267 = vector.extract_strided_slice %6 {offsets = [3, 0, 0], sizes = [1, 1, 128], strides = [1, 1, 1]} : vector<9x1x128xf32> to vector<1x1x128xf32>
    %268 = vector.shape_cast %267 : vector<1x1x128xf32> to vector<1x128xf32>
    %269 = vector.broadcast %268 : vector<1x128xf32> to vector<8x128xf32>
    %270 = arith.mulf %266, %269 : vector<8x128xf32>
    %c24_150 = arith.constant 24 : index
    %c0_151 = arith.constant 0 : index
    %271 = vector.load %arg46[%c24_150, %c0_151] : memref<360x512xf32, #tpu.memory_space<vmem>>, vector<8x128xf32>
    tpu.vector_store %arg46[%c24_150, %c0_151], %270 {strides = array<i32>} : memref<360x512xf32, #tpu.memory_space<vmem>>, vector<8x128xf32>,
    %c32_152 = arith.constant 32 : index
    %c0_153 = arith.constant 0 : index
    %272 = vector.load %arg46[%c32_152, %c0_153] : memref<360x512xf32, #tpu.memory_space<vmem>>, vector<8x128xf32>
    tpu.vector_store %arg46[%c32_152, %c0_153], %247 {strides = array<i32>} : memref<360x512xf32, #tpu.memory_space<vmem>>, vector<8x128xf32>,
    %c127_i32_154 = arith.constant 127 : i32
    %273 = tpu.dynamic_rotate %247 by %c127_i32_154 dim 1 : vector<8x128xf32>, i32 -> vector<8x128xf32>
    %274 = vector.extract_strided_slice %6 {offsets = [5, 0, 0], sizes = [1, 1, 128], strides = [1, 1, 1]} : vector<9x1x128xf32> to vector<1x1x128xf32>
    %275 = vector.shape_cast %274 : vector<1x1x128xf32> to vector<1x128xf32>
    %276 = vector.broadcast %275 : vector<1x128xf32> to vector<8x128xf32>
    %277 = arith.mulf %273, %276 : vector<8x128xf32>
    %c40_155 = arith.constant 40 : index
    %c0_156 = arith.constant 0 : index
    %278 = vector.load %arg46[%c40_155, %c0_156] : memref<360x512xf32, #tpu.memory_space<vmem>>, vector<8x128xf32>
    tpu.vector_store %arg46[%c40_155, %c0_156], %277 {strides = array<i32>} : memref<360x512xf32, #tpu.memory_space<vmem>>, vector<8x128xf32>,
    %c125_i32 = arith.constant 125 : i32
    %279 = tpu.dynamic_rotate %247 by %c125_i32 dim 1 : vector<8x128xf32>, i32 -> vector<8x128xf32>
    %280 = vector.extract_strided_slice %6 {offsets = [6, 0, 0], sizes = [1, 1, 128], strides = [1, 1, 1]} : vector<9x1x128xf32> to vector<1x1x128xf32>
    %281 = vector.shape_cast %280 : vector<1x1x128xf32> to vector<1x128xf32>
    %282 = vector.broadcast %281 : vector<1x128xf32> to vector<8x128xf32>
    %283 = arith.mulf %279, %282 : vector<8x128xf32>
    %c48_157 = arith.constant 48 : index
    %c0_158 = arith.constant 0 : index
    %284 = vector.load %arg46[%c48_157, %c0_158] : memref<360x512xf32, #tpu.memory_space<vmem>>, vector<8x128xf32>
    tpu.vector_store %arg46[%c48_157, %c0_158], %283 {strides = array<i32>} : memref<360x512xf32, #tpu.memory_space<vmem>>, vector<8x128xf32>,
    %c124_i32 = arith.constant 124 : i32
    %285 = tpu.dynamic_rotate %247 by %c124_i32 dim 1 : vector<8x128xf32>, i32 -> vector<8x128xf32>
    %286 = vector.extract_strided_slice %6 {offsets = [7, 0, 0], sizes = [1, 1, 128], strides = [1, 1, 1]} : vector<9x1x128xf32> to vector<1x1x128xf32>
    %287 = vector.shape_cast %286 : vector<1x1x128xf32> to vector<1x128xf32>
    %288 = vector.broadcast %287 : vector<1x128xf32> to vector<8x128xf32>
    %289 = arith.mulf %285, %288 : vector<8x128xf32>
    %c56_159 = arith.constant 56 : index
    %c0_160 = arith.constant 0 : index
    %290 = vector.load %arg46[%c56_159, %c0_160] : memref<360x512xf32, #tpu.memory_space<vmem>>, vector<8x128xf32>
    tpu.vector_store %arg46[%c56_159, %c0_160], %289 {strides = array<i32>} : memref<360x512xf32, #tpu.memory_space<vmem>>, vector<8x128xf32>,
    %c123_i32 = arith.constant 123 : i32
    %291 = tpu.dynamic_rotate %247 by %c123_i32 dim 1 : vector<8x128xf32>, i32 -> vector<8x128xf32>
    %292 = vector.extract_strided_slice %6 {offsets = [8, 0, 0], sizes = [1, 1, 128], strides = [1, 1, 1]} : vector<9x1x128xf32> to vector<1x1x128xf32>
    %293 = vector.shape_cast %292 : vector<1x1x128xf32> to vector<1x128xf32>
    %294 = vector.broadcast %293 : vector<1x128xf32> to vector<8x128xf32>
    %295 = arith.mulf %291, %294 : vector<8x128xf32>
    %c64_161 = arith.constant 64 : index
    %c0_162 = arith.constant 0 : index
    %296 = vector.load %arg46[%c64_161, %c0_162] : memref<360x512xf32, #tpu.memory_space<vmem>>, vector<8x128xf32>
    tpu.vector_store %arg46[%c64_161, %c0_162], %295 {strides = array<i32>} : memref<360x512xf32, #tpu.memory_space<vmem>>, vector<8x128xf32>,
    %c0_163 = arith.constant 0 : index
    %c0_164 = arith.constant 0 : index
    %297 = vector.load %arg46[%c0_163, %c0_164] : memref<360x512xf32, #tpu.memory_space<vmem>>, vector<72x128xf32>
    %298 = arith.truncf %297 : vector<72x128xf32> to vector<72x128xbf16>
    %c0_165 = arith.constant 0 : index
    %c0_166 = arith.constant 0 : index
    %299 = vector.load %arg9[%c0_165, %c0_166] : memref<16x72xbf16, #tpu.memory_space<vmem>>, vector<16x72xbf16>
    %cst_167 = arith.constant dense<0.000000e+00> : vector<16x128xf32>
    %300 = tpu.matmul %299, %298, %cst_167 {dimension_numbers = #tpu.dot_dimension_numbers<[1], [0], [0], [1], [0, 0, 1, 1], [], []>} : vector<16x72xbf16>, vector<72x128xbf16>, vector<16x128xf32> -> vector<16x128xf32>
    %c0_168 = arith.constant 0 : index
    %c0_169 = arith.constant 0 : index
    %301 = vector.load %arg10[%c0_168, %c0_169] : memref<16x1xf32, #tpu.memory_space<vmem>>, vector<16x1xf32>
    %302 = vector.broadcast %301 : vector<16x1xf32> to vector<16x128xf32>
    %303 = arith.addf %300, %302 : vector<16x128xf32>
    %cst_170 = arith.constant 0.000000e+00 : f32
    %304 = vector.broadcast %cst_170 : f32 to vector<16x128xf32>
    %305 = arith.maximumf %303, %304 : vector<16x128xf32>
    %c5_i32_171 = arith.constant 5 : i32
    %306 = tpu.dynamic_rotate %305 by %c5_i32_171 dim 1 : vector<16x128xf32>, i32 -> vector<16x128xf32>
    %307 = vector.extract_strided_slice %6 {offsets = [0, 0, 0], sizes = [1, 1, 128], strides = [1, 1, 1]} : vector<9x1x128xf32> to vector<1x1x128xf32>
    %308 = vector.shape_cast %307 : vector<1x1x128xf32> to vector<1x128xf32>
    %309 = vector.broadcast %308 : vector<1x128xf32> to vector<16x128xf32>
    %310 = arith.mulf %306, %309 : vector<16x128xf32>
    %c0_172 = arith.constant 0 : index
    %c0_173 = arith.constant 0 : index
    %311 = vector.load %arg46[%c0_172, %c0_173] : memref<360x512xf32, #tpu.memory_space<vmem>>, vector<16x128xf32>
    tpu.vector_store %arg46[%c0_172, %c0_173], %310 {strides = array<i32>} : memref<360x512xf32, #tpu.memory_space<vmem>>, vector<16x128xf32>,
    %c4_i32_174 = arith.constant 4 : i32
    %312 = tpu.dynamic_rotate %305 by %c4_i32_174 dim 1 : vector<16x128xf32>, i32 -> vector<16x128xf32>
    %313 = vector.extract_strided_slice %6 {offsets = [1, 0, 0], sizes = [1, 1, 128], strides = [1, 1, 1]} : vector<9x1x128xf32> to vector<1x1x128xf32>
    %314 = vector.shape_cast %313 : vector<1x1x128xf32> to vector<1x128xf32>
    %315 = vector.broadcast %314 : vector<1x128xf32> to vector<16x128xf32>
    %316 = arith.mulf %312, %315 : vector<16x128xf32>
    %c16_175 = arith.constant 16 : index
    %c0_176 = arith.constant 0 : index
    %317 = vector.load %arg46[%c16_175, %c0_176] : memref<360x512xf32, #tpu.memory_space<vmem>>, vector<16x128xf32>
    tpu.vector_store %arg46[%c16_175, %c0_176], %316 {strides = array<i32>} : memref<360x512xf32, #tpu.memory_space<vmem>>, vector<16x128xf32>,
    %c3_i32_177 = arith.constant 3 : i32
    %318 = tpu.dynamic_rotate %305 by %c3_i32_177 dim 1 : vector<16x128xf32>, i32 -> vector<16x128xf32>
    %319 = vector.extract_strided_slice %6 {offsets = [2, 0, 0], sizes = [1, 1, 128], strides = [1, 1, 1]} : vector<9x1x128xf32> to vector<1x1x128xf32>
    %320 = vector.shape_cast %319 : vector<1x1x128xf32> to vector<1x128xf32>
    %321 = vector.broadcast %320 : vector<1x128xf32> to vector<16x128xf32>
    %322 = arith.mulf %318, %321 : vector<16x128xf32>
    %c32_178 = arith.constant 32 : index
    %c0_179 = arith.constant 0 : index
    %323 = vector.load %arg46[%c32_178, %c0_179] : memref<360x512xf32, #tpu.memory_space<vmem>>, vector<16x128xf32>
    tpu.vector_store %arg46[%c32_178, %c0_179], %322 {strides = array<i32>} : memref<360x512xf32, #tpu.memory_space<vmem>>, vector<16x128xf32>,
    %c1_i32_180 = arith.constant 1 : i32
    %324 = tpu.dynamic_rotate %305 by %c1_i32_180 dim 1 : vector<16x128xf32>, i32 -> vector<16x128xf32>
    %325 = vector.extract_strided_slice %6 {offsets = [3, 0, 0], sizes = [1, 1, 128], strides = [1, 1, 1]} : vector<9x1x128xf32> to vector<1x1x128xf32>
    %326 = vector.shape_cast %325 : vector<1x1x128xf32> to vector<1x128xf32>
    %327 = vector.broadcast %326 : vector<1x128xf32> to vector<16x128xf32>
    %328 = arith.mulf %324, %327 : vector<16x128xf32>
    %c48_181 = arith.constant 48 : index
    %c0_182 = arith.constant 0 : index
    %329 = vector.load %arg46[%c48_181, %c0_182] : memref<360x512xf32, #tpu.memory_space<vmem>>, vector<16x128xf32>
    tpu.vector_store %arg46[%c48_181, %c0_182], %328 {strides = array<i32>} : memref<360x512xf32, #tpu.memory_space<vmem>>, vector<16x128xf32>,
    %c64_183 = arith.constant 64 : index
    %c0_184 = arith.constant 0 : index
    %330 = vector.load %arg46[%c64_183, %c0_184] : memref<360x512xf32, #tpu.memory_space<vmem>>, vector<16x128xf32>
    tpu.vector_store %arg46[%c64_183, %c0_184], %305 {strides = array<i32>} : memref<360x512xf32, #tpu.memory_space<vmem>>, vector<16x128xf32>,
    %c127_i32_185 = arith.constant 127 : i32
    %331 = tpu.dynamic_rotate %305 by %c127_i32_185 dim 1 : vector<16x128xf32>, i32 -> vector<16x128xf32>
    %332 = vector.extract_strided_slice %6 {offsets = [5, 0, 0], sizes = [1, 1, 128], strides = [1, 1, 1]} : vector<9x1x128xf32> to vector<1x1x128xf32>
    %333 = vector.shape_cast %332 : vector<1x1x128xf32> to vector<1x128xf32>
    %334 = vector.broadcast %333 : vector<1x128xf32> to vector<16x128xf32>
    %335 = arith.mulf %331, %334 : vector<16x128xf32>
    %c80 = arith.constant 80 : index
    %c0_186 = arith.constant 0 : index
    %336 = vector.load %arg46[%c80, %c0_186] : memref<360x512xf32, #tpu.memory_space<vmem>>, vector<16x128xf32>
    tpu.vector_store %arg46[%c80, %c0_186], %335 {strides = array<i32>} : memref<360x512xf32, #tpu.memory_space<vmem>>, vector<16x128xf32>,
    %c125_i32_187 = arith.constant 125 : i32
    %337 = tpu.dynamic_rotate %305 by %c125_i32_187 dim 1 : vector<16x128xf32>, i32 -> vector<16x128xf32>
    %338 = vector.extract_strided_slice %6 {offsets = [6, 0, 0], sizes = [1, 1, 128], strides = [1, 1, 1]} : vector<9x1x128xf32> to vector<1x1x128xf32>
    %339 = vector.shape_cast %338 : vector<1x1x128xf32> to vector<1x128xf32>
    %340 = vector.broadcast %339 : vector<1x128xf32> to vector<16x128xf32>
    %341 = arith.mulf %337, %340 : vector<16x128xf32>
    %c96 = arith.constant 96 : index
    %c0_188 = arith.constant 0 : index
    %342 = vector.load %arg46[%c96, %c0_188] : memref<360x512xf32, #tpu.memory_space<vmem>>, vector<16x128xf32>
    tpu.vector_store %arg46[%c96, %c0_188], %341 {strides = array<i32>} : memref<360x512xf32, #tpu.memory_space<vmem>>, vector<16x128xf32>,
    %c124_i32_189 = arith.constant 124 : i32
    %343 = tpu.dynamic_rotate %305 by %c124_i32_189 dim 1 : vector<16x128xf32>, i32 -> vector<16x128xf32>
    %344 = vector.extract_strided_slice %6 {offsets = [7, 0, 0], sizes = [1, 1, 128], strides = [1, 1, 1]} : vector<9x1x128xf32> to vector<1x1x128xf32>
    %345 = vector.shape_cast %344 : vector<1x1x128xf32> to vector<1x128xf32>
    %346 = vector.broadcast %345 : vector<1x128xf32> to vector<16x128xf32>
    %347 = arith.mulf %343, %346 : vector<16x128xf32>
    %c112 = arith.constant 112 : index
    %c0_190 = arith.constant 0 : index
    %348 = vector.load %arg46[%c112, %c0_190] : memref<360x512xf32, #tpu.memory_space<vmem>>, vector<16x128xf32>
    tpu.vector_store %arg46[%c112, %c0_190], %347 {strides = array<i32>} : memref<360x512xf32, #tpu.memory_space<vmem>>, vector<16x128xf32>,
    %c123_i32_191 = arith.constant 123 : i32
    %349 = tpu.dynamic_rotate %305 by %c123_i32_191 dim 1 : vector<16x128xf32>, i32 -> vector<16x128xf32>
    %350 = vector.extract_strided_slice %6 {offsets = [8, 0, 0], sizes = [1, 1, 128], strides = [1, 1, 1]} : vector<9x1x128xf32> to vector<1x1x128xf32>
    %351 = vector.shape_cast %350 : vector<1x1x128xf32> to vector<1x128xf32>
    %352 = vector.broadcast %351 : vector<1x128xf32> to vector<16x128xf32>
    %353 = arith.mulf %349, %352 : vector<16x128xf32>
    %c128 = arith.constant 128 : index
    %c0_192 = arith.constant 0 : index
    %354 = vector.load %arg46[%c128, %c0_192] : memref<360x512xf32, #tpu.memory_space<vmem>>, vector<16x128xf32>
    tpu.vector_store %arg46[%c128, %c0_192], %353 {strides = array<i32>} : memref<360x512xf32, #tpu.memory_space<vmem>>, vector<16x128xf32>,
    %c0_193 = arith.constant 0 : index
    %c0_194 = arith.constant 0 : index
    %355 = vector.load %arg46[%c0_193, %c0_194] : memref<360x512xf32, #tpu.memory_space<vmem>>, vector<144x128xf32>
    %356 = arith.truncf %355 : vector<144x128xf32> to vector<144x128xbf16>
    %c0_195 = arith.constant 0 : index
    %c0_196 = arith.constant 0 : index
    %357 = vector.load %arg11[%c0_195, %c0_196] : memref<16x144xbf16, #tpu.memory_space<vmem>>, vector<16x144xbf16>
    %cst_197 = arith.constant dense<0.000000e+00> : vector<16x128xf32>
    %358 = tpu.matmul %357, %356, %cst_197 {dimension_numbers = #tpu.dot_dimension_numbers<[1], [0], [0], [1], [0, 0, 1, 1], [], []>} : vector<16x144xbf16>, vector<144x128xbf16>, vector<16x128xf32> -> vector<16x128xf32>
    %c0_198 = arith.constant 0 : index
    %c0_199 = arith.constant 0 : index
    %359 = vector.load %arg12[%c0_198, %c0_199] : memref<16x1xf32, #tpu.memory_space<vmem>>, vector<16x1xf32>
    %360 = vector.broadcast %359 : vector<16x1xf32> to vector<16x128xf32>
    %361 = arith.addf %358, %360 : vector<16x128xf32>
    %cst_200 = arith.constant 0.000000e+00 : f32
    %362 = vector.broadcast %cst_200 : f32 to vector<16x128xf32>
    %363 = arith.maximumf %361, %362 : vector<16x128xf32>
    %c5_i32_201 = arith.constant 5 : i32
    %364 = tpu.dynamic_rotate %363 by %c5_i32_201 dim 1 : vector<16x128xf32>, i32 -> vector<16x128xf32>
    %365 = vector.extract_strided_slice %6 {offsets = [0, 0, 0], sizes = [1, 1, 128], strides = [1, 1, 1]} : vector<9x1x128xf32> to vector<1x1x128xf32>
    %366 = vector.shape_cast %365 : vector<1x1x128xf32> to vector<1x128xf32>
    %367 = vector.broadcast %366 : vector<1x128xf32> to vector<16x128xf32>
    %368 = arith.mulf %364, %367 : vector<16x128xf32>
    %c0_202 = arith.constant 0 : index
    %c0_203 = arith.constant 0 : index
    %369 = vector.load %arg46[%c0_202, %c0_203] : memref<360x512xf32, #tpu.memory_space<vmem>>, vector<16x128xf32>
    tpu.vector_store %arg46[%c0_202, %c0_203], %368 {strides = array<i32>} : memref<360x512xf32, #tpu.memory_space<vmem>>, vector<16x128xf32>,
    %c4_i32_204 = arith.constant 4 : i32
    %370 = tpu.dynamic_rotate %363 by %c4_i32_204 dim 1 : vector<16x128xf32>, i32 -> vector<16x128xf32>
    %371 = vector.extract_strided_slice %6 {offsets = [1, 0, 0], sizes = [1, 1, 128], strides = [1, 1, 1]} : vector<9x1x128xf32> to vector<1x1x128xf32>
    %372 = vector.shape_cast %371 : vector<1x1x128xf32> to vector<1x128xf32>
    %373 = vector.broadcast %372 : vector<1x128xf32> to vector<16x128xf32>
    %374 = arith.mulf %370, %373 : vector<16x128xf32>
    %c16_205 = arith.constant 16 : index
    %c0_206 = arith.constant 0 : index
    %375 = vector.load %arg46[%c16_205, %c0_206] : memref<360x512xf32, #tpu.memory_space<vmem>>, vector<16x128xf32>
    tpu.vector_store %arg46[%c16_205, %c0_206], %374 {strides = array<i32>} : memref<360x512xf32, #tpu.memory_space<vmem>>, vector<16x128xf32>,
    %c3_i32_207 = arith.constant 3 : i32
    %376 = tpu.dynamic_rotate %363 by %c3_i32_207 dim 1 : vector<16x128xf32>, i32 -> vector<16x128xf32>
    %377 = vector.extract_strided_slice %6 {offsets = [2, 0, 0], sizes = [1, 1, 128], strides = [1, 1, 1]} : vector<9x1x128xf32> to vector<1x1x128xf32>
    %378 = vector.shape_cast %377 : vector<1x1x128xf32> to vector<1x128xf32>
    %379 = vector.broadcast %378 : vector<1x128xf32> to vector<16x128xf32>
    %380 = arith.mulf %376, %379 : vector<16x128xf32>
    %c32_208 = arith.constant 32 : index
    %c0_209 = arith.constant 0 : index
    %381 = vector.load %arg46[%c32_208, %c0_209] : memref<360x512xf32, #tpu.memory_space<vmem>>, vector<16x128xf32>
    tpu.vector_store %arg46[%c32_208, %c0_209], %380 {strides = array<i32>} : memref<360x512xf32, #tpu.memory_space<vmem>>, vector<16x128xf32>,
    %c1_i32_210 = arith.constant 1 : i32
    %382 = tpu.dynamic_rotate %363 by %c1_i32_210 dim 1 : vector<16x128xf32>, i32 -> vector<16x128xf32>
    %383 = vector.extract_strided_slice %6 {offsets = [3, 0, 0], sizes = [1, 1, 128], strides = [1, 1, 1]} : vector<9x1x128xf32> to vector<1x1x128xf32>
    %384 = vector.shape_cast %383 : vector<1x1x128xf32> to vector<1x128xf32>
    %385 = vector.broadcast %384 : vector<1x128xf32> to vector<16x128xf32>
    %386 = arith.mulf %382, %385 : vector<16x128xf32>
    %c48_211 = arith.constant 48 : index
    %c0_212 = arith.constant 0 : index
    %387 = vector.load %arg46[%c48_211, %c0_212] : memref<360x512xf32, #tpu.memory_space<vmem>>, vector<16x128xf32>
    tpu.vector_store %arg46[%c48_211, %c0_212], %386 {strides = array<i32>} : memref<360x512xf32, #tpu.memory_space<vmem>>, vector<16x128xf32>,
    %c64_213 = arith.constant 64 : index
    %c0_214 = arith.constant 0 : index
    %388 = vector.load %arg46[%c64_213, %c0_214] : memref<360x512xf32, #tpu.memory_space<vmem>>, vector<16x128xf32>
    tpu.vector_store %arg46[%c64_213, %c0_214], %363 {strides = array<i32>} : memref<360x512xf32, #tpu.memory_space<vmem>>, vector<16x128xf32>,
    %c127_i32_215 = arith.constant 127 : i32
    %389 = tpu.dynamic_rotate %363 by %c127_i32_215 dim 1 : vector<16x128xf32>, i32 -> vector<16x128xf32>
    %390 = vector.extract_strided_slice %6 {offsets = [5, 0, 0], sizes = [1, 1, 128], strides = [1, 1, 1]} : vector<9x1x128xf32> to vector<1x1x128xf32>
    %391 = vector.shape_cast %390 : vector<1x1x128xf32> to vector<1x128xf32>
    %392 = vector.broadcast %391 : vector<1x128xf32> to vector<16x128xf32>
    %393 = arith.mulf %389, %392 : vector<16x128xf32>
    %c80_216 = arith.constant 80 : index
    %c0_217 = arith.constant 0 : index
    %394 = vector.load %arg46[%c80_216, %c0_217] : memref<360x512xf32, #tpu.memory_space<vmem>>, vector<16x128xf32>
    tpu.vector_store %arg46[%c80_216, %c0_217], %393 {strides = array<i32>} : memref<360x512xf32, #tpu.memory_space<vmem>>, vector<16x128xf32>,
    %c125_i32_218 = arith.constant 125 : i32
    %395 = tpu.dynamic_rotate %363 by %c125_i32_218 dim 1 : vector<16x128xf32>, i32 -> vector<16x128xf32>
    %396 = vector.extract_strided_slice %6 {offsets = [6, 0, 0], sizes = [1, 1, 128], strides = [1, 1, 1]} : vector<9x1x128xf32> to vector<1x1x128xf32>
    %397 = vector.shape_cast %396 : vector<1x1x128xf32> to vector<1x128xf32>
    %398 = vector.broadcast %397 : vector<1x128xf32> to vector<16x128xf32>
    %399 = arith.mulf %395, %398 : vector<16x128xf32>
    %c96_219 = arith.constant 96 : index
    %c0_220 = arith.constant 0 : index
    %400 = vector.load %arg46[%c96_219, %c0_220] : memref<360x512xf32, #tpu.memory_space<vmem>>, vector<16x128xf32>
    tpu.vector_store %arg46[%c96_219, %c0_220], %399 {strides = array<i32>} : memref<360x512xf32, #tpu.memory_space<vmem>>, vector<16x128xf32>,
    %c124_i32_221 = arith.constant 124 : i32
    %401 = tpu.dynamic_rotate %363 by %c124_i32_221 dim 1 : vector<16x128xf32>, i32 -> vector<16x128xf32>
    %402 = vector.extract_strided_slice %6 {offsets = [7, 0, 0], sizes = [1, 1, 128], strides = [1, 1, 1]} : vector<9x1x128xf32> to vector<1x1x128xf32>
    %403 = vector.shape_cast %402 : vector<1x1x128xf32> to vector<1x128xf32>
    %404 = vector.broadcast %403 : vector<1x128xf32> to vector<16x128xf32>
    %405 = arith.mulf %401, %404 : vector<16x128xf32>
    %c112_222 = arith.constant 112 : index
    %c0_223 = arith.constant 0 : index
    %406 = vector.load %arg46[%c112_222, %c0_223] : memref<360x512xf32, #tpu.memory_space<vmem>>, vector<16x128xf32>
    tpu.vector_store %arg46[%c112_222, %c0_223], %405 {strides = array<i32>} : memref<360x512xf32, #tpu.memory_space<vmem>>, vector<16x128xf32>,
    %c123_i32_224 = arith.constant 123 : i32
    %407 = tpu.dynamic_rotate %363 by %c123_i32_224 dim 1 : vector<16x128xf32>, i32 -> vector<16x128xf32>
    %408 = vector.extract_strided_slice %6 {offsets = [8, 0, 0], sizes = [1, 1, 128], strides = [1, 1, 1]} : vector<9x1x128xf32> to vector<1x1x128xf32>
    %409 = vector.shape_cast %408 : vector<1x1x128xf32> to vector<1x128xf32>
    %410 = vector.broadcast %409 : vector<1x128xf32> to vector<16x128xf32>
    %411 = arith.mulf %407, %410 : vector<16x128xf32>
    %c128_225 = arith.constant 128 : index
    %c0_226 = arith.constant 0 : index
    %412 = vector.load %arg46[%c128_225, %c0_226] : memref<360x512xf32, #tpu.memory_space<vmem>>, vector<16x128xf32>
    tpu.vector_store %arg46[%c128_225, %c0_226], %411 {strides = array<i32>} : memref<360x512xf32, #tpu.memory_space<vmem>>, vector<16x128xf32>,
    %c0_227 = arith.constant 0 : index
    %c0_228 = arith.constant 0 : index
    %413 = vector.load %arg46[%c0_227, %c0_228] : memref<360x512xf32, #tpu.memory_space<vmem>>, vector<144x128xf32>
    %414 = arith.truncf %413 : vector<144x128xf32> to vector<144x128xbf16>
    %c0_229 = arith.constant 0 : index
    %c0_230 = arith.constant 0 : index
    %415 = vector.load %arg13[%c0_229, %c0_230] : memref<16x144xbf16, #tpu.memory_space<vmem>>, vector<16x144xbf16>
    %cst_231 = arith.constant dense<0.000000e+00> : vector<16x128xf32>
    %416 = tpu.matmul %415, %414, %cst_231 {dimension_numbers = #tpu.dot_dimension_numbers<[1], [0], [0], [1], [0, 0, 1, 1], [], []>} : vector<16x144xbf16>, vector<144x128xbf16>, vector<16x128xf32> -> vector<16x128xf32>
    %c0_232 = arith.constant 0 : index
    %c0_233 = arith.constant 0 : index
    %417 = vector.load %arg14[%c0_232, %c0_233] : memref<16x1xf32, #tpu.memory_space<vmem>>, vector<16x1xf32>
    %418 = vector.broadcast %417 : vector<16x1xf32> to vector<16x128xf32>
    %419 = arith.addf %416, %418 : vector<16x128xf32>
    %cst_234 = arith.constant 0.000000e+00 : f32
    %420 = vector.broadcast %cst_234 : f32 to vector<16x128xf32>
    %421 = arith.maximumf %419, %420 : vector<16x128xf32>
    %c127_i32_235 = arith.constant 127 : i32
    %422 = tpu.dynamic_rotate %421 by %c127_i32_235 dim 1 : vector<16x128xf32>, i32 -> vector<16x128xf32>
    %423 = arith.maximumf %421, %422 : vector<16x128xf32>
    %c124_i32_236 = arith.constant 124 : i32
    %424 = tpu.dynamic_rotate %423 by %c124_i32_236 dim 1 : vector<16x128xf32>, i32 -> vector<16x128xf32>
    %425 = arith.maximumf %423, %424 : vector<16x128xf32>
    %426 = arith.truncf %425 : vector<16x128xf32> to vector<16x128xbf16>
    %c0_237 = arith.constant 0 : index
    %c0_238 = arith.constant 0 : index
    %427 = vector.load %arg40[%c0_237, %c0_238] : memref<128x128xbf16, #tpu.memory_space<vmem>>, vector<128x128xbf16>
    %cst_239 = arith.constant dense<0.000000e+00> : vector<16x128xf32>
    %428 = tpu.matmul %426, %427, %cst_239 {dimension_numbers = #tpu.dot_dimension_numbers<[1], [0], [0], [1], [0, 0, 1, 1], [], []>} : vector<16x128xbf16>, vector<128x128xbf16>, vector<16x128xf32> -> vector<16x128xf32>
    %c3_i32_240 = arith.constant 3 : i32
    %429 = tpu.dynamic_rotate %428 by %c3_i32_240 dim 1 : vector<16x128xf32>, i32 -> vector<16x128xf32>
    %430 = vector.extract_strided_slice %7 {offsets = [0, 0, 0], sizes = [1, 1, 128], strides = [1, 1, 1]} : vector<9x1x128xf32> to vector<1x1x128xf32>
    %431 = vector.shape_cast %430 : vector<1x1x128xf32> to vector<1x128xf32>
    %432 = vector.broadcast %431 : vector<1x128xf32> to vector<16x128xf32>
    %433 = arith.mulf %429, %432 : vector<16x128xf32>
    %c0_241 = arith.constant 0 : index
    %c0_242 = arith.constant 0 : index
    %434 = vector.load %arg46[%c0_241, %c0_242] : memref<360x512xf32, #tpu.memory_space<vmem>>, vector<16x128xf32>
    tpu.vector_store %arg46[%c0_241, %c0_242], %433 {strides = array<i32>} : memref<360x512xf32, #tpu.memory_space<vmem>>, vector<16x128xf32>,
    %c2_i32 = arith.constant 2 : i32
    %435 = tpu.dynamic_rotate %428 by %c2_i32 dim 1 : vector<16x128xf32>, i32 -> vector<16x128xf32>
    %436 = vector.extract_strided_slice %7 {offsets = [1, 0, 0], sizes = [1, 1, 128], strides = [1, 1, 1]} : vector<9x1x128xf32> to vector<1x1x128xf32>
    %437 = vector.shape_cast %436 : vector<1x1x128xf32> to vector<1x128xf32>
    %438 = vector.broadcast %437 : vector<1x128xf32> to vector<16x128xf32>
    %439 = arith.mulf %435, %438 : vector<16x128xf32>
    %c16_243 = arith.constant 16 : index
    %c0_244 = arith.constant 0 : index
    %440 = vector.load %arg46[%c16_243, %c0_244] : memref<360x512xf32, #tpu.memory_space<vmem>>, vector<16x128xf32>
    tpu.vector_store %arg46[%c16_243, %c0_244], %439 {strides = array<i32>} : memref<360x512xf32, #tpu.memory_space<vmem>>, vector<16x128xf32>,
    %c1_i32_245 = arith.constant 1 : i32
    %441 = tpu.dynamic_rotate %428 by %c1_i32_245 dim 1 : vector<16x128xf32>, i32 -> vector<16x128xf32>
    %442 = vector.extract_strided_slice %7 {offsets = [2, 0, 0], sizes = [1, 1, 128], strides = [1, 1, 1]} : vector<9x1x128xf32> to vector<1x1x128xf32>
    %443 = vector.shape_cast %442 : vector<1x1x128xf32> to vector<1x128xf32>
    %444 = vector.broadcast %443 : vector<1x128xf32> to vector<16x128xf32>
    %445 = arith.mulf %441, %444 : vector<16x128xf32>
    %c32_246 = arith.constant 32 : index
    %c0_247 = arith.constant 0 : index
    %446 = vector.load %arg46[%c32_246, %c0_247] : memref<360x512xf32, #tpu.memory_space<vmem>>, vector<16x128xf32>
    tpu.vector_store %arg46[%c32_246, %c0_247], %445 {strides = array<i32>} : memref<360x512xf32, #tpu.memory_space<vmem>>, vector<16x128xf32>,
    %c1_i32_248 = arith.constant 1 : i32
    %447 = tpu.dynamic_rotate %428 by %c1_i32_248 dim 1 : vector<16x128xf32>, i32 -> vector<16x128xf32>
    %448 = vector.extract_strided_slice %7 {offsets = [3, 0, 0], sizes = [1, 1, 128], strides = [1, 1, 1]} : vector<9x1x128xf32> to vector<1x1x128xf32>
    %449 = vector.shape_cast %448 : vector<1x1x128xf32> to vector<1x128xf32>
    %450 = vector.broadcast %449 : vector<1x128xf32> to vector<16x128xf32>
    %451 = arith.mulf %447, %450 : vector<16x128xf32>
    %c48_249 = arith.constant 48 : index
    %c0_250 = arith.constant 0 : index
    %452 = vector.load %arg46[%c48_249, %c0_250] : memref<360x512xf32, #tpu.memory_space<vmem>>, vector<16x128xf32>
    tpu.vector_store %arg46[%c48_249, %c0_250], %451 {strides = array<i32>} : memref<360x512xf32, #tpu.memory_space<vmem>>, vector<16x128xf32>,
    %c64_251 = arith.constant 64 : index
    %c0_252 = arith.constant 0 : index
    %453 = vector.load %arg46[%c64_251, %c0_252] : memref<360x512xf32, #tpu.memory_space<vmem>>, vector<16x128xf32>
    tpu.vector_store %arg46[%c64_251, %c0_252], %428 {strides = array<i32>} : memref<360x512xf32, #tpu.memory_space<vmem>>, vector<16x128xf32>,
    %c127_i32_253 = arith.constant 127 : i32
    %454 = tpu.dynamic_rotate %428 by %c127_i32_253 dim 1 : vector<16x128xf32>, i32 -> vector<16x128xf32>
    %455 = vector.extract_strided_slice %7 {offsets = [5, 0, 0], sizes = [1, 1, 128], strides = [1, 1, 1]} : vector<9x1x128xf32> to vector<1x1x128xf32>
    %456 = vector.shape_cast %455 : vector<1x1x128xf32> to vector<1x128xf32>
    %457 = vector.broadcast %456 : vector<1x128xf32> to vector<16x128xf32>
    %458 = arith.mulf %454, %457 : vector<16x128xf32>
    %c80_254 = arith.constant 80 : index
    %c0_255 = arith.constant 0 : index
    %459 = vector.load %arg46[%c80_254, %c0_255] : memref<360x512xf32, #tpu.memory_space<vmem>>, vector<16x128xf32>
    tpu.vector_store %arg46[%c80_254, %c0_255], %458 {strides = array<i32>} : memref<360x512xf32, #tpu.memory_space<vmem>>, vector<16x128xf32>,
    %c127_i32_256 = arith.constant 127 : i32
    %460 = tpu.dynamic_rotate %428 by %c127_i32_256 dim 1 : vector<16x128xf32>, i32 -> vector<16x128xf32>
    %461 = vector.extract_strided_slice %7 {offsets = [6, 0, 0], sizes = [1, 1, 128], strides = [1, 1, 1]} : vector<9x1x128xf32> to vector<1x1x128xf32>
    %462 = vector.shape_cast %461 : vector<1x1x128xf32> to vector<1x128xf32>
    %463 = vector.broadcast %462 : vector<1x128xf32> to vector<16x128xf32>
    %464 = arith.mulf %460, %463 : vector<16x128xf32>
    %c96_257 = arith.constant 96 : index
    %c0_258 = arith.constant 0 : index
    %465 = vector.load %arg46[%c96_257, %c0_258] : memref<360x512xf32, #tpu.memory_space<vmem>>, vector<16x128xf32>
    tpu.vector_store %arg46[%c96_257, %c0_258], %464 {strides = array<i32>} : memref<360x512xf32, #tpu.memory_space<vmem>>, vector<16x128xf32>,
    %c126_i32 = arith.constant 126 : i32
    %466 = tpu.dynamic_rotate %428 by %c126_i32 dim 1 : vector<16x128xf32>, i32 -> vector<16x128xf32>
    %467 = vector.extract_strided_slice %7 {offsets = [7, 0, 0], sizes = [1, 1, 128], strides = [1, 1, 1]} : vector<9x1x128xf32> to vector<1x1x128xf32>
    %468 = vector.shape_cast %467 : vector<1x1x128xf32> to vector<1x128xf32>
    %469 = vector.broadcast %468 : vector<1x128xf32> to vector<16x128xf32>
    %470 = arith.mulf %466, %469 : vector<16x128xf32>
    %c112_259 = arith.constant 112 : index
    %c0_260 = arith.constant 0 : index
    %471 = vector.load %arg46[%c112_259, %c0_260] : memref<360x512xf32, #tpu.memory_space<vmem>>, vector<16x128xf32>
    tpu.vector_store %arg46[%c112_259, %c0_260], %470 {strides = array<i32>} : memref<360x512xf32, #tpu.memory_space<vmem>>, vector<16x128xf32>,
    %c125_i32_261 = arith.constant 125 : i32
    %472 = tpu.dynamic_rotate %428 by %c125_i32_261 dim 1 : vector<16x128xf32>, i32 -> vector<16x128xf32>
    %473 = vector.extract_strided_slice %7 {offsets = [8, 0, 0], sizes = [1, 1, 128], strides = [1, 1, 1]} : vector<9x1x128xf32> to vector<1x1x128xf32>
    %474 = vector.shape_cast %473 : vector<1x1x128xf32> to vector<1x128xf32>
    %475 = vector.broadcast %474 : vector<1x128xf32> to vector<16x128xf32>
    %476 = arith.mulf %472, %475 : vector<16x128xf32>
    %c128_262 = arith.constant 128 : index
    %c0_263 = arith.constant 0 : index
    %477 = vector.load %arg46[%c128_262, %c0_263] : memref<360x512xf32, #tpu.memory_space<vmem>>, vector<16x128xf32>
    tpu.vector_store %arg46[%c128_262, %c0_263], %476 {strides = array<i32>} : memref<360x512xf32, #tpu.memory_space<vmem>>, vector<16x128xf32>,
    %c0_264 = arith.constant 0 : index
    %c0_265 = arith.constant 0 : index
    %478 = vector.load %arg46[%c0_264, %c0_265] : memref<360x512xf32, #tpu.memory_space<vmem>>, vector<144x128xf32>
    %479 = arith.truncf %478 : vector<144x128xf32> to vector<144x128xbf16>
    %c0_266 = arith.constant 0 : index
    %c0_267 = arith.constant 0 : index
    %480 = vector.load %arg15[%c0_266, %c0_267] : memref<32x144xbf16, #tpu.memory_space<vmem>>, vector<32x144xbf16>
    %cst_268 = arith.constant dense<0.000000e+00> : vector<32x128xf32>
    %481 = tpu.matmul %480, %479, %cst_268 {dimension_numbers = #tpu.dot_dimension_numbers<[1], [0], [0], [1], [0, 0, 1, 1], [], []>} : vector<32x144xbf16>, vector<144x128xbf16>, vector<32x128xf32> -> vector<32x128xf32>
    %c0_269 = arith.constant 0 : index
    %c0_270 = arith.constant 0 : index
    %482 = vector.load %arg16[%c0_269, %c0_270] : memref<32x1xf32, #tpu.memory_space<vmem>>, vector<32x1xf32>
    %483 = vector.broadcast %482 : vector<32x1xf32> to vector<32x128xf32>
    %484 = arith.addf %481, %483 : vector<32x128xf32>
    %cst_271 = arith.constant 0.000000e+00 : f32
    %485 = vector.broadcast %cst_271 : f32 to vector<32x128xf32>
    %486 = arith.maximumf %484, %485 : vector<32x128xf32>
    %c3_i32_272 = arith.constant 3 : i32
    %487 = tpu.dynamic_rotate %486 by %c3_i32_272 dim 1 : vector<32x128xf32>, i32 -> vector<32x128xf32>
    %488 = vector.extract_strided_slice %7 {offsets = [0, 0, 0], sizes = [1, 1, 128], strides = [1, 1, 1]} : vector<9x1x128xf32> to vector<1x1x128xf32>
    %489 = vector.shape_cast %488 : vector<1x1x128xf32> to vector<1x128xf32>
    %490 = vector.broadcast %489 : vector<1x128xf32> to vector<32x128xf32>
    %491 = arith.mulf %487, %490 : vector<32x128xf32>
    %c0_273 = arith.constant 0 : index
    %c0_274 = arith.constant 0 : index
    %492 = vector.load %arg46[%c0_273, %c0_274] : memref<360x512xf32, #tpu.memory_space<vmem>>, vector<32x128xf32>
    tpu.vector_store %arg46[%c0_273, %c0_274], %491 {strides = array<i32>} : memref<360x512xf32, #tpu.memory_space<vmem>>, vector<32x128xf32>,
    %c2_i32_275 = arith.constant 2 : i32
    %493 = tpu.dynamic_rotate %486 by %c2_i32_275 dim 1 : vector<32x128xf32>, i32 -> vector<32x128xf32>
    %494 = vector.extract_strided_slice %7 {offsets = [1, 0, 0], sizes = [1, 1, 128], strides = [1, 1, 1]} : vector<9x1x128xf32> to vector<1x1x128xf32>
    %495 = vector.shape_cast %494 : vector<1x1x128xf32> to vector<1x128xf32>
    %496 = vector.broadcast %495 : vector<1x128xf32> to vector<32x128xf32>
    %497 = arith.mulf %493, %496 : vector<32x128xf32>
    %c32_276 = arith.constant 32 : index
    %c0_277 = arith.constant 0 : index
    %498 = vector.load %arg46[%c32_276, %c0_277] : memref<360x512xf32, #tpu.memory_space<vmem>>, vector<32x128xf32>
    tpu.vector_store %arg46[%c32_276, %c0_277], %497 {strides = array<i32>} : memref<360x512xf32, #tpu.memory_space<vmem>>, vector<32x128xf32>,
    %c1_i32_278 = arith.constant 1 : i32
    %499 = tpu.dynamic_rotate %486 by %c1_i32_278 dim 1 : vector<32x128xf32>, i32 -> vector<32x128xf32>
    %500 = vector.extract_strided_slice %7 {offsets = [2, 0, 0], sizes = [1, 1, 128], strides = [1, 1, 1]} : vector<9x1x128xf32> to vector<1x1x128xf32>
    %501 = vector.shape_cast %500 : vector<1x1x128xf32> to vector<1x128xf32>
    %502 = vector.broadcast %501 : vector<1x128xf32> to vector<32x128xf32>
    %503 = arith.mulf %499, %502 : vector<32x128xf32>
    %c64_279 = arith.constant 64 : index
    %c0_280 = arith.constant 0 : index
    %504 = vector.load %arg46[%c64_279, %c0_280] : memref<360x512xf32, #tpu.memory_space<vmem>>, vector<32x128xf32>
    tpu.vector_store %arg46[%c64_279, %c0_280], %503 {strides = array<i32>} : memref<360x512xf32, #tpu.memory_space<vmem>>, vector<32x128xf32>,
    %c1_i32_281 = arith.constant 1 : i32
    %505 = tpu.dynamic_rotate %486 by %c1_i32_281 dim 1 : vector<32x128xf32>, i32 -> vector<32x128xf32>
    %506 = vector.extract_strided_slice %7 {offsets = [3, 0, 0], sizes = [1, 1, 128], strides = [1, 1, 1]} : vector<9x1x128xf32> to vector<1x1x128xf32>
    %507 = vector.shape_cast %506 : vector<1x1x128xf32> to vector<1x128xf32>
    %508 = vector.broadcast %507 : vector<1x128xf32> to vector<32x128xf32>
    %509 = arith.mulf %505, %508 : vector<32x128xf32>
    %c96_282 = arith.constant 96 : index
    %c0_283 = arith.constant 0 : index
    %510 = vector.load %arg46[%c96_282, %c0_283] : memref<360x512xf32, #tpu.memory_space<vmem>>, vector<32x128xf32>
    tpu.vector_store %arg46[%c96_282, %c0_283], %509 {strides = array<i32>} : memref<360x512xf32, #tpu.memory_space<vmem>>, vector<32x128xf32>,
    %c128_284 = arith.constant 128 : index
    %c0_285 = arith.constant 0 : index
    %511 = vector.load %arg46[%c128_284, %c0_285] : memref<360x512xf32, #tpu.memory_space<vmem>>, vector<32x128xf32>
    tpu.vector_store %arg46[%c128_284, %c0_285], %486 {strides = array<i32>} : memref<360x512xf32, #tpu.memory_space<vmem>>, vector<32x128xf32>,
    %c127_i32_286 = arith.constant 127 : i32
    %512 = tpu.dynamic_rotate %486 by %c127_i32_286 dim 1 : vector<32x128xf32>, i32 -> vector<32x128xf32>
    %513 = vector.extract_strided_slice %7 {offsets = [5, 0, 0], sizes = [1, 1, 128], strides = [1, 1, 1]} : vector<9x1x128xf32> to vector<1x1x128xf32>
    %514 = vector.shape_cast %513 : vector<1x1x128xf32> to vector<1x128xf32>
    %515 = vector.broadcast %514 : vector<1x128xf32> to vector<32x128xf32>
    %516 = arith.mulf %512, %515 : vector<32x128xf32>
    %c160 = arith.constant 160 : index
    %c0_287 = arith.constant 0 : index
    %517 = vector.load %arg46[%c160, %c0_287] : memref<360x512xf32, #tpu.memory_space<vmem>>, vector<32x128xf32>
    tpu.vector_store %arg46[%c160, %c0_287], %516 {strides = array<i32>} : memref<360x512xf32, #tpu.memory_space<vmem>>, vector<32x128xf32>,
    %c127_i32_288 = arith.constant 127 : i32
    %518 = tpu.dynamic_rotate %486 by %c127_i32_288 dim 1 : vector<32x128xf32>, i32 -> vector<32x128xf32>
    %519 = vector.extract_strided_slice %7 {offsets = [6, 0, 0], sizes = [1, 1, 128], strides = [1, 1, 1]} : vector<9x1x128xf32> to vector<1x1x128xf32>
    %520 = vector.shape_cast %519 : vector<1x1x128xf32> to vector<1x128xf32>
    %521 = vector.broadcast %520 : vector<1x128xf32> to vector<32x128xf32>
    %522 = arith.mulf %518, %521 : vector<32x128xf32>
    %c192 = arith.constant 192 : index
    %c0_289 = arith.constant 0 : index
    %523 = vector.load %arg46[%c192, %c0_289] : memref<360x512xf32, #tpu.memory_space<vmem>>, vector<32x128xf32>
    tpu.vector_store %arg46[%c192, %c0_289], %522 {strides = array<i32>} : memref<360x512xf32, #tpu.memory_space<vmem>>, vector<32x128xf32>,
    %c126_i32_290 = arith.constant 126 : i32
    %524 = tpu.dynamic_rotate %486 by %c126_i32_290 dim 1 : vector<32x128xf32>, i32 -> vector<32x128xf32>
    %525 = vector.extract_strided_slice %7 {offsets = [7, 0, 0], sizes = [1, 1, 128], strides = [1, 1, 1]} : vector<9x1x128xf32> to vector<1x1x128xf32>
    %526 = vector.shape_cast %525 : vector<1x1x128xf32> to vector<1x128xf32>
    %527 = vector.broadcast %526 : vector<1x128xf32> to vector<32x128xf32>
    %528 = arith.mulf %524, %527 : vector<32x128xf32>
    %c224 = arith.constant 224 : index
    %c0_291 = arith.constant 0 : index
    %529 = vector.load %arg46[%c224, %c0_291] : memref<360x512xf32, #tpu.memory_space<vmem>>, vector<32x128xf32>
    tpu.vector_store %arg46[%c224, %c0_291], %528 {strides = array<i32>} : memref<360x512xf32, #tpu.memory_space<vmem>>, vector<32x128xf32>,
    %c125_i32_292 = arith.constant 125 : i32
    %530 = tpu.dynamic_rotate %486 by %c125_i32_292 dim 1 : vector<32x128xf32>, i32 -> vector<32x128xf32>
    %531 = vector.extract_strided_slice %7 {offsets = [8, 0, 0], sizes = [1, 1, 128], strides = [1, 1, 1]} : vector<9x1x128xf32> to vector<1x1x128xf32>
    %532 = vector.shape_cast %531 : vector<1x1x128xf32> to vector<1x128xf32>
    %533 = vector.broadcast %532 : vector<1x128xf32> to vector<32x128xf32>
    %534 = arith.mulf %530, %533 : vector<32x128xf32>
    %c256 = arith.constant 256 : index
    %c0_293 = arith.constant 0 : index
    %535 = vector.load %arg46[%c256, %c0_293] : memref<360x512xf32, #tpu.memory_space<vmem>>, vector<32x128xf32>
    tpu.vector_store %arg46[%c256, %c0_293], %534 {strides = array<i32>} : memref<360x512xf32, #tpu.memory_space<vmem>>, vector<32x128xf32>,
    %c0_294 = arith.constant 0 : index
    %c0_295 = arith.constant 0 : index
    %536 = vector.load %arg46[%c0_294, %c0_295] : memref<360x512xf32, #tpu.memory_space<vmem>>, vector<288x128xf32>
    %537 = arith.truncf %536 : vector<288x128xf32> to vector<288x128xbf16>
    %c0_296 = arith.constant 0 : index
    %c0_297 = arith.constant 0 : index
    %538 = vector.load %arg17[%c0_296, %c0_297] : memref<32x288xbf16, #tpu.memory_space<vmem>>, vector<32x288xbf16>
    %cst_298 = arith.constant dense<0.000000e+00> : vector<32x128xf32>
    %539 = tpu.matmul %538, %537, %cst_298 {dimension_numbers = #tpu.dot_dimension_numbers<[1], [0], [0], [1], [0, 0, 1, 1], [], []>} : vector<32x288xbf16>, vector<288x128xbf16>, vector<32x128xf32> -> vector<32x128xf32>
    %c0_299 = arith.constant 0 : index
    %c0_300 = arith.constant 0 : index
    %540 = vector.load %arg18[%c0_299, %c0_300] : memref<32x1xf32, #tpu.memory_space<vmem>>, vector<32x1xf32>
    %541 = vector.broadcast %540 : vector<32x1xf32> to vector<32x128xf32>
    %542 = arith.addf %539, %541 : vector<32x128xf32>
    %cst_301 = arith.constant 0.000000e+00 : f32
    %543 = vector.broadcast %cst_301 : f32 to vector<32x128xf32>
    %544 = arith.maximumf %542, %543 : vector<32x128xf32>
    %c3_i32_302 = arith.constant 3 : i32
    %545 = tpu.dynamic_rotate %544 by %c3_i32_302 dim 1 : vector<32x128xf32>, i32 -> vector<32x128xf32>
    %546 = vector.extract_strided_slice %7 {offsets = [0, 0, 0], sizes = [1, 1, 128], strides = [1, 1, 1]} : vector<9x1x128xf32> to vector<1x1x128xf32>
    %547 = vector.shape_cast %546 : vector<1x1x128xf32> to vector<1x128xf32>
    %548 = vector.broadcast %547 : vector<1x128xf32> to vector<32x128xf32>
    %549 = arith.mulf %545, %548 : vector<32x128xf32>
    %c0_303 = arith.constant 0 : index
    %c0_304 = arith.constant 0 : index
    %550 = vector.load %arg46[%c0_303, %c0_304] : memref<360x512xf32, #tpu.memory_space<vmem>>, vector<32x128xf32>
    tpu.vector_store %arg46[%c0_303, %c0_304], %549 {strides = array<i32>} : memref<360x512xf32, #tpu.memory_space<vmem>>, vector<32x128xf32>,
    %c2_i32_305 = arith.constant 2 : i32
    %551 = tpu.dynamic_rotate %544 by %c2_i32_305 dim 1 : vector<32x128xf32>, i32 -> vector<32x128xf32>
    %552 = vector.extract_strided_slice %7 {offsets = [1, 0, 0], sizes = [1, 1, 128], strides = [1, 1, 1]} : vector<9x1x128xf32> to vector<1x1x128xf32>
    %553 = vector.shape_cast %552 : vector<1x1x128xf32> to vector<1x128xf32>
    %554 = vector.broadcast %553 : vector<1x128xf32> to vector<32x128xf32>
    %555 = arith.mulf %551, %554 : vector<32x128xf32>
    %c32_306 = arith.constant 32 : index
    %c0_307 = arith.constant 0 : index
    %556 = vector.load %arg46[%c32_306, %c0_307] : memref<360x512xf32, #tpu.memory_space<vmem>>, vector<32x128xf32>
    tpu.vector_store %arg46[%c32_306, %c0_307], %555 {strides = array<i32>} : memref<360x512xf32, #tpu.memory_space<vmem>>, vector<32x128xf32>,
    %c1_i32_308 = arith.constant 1 : i32
    %557 = tpu.dynamic_rotate %544 by %c1_i32_308 dim 1 : vector<32x128xf32>, i32 -> vector<32x128xf32>
    %558 = vector.extract_strided_slice %7 {offsets = [2, 0, 0], sizes = [1, 1, 128], strides = [1, 1, 1]} : vector<9x1x128xf32> to vector<1x1x128xf32>
    %559 = vector.shape_cast %558 : vector<1x1x128xf32> to vector<1x128xf32>
    %560 = vector.broadcast %559 : vector<1x128xf32> to vector<32x128xf32>
    %561 = arith.mulf %557, %560 : vector<32x128xf32>
    %c64_309 = arith.constant 64 : index
    %c0_310 = arith.constant 0 : index
    %562 = vector.load %arg46[%c64_309, %c0_310] : memref<360x512xf32, #tpu.memory_space<vmem>>, vector<32x128xf32>
    tpu.vector_store %arg46[%c64_309, %c0_310], %561 {strides = array<i32>} : memref<360x512xf32, #tpu.memory_space<vmem>>, vector<32x128xf32>,
    %c1_i32_311 = arith.constant 1 : i32
    %563 = tpu.dynamic_rotate %544 by %c1_i32_311 dim 1 : vector<32x128xf32>, i32 -> vector<32x128xf32>
    %564 = vector.extract_strided_slice %7 {offsets = [3, 0, 0], sizes = [1, 1, 128], strides = [1, 1, 1]} : vector<9x1x128xf32> to vector<1x1x128xf32>
    %565 = vector.shape_cast %564 : vector<1x1x128xf32> to vector<1x128xf32>
    %566 = vector.broadcast %565 : vector<1x128xf32> to vector<32x128xf32>
    %567 = arith.mulf %563, %566 : vector<32x128xf32>
    %c96_312 = arith.constant 96 : index
    %c0_313 = arith.constant 0 : index
    %568 = vector.load %arg46[%c96_312, %c0_313] : memref<360x512xf32, #tpu.memory_space<vmem>>, vector<32x128xf32>
    tpu.vector_store %arg46[%c96_312, %c0_313], %567 {strides = array<i32>} : memref<360x512xf32, #tpu.memory_space<vmem>>, vector<32x128xf32>,
    %c128_314 = arith.constant 128 : index
    %c0_315 = arith.constant 0 : index
    %569 = vector.load %arg46[%c128_314, %c0_315] : memref<360x512xf32, #tpu.memory_space<vmem>>, vector<32x128xf32>
    tpu.vector_store %arg46[%c128_314, %c0_315], %544 {strides = array<i32>} : memref<360x512xf32, #tpu.memory_space<vmem>>, vector<32x128xf32>,
    %c127_i32_316 = arith.constant 127 : i32
    %570 = tpu.dynamic_rotate %544 by %c127_i32_316 dim 1 : vector<32x128xf32>, i32 -> vector<32x128xf32>
    %571 = vector.extract_strided_slice %7 {offsets = [5, 0, 0], sizes = [1, 1, 128], strides = [1, 1, 1]} : vector<9x1x128xf32> to vector<1x1x128xf32>
    %572 = vector.shape_cast %571 : vector<1x1x128xf32> to vector<1x128xf32>
    %573 = vector.broadcast %572 : vector<1x128xf32> to vector<32x128xf32>
    %574 = arith.mulf %570, %573 : vector<32x128xf32>
    %c160_317 = arith.constant 160 : index
    %c0_318 = arith.constant 0 : index
    %575 = vector.load %arg46[%c160_317, %c0_318] : memref<360x512xf32, #tpu.memory_space<vmem>>, vector<32x128xf32>
    tpu.vector_store %arg46[%c160_317, %c0_318], %574 {strides = array<i32>} : memref<360x512xf32, #tpu.memory_space<vmem>>, vector<32x128xf32>,
    %c127_i32_319 = arith.constant 127 : i32
    %576 = tpu.dynamic_rotate %544 by %c127_i32_319 dim 1 : vector<32x128xf32>, i32 -> vector<32x128xf32>
    %577 = vector.extract_strided_slice %7 {offsets = [6, 0, 0], sizes = [1, 1, 128], strides = [1, 1, 1]} : vector<9x1x128xf32> to vector<1x1x128xf32>
    %578 = vector.shape_cast %577 : vector<1x1x128xf32> to vector<1x128xf32>
    %579 = vector.broadcast %578 : vector<1x128xf32> to vector<32x128xf32>
    %580 = arith.mulf %576, %579 : vector<32x128xf32>
    %c192_320 = arith.constant 192 : index
    %c0_321 = arith.constant 0 : index
    %581 = vector.load %arg46[%c192_320, %c0_321] : memref<360x512xf32, #tpu.memory_space<vmem>>, vector<32x128xf32>
    tpu.vector_store %arg46[%c192_320, %c0_321], %580 {strides = array<i32>} : memref<360x512xf32, #tpu.memory_space<vmem>>, vector<32x128xf32>,
    %c126_i32_322 = arith.constant 126 : i32
    %582 = tpu.dynamic_rotate %544 by %c126_i32_322 dim 1 : vector<32x128xf32>, i32 -> vector<32x128xf32>
    %583 = vector.extract_strided_slice %7 {offsets = [7, 0, 0], sizes = [1, 1, 128], strides = [1, 1, 1]} : vector<9x1x128xf32> to vector<1x1x128xf32>
    %584 = vector.shape_cast %583 : vector<1x1x128xf32> to vector<1x128xf32>
    %585 = vector.broadcast %584 : vector<1x128xf32> to vector<32x128xf32>
    %586 = arith.mulf %582, %585 : vector<32x128xf32>
    %c224_323 = arith.constant 224 : index
    %c0_324 = arith.constant 0 : index
    %587 = vector.load %arg46[%c224_323, %c0_324] : memref<360x512xf32, #tpu.memory_space<vmem>>, vector<32x128xf32>
    tpu.vector_store %arg46[%c224_323, %c0_324], %586 {strides = array<i32>} : memref<360x512xf32, #tpu.memory_space<vmem>>, vector<32x128xf32>,
    %c125_i32_325 = arith.constant 125 : i32
    %588 = tpu.dynamic_rotate %544 by %c125_i32_325 dim 1 : vector<32x128xf32>, i32 -> vector<32x128xf32>
    %589 = vector.extract_strided_slice %7 {offsets = [8, 0, 0], sizes = [1, 1, 128], strides = [1, 1, 1]} : vector<9x1x128xf32> to vector<1x1x128xf32>
    %590 = vector.shape_cast %589 : vector<1x1x128xf32> to vector<1x128xf32>
    %591 = vector.broadcast %590 : vector<1x128xf32> to vector<32x128xf32>
    %592 = arith.mulf %588, %591 : vector<32x128xf32>
    %c256_326 = arith.constant 256 : index
    %c0_327 = arith.constant 0 : index
    %593 = vector.load %arg46[%c256_326, %c0_327] : memref<360x512xf32, #tpu.memory_space<vmem>>, vector<32x128xf32>
    tpu.vector_store %arg46[%c256_326, %c0_327], %592 {strides = array<i32>} : memref<360x512xf32, #tpu.memory_space<vmem>>, vector<32x128xf32>,
    %c0_328 = arith.constant 0 : index
    %c0_329 = arith.constant 0 : index
    %594 = vector.load %arg46[%c0_328, %c0_329] : memref<360x512xf32, #tpu.memory_space<vmem>>, vector<288x128xf32>
    %595 = arith.truncf %594 : vector<288x128xf32> to vector<288x128xbf16>
    %c0_330 = arith.constant 0 : index
    %c0_331 = arith.constant 0 : index
    %596 = vector.load %arg19[%c0_330, %c0_331] : memref<32x288xbf16, #tpu.memory_space<vmem>>, vector<32x288xbf16>
    %cst_332 = arith.constant dense<0.000000e+00> : vector<32x128xf32>
    %597 = tpu.matmul %596, %595, %cst_332 {dimension_numbers = #tpu.dot_dimension_numbers<[1], [0], [0], [1], [0, 0, 1, 1], [], []>} : vector<32x288xbf16>, vector<288x128xbf16>, vector<32x128xf32> -> vector<32x128xf32>
    %c0_333 = arith.constant 0 : index
    %c0_334 = arith.constant 0 : index
    %598 = vector.load %arg20[%c0_333, %c0_334] : memref<32x1xf32, #tpu.memory_space<vmem>>, vector<32x1xf32>
    %599 = vector.broadcast %598 : vector<32x1xf32> to vector<32x128xf32>
    %600 = arith.addf %597, %599 : vector<32x128xf32>
    %cst_335 = arith.constant 0.000000e+00 : f32
    %601 = vector.broadcast %cst_335 : f32 to vector<32x128xf32>
    %602 = arith.maximumf %600, %601 : vector<32x128xf32>
    %c0_336 = arith.constant 0 : index
    %c0_337 = arith.constant 0 : index
    %603 = vector.load %arg21[%c0_336, %c0_337] : memref<16x32xbf16, #tpu.memory_space<vmem>>, vector<16x32xbf16>
    %604 = arith.truncf %602 : vector<32x128xf32> to vector<32x128xbf16>
    %cst_338 = arith.constant dense<0.000000e+00> : vector<16x128xf32>
    %605 = tpu.matmul %603, %604, %cst_338 {dimension_numbers = #tpu.dot_dimension_numbers<[1], [0], [0], [1], [0, 0, 1, 1], [], []>} : vector<16x32xbf16>, vector<32x128xbf16>, vector<16x128xf32> -> vector<16x128xf32>
    %c0_339 = arith.constant 0 : index
    %c0_340 = arith.constant 0 : index
    %606 = vector.load %arg22[%c0_339, %c0_340] : memref<16x1xf32, #tpu.memory_space<vmem>>, vector<16x1xf32>
    %607 = vector.broadcast %606 : vector<16x1xf32> to vector<16x128xf32>
    %608 = arith.addf %605, %607 : vector<16x128xf32>
    %cst_341 = arith.constant 0.000000e+00 : f32
    %609 = vector.broadcast %cst_341 : f32 to vector<16x128xf32>
    %610 = arith.maximumf %608, %609 : vector<16x128xf32>
    %611 = arith.truncf %610 : vector<16x128xf32> to vector<16x128xbf16>
    %c0_342 = arith.constant 0 : index
    %c0_343 = arith.constant 0 : index
    %612 = vector.load %arg41[%c0_342, %c0_343] : memref<128x128xbf16, #tpu.memory_space<vmem>>, vector<128x128xbf16>
    %cst_344 = arith.constant dense<0.000000e+00> : vector<16x128xf32>
    %613 = tpu.matmul %611, %612, %cst_344 {dimension_numbers = #tpu.dot_dimension_numbers<[1], [0], [0], [1], [0, 0, 1, 1], [], []>} : vector<16x128xbf16>, vector<128x128xbf16>, vector<16x128xf32> -> vector<16x128xf32>
    %614 = arith.truncf %613 : vector<16x128xf32> to vector<16x128xbf16>
    %c0_345 = arith.constant 0 : index
    %c0_346 = arith.constant 0 : index
    %615 = vector.load %arg43[%c0_345, %c0_346] : memref<128x512xbf16, #tpu.memory_space<vmem>>, vector<128x512xbf16>
    %cst_347 = arith.constant dense<0.000000e+00> : vector<16x512xf32>
    %616 = tpu.matmul %614, %615, %cst_347 {dimension_numbers = #tpu.dot_dimension_numbers<[1], [0], [0], [1], [0, 0, 1, 1], [], []>} : vector<16x128xbf16>, vector<128x512xbf16>, vector<16x512xf32> -> vector<16x512xf32>
    %c0_348 = arith.constant 0 : index
    %c0_349 = arith.constant 0 : index
    %617 = vector.load %arg47[%c0_348, %c0_349] : memref<40x512xf32, #tpu.memory_space<vmem>>, vector<16x512xf32>
    tpu.vector_store %arg47[%c0_348, %c0_349], %616 {strides = array<i32>} : memref<40x512xf32, #tpu.memory_space<vmem>>, vector<16x512xf32>,
    %618 = arith.addf %613, %421 : vector<16x128xf32>
    %c5_i32_350 = arith.constant 5 : i32
    %619 = tpu.dynamic_rotate %618 by %c5_i32_350 dim 1 : vector<16x128xf32>, i32 -> vector<16x128xf32>
    %620 = vector.extract_strided_slice %6 {offsets = [0, 0, 0], sizes = [1, 1, 128], strides = [1, 1, 1]} : vector<9x1x128xf32> to vector<1x1x128xf32>
    %621 = vector.shape_cast %620 : vector<1x1x128xf32> to vector<1x128xf32>
    %622 = vector.broadcast %621 : vector<1x128xf32> to vector<16x128xf32>
    %623 = arith.mulf %619, %622 : vector<16x128xf32>
    %c0_351 = arith.constant 0 : index
    %c0_352 = arith.constant 0 : index
    %624 = vector.load %arg46[%c0_351, %c0_352] : memref<360x512xf32, #tpu.memory_space<vmem>>, vector<16x128xf32>
    tpu.vector_store %arg46[%c0_351, %c0_352], %623 {strides = array<i32>} : memref<360x512xf32, #tpu.memory_space<vmem>>, vector<16x128xf32>,
    %c4_i32_353 = arith.constant 4 : i32
    %625 = tpu.dynamic_rotate %618 by %c4_i32_353 dim 1 : vector<16x128xf32>, i32 -> vector<16x128xf32>
    %626 = vector.extract_strided_slice %6 {offsets = [1, 0, 0], sizes = [1, 1, 128], strides = [1, 1, 1]} : vector<9x1x128xf32> to vector<1x1x128xf32>
    %627 = vector.shape_cast %626 : vector<1x1x128xf32> to vector<1x128xf32>
    %628 = vector.broadcast %627 : vector<1x128xf32> to vector<16x128xf32>
    %629 = arith.mulf %625, %628 : vector<16x128xf32>
    %c16_354 = arith.constant 16 : index
    %c0_355 = arith.constant 0 : index
    %630 = vector.load %arg46[%c16_354, %c0_355] : memref<360x512xf32, #tpu.memory_space<vmem>>, vector<16x128xf32>
    tpu.vector_store %arg46[%c16_354, %c0_355], %629 {strides = array<i32>} : memref<360x512xf32, #tpu.memory_space<vmem>>, vector<16x128xf32>,
    %c3_i32_356 = arith.constant 3 : i32
    %631 = tpu.dynamic_rotate %618 by %c3_i32_356 dim 1 : vector<16x128xf32>, i32 -> vector<16x128xf32>
    %632 = vector.extract_strided_slice %6 {offsets = [2, 0, 0], sizes = [1, 1, 128], strides = [1, 1, 1]} : vector<9x1x128xf32> to vector<1x1x128xf32>
    %633 = vector.shape_cast %632 : vector<1x1x128xf32> to vector<1x128xf32>
    %634 = vector.broadcast %633 : vector<1x128xf32> to vector<16x128xf32>
    %635 = arith.mulf %631, %634 : vector<16x128xf32>
    %c32_357 = arith.constant 32 : index
    %c0_358 = arith.constant 0 : index
    %636 = vector.load %arg46[%c32_357, %c0_358] : memref<360x512xf32, #tpu.memory_space<vmem>>, vector<16x128xf32>
    tpu.vector_store %arg46[%c32_357, %c0_358], %635 {strides = array<i32>} : memref<360x512xf32, #tpu.memory_space<vmem>>, vector<16x128xf32>,
    %c1_i32_359 = arith.constant 1 : i32
    %637 = tpu.dynamic_rotate %618 by %c1_i32_359 dim 1 : vector<16x128xf32>, i32 -> vector<16x128xf32>
    %638 = vector.extract_strided_slice %6 {offsets = [3, 0, 0], sizes = [1, 1, 128], strides = [1, 1, 1]} : vector<9x1x128xf32> to vector<1x1x128xf32>
    %639 = vector.shape_cast %638 : vector<1x1x128xf32> to vector<1x128xf32>
    %640 = vector.broadcast %639 : vector<1x128xf32> to vector<16x128xf32>
    %641 = arith.mulf %637, %640 : vector<16x128xf32>
    %c48_360 = arith.constant 48 : index
    %c0_361 = arith.constant 0 : index
    %642 = vector.load %arg46[%c48_360, %c0_361] : memref<360x512xf32, #tpu.memory_space<vmem>>, vector<16x128xf32>
    tpu.vector_store %arg46[%c48_360, %c0_361], %641 {strides = array<i32>} : memref<360x512xf32, #tpu.memory_space<vmem>>, vector<16x128xf32>,
    %c64_362 = arith.constant 64 : index
    %c0_363 = arith.constant 0 : index
    %643 = vector.load %arg46[%c64_362, %c0_363] : memref<360x512xf32, #tpu.memory_space<vmem>>, vector<16x128xf32>
    tpu.vector_store %arg46[%c64_362, %c0_363], %618 {strides = array<i32>} : memref<360x512xf32, #tpu.memory_space<vmem>>, vector<16x128xf32>,
    %c127_i32_364 = arith.constant 127 : i32
    %644 = tpu.dynamic_rotate %618 by %c127_i32_364 dim 1 : vector<16x128xf32>, i32 -> vector<16x128xf32>
    %645 = vector.extract_strided_slice %6 {offsets = [5, 0, 0], sizes = [1, 1, 128], strides = [1, 1, 1]} : vector<9x1x128xf32> to vector<1x1x128xf32>
    %646 = vector.shape_cast %645 : vector<1x1x128xf32> to vector<1x128xf32>
    %647 = vector.broadcast %646 : vector<1x128xf32> to vector<16x128xf32>
    %648 = arith.mulf %644, %647 : vector<16x128xf32>
    %c80_365 = arith.constant 80 : index
    %c0_366 = arith.constant 0 : index
    %649 = vector.load %arg46[%c80_365, %c0_366] : memref<360x512xf32, #tpu.memory_space<vmem>>, vector<16x128xf32>
    tpu.vector_store %arg46[%c80_365, %c0_366], %648 {strides = array<i32>} : memref<360x512xf32, #tpu.memory_space<vmem>>, vector<16x128xf32>,
    %c125_i32_367 = arith.constant 125 : i32
    %650 = tpu.dynamic_rotate %618 by %c125_i32_367 dim 1 : vector<16x128xf32>, i32 -> vector<16x128xf32>
    %651 = vector.extract_strided_slice %6 {offsets = [6, 0, 0], sizes = [1, 1, 128], strides = [1, 1, 1]} : vector<9x1x128xf32> to vector<1x1x128xf32>
    %652 = vector.shape_cast %651 : vector<1x1x128xf32> to vector<1x128xf32>
    %653 = vector.broadcast %652 : vector<1x128xf32> to vector<16x128xf32>
    %654 = arith.mulf %650, %653 : vector<16x128xf32>
    %c96_368 = arith.constant 96 : index
    %c0_369 = arith.constant 0 : index
    %655 = vector.load %arg46[%c96_368, %c0_369] : memref<360x512xf32, #tpu.memory_space<vmem>>, vector<16x128xf32>
    tpu.vector_store %arg46[%c96_368, %c0_369], %654 {strides = array<i32>} : memref<360x512xf32, #tpu.memory_space<vmem>>, vector<16x128xf32>,
    %c124_i32_370 = arith.constant 124 : i32
    %656 = tpu.dynamic_rotate %618 by %c124_i32_370 dim 1 : vector<16x128xf32>, i32 -> vector<16x128xf32>
    %657 = vector.extract_strided_slice %6 {offsets = [7, 0, 0], sizes = [1, 1, 128], strides = [1, 1, 1]} : vector<9x1x128xf32> to vector<1x1x128xf32>
    %658 = vector.shape_cast %657 : vector<1x1x128xf32> to vector<1x128xf32>
    %659 = vector.broadcast %658 : vector<1x128xf32> to vector<16x128xf32>
    %660 = arith.mulf %656, %659 : vector<16x128xf32>
    %c112_371 = arith.constant 112 : index
    %c0_372 = arith.constant 0 : index
    %661 = vector.load %arg46[%c112_371, %c0_372] : memref<360x512xf32, #tpu.memory_space<vmem>>, vector<16x128xf32>
    tpu.vector_store %arg46[%c112_371, %c0_372], %660 {strides = array<i32>} : memref<360x512xf32, #tpu.memory_space<vmem>>, vector<16x128xf32>,
    %c123_i32_373 = arith.constant 123 : i32
    %662 = tpu.dynamic_rotate %618 by %c123_i32_373 dim 1 : vector<16x128xf32>, i32 -> vector<16x128xf32>
    %663 = vector.extract_strided_slice %6 {offsets = [8, 0, 0], sizes = [1, 1, 128], strides = [1, 1, 1]} : vector<9x1x128xf32> to vector<1x1x128xf32>
    %664 = vector.shape_cast %663 : vector<1x1x128xf32> to vector<1x128xf32>
    %665 = vector.broadcast %664 : vector<1x128xf32> to vector<16x128xf32>
    %666 = arith.mulf %662, %665 : vector<16x128xf32>
    %c128_374 = arith.constant 128 : index
    %c0_375 = arith.constant 0 : index
    %667 = vector.load %arg46[%c128_374, %c0_375] : memref<360x512xf32, #tpu.memory_space<vmem>>, vector<16x128xf32>
    tpu.vector_store %arg46[%c128_374, %c0_375], %666 {strides = array<i32>} : memref<360x512xf32, #tpu.memory_space<vmem>>, vector<16x128xf32>,
    %c0_376 = arith.constant 0 : index
    %c0_377 = arith.constant 0 : index
    %668 = vector.load %arg46[%c0_376, %c0_377] : memref<360x512xf32, #tpu.memory_space<vmem>>, vector<144x128xf32>
    %669 = arith.truncf %668 : vector<144x128xf32> to vector<144x128xbf16>
    %c0_378 = arith.constant 0 : index
    %c0_379 = arith.constant 0 : index
    %670 = vector.load %arg23[%c0_378, %c0_379] : memref<8x144xbf16, #tpu.memory_space<vmem>>, vector<8x144xbf16>
    %cst_380 = arith.constant dense<0.000000e+00> : vector<8x128xf32>
    %671 = tpu.matmul %670, %669, %cst_380 {dimension_numbers = #tpu.dot_dimension_numbers<[1], [0], [0], [1], [0, 0, 1, 1], [], []>} : vector<8x144xbf16>, vector<144x128xbf16>, vector<8x128xf32> -> vector<8x128xf32>
    %c0_381 = arith.constant 0 : index
    %c0_382 = arith.constant 0 : index
    %672 = vector.load %arg24[%c0_381, %c0_382] : memref<8x1xf32, #tpu.memory_space<vmem>>, vector<8x1xf32>
    %673 = vector.broadcast %672 : vector<8x1xf32> to vector<8x128xf32>
    %674 = arith.addf %671, %673 : vector<8x128xf32>
    %cst_383 = arith.constant 0.000000e+00 : f32
    %675 = vector.broadcast %cst_383 : f32 to vector<8x128xf32>
    %676 = arith.maximumf %674, %675 : vector<8x128xf32>
    %677 = arith.truncf %676 : vector<8x128xf32> to vector<8x128xbf16>
    %c0_384 = arith.constant 0 : index
    %c0_385 = arith.constant 0 : index
    %678 = vector.load %arg42[%c0_384, %c0_385] : memref<128x128xbf16, #tpu.memory_space<vmem>>, vector<128x128xbf16>
    %cst_386 = arith.constant dense<0.000000e+00> : vector<8x128xf32>
    %679 = tpu.matmul %677, %678, %cst_386 {dimension_numbers = #tpu.dot_dimension_numbers<[1], [0], [0], [1], [0, 0, 1, 1], [], []>} : vector<8x128xbf16>, vector<128x128xbf16>, vector<8x128xf32> -> vector<8x128xf32>
    %680 = arith.truncf %679 : vector<8x128xf32> to vector<8x128xbf16>
    %c0_387 = arith.constant 0 : index
    %c0_388 = arith.constant 0 : index
    %681 = vector.load %arg44[%c0_387, %c0_388] : memref<128x512xbf16, #tpu.memory_space<vmem>>, vector<128x512xbf16>
    %cst_389 = arith.constant dense<0.000000e+00> : vector<8x512xf32>
    %682 = tpu.matmul %680, %681, %cst_389 {dimension_numbers = #tpu.dot_dimension_numbers<[1], [0], [0], [1], [0, 0, 1, 1], [], []>} : vector<8x128xbf16>, vector<128x512xbf16>, vector<8x512xf32> -> vector<8x512xf32>
    %c16_390 = arith.constant 16 : index
    %c0_391 = arith.constant 0 : index
    %683 = vector.load %arg47[%c16_390, %c0_391] : memref<40x512xf32, #tpu.memory_space<vmem>>, vector<8x512xf32>
    tpu.vector_store %arg47[%c16_390, %c0_391], %682 {strides = array<i32>} : memref<40x512xf32, #tpu.memory_space<vmem>>, vector<8x512xf32>,
    %684 = arith.addf %679, %240 : vector<8x128xf32>
    %c9_i32_392 = arith.constant 9 : i32
    %685 = tpu.dynamic_rotate %684 by %c9_i32_392 dim 1 : vector<8x128xf32>, i32 -> vector<8x128xf32>
    %686 = vector.extract_strided_slice %5 {offsets = [0, 0, 0], sizes = [1, 1, 128], strides = [1, 1, 1]} : vector<9x1x128xf32> to vector<1x1x128xf32>
    %687 = vector.shape_cast %686 : vector<1x1x128xf32> to vector<1x128xf32>
    %688 = vector.broadcast %687 : vector<1x128xf32> to vector<8x128xf32>
    %689 = arith.mulf %685, %688 : vector<8x128xf32>
    %c0_393 = arith.constant 0 : index
    %c0_394 = arith.constant 0 : index
    %690 = vector.load %arg46[%c0_393, %c0_394] : memref<360x512xf32, #tpu.memory_space<vmem>>, vector<8x128xf32>
    tpu.vector_store %arg46[%c0_393, %c0_394], %689 {strides = array<i32>} : memref<360x512xf32, #tpu.memory_space<vmem>>, vector<8x128xf32>,
    %c8_i32_395 = arith.constant 8 : i32
    %691 = tpu.dynamic_rotate %684 by %c8_i32_395 dim 1 : vector<8x128xf32>, i32 -> vector<8x128xf32>
    %692 = vector.extract_strided_slice %5 {offsets = [1, 0, 0], sizes = [1, 1, 128], strides = [1, 1, 1]} : vector<9x1x128xf32> to vector<1x1x128xf32>
    %693 = vector.shape_cast %692 : vector<1x1x128xf32> to vector<1x128xf32>
    %694 = vector.broadcast %693 : vector<1x128xf32> to vector<8x128xf32>
    %695 = arith.mulf %691, %694 : vector<8x128xf32>
    %c8_396 = arith.constant 8 : index
    %c0_397 = arith.constant 0 : index
    %696 = vector.load %arg46[%c8_396, %c0_397] : memref<360x512xf32, #tpu.memory_space<vmem>>, vector<8x128xf32>
    tpu.vector_store %arg46[%c8_396, %c0_397], %695 {strides = array<i32>} : memref<360x512xf32, #tpu.memory_space<vmem>>, vector<8x128xf32>,
    %c7_i32_398 = arith.constant 7 : i32
    %697 = tpu.dynamic_rotate %684 by %c7_i32_398 dim 1 : vector<8x128xf32>, i32 -> vector<8x128xf32>
    %698 = vector.extract_strided_slice %5 {offsets = [2, 0, 0], sizes = [1, 1, 128], strides = [1, 1, 1]} : vector<9x1x128xf32> to vector<1x1x128xf32>
    %699 = vector.shape_cast %698 : vector<1x1x128xf32> to vector<1x128xf32>
    %700 = vector.broadcast %699 : vector<1x128xf32> to vector<8x128xf32>
    %701 = arith.mulf %697, %700 : vector<8x128xf32>
    %c16_399 = arith.constant 16 : index
    %c0_400 = arith.constant 0 : index
    %702 = vector.load %arg46[%c16_399, %c0_400] : memref<360x512xf32, #tpu.memory_space<vmem>>, vector<8x128xf32>
    tpu.vector_store %arg46[%c16_399, %c0_400], %701 {strides = array<i32>} : memref<360x512xf32, #tpu.memory_space<vmem>>, vector<8x128xf32>,
    %c1_i32_401 = arith.constant 1 : i32
    %703 = tpu.dynamic_rotate %684 by %c1_i32_401 dim 1 : vector<8x128xf32>, i32 -> vector<8x128xf32>
    %704 = vector.extract_strided_slice %5 {offsets = [3, 0, 0], sizes = [1, 1, 128], strides = [1, 1, 1]} : vector<9x1x128xf32> to vector<1x1x128xf32>
    %705 = vector.shape_cast %704 : vector<1x1x128xf32> to vector<1x128xf32>
    %706 = vector.broadcast %705 : vector<1x128xf32> to vector<8x128xf32>
    %707 = arith.mulf %703, %706 : vector<8x128xf32>
    %c24_402 = arith.constant 24 : index
    %c0_403 = arith.constant 0 : index
    %708 = vector.load %arg46[%c24_402, %c0_403] : memref<360x512xf32, #tpu.memory_space<vmem>>, vector<8x128xf32>
    tpu.vector_store %arg46[%c24_402, %c0_403], %707 {strides = array<i32>} : memref<360x512xf32, #tpu.memory_space<vmem>>, vector<8x128xf32>,
    %c32_404 = arith.constant 32 : index
    %c0_405 = arith.constant 0 : index
    %709 = vector.load %arg46[%c32_404, %c0_405] : memref<360x512xf32, #tpu.memory_space<vmem>>, vector<8x128xf32>
    tpu.vector_store %arg46[%c32_404, %c0_405], %684 {strides = array<i32>} : memref<360x512xf32, #tpu.memory_space<vmem>>, vector<8x128xf32>,
    %c127_i32_406 = arith.constant 127 : i32
    %710 = tpu.dynamic_rotate %684 by %c127_i32_406 dim 1 : vector<8x128xf32>, i32 -> vector<8x128xf32>
    %711 = vector.extract_strided_slice %5 {offsets = [5, 0, 0], sizes = [1, 1, 128], strides = [1, 1, 1]} : vector<9x1x128xf32> to vector<1x1x128xf32>
    %712 = vector.shape_cast %711 : vector<1x1x128xf32> to vector<1x128xf32>
    %713 = vector.broadcast %712 : vector<1x128xf32> to vector<8x128xf32>
    %714 = arith.mulf %710, %713 : vector<8x128xf32>
    %c40_407 = arith.constant 40 : index
    %c0_408 = arith.constant 0 : index
    %715 = vector.load %arg46[%c40_407, %c0_408] : memref<360x512xf32, #tpu.memory_space<vmem>>, vector<8x128xf32>
    tpu.vector_store %arg46[%c40_407, %c0_408], %714 {strides = array<i32>} : memref<360x512xf32, #tpu.memory_space<vmem>>, vector<8x128xf32>,
    %c121_i32_409 = arith.constant 121 : i32
    %716 = tpu.dynamic_rotate %684 by %c121_i32_409 dim 1 : vector<8x128xf32>, i32 -> vector<8x128xf32>
    %717 = vector.extract_strided_slice %5 {offsets = [6, 0, 0], sizes = [1, 1, 128], strides = [1, 1, 1]} : vector<9x1x128xf32> to vector<1x1x128xf32>
    %718 = vector.shape_cast %717 : vector<1x1x128xf32> to vector<1x128xf32>
    %719 = vector.broadcast %718 : vector<1x128xf32> to vector<8x128xf32>
    %720 = arith.mulf %716, %719 : vector<8x128xf32>
    %c48_410 = arith.constant 48 : index
    %c0_411 = arith.constant 0 : index
    %721 = vector.load %arg46[%c48_410, %c0_411] : memref<360x512xf32, #tpu.memory_space<vmem>>, vector<8x128xf32>
    tpu.vector_store %arg46[%c48_410, %c0_411], %720 {strides = array<i32>} : memref<360x512xf32, #tpu.memory_space<vmem>>, vector<8x128xf32>,
    %c120_i32_412 = arith.constant 120 : i32
    %722 = tpu.dynamic_rotate %684 by %c120_i32_412 dim 1 : vector<8x128xf32>, i32 -> vector<8x128xf32>
    %723 = vector.extract_strided_slice %5 {offsets = [7, 0, 0], sizes = [1, 1, 128], strides = [1, 1, 1]} : vector<9x1x128xf32> to vector<1x1x128xf32>
    %724 = vector.shape_cast %723 : vector<1x1x128xf32> to vector<1x128xf32>
    %725 = vector.broadcast %724 : vector<1x128xf32> to vector<8x128xf32>
    %726 = arith.mulf %722, %725 : vector<8x128xf32>
    %c56_413 = arith.constant 56 : index
    %c0_414 = arith.constant 0 : index
    %727 = vector.load %arg46[%c56_413, %c0_414] : memref<360x512xf32, #tpu.memory_space<vmem>>, vector<8x128xf32>
    tpu.vector_store %arg46[%c56_413, %c0_414], %726 {strides = array<i32>} : memref<360x512xf32, #tpu.memory_space<vmem>>, vector<8x128xf32>,
    %c119_i32_415 = arith.constant 119 : i32
    %728 = tpu.dynamic_rotate %684 by %c119_i32_415 dim 1 : vector<8x128xf32>, i32 -> vector<8x128xf32>
    %729 = vector.extract_strided_slice %5 {offsets = [8, 0, 0], sizes = [1, 1, 128], strides = [1, 1, 1]} : vector<9x1x128xf32> to vector<1x1x128xf32>
    %730 = vector.shape_cast %729 : vector<1x1x128xf32> to vector<1x128xf32>
    %731 = vector.broadcast %730 : vector<1x128xf32> to vector<8x128xf32>
    %732 = arith.mulf %728, %731 : vector<8x128xf32>
    %c64_416 = arith.constant 64 : index
    %c0_417 = arith.constant 0 : index
    %733 = vector.load %arg46[%c64_416, %c0_417] : memref<360x512xf32, #tpu.memory_space<vmem>>, vector<8x128xf32>
    tpu.vector_store %arg46[%c64_416, %c0_417], %732 {strides = array<i32>} : memref<360x512xf32, #tpu.memory_space<vmem>>, vector<8x128xf32>,
    %c0_418 = arith.constant 0 : index
    %c0_419 = arith.constant 0 : index
    %734 = vector.load %arg46[%c0_418, %c0_419] : memref<360x512xf32, #tpu.memory_space<vmem>>, vector<72x128xf32>
    %735 = arith.truncf %734 : vector<72x128xf32> to vector<72x128xbf16>
    %c0_420 = arith.constant 0 : index
    %c0_421 = arith.constant 0 : index
    %736 = vector.load %arg25[%c0_420, %c0_421] : memref<4x72xbf16, #tpu.memory_space<vmem>>, vector<4x72xbf16>
    %cst_422 = arith.constant dense<0.000000e+00> : vector<4x128xf32>
    %737 = tpu.matmul %736, %735, %cst_422 {dimension_numbers = #tpu.dot_dimension_numbers<[1], [0], [0], [1], [0, 0, 1, 1], [], []>} : vector<4x72xbf16>, vector<72x128xbf16>, vector<4x128xf32> -> vector<4x128xf32>
    %c0_423 = arith.constant 0 : index
    %c0_424 = arith.constant 0 : index
    %738 = vector.load %arg26[%c0_423, %c0_424] : memref<4x1xf32, #tpu.memory_space<vmem>>, vector<4x1xf32>
    %739 = vector.broadcast %738 : vector<4x1xf32> to vector<4x128xf32>
    %740 = arith.addf %737, %739 : vector<4x128xf32>
    %cst_425 = arith.constant 0.000000e+00 : f32
    %741 = vector.broadcast %cst_425 : f32 to vector<4x128xf32>
    %742 = arith.maximumf %740, %741 : vector<4x128xf32>
    %743 = arith.truncf %742 : vector<4x128xf32> to vector<4x128xbf16>
    %c0_426 = arith.constant 0 : index
    %c0_427 = arith.constant 0 : index
    %744 = vector.load %arg44[%c0_426, %c0_427] : memref<128x512xbf16, #tpu.memory_space<vmem>>, vector<128x512xbf16>
    %cst_428 = arith.constant dense<0.000000e+00> : vector<4x512xf32>
    %745 = tpu.matmul %743, %744, %cst_428 {dimension_numbers = #tpu.dot_dimension_numbers<[1], [0], [0], [1], [0, 0, 1, 1], [], []>} : vector<4x128xbf16>, vector<128x512xbf16>, vector<4x512xf32> -> vector<4x512xf32>
    %c24_429 = arith.constant 24 : index
    %c0_430 = arith.constant 0 : index
    %746 = vector.load %arg47[%c24_429, %c0_430] : memref<40x512xf32, #tpu.memory_space<vmem>>, vector<4x512xf32>
    tpu.vector_store %arg47[%c24_429, %c0_430], %745 {strides = array<i32>} : memref<40x512xf32, #tpu.memory_space<vmem>>, vector<4x512xf32>,
    %c0_431 = arith.constant 0 : index
    %c0_432 = arith.constant 0 : index
    %747 = vector.load %arg47[%c0_431, %c0_432] : memref<40x512xf32, #tpu.memory_space<vmem>>, vector<40x512xf32>
    %c17_i32_433 = arith.constant 17 : i32
    %748 = tpu.dynamic_rotate %747 by %c17_i32_433 dim 1 : vector<40x512xf32>, i32 -> vector<40x512xf32>
    %749 = vector.extract_strided_slice %4 {offsets = [0, 0, 0], sizes = [1, 1, 512], strides = [1, 1, 1]} : vector<9x1x512xf32> to vector<1x1x512xf32>
    %750 = vector.shape_cast %749 : vector<1x1x512xf32> to vector<1x512xf32>
    %751 = vector.broadcast %750 : vector<1x512xf32> to vector<40x512xf32>
    %752 = arith.mulf %748, %751 : vector<40x512xf32>
    %c0_434 = arith.constant 0 : index
    %c0_435 = arith.constant 0 : index
    %753 = vector.load %arg46[%c0_434, %c0_435] : memref<360x512xf32, #tpu.memory_space<vmem>>, vector<40x512xf32>
    tpu.vector_store %arg46[%c0_434, %c0_435], %752 {strides = array<i32>} : memref<360x512xf32, #tpu.memory_space<vmem>>, vector<40x512xf32>,
    %c16_i32_436 = arith.constant 16 : i32
    %754 = tpu.dynamic_rotate %747 by %c16_i32_436 dim 1 : vector<40x512xf32>, i32 -> vector<40x512xf32>
    %755 = vector.extract_strided_slice %4 {offsets = [1, 0, 0], sizes = [1, 1, 512], strides = [1, 1, 1]} : vector<9x1x512xf32> to vector<1x1x512xf32>
    %756 = vector.shape_cast %755 : vector<1x1x512xf32> to vector<1x512xf32>
    %757 = vector.broadcast %756 : vector<1x512xf32> to vector<40x512xf32>
    %758 = arith.mulf %754, %757 : vector<40x512xf32>
    %c40_437 = arith.constant 40 : index
    %c0_438 = arith.constant 0 : index
    %759 = vector.load %arg46[%c40_437, %c0_438] : memref<360x512xf32, #tpu.memory_space<vmem>>, vector<40x512xf32>
    tpu.vector_store %arg46[%c40_437, %c0_438], %758 {strides = array<i32>} : memref<360x512xf32, #tpu.memory_space<vmem>>, vector<40x512xf32>,
    %c15_i32_439 = arith.constant 15 : i32
    %760 = tpu.dynamic_rotate %747 by %c15_i32_439 dim 1 : vector<40x512xf32>, i32 -> vector<40x512xf32>
    %761 = vector.extract_strided_slice %4 {offsets = [2, 0, 0], sizes = [1, 1, 512], strides = [1, 1, 1]} : vector<9x1x512xf32> to vector<1x1x512xf32>
    %762 = vector.shape_cast %761 : vector<1x1x512xf32> to vector<1x512xf32>
    %763 = vector.broadcast %762 : vector<1x512xf32> to vector<40x512xf32>
    %764 = arith.mulf %760, %763 : vector<40x512xf32>
    %c80_440 = arith.constant 80 : index
    %c0_441 = arith.constant 0 : index
    %765 = vector.load %arg46[%c80_440, %c0_441] : memref<360x512xf32, #tpu.memory_space<vmem>>, vector<40x512xf32>
    tpu.vector_store %arg46[%c80_440, %c0_441], %764 {strides = array<i32>} : memref<360x512xf32, #tpu.memory_space<vmem>>, vector<40x512xf32>,
    %c1_i32_442 = arith.constant 1 : i32
    %766 = tpu.dynamic_rotate %747 by %c1_i32_442 dim 1 : vector<40x512xf32>, i32 -> vector<40x512xf32>
    %767 = vector.extract_strided_slice %4 {offsets = [3, 0, 0], sizes = [1, 1, 512], strides = [1, 1, 1]} : vector<9x1x512xf32> to vector<1x1x512xf32>
    %768 = vector.shape_cast %767 : vector<1x1x512xf32> to vector<1x512xf32>
    %769 = vector.broadcast %768 : vector<1x512xf32> to vector<40x512xf32>
    %770 = arith.mulf %766, %769 : vector<40x512xf32>
    %c120 = arith.constant 120 : index
    %c0_443 = arith.constant 0 : index
    %771 = vector.load %arg46[%c120, %c0_443] : memref<360x512xf32, #tpu.memory_space<vmem>>, vector<40x512xf32>
    tpu.vector_store %arg46[%c120, %c0_443], %770 {strides = array<i32>} : memref<360x512xf32, #tpu.memory_space<vmem>>, vector<40x512xf32>,
    %c160_444 = arith.constant 160 : index
    %c0_445 = arith.constant 0 : index
    %772 = vector.load %arg46[%c160_444, %c0_445] : memref<360x512xf32, #tpu.memory_space<vmem>>, vector<40x512xf32>
    tpu.vector_store %arg46[%c160_444, %c0_445], %747 {strides = array<i32>} : memref<360x512xf32, #tpu.memory_space<vmem>>, vector<40x512xf32>,
    %c511_i32_446 = arith.constant 511 : i32
    %773 = tpu.dynamic_rotate %747 by %c511_i32_446 dim 1 : vector<40x512xf32>, i32 -> vector<40x512xf32>
    %774 = vector.extract_strided_slice %4 {offsets = [5, 0, 0], sizes = [1, 1, 512], strides = [1, 1, 1]} : vector<9x1x512xf32> to vector<1x1x512xf32>
    %775 = vector.shape_cast %774 : vector<1x1x512xf32> to vector<1x512xf32>
    %776 = vector.broadcast %775 : vector<1x512xf32> to vector<40x512xf32>
    %777 = arith.mulf %773, %776 : vector<40x512xf32>
    %c200 = arith.constant 200 : index
    %c0_447 = arith.constant 0 : index
    %778 = vector.load %arg46[%c200, %c0_447] : memref<360x512xf32, #tpu.memory_space<vmem>>, vector<40x512xf32>
    tpu.vector_store %arg46[%c200, %c0_447], %777 {strides = array<i32>} : memref<360x512xf32, #tpu.memory_space<vmem>>, vector<40x512xf32>,
    %c497_i32_448 = arith.constant 497 : i32
    %779 = tpu.dynamic_rotate %747 by %c497_i32_448 dim 1 : vector<40x512xf32>, i32 -> vector<40x512xf32>
    %780 = vector.extract_strided_slice %4 {offsets = [6, 0, 0], sizes = [1, 1, 512], strides = [1, 1, 1]} : vector<9x1x512xf32> to vector<1x1x512xf32>
    %781 = vector.shape_cast %780 : vector<1x1x512xf32> to vector<1x512xf32>
    %782 = vector.broadcast %781 : vector<1x512xf32> to vector<40x512xf32>
    %783 = arith.mulf %779, %782 : vector<40x512xf32>
    %c240 = arith.constant 240 : index
    %c0_449 = arith.constant 0 : index
    %784 = vector.load %arg46[%c240, %c0_449] : memref<360x512xf32, #tpu.memory_space<vmem>>, vector<40x512xf32>
    tpu.vector_store %arg46[%c240, %c0_449], %783 {strides = array<i32>} : memref<360x512xf32, #tpu.memory_space<vmem>>, vector<40x512xf32>,
    %c496_i32_450 = arith.constant 496 : i32
    %785 = tpu.dynamic_rotate %747 by %c496_i32_450 dim 1 : vector<40x512xf32>, i32 -> vector<40x512xf32>
    %786 = vector.extract_strided_slice %4 {offsets = [7, 0, 0], sizes = [1, 1, 512], strides = [1, 1, 1]} : vector<9x1x512xf32> to vector<1x1x512xf32>
    %787 = vector.shape_cast %786 : vector<1x1x512xf32> to vector<1x512xf32>
    %788 = vector.broadcast %787 : vector<1x512xf32> to vector<40x512xf32>
    %789 = arith.mulf %785, %788 : vector<40x512xf32>
    %c280 = arith.constant 280 : index
    %c0_451 = arith.constant 0 : index
    %790 = vector.load %arg46[%c280, %c0_451] : memref<360x512xf32, #tpu.memory_space<vmem>>, vector<40x512xf32>
    tpu.vector_store %arg46[%c280, %c0_451], %789 {strides = array<i32>} : memref<360x512xf32, #tpu.memory_space<vmem>>, vector<40x512xf32>,
    %c495_i32_452 = arith.constant 495 : i32
    %791 = tpu.dynamic_rotate %747 by %c495_i32_452 dim 1 : vector<40x512xf32>, i32 -> vector<40x512xf32>
    %792 = vector.extract_strided_slice %4 {offsets = [8, 0, 0], sizes = [1, 1, 512], strides = [1, 1, 1]} : vector<9x1x512xf32> to vector<1x1x512xf32>
    %793 = vector.shape_cast %792 : vector<1x1x512xf32> to vector<1x512xf32>
    %794 = vector.broadcast %793 : vector<1x512xf32> to vector<40x512xf32>
    %795 = arith.mulf %791, %794 : vector<40x512xf32>
    %c320 = arith.constant 320 : index
    %c0_453 = arith.constant 0 : index
    %796 = vector.load %arg46[%c320, %c0_453] : memref<360x512xf32, #tpu.memory_space<vmem>>, vector<40x512xf32>
    tpu.vector_store %arg46[%c320, %c0_453], %795 {strides = array<i32>} : memref<360x512xf32, #tpu.memory_space<vmem>>, vector<40x512xf32>,
    %c0_454 = arith.constant 0 : index
    %c0_455 = arith.constant 0 : index
    %797 = vector.load %arg46[%c0_454, %c0_455] : memref<360x512xf32, #tpu.memory_space<vmem>>, vector<360x512xf32>
    %798 = arith.truncf %797 : vector<360x512xf32> to vector<360x512xbf16>
    %c0_456 = arith.constant 0 : index
    %c0_457 = arith.constant 0 : index
    %799 = vector.load %arg27[%c0_456, %c0_457] : memref<16x360xbf16, #tpu.memory_space<vmem>>, vector<16x360xbf16>
    %cst_458 = arith.constant dense<0.000000e+00> : vector<16x512xf32>
    %800 = tpu.matmul %799, %798, %cst_458 {dimension_numbers = #tpu.dot_dimension_numbers<[1], [0], [0], [1], [0, 0, 1, 1], [], []>} : vector<16x360xbf16>, vector<360x512xbf16>, vector<16x512xf32> -> vector<16x512xf32>
    %c0_459 = arith.constant 0 : index
    %c0_460 = arith.constant 0 : index
    %801 = vector.load %arg28[%c0_459, %c0_460] : memref<16x1xf32, #tpu.memory_space<vmem>>, vector<16x1xf32>
    %802 = vector.broadcast %801 : vector<16x1xf32> to vector<16x512xf32>
    %803 = arith.addf %800, %802 : vector<16x512xf32>
    %cst_461 = arith.constant 0.000000e+00 : f32
    %804 = vector.broadcast %cst_461 : f32 to vector<16x512xf32>
    %805 = arith.maximumf %803, %804 : vector<16x512xf32>
    %c17_i32_462 = arith.constant 17 : i32
    %806 = tpu.dynamic_rotate %805 by %c17_i32_462 dim 1 : vector<16x512xf32>, i32 -> vector<16x512xf32>
    %807 = vector.extract_strided_slice %4 {offsets = [0, 0, 0], sizes = [1, 1, 512], strides = [1, 1, 1]} : vector<9x1x512xf32> to vector<1x1x512xf32>
    %808 = vector.shape_cast %807 : vector<1x1x512xf32> to vector<1x512xf32>
    %809 = vector.broadcast %808 : vector<1x512xf32> to vector<16x512xf32>
    %810 = arith.mulf %806, %809 : vector<16x512xf32>
    %c0_463 = arith.constant 0 : index
    %c0_464 = arith.constant 0 : index
    %811 = vector.load %arg46[%c0_463, %c0_464] : memref<360x512xf32, #tpu.memory_space<vmem>>, vector<16x512xf32>
    tpu.vector_store %arg46[%c0_463, %c0_464], %810 {strides = array<i32>} : memref<360x512xf32, #tpu.memory_space<vmem>>, vector<16x512xf32>,
    %c16_i32_465 = arith.constant 16 : i32
    %812 = tpu.dynamic_rotate %805 by %c16_i32_465 dim 1 : vector<16x512xf32>, i32 -> vector<16x512xf32>
    %813 = vector.extract_strided_slice %4 {offsets = [1, 0, 0], sizes = [1, 1, 512], strides = [1, 1, 1]} : vector<9x1x512xf32> to vector<1x1x512xf32>
    %814 = vector.shape_cast %813 : vector<1x1x512xf32> to vector<1x512xf32>
    %815 = vector.broadcast %814 : vector<1x512xf32> to vector<16x512xf32>
    %816 = arith.mulf %812, %815 : vector<16x512xf32>
    %c16_466 = arith.constant 16 : index
    %c0_467 = arith.constant 0 : index
    %817 = vector.load %arg46[%c16_466, %c0_467] : memref<360x512xf32, #tpu.memory_space<vmem>>, vector<16x512xf32>
    tpu.vector_store %arg46[%c16_466, %c0_467], %816 {strides = array<i32>} : memref<360x512xf32, #tpu.memory_space<vmem>>, vector<16x512xf32>,
    %c15_i32_468 = arith.constant 15 : i32
    %818 = tpu.dynamic_rotate %805 by %c15_i32_468 dim 1 : vector<16x512xf32>, i32 -> vector<16x512xf32>
    %819 = vector.extract_strided_slice %4 {offsets = [2, 0, 0], sizes = [1, 1, 512], strides = [1, 1, 1]} : vector<9x1x512xf32> to vector<1x1x512xf32>
    %820 = vector.shape_cast %819 : vector<1x1x512xf32> to vector<1x512xf32>
    %821 = vector.broadcast %820 : vector<1x512xf32> to vector<16x512xf32>
    %822 = arith.mulf %818, %821 : vector<16x512xf32>
    %c32_469 = arith.constant 32 : index
    %c0_470 = arith.constant 0 : index
    %823 = vector.load %arg46[%c32_469, %c0_470] : memref<360x512xf32, #tpu.memory_space<vmem>>, vector<16x512xf32>
    tpu.vector_store %arg46[%c32_469, %c0_470], %822 {strides = array<i32>} : memref<360x512xf32, #tpu.memory_space<vmem>>, vector<16x512xf32>,
    %c1_i32_471 = arith.constant 1 : i32
    %824 = tpu.dynamic_rotate %805 by %c1_i32_471 dim 1 : vector<16x512xf32>, i32 -> vector<16x512xf32>
    %825 = vector.extract_strided_slice %4 {offsets = [3, 0, 0], sizes = [1, 1, 512], strides = [1, 1, 1]} : vector<9x1x512xf32> to vector<1x1x512xf32>
    %826 = vector.shape_cast %825 : vector<1x1x512xf32> to vector<1x512xf32>
    %827 = vector.broadcast %826 : vector<1x512xf32> to vector<16x512xf32>
    %828 = arith.mulf %824, %827 : vector<16x512xf32>
    %c48_472 = arith.constant 48 : index
    %c0_473 = arith.constant 0 : index
    %829 = vector.load %arg46[%c48_472, %c0_473] : memref<360x512xf32, #tpu.memory_space<vmem>>, vector<16x512xf32>
    tpu.vector_store %arg46[%c48_472, %c0_473], %828 {strides = array<i32>} : memref<360x512xf32, #tpu.memory_space<vmem>>, vector<16x512xf32>,
    %c64_474 = arith.constant 64 : index
    %c0_475 = arith.constant 0 : index
    %830 = vector.load %arg46[%c64_474, %c0_475] : memref<360x512xf32, #tpu.memory_space<vmem>>, vector<16x512xf32>
    tpu.vector_store %arg46[%c64_474, %c0_475], %805 {strides = array<i32>} : memref<360x512xf32, #tpu.memory_space<vmem>>, vector<16x512xf32>,
    %c511_i32_476 = arith.constant 511 : i32
    %831 = tpu.dynamic_rotate %805 by %c511_i32_476 dim 1 : vector<16x512xf32>, i32 -> vector<16x512xf32>
    %832 = vector.extract_strided_slice %4 {offsets = [5, 0, 0], sizes = [1, 1, 512], strides = [1, 1, 1]} : vector<9x1x512xf32> to vector<1x1x512xf32>
    %833 = vector.shape_cast %832 : vector<1x1x512xf32> to vector<1x512xf32>
    %834 = vector.broadcast %833 : vector<1x512xf32> to vector<16x512xf32>
    %835 = arith.mulf %831, %834 : vector<16x512xf32>
    %c80_477 = arith.constant 80 : index
    %c0_478 = arith.constant 0 : index
    %836 = vector.load %arg46[%c80_477, %c0_478] : memref<360x512xf32, #tpu.memory_space<vmem>>, vector<16x512xf32>
    tpu.vector_store %arg46[%c80_477, %c0_478], %835 {strides = array<i32>} : memref<360x512xf32, #tpu.memory_space<vmem>>, vector<16x512xf32>,
    %c497_i32_479 = arith.constant 497 : i32
    %837 = tpu.dynamic_rotate %805 by %c497_i32_479 dim 1 : vector<16x512xf32>, i32 -> vector<16x512xf32>
    %838 = vector.extract_strided_slice %4 {offsets = [6, 0, 0], sizes = [1, 1, 512], strides = [1, 1, 1]} : vector<9x1x512xf32> to vector<1x1x512xf32>
    %839 = vector.shape_cast %838 : vector<1x1x512xf32> to vector<1x512xf32>
    %840 = vector.broadcast %839 : vector<1x512xf32> to vector<16x512xf32>
    %841 = arith.mulf %837, %840 : vector<16x512xf32>
    %c96_480 = arith.constant 96 : index
    %c0_481 = arith.constant 0 : index
    %842 = vector.load %arg46[%c96_480, %c0_481] : memref<360x512xf32, #tpu.memory_space<vmem>>, vector<16x512xf32>
    tpu.vector_store %arg46[%c96_480, %c0_481], %841 {strides = array<i32>} : memref<360x512xf32, #tpu.memory_space<vmem>>, vector<16x512xf32>,
    %c496_i32_482 = arith.constant 496 : i32
    %843 = tpu.dynamic_rotate %805 by %c496_i32_482 dim 1 : vector<16x512xf32>, i32 -> vector<16x512xf32>
    %844 = vector.extract_strided_slice %4 {offsets = [7, 0, 0], sizes = [1, 1, 512], strides = [1, 1, 1]} : vector<9x1x512xf32> to vector<1x1x512xf32>
    %845 = vector.shape_cast %844 : vector<1x1x512xf32> to vector<1x512xf32>
    %846 = vector.broadcast %845 : vector<1x512xf32> to vector<16x512xf32>
    %847 = arith.mulf %843, %846 : vector<16x512xf32>
    %c112_483 = arith.constant 112 : index
    %c0_484 = arith.constant 0 : index
    %848 = vector.load %arg46[%c112_483, %c0_484] : memref<360x512xf32, #tpu.memory_space<vmem>>, vector<16x512xf32>
    tpu.vector_store %arg46[%c112_483, %c0_484], %847 {strides = array<i32>} : memref<360x512xf32, #tpu.memory_space<vmem>>, vector<16x512xf32>,
    %c495_i32_485 = arith.constant 495 : i32
    %849 = tpu.dynamic_rotate %805 by %c495_i32_485 dim 1 : vector<16x512xf32>, i32 -> vector<16x512xf32>
    %850 = vector.extract_strided_slice %4 {offsets = [8, 0, 0], sizes = [1, 1, 512], strides = [1, 1, 1]} : vector<9x1x512xf32> to vector<1x1x512xf32>
    %851 = vector.shape_cast %850 : vector<1x1x512xf32> to vector<1x512xf32>
    %852 = vector.broadcast %851 : vector<1x512xf32> to vector<16x512xf32>
    %853 = arith.mulf %849, %852 : vector<16x512xf32>
    %c128_486 = arith.constant 128 : index
    %c0_487 = arith.constant 0 : index
    %854 = vector.load %arg46[%c128_486, %c0_487] : memref<360x512xf32, #tpu.memory_space<vmem>>, vector<16x512xf32>
    tpu.vector_store %arg46[%c128_486, %c0_487], %853 {strides = array<i32>} : memref<360x512xf32, #tpu.memory_space<vmem>>, vector<16x512xf32>,
    %c0_488 = arith.constant 0 : index
    %c0_489 = arith.constant 0 : index
    %855 = vector.load %arg46[%c0_488, %c0_489] : memref<360x512xf32, #tpu.memory_space<vmem>>, vector<144x512xf32>
    %856 = arith.truncf %855 : vector<144x512xf32> to vector<144x512xbf16>
    %c0_490 = arith.constant 0 : index
    %c0_491 = arith.constant 0 : index
    %857 = vector.load %arg29[%c0_490, %c0_491] : memref<4x144xbf16, #tpu.memory_space<vmem>>, vector<4x144xbf16>
    %cst_492 = arith.constant dense<0.000000e+00> : vector<4x512xf32>
    %858 = tpu.matmul %857, %856, %cst_492 {dimension_numbers = #tpu.dot_dimension_numbers<[1], [0], [0], [1], [0, 0, 1, 1], [], []>} : vector<4x144xbf16>, vector<144x512xbf16>, vector<4x512xf32> -> vector<4x512xf32>
    %c0_493 = arith.constant 0 : index
    %c0_494 = arith.constant 0 : index
    %859 = vector.load %arg30[%c0_493, %c0_494] : memref<4x1xf32, #tpu.memory_space<vmem>>, vector<4x1xf32>
    %860 = vector.broadcast %859 : vector<4x1xf32> to vector<4x512xf32>
    %861 = arith.addf %858, %860 : vector<4x512xf32>
    %cst_495 = arith.constant 0.000000e+00 : f32
    %862 = vector.broadcast %cst_495 : f32 to vector<4x512xf32>
    %863 = arith.maximumf %861, %862 : vector<4x512xf32>
    %c17_i32_496 = arith.constant 17 : i32
    %864 = tpu.dynamic_rotate %863 by %c17_i32_496 dim 1 : vector<4x512xf32>, i32 -> vector<4x512xf32>
    %865 = vector.extract_strided_slice %4 {offsets = [0, 0, 0], sizes = [1, 1, 512], strides = [1, 1, 1]} : vector<9x1x512xf32> to vector<1x1x512xf32>
    %866 = vector.shape_cast %865 : vector<1x1x512xf32> to vector<1x512xf32>
    %867 = vector.broadcast %866 : vector<1x512xf32> to vector<4x512xf32>
    %868 = arith.mulf %864, %867 : vector<4x512xf32>
    %c0_497 = arith.constant 0 : index
    %c0_498 = arith.constant 0 : index
    %869 = vector.load %arg46[%c0_497, %c0_498] : memref<360x512xf32, #tpu.memory_space<vmem>>, vector<4x512xf32>
    tpu.vector_store %arg46[%c0_497, %c0_498], %868 {strides = array<i32>} : memref<360x512xf32, #tpu.memory_space<vmem>>, vector<4x512xf32>,
    %c16_i32_499 = arith.constant 16 : i32
    %870 = tpu.dynamic_rotate %863 by %c16_i32_499 dim 1 : vector<4x512xf32>, i32 -> vector<4x512xf32>
    %871 = vector.extract_strided_slice %4 {offsets = [1, 0, 0], sizes = [1, 1, 512], strides = [1, 1, 1]} : vector<9x1x512xf32> to vector<1x1x512xf32>
    %872 = vector.shape_cast %871 : vector<1x1x512xf32> to vector<1x512xf32>
    %873 = vector.broadcast %872 : vector<1x512xf32> to vector<4x512xf32>
    %874 = arith.mulf %870, %873 : vector<4x512xf32>
    %c8_500 = arith.constant 8 : index
    %c0_501 = arith.constant 0 : index
    %875 = vector.load %arg46[%c8_500, %c0_501] : memref<360x512xf32, #tpu.memory_space<vmem>>, vector<4x512xf32>
    tpu.vector_store %arg46[%c8_500, %c0_501], %874 {strides = array<i32>} : memref<360x512xf32, #tpu.memory_space<vmem>>, vector<4x512xf32>,
    %c15_i32_502 = arith.constant 15 : i32
    %876 = tpu.dynamic_rotate %863 by %c15_i32_502 dim 1 : vector<4x512xf32>, i32 -> vector<4x512xf32>
    %877 = vector.extract_strided_slice %4 {offsets = [2, 0, 0], sizes = [1, 1, 512], strides = [1, 1, 1]} : vector<9x1x512xf32> to vector<1x1x512xf32>
    %878 = vector.shape_cast %877 : vector<1x1x512xf32> to vector<1x512xf32>
    %879 = vector.broadcast %878 : vector<1x512xf32> to vector<4x512xf32>
    %880 = arith.mulf %876, %879 : vector<4x512xf32>
    %c16_503 = arith.constant 16 : index
    %c0_504 = arith.constant 0 : index
    %881 = vector.load %arg46[%c16_503, %c0_504] : memref<360x512xf32, #tpu.memory_space<vmem>>, vector<4x512xf32>
    tpu.vector_store %arg46[%c16_503, %c0_504], %880 {strides = array<i32>} : memref<360x512xf32, #tpu.memory_space<vmem>>, vector<4x512xf32>,
    %c1_i32_505 = arith.constant 1 : i32
    %882 = tpu.dynamic_rotate %863 by %c1_i32_505 dim 1 : vector<4x512xf32>, i32 -> vector<4x512xf32>
    %883 = vector.extract_strided_slice %4 {offsets = [3, 0, 0], sizes = [1, 1, 512], strides = [1, 1, 1]} : vector<9x1x512xf32> to vector<1x1x512xf32>
    %884 = vector.shape_cast %883 : vector<1x1x512xf32> to vector<1x512xf32>
    %885 = vector.broadcast %884 : vector<1x512xf32> to vector<4x512xf32>
    %886 = arith.mulf %882, %885 : vector<4x512xf32>
    %c24_506 = arith.constant 24 : index
    %c0_507 = arith.constant 0 : index
    %887 = vector.load %arg46[%c24_506, %c0_507] : memref<360x512xf32, #tpu.memory_space<vmem>>, vector<4x512xf32>
    tpu.vector_store %arg46[%c24_506, %c0_507], %886 {strides = array<i32>} : memref<360x512xf32, #tpu.memory_space<vmem>>, vector<4x512xf32>,
    %c32_508 = arith.constant 32 : index
    %c0_509 = arith.constant 0 : index
    %888 = vector.load %arg46[%c32_508, %c0_509] : memref<360x512xf32, #tpu.memory_space<vmem>>, vector<4x512xf32>
    tpu.vector_store %arg46[%c32_508, %c0_509], %863 {strides = array<i32>} : memref<360x512xf32, #tpu.memory_space<vmem>>, vector<4x512xf32>,
    %c511_i32_510 = arith.constant 511 : i32
    %889 = tpu.dynamic_rotate %863 by %c511_i32_510 dim 1 : vector<4x512xf32>, i32 -> vector<4x512xf32>
    %890 = vector.extract_strided_slice %4 {offsets = [5, 0, 0], sizes = [1, 1, 512], strides = [1, 1, 1]} : vector<9x1x512xf32> to vector<1x1x512xf32>
    %891 = vector.shape_cast %890 : vector<1x1x512xf32> to vector<1x512xf32>
    %892 = vector.broadcast %891 : vector<1x512xf32> to vector<4x512xf32>
    %893 = arith.mulf %889, %892 : vector<4x512xf32>
    %c40_511 = arith.constant 40 : index
    %c0_512 = arith.constant 0 : index
    %894 = vector.load %arg46[%c40_511, %c0_512] : memref<360x512xf32, #tpu.memory_space<vmem>>, vector<4x512xf32>
    tpu.vector_store %arg46[%c40_511, %c0_512], %893 {strides = array<i32>} : memref<360x512xf32, #tpu.memory_space<vmem>>, vector<4x512xf32>,
    %c497_i32_513 = arith.constant 497 : i32
    %895 = tpu.dynamic_rotate %863 by %c497_i32_513 dim 1 : vector<4x512xf32>, i32 -> vector<4x512xf32>
    %896 = vector.extract_strided_slice %4 {offsets = [6, 0, 0], sizes = [1, 1, 512], strides = [1, 1, 1]} : vector<9x1x512xf32> to vector<1x1x512xf32>
    %897 = vector.shape_cast %896 : vector<1x1x512xf32> to vector<1x512xf32>
    %898 = vector.broadcast %897 : vector<1x512xf32> to vector<4x512xf32>
    %899 = arith.mulf %895, %898 : vector<4x512xf32>
    %c48_514 = arith.constant 48 : index
    %c0_515 = arith.constant 0 : index
    %900 = vector.load %arg46[%c48_514, %c0_515] : memref<360x512xf32, #tpu.memory_space<vmem>>, vector<4x512xf32>
    tpu.vector_store %arg46[%c48_514, %c0_515], %899 {strides = array<i32>} : memref<360x512xf32, #tpu.memory_space<vmem>>, vector<4x512xf32>,
    %c496_i32_516 = arith.constant 496 : i32
    %901 = tpu.dynamic_rotate %863 by %c496_i32_516 dim 1 : vector<4x512xf32>, i32 -> vector<4x512xf32>
    %902 = vector.extract_strided_slice %4 {offsets = [7, 0, 0], sizes = [1, 1, 512], strides = [1, 1, 1]} : vector<9x1x512xf32> to vector<1x1x512xf32>
    %903 = vector.shape_cast %902 : vector<1x1x512xf32> to vector<1x512xf32>
    %904 = vector.broadcast %903 : vector<1x512xf32> to vector<4x512xf32>
    %905 = arith.mulf %901, %904 : vector<4x512xf32>
    %c56_517 = arith.constant 56 : index
    %c0_518 = arith.constant 0 : index
    %906 = vector.load %arg46[%c56_517, %c0_518] : memref<360x512xf32, #tpu.memory_space<vmem>>, vector<4x512xf32>
    tpu.vector_store %arg46[%c56_517, %c0_518], %905 {strides = array<i32>} : memref<360x512xf32, #tpu.memory_space<vmem>>, vector<4x512xf32>,
    %c495_i32_519 = arith.constant 495 : i32
    %907 = tpu.dynamic_rotate %863 by %c495_i32_519 dim 1 : vector<4x512xf32>, i32 -> vector<4x512xf32>
    %908 = vector.extract_strided_slice %4 {offsets = [8, 0, 0], sizes = [1, 1, 512], strides = [1, 1, 1]} : vector<9x1x512xf32> to vector<1x1x512xf32>
    %909 = vector.shape_cast %908 : vector<1x1x512xf32> to vector<1x512xf32>
    %910 = vector.broadcast %909 : vector<1x512xf32> to vector<4x512xf32>
    %911 = arith.mulf %907, %910 : vector<4x512xf32>
    %c64_520 = arith.constant 64 : index
    %c0_521 = arith.constant 0 : index
    %912 = vector.load %arg46[%c64_520, %c0_521] : memref<360x512xf32, #tpu.memory_space<vmem>>, vector<4x512xf32>
    tpu.vector_store %arg46[%c64_520, %c0_521], %911 {strides = array<i32>} : memref<360x512xf32, #tpu.memory_space<vmem>>, vector<4x512xf32>,
    %c0_522 = arith.constant 0 : index
    %c0_523 = arith.constant 0 : index
    %913 = vector.load %arg46[%c0_522, %c0_523] : memref<360x512xf32, #tpu.memory_space<vmem>>, vector<72x512xf32>
    %914 = arith.truncf %913 : vector<72x512xf32> to vector<72x512xbf16>
    %c0_524 = arith.constant 0 : index
    %c0_525 = arith.constant 0 : index
    %915 = vector.load %arg31[%c0_524, %c0_525] : memref<4x72xbf16, #tpu.memory_space<vmem>>, vector<4x72xbf16>
    %cst_526 = arith.constant dense<0.000000e+00> : vector<4x512xf32>
    %916 = tpu.matmul %915, %914, %cst_526 {dimension_numbers = #tpu.dot_dimension_numbers<[1], [0], [0], [1], [0, 0, 1, 1], [], []>} : vector<4x72xbf16>, vector<72x512xbf16>, vector<4x512xf32> -> vector<4x512xf32>
    %c0_527 = arith.constant 0 : index
    %c0_528 = arith.constant 0 : index
    %917 = vector.load %arg32[%c0_527, %c0_528] : memref<4x1xf32, #tpu.memory_space<vmem>>, vector<4x1xf32>
    %918 = vector.broadcast %917 : vector<4x1xf32> to vector<4x512xf32>
    %919 = arith.addf %916, %918 : vector<4x512xf32>
    %cst_529 = arith.constant 0.000000e+00 : f32
    %920 = vector.broadcast %cst_529 : f32 to vector<4x512xf32>
    %921 = arith.maximumf %919, %920 : vector<4x512xf32>
    %c0_530 = arith.constant 0 : index
    %c0_531 = arith.constant 0 : index
    %922 = vector.load %arg33[%c0_530, %c0_531] : memref<104x4xbf16, #tpu.memory_space<vmem>>, vector<104x4xbf16>
    %923 = arith.truncf %921 : vector<4x512xf32> to vector<4x512xbf16>
    %cst_532 = arith.constant dense<0.000000e+00> : vector<104x512xf32>
    %924 = tpu.matmul %922, %923, %cst_532 {dimension_numbers = #tpu.dot_dimension_numbers<[1], [0], [0], [1], [0, 0, 1, 1], [], []>} : vector<104x4xbf16>, vector<4x512xbf16>, vector<104x512xf32> -> vector<104x512xf32>
    %c0_533 = arith.constant 0 : index
    %c0_534 = arith.constant 0 : index
    %925 = vector.load %arg45[%c0_533, %c0_534] : memref<104x512xf32, #tpu.memory_space<vmem>>, vector<104x512xf32>
    tpu.vector_store %arg45[%c0_533, %c0_534], %924 {strides = array<i32>} : memref<104x512xf32, #tpu.memory_space<vmem>>, vector<104x512xf32>,
    return
  }
}

</mosaic_0001>

<bundles_post_ra>
// kernel: forward.1
= control target key start
LH: loop header
LB: loop body
LE: loop exit
PB: predicated region body
PF: predicated region fallthrough
CT: control target
= control target key end

     0   :  { %s8731_s6 = smov 1   ;;  %s8732_s10 = smov 2   ;;  %s12222_s0 = inlined_call_operand.smem [shape: u32[46], index: -1, kind: input, shape index: {}] }
   0x1   :  { %s8811_s5 = sld [smem:[%s12222_s0]]   ;;  %s8733_s14 = smov 3  }
   0x2   :  { %s8816_s9 = sld [smem:[%s12222_s0 + %s8731_s6]]   ;;  %s8734_s18 = smov 4  }
   0x3   :  { %s8821_s13 = sld [smem:[%s12222_s0 + %s8732_s10]]   ;;  %s8735_s22 = smov 5  }
   0x4   :  { %s8826_s17 = sld [smem:[%s12222_s0 + %s8733_s14]]   ;;  %s8736_s26 = smov 6  }
   0x5   :  { %s8831_s21 = sld [smem:[%s12222_s0 + %s8734_s18]]   ;;  %s8737_s30 = smov 7  }
   0x6   :  { %s8836_s25 = sld [smem:[%s12222_s0 + %s8735_s22]]   ;;  %s8738_s4 = smov 8  }
   0x7   :  { %s8841_s29 = sld [smem:[%s12222_s0 + %s8736_s26]]   ;;  %s8739_s10 = smov 9  }
   0x8   :  { %s8846_s3 = sld [smem:[%s12222_s0 + %s8737_s30]]   ;;  %s8740_s15 = smov 10  }
   0x9   :  { %s8851_s8 = sld [smem:[%s12222_s0 + %s8738_s4]]   ;;  %s8741_s20 = smov 11  }
   0xa   :  { %s8856_s14 = sld [smem:[%s12222_s0 + %s8739_s10]]   ;;  %s8742_s26 = smov 12  }
   0xb   :  { %s8861_s19 = sld [smem:[%s12222_s0 + %s8740_s15]]   ;;  %s8743_s1 = smov 13  }
   0xc   :  { %s8866_s24 = sld [smem:[%s12222_s0 + %s8741_s20]]   ;;  %s8744_s7 = smov 14  }
   0xd   :  { %s8871_s30 = sld [smem:[%s12222_s0 + %s8742_s26]]   ;;  %s8745_s15 = smov 15  }
   0xe   :  { %s8876_s6 = sld [smem:[%s12222_s0 + %s8743_s1]]   ;;  %s8746_s22 = smov 16  }
   0xf   :  { %s8881_s12 = sld [smem:[%s12222_s0 + %s8744_s7]]   ;;  %s8747_s28 = smov 17  }
  0x10   :  { %12319 = sst [smem:[#allocation7_spill]] %s8856_s14  ;;  %s8748_s7 = smov 18  }
  0x11   :  { %s8886_s20 = sld [smem:[%s12222_s0 + %s8745_s15]]   ;;  %s8749_s15 = smov 19  }
  0x12   :  { %12320 = sst [smem:[#allocation8_spill]] %s8866_s24 }
  0x13   :  { %12321 = sst [smem:[#allocation9_spill]] %s8871_s30 }
  0x14   :  { %12322 = sst [smem:[#allocation10_spill]] %s8876_s6 }
  0x15   :  { %12323 = sst [smem:[#allocation11_spill]] %s8881_s12 }
  0x16   :  { %s8891_s27 = sld [smem:[%s12222_s0 + %s8746_s22]]   ;;  %s8750_s22 = smov 20  }
  0x17   :  { %12324 = sst [smem:[#allocation12_spill]] %s8886_s20 }
  0x18   :  { %s8896_s4 = sld [smem:[%s12222_s0 + %s8747_s28]]   ;;  %s8751_s28 = smov 21  }
  0x19   :  { %s8901_s12 = sld [smem:[%s12222_s0 + %s8748_s7]]   ;;  %s8752_s7 = smov 22  }
  0x1a   :  { %s8906_s20 = sld [smem:[%s12222_s0 + %s8749_s15]]   ;;  %s8753_s15 = smov 23  }
  0x1c   :  { %12325 = sst [smem:[#allocation13_spill]] %s8891_s27 }
  0x1d   :  { %s8911_s27 = sld [smem:[%s12222_s0 + %s8750_s22]]   ;;  %s8754_s22 = smov 24  }
  0x1e   :  { %12326 = sst [smem:[#allocation14_spill]] %s8896_s4 }
  0x1f   :  { %12327 = sst [smem:[#allocation15_spill]] %s8901_s12 }
  0x20   :  { %12328 = sst [smem:[#allocation16_spill]] %s8906_s20 }
  0x21   :  { %s8916_s4 = sld [smem:[%s12222_s0 + %s8751_s28]]   ;;  %s8755_s28 = smov 25  }
  0x22   :  { %s8921_s12 = sld [smem:[%s12222_s0 + %s8752_s7]]   ;;  %s8756_s7 = smov 26  }
  0x23   :  { %12329 = sst [smem:[#allocation17_spill]] %s8911_s27 }
  0x24   :  { %s8926_s20 = sld [smem:[%s12222_s0 + %s8753_s15]]   ;;  %s8757_s15 = smov 27  }
  0x25   :  { %s8931_s27 = sld [smem:[%s12222_s0 + %s8754_s22]]   ;;  %s8758_s22 = smov 28  }
  0x27   :  { %12330 = sst [smem:[#allocation18_spill]] %s8916_s4 }
  0x28   :  { %12331 = sst [smem:[#allocation19_spill]] %s8921_s12 }
  0x29   :  { %s8936_s4 = sld [smem:[%s12222_s0 + %s8755_s28]]   ;;  %s8759_s28 = smov 29  }
  0x2a   :  { %12332 = sst [smem:[#allocation20_spill]] %s8926_s20 }
  0x2b   :  { %12333 = sst [smem:[#allocation21_spill]] %s8931_s27 }
  0x2c   :  { %s8941_s12 = sld [smem:[%s12222_s0 + %s8756_s7]]   ;;  %s8760_s7 = smov 30  }
  0x2d   :  { %s8946_s20 = sld [smem:[%s12222_s0 + %s8757_s15]]   ;;  %s8761_s15 = smov 31  }
  0x2e   :  { %s8951_s27 = sld [smem:[%s12222_s0 + %s8758_s22]]   ;;  %s8762_s22 = smov 32  }
  0x2f   :  { %12334 = sst [smem:[#allocation22_spill]] %s8936_s4 }
  0x30   :  { %s8956_s4 = sld [smem:[%s12222_s0 + %s8759_s28]]   ;;  %s8763_s28 = smov 33  }
  0x32   :  { %12335 = sst [smem:[#allocation23_spill]] %s8941_s12 }
  0x33   :  { %12336 = sst [smem:[#allocation24_spill]] %s8946_s20 }
  0x34   :  { %12337 = sst [smem:[#allocation25_spill]] %s8951_s27 }
  0x35   :  { %s8961_s12 = sld [smem:[%s12222_s0 + %s8760_s7]]   ;;  %s8764_s7 = smov 34  }
  0x36   :  { %12338 = sst [smem:[#allocation26_spill]] %s8956_s4 }
  0x37   :  { %s8966_s20 = sld [smem:[%s12222_s0 + %s8761_s15]]   ;;  %s8765_s15 = smov 35  }
  0x38   :  { %s8971_s27 = sld [smem:[%s12222_s0 + %s8762_s22]]   ;;  %s8766_s22 = smov 36  }
  0x39   :  { %s8976_s4 = sld [smem:[%s12222_s0 + %s8763_s28]]   ;;  %s8767_s28 = smov 37  }
  0x3b   :  { %12339 = sst [smem:[#allocation27_spill]] %s8961_s12 }
  0x3c   :  { %s8981_s12 = sld [smem:[%s12222_s0 + %s8764_s7]]   ;;  %s8768_s7 = smov 38  }
  0x3d   :  { %12340 = sst [smem:[#allocation28_spill]] %s8966_s20 }
  0x3e   :  { %12341 = sst [smem:[#allocation29_spill]] %s8971_s27 }
  0x3f   :  { %12342 = sst [smem:[#allocation30_spill]] %s8976_s4 }
  0x40   :  { %s8986_s20 = sld [smem:[%s12222_s0 + %s8765_s15]]   ;;  %s8769_s15 = smov 39  }
  0x41   :  { %s8991_s27 = sld [smem:[%s12222_s0 + %s8766_s22]]   ;;  %s8770_s22 = smov 40  }
  0x42   :  { %s8996_s4 = sld [smem:[%s12222_s0 + %s8767_s28]]   ;;  %s8771_s28 = smov 41  }
  0x43   :  { %s9001_s6 = sld [smem:[%s12222_s0 + %s8768_s7]]   ;;  %s8772_s7 = smov 42  }
  0x44   :  { %s9006_s30 = sld [smem:[%s12222_s0 + %s8769_s15]]   ;;  %s8773_s15 = smov 43  }
  0x45   :  { %s9011_s24 = sld [smem:[%s12222_s0 + %s8770_s22]]   ;;  %s8774_s22 = smov 44  }
  0x46   :  { %s9021_s14 = sld [smem:[%s12222_s0 + %s8772_s7]]  }
  0x47   :  { %12343 = sst [smem:[#allocation31_spill]] %s8991_s27 }
  0x48   :  { %12344 = sst [smem:[#allocation32_spill]] %s8996_s4 }
  0x49   :  { %s9016_s4 = sld [smem:[%s12222_s0 + %s8771_s28]]   ;;  %s8775_s28 = smov 45  }
  0x4a   :  { %s9026_s27 = sld [smem:[%s12222_s0 + %s8773_s15]]  }
  0x4b   :  { %12345 = sst [smem:[#allocation33_spill]] %s9011_s24 }
  0x4c   :  { %s9031_s24 = sld [smem:[%s12222_s0 + %s8774_s22]]  }
  0x4f   :  { %12346 = sst [smem:[#allocation34_spill]] %s9016_s4 }
  0x50   :  { %s9036_s4 = sld [smem:[%s12222_s0 + %s8775_s28]]  }
  0x51   :  { %96 = vsyncpa [#allocation5], 0  ;;  %s8776_s7 = smov [#allocation4]   ;;  %s8707_s11 = scalar_lea.hbm %s8816_s9, 32 }
  0x52   :  { %s105_s10 = sshll.u32 %s8776_s7, 4  ;;  %p8708_p0 = scmp.ne.s32.totalorder %s8816_s9, %s8707_s11  ;;  %s106_s10 = int_to_ptr.vmem [resolvable:$true] %s105_s10 }
  0x53   :  { %p8711_p1 = scmp.lt.u32.totalorder %s8707_s11, %s8816_s9 }
  0x55   :  { %p8713_p2 = pnand %p8711_p1, %p8708_p0 }
  0x57   :  { %8716 = shalt.err (!%p8713_p2)
}
  0x58   :  { %s8717_s15 = scalar_lea.vmem %s106_s10, 32  ;;  %p8722_p4 = scmp.lt.s32.totalorder %s106_s10, %s106_s10 }
  0x59   :  { %p8718_p3 = scmp.ne.s32.totalorder %s106_s10, %s8717_s15  ;;  %p8723_p5 = scmp.lt.s32.totalorder %s8717_s15, %s8717_s15 }
  0x5b   :  { %p8724_p6 = por %p8723_p5, %p8722_p4 }
  0x5d   :  { %p8725_p7 = pnand %p8724_p6, %p8718_p3 }
  0x5f   :  { %8728 = shalt.err (!%p8725_p7)
}
  0x60   :  { %108 = dma.hbm_to_vmem [thread:$0]  %s8816_s9, 32, %s106_s10, [#allocation5]  }
  0x61   :  { %8729 = dma.done.wait [#allocation5], 32  }
  0x62   :  { %8730 = vsyncadd [#allocation5], 4294967264  ;;  %v433_v0 = vlaneseq  ;;  %v431_v5 = vld [vmem:[%s8811_s5] sm:$0xf]  ;;  %s8777_s0 = smov 17   ;;  %v8778_v12 = vmov 0.0  }
  0x63   :  { %207 = vst [vmem:[#allocation2 + $0x40] sm:$0xff] %v8778_v12  ;;  %208 = vst [vmem:[#allocation2 + $0x48] sm:$0xff] %v8778_v12  ;;  %s8779_s5 = smov 16   ;;  %s8780_s9 = smov 15   ;;  %v12241_v13 = vmov 0   ;;  %vm1088_vm9 = vcmask 1043456  }
  0x64   :  { %v9043_v1 = vshrl.u32 %v433_v0, 7  ;;  %vm9075_vm0 = vcmp.lt.s32.totalorder %v433_v0, 512  ;;  %209 = vst [vmem:[#allocation2 + $0x50] sm:$0xff] %v8778_v12  ;;  %210 = vst [vmem:[#allocation2 + $0x58] sm:$0xff] %v8778_v12  ;;  %s8781_s16 = smov 1   ;;  %s8782_s18 = smov 127   ;;  %1133 = vmatprep.mubr.bf16.mxu0 %v12241_v13  ;;  %1174 = vmatprep.mubr.bf16.mxu1 %v12241_v13 }
  0x65   :  { %199 = vst [vmem:[#allocation2] sm:$0xff] %v8778_v12  ;;  %200 = vst [vmem:[#allocation2 + $0x8] sm:$0xff] %v8778_v12  ;;  %s8783_s22 = smov 113   ;;  %s8784_s23 = smov 112   ;;  %8438 = vset.pattern.permute.xlu0 %v12241_v13  ;;  %8459 = vset.pattern.permute.xlu1 %v12241_v13  ;;  %v1078_v14 = vld [vmem:[%s8821_s13] sm:$0xf] }
  0x66   :  { %v9046_v2 = vsub.s32 2, %v9043_v1  ;;  %v9049_v3 = vsub.s32 0, %v9043_v1  ;;  %v9052_v4 = vsub.s32 3, %v9043_v1  ;;  %v9056_v6 = vsub.s32 1, %v9043_v1  ;;  %201 = vst [vmem:[#allocation2 + $0x10] sm:$0xff] %v8778_v12  ;;  %202 = vst [vmem:[#allocation2 + $0x18] sm:$0xff] %v8778_v12 }
  0x67   :  { %203 = vst [vmem:[#allocation2 + $0x20] sm:$0xff] %v8778_v12  ;;  %204 = vst [vmem:[#allocation2 + $0x28] sm:$0xff] %v8778_v12  ;;  %s8785_s26 = smov 111   ;;  %v8787_v15 = vmov 1966171168   ;;  %v9147_v17 = vand.u32 127, %v433_v0 }
  0x68   :  { %v9059_v7 = vrot.slane %v431_v5, %v9046_v2  ;;  %v9062_v8 = vrot.slane %v431_v5, %v9049_v3  ;;  %v9069_v9 = vrot.slane %v431_v5, %v9052_v4  ;;  %v9072_v10 = vrot.slane %v431_v5, %v9056_v6  ;;  %205 = vst [vmem:[#allocation2 + $0x30] sm:$0xff] %v8778_v12  ;;  %v399_v18 = vld [vmem:[%s8981_s12] sm:$0xf]  ;;  %v400_v37 = vld [vmem:[%s8981_s12 + $0x4] sm:$0xf]  ;;  %s8788_s13 = smov 8  }
  0x69   :  { %206 = vst [vmem:[#allocation2 + $0x38] sm:$0xff] %v8778_v12  ;;  %211 = vst [vmem:[#allocation2 + $0x60] sm:$0xff] %v8778_v12  ;;  %v500_v16 = vunpack.c.l.s4 %v8787_v15  ;;  %vm463_vm1 = vcmp.lt.s32.totalorder %v9147_v17, 17  ;;  %v9152_v22 = vrot.slane %v399_v18, %v9049_v3  ;;  %v9155_v23 = vrot.slane %v399_v18, %v9052_v4  ;;  %v401_v60 = vld [vmem:[%s8981_s12 + $0x8] sm:$0xf]  ;;  %s8793_s28 = smov 120  }
  0x6a   :  { %457 = vrot.lane.b32.xlu1 %v9059_v7, %s8777_s0  ;;  %453 = vrot.lane.b32.xlu0 %v9062_v8, %s8777_s0  ;;  %212 = vst [vmem:[#allocation2 + $0x68] sm:$0xff] %v8778_v12  ;;  %213 = vst [vmem:[#allocation2 + $0x70] sm:$0xff] %v8778_v12  ;;  %v9158_v24 = vrot.slane %v399_v18, %v9056_v6  ;;  %v9161_v25 = vrot.slane %v399_v18, %v9046_v2  ;;  %vm536_vm2 = vcmp.lt.s32.totalorder %v9147_v17, 16  ;;  %vm1084_vm10 = vcmask 588800   ;;  %s8799_s1 = smov 123   ;;  %s8800_s2 = smov 124  }
  0x6b   :  { %214 = vst [vmem:[#allocation2 + $0x78] sm:$0xff] %v8778_v12  ;;  %215 = vst [vmem:[#allocation2 + $0x80] sm:$0xff] %v8778_v12  ;;  %v501_v19 = vunpack.c.0.s8 %v500_v16  ;;  %v9181_v42 = vrot.slane %v400_v37, %v9056_v6  ;;  %v9184_v43 = vrot.slane %v400_v37, %v9049_v3  ;;  %v9187_v44 = vrot.slane %v400_v37, %v9046_v2  ;;  %s12374_s7 = sld [smem:[#allocation8_spill]]  ;;  %s12375_s10 = sld [smem:[#allocation9_spill]] }
  0x6c   :  { %216 = vst [vmem:[#allocation2 + $0x88] sm:$0xff] %v8778_v12  ;;  %217 = vst [vmem:[#allocation2 + $0x90] sm:$0xff] %v8778_v12  ;;  %v9194_v48 = vrot.slane %v400_v37, %v9052_v4  ;;  %vm606_vm3 = vcmp.lt.s32.totalorder %v9147_v17, 15  ;;  %vm676_vm4 = vcmp.lt.s32.totalorder %v9147_v17, 1  ;;  %vm749_vm5 = vcmp.lt.s32.totalorder %v9147_v17, 127  ;;  %s12376_s11 = sld [smem:[#allocation10_spill]] }
  0x6d   :  { %218 = vst [vmem:[#allocation2 + $0x98] sm:$0xff] %v8778_v12  ;;  %219 = vst [vmem:[#allocation2 + $0xa0] sm:$0xff] %v8778_v12  ;;  %v9164_v26 = vsub.s32 %v501_v19, %v9043_v1  ;;  %v9212_v1 = vrot.slane %v401_v60, %v9056_v6  ;;  %vm819_vm6 = vcmp.lt.s32.totalorder %v9147_v17, 113  ;;  %vm889_vm7 = vcmp.lt.s32.totalorder %v9147_v17, 112  ;;  %s12377_s15 = sld [smem:[#allocation11_spill]] }
  0x6e   :  { %220 = vst [vmem:[#allocation2 + $0xa8] sm:$0xff] %v8778_v12  ;;  %221 = vst [vmem:[#allocation2 + $0xb0] sm:$0xff] %v8778_v12  ;;  %459 = vrot.lane.b32.xlu1 %v9069_v9, %s8777_s0  ;;  %455 = vrot.lane.b32.xlu0 %v9072_v10, %s8777_s0  ;;  %vm959_vm8 = vcmp.lt.s32.totalorder %v9147_v17, 111  ;;  %vm8794_vm11 = vmmov 0   ;;  %vm2531_vm12 = vcmask 130048   ;;  %vm3328_vm13 = vcmask 261120  }
  0x6f   :  { %222 = vst [vmem:[#allocation2 + $0xb8] sm:$0xff] %v8778_v12  ;;  %223 = vst [vmem:[#allocation2 + $0xc0] sm:$0xff] %v8778_v12  ;;  %vm6297_vm14 = vcmask 850944   ;;  %vm7435_vm15 = vcmask 1041408  }
  0x70   :  { %224 = vst [vmem:[#allocation2 + $0xc8] sm:$0xff] %v8778_v12  ;;  %225 = vst [vmem:[#allocation2 + $0xd0] sm:$0xff] %v8778_v12 }
  0x71   :  { %226 = vst [vmem:[#allocation2 + $0xd8] sm:$0xff] %v8778_v12  ;;  %227 = vst [vmem:[#allocation2 + $0xe0] sm:$0xff] %v8778_v12 }
  0x72   :  { %228 = vst [vmem:[#allocation2 + $0xe8] sm:$0xff] %v8778_v12  ;;  %229 = vst [vmem:[#allocation2 + $0xf0] sm:$0xff] %v8778_v12  ;;  %530 = vrot.lane.b32.xlu1 %v9072_v10, %s8779_s5  ;;  %528 = vrot.lane.b32.xlu0 %v9062_v8, %s8779_s5 }
  0x73   :  { %230 = vst [vmem:[#allocation2 + $0xf8] sm:$0xff] %v8778_v12  ;;  %231 = vst [vmem:[#allocation2 + $0x100] sm:$0xff] %v8778_v12 }
  0x74   :  { %232 = vst [vmem:[#allocation2 + $0x108] sm:$0xff] %v8778_v12  ;;  %233 = vst [vmem:[#allocation2 + $0x110] sm:$0xff] %v8778_v12 }
  0x75   :  { %234 = vst [vmem:[#allocation2 + $0x118] sm:$0xff] %v8778_v12  ;;  %391 = vst [vmem:[#allocation3 + $0x60] sm:$0xff] %v8778_v12 }
  0x76   :  { %392 = vst [vmem:[#allocation3 + $0x68] sm:$0xff] %v8778_v12  ;;  %393 = vst [vmem:[#allocation3 + $0x70] sm:$0xff] %v8778_v12  ;;  %534 = vrot.lane.b32.xlu1 %v9069_v9, %s8779_s5  ;;  %532 = vrot.lane.b32.xlu0 %v9059_v7, %s8779_s5 }
  0x77   :  { %394 = vst [vmem:[#allocation3 + $0x78] sm:$0xff] %v8778_v12  ;;  %395 = vst [vmem:[#allocation3 + $0x80] sm:$0xff] %v8778_v12 }
  0x78   :  { %396 = vst [vmem:[#allocation3 + $0x88] sm:$0xff] %v8778_v12  ;;  %397 = vst [vmem:[#allocation3 + $0x90] sm:$0xff] %v8778_v12 }
  0x79   :  { %398 = vst [vmem:[#allocation3 + $0x98] sm:$0xff] %v8778_v12  ;;  %739 = vst.msk [vmem:[#allocation2 + $0x80] ss:$8 sm:$0xf] %vm9075_vm0, %v431_v5  ;;  %v9215_v5 = vrot.slane %v401_v60, %v9049_v3  ;;  %v9225_v12 = vrot.slane %v401_v60, %v9052_v4 }
  0x7a   :  { %600 = vrot.lane.b32.xlu1 %v9072_v10, %s8780_s9  ;;  %598 = vrot.lane.b32.xlu0 %v9062_v8, %s8780_s9  ;;  %12349 = vst [vmem:[#allocation35_spill] sm:$0xff] %v9152_v22  ;;  %12350 = vst [vmem:[#allocation36_spill] sm:$0xff] %v9155_v23 }
  0x7b   :  { %12351 = vst [vmem:[#allocation37_spill] sm:$0xff] %v9158_v24 }
  0x7e   :  { %604 = vrot.lane.b32.xlu1 %v9069_v9, %s8780_s9  ;;  %602 = vrot.lane.b32.xlu0 %v9059_v7, %s8780_s9 }
  0x82   :  { %670 = vrot.lane.b32.xlu1 %v9072_v10, %s8781_s16  ;;  %668 = vrot.lane.b32.xlu0 %v9062_v8, %s8781_s16 }
  0x86   :  { %674 = vrot.lane.b32.xlu1 %v9069_v9, %s8781_s16  ;;  %672 = vrot.lane.b32.xlu0 %v9059_v7, %s8781_s16 }
  0x8a   :  { %743 = vrot.lane.b32.xlu1 %v9072_v10, %s8782_s18  ;;  %741 = vrot.lane.b32.xlu0 %v9062_v8, %s8782_s18 }
  0x8e   :  { %747 = vrot.lane.b32.xlu1 %v9069_v9, %s8782_s18  ;;  %745 = vrot.lane.b32.xlu0 %v9059_v7, %s8782_s18 }
  0x92   :  { %813 = vrot.lane.b32.xlu1 %v9072_v10, %s8783_s22  ;;  %811 = vrot.lane.b32.xlu0 %v9062_v8, %s8783_s22 }
  0x96   :  { %817 = vrot.lane.b32.xlu1 %v9069_v9, %s8783_s22  ;;  %815 = vrot.lane.b32.xlu0 %v9059_v7, %s8783_s22 }
  0x9a   :  { %883 = vrot.lane.b32.xlu1 %v9072_v10, %s8784_s23  ;;  %881 = vrot.lane.b32.xlu0 %v9062_v8, %s8784_s23 }
  0x9e   :  { %887 = vrot.lane.b32.xlu1 %v9069_v9, %s8784_s23  ;;  %885 = vrot.lane.b32.xlu0 %v9059_v7, %s8784_s23 }
  0xa2   :  { %953 = vrot.lane.b32.xlu1 %v9072_v10, %s8785_s26  ;;  %951 = vrot.lane.b32.xlu0 %v9062_v8, %s8785_s26 }
  0xa6   :  { %957 = vrot.lane.b32.xlu1 %v9069_v9, %s8785_s26  ;;  %955 = vrot.lane.b32.xlu0 %v9059_v7, %s8785_s26  ;;  %v9218_v7 = vrot.slane %v401_v60, %v9046_v2 }
  0xaa   :  { %1081 = vperm.xlu0 %8438, %v1078_v14  }
  0xdc   :  { %v458_v20 = vpop.permute.xlu1 %457  ;;  %v454_v21 = vpop.permute.xlu0 %453 }
  0xe0   :  { %v460_v27 = vpop.permute.xlu1 %459  ;;  %v456_v28 = vpop.permute.xlu0 %455 }
  0xe1   :  { %v464_v29 = vsel %vm463_vm1, %v458_v20, %v460_v27  ;;  %v467_v30 = vsel %vm463_vm1, %v460_v27, %v454_v21  ;;  %v465_v31 = vsel %vm463_vm1, %v456_v28, %v458_v20  ;;  %v466_v32 = vsel %vm463_vm1, %v454_v21, %v456_v28 }
  0xe2   :  { %v489_v33 = vmul.f32 %v9152_v22, %v467_v30  ;;  %v492_v34 = vmul.f32 %v9155_v23, %v464_v29  ;;  %v490_v35 = vmul.f32 %v9158_v24, %v466_v32  ;;  %v491_v36 = vmul.f32 %v9161_v25, %v465_v31  ;;  %v402_v31 = vld [vmem:[%s8981_s12 + $0xc] sm:$0xf] }
  0xe3   :  { %v9246_v37 = vrot.slane %v402_v31, %v9049_v3 }
  0xe4   :  { %v497_v38 = vcombine.low %v489_v33, %v490_v35  ;;  %v498_v39 = vcombine.low %v491_v36, %v492_v34  ;;  %v531_v40 = vpop.permute.xlu1 %530  ;;  %v529_v41 = vpop.permute.xlu0 %528  ;;  %v9243_v36 = vrot.slane %v402_v31, %v9056_v6 }
  0xe5   :  { %v539_v47 = vsel %vm536_vm2, %v529_v41, %v531_v40  ;;  %12353 = vst [vmem:[#allocation39_spill] sm:$0xff] %v9246_v37 }
  0xe6   :  { %v505_v45 = vrot.slane %v497_v38, %v9164_v26  ;;  %v512_v46 = vrot.slane %v498_v39, %v9164_v26  ;;  %v563_v52 = vmul.f32 %v9181_v42, %v539_v47  ;;  %12352 = vst [vmem:[#allocation38_spill] sm:$0xff] %v9243_v36  ;;  %v9249_v38 = vrot.slane %v402_v31, %v9046_v2 }
  0xe8   :  { %v513_v49 = vcombine.low %v505_v45, %v512_v46  ;;  %v535_v50 = vpop.permute.xlu1 %534  ;;  %v533_v51 = vpop.permute.xlu0 %532  ;;  %12354 = vst [vmem:[#allocation40_spill] sm:$0xff] %v9249_v38  ;;  %v9256_v45 = vrot.slane %v402_v31, %v9052_v4 }
  0xe9   :  { %v540_v53 = vsel %vm536_vm2, %v535_v50, %v529_v41  ;;  %v537_v54 = vsel %vm536_vm2, %v533_v51, %v535_v50  ;;  %v538_v55 = vsel %vm536_vm2, %v531_v40, %v533_v51  ;;  %v403_v50 = vld [vmem:[%s8981_s12 + $0x14] sm:$0xf] }
  0xea   :  { %v520_v56 = vrot.slane %v513_v49, %v9164_v26  ;;  %v562_v57 = vmul.f32 %v9184_v43, %v540_v53  ;;  %v564_v58 = vmul.f32 %v9187_v44, %v538_v55  ;;  %v565_v59 = vmul.f32 %v9194_v48, %v537_v54  ;;  %12355 = vst [vmem:[#allocation41_spill] sm:$0xff] %v9256_v45 }
  0xec   :  { %v570_v61 = vcombine.low %v562_v57, %v563_v52  ;;  %v571_v62 = vcombine.low %v564_v58, %v565_v59  ;;  %v601_v63 = vpop.permute.xlu1 %600  ;;  %v599_v0 = vpop.permute.xlu0 %598  ;;  %526 = vst.msk [vmem:[#allocation2] ss:$8 sm:$0xf] %vm9075_vm0, %v520_v56 }
  0xed   :  { %v609_v10 = vsel %vm606_vm3, %v599_v0, %v601_v63 }
  0xee   :  { %v578_v8 = vrot.slane %v570_v61, %v9164_v26  ;;  %v585_v9 = vrot.slane %v571_v62, %v9164_v26  ;;  %v633_v18 = vmul.f32 %v9212_v1, %v609_v10  ;;  %v9272_v61 = vrot.slane %v403_v50, %v9049_v3 }
  0xf0   :  { %v586_v14 = vcombine.low %v578_v8, %v585_v9  ;;  %v605_v15 = vpop.permute.xlu1 %604  ;;  %v603_v16 = vpop.permute.xlu0 %602  ;;  %12356 = vst [vmem:[#allocation42_spill] sm:$0xff] %v9272_v61  ;;  %v9275_v8 = vrot.slane %v403_v50, %v9052_v4 }
  0xf1   :  { %v610_v19 = vsel %vm606_vm3, %v605_v15, %v599_v0  ;;  %v607_v20 = vsel %vm606_vm3, %v603_v16, %v605_v15  ;;  %v608_v21 = vsel %vm606_vm3, %v601_v63, %v603_v16 }
  0xf2   :  { %v593_v27 = vrot.slane %v586_v14, %v9164_v26  ;;  %v632_v28 = vmul.f32 %v9215_v5, %v610_v19  ;;  %v634_v29 = vmul.f32 %v9218_v7, %v608_v21  ;;  %v635_v30 = vmul.f32 %v9225_v12, %v607_v20  ;;  %12357 = vst [vmem:[#allocation43_spill] sm:$0xff] %v9275_v8 }
  0xf3   :  { %v1022_v59 = vld [vmem:[#allocation2 + $0x8] sm:$0xff]  ;;  %v1024_v60 = vld [vmem:[#allocation2 + $0x18] sm:$0xff]  ;;  %v1021_v19 = vld [vmem:[#allocation2] sm:$0xff] }
  0xf4   :  { %v640_v32 = vcombine.low %v632_v28, %v633_v18  ;;  %v641_v33 = vcombine.low %v634_v29, %v635_v30  ;;  %v671_v34 = vpop.permute.xlu1 %670  ;;  %596 = vst.msk [vmem:[#allocation2 + $0x20] ss:$8 sm:$0xf] %vm9075_vm0, %v593_v27  ;;  %v669_v35 = vpop.permute.xlu0 %668  ;;  %v1023_v20 = vld [vmem:[#allocation2 + $0x10] sm:$0xff]  ;;  %v9280_v29 = vrot.slane %v403_v50, %v9056_v6  ;;  %v9283_v30 = vrot.slane %v403_v50, %v9046_v2 }
  0xf5   :  { %v679_v41 = vsel %vm676_vm4, %v669_v35, %v671_v34 }
  0xf6   :  { %v648_v39 = vrot.slane %v640_v32, %v9164_v26  ;;  %v655_v40 = vrot.slane %v641_v33, %v9164_v26  ;;  %v703_v51 = vmul.f32 %v9243_v36, %v679_v41  ;;  %12358 = vst [vmem:[#allocation44_spill] sm:$0xff] %v9280_v29  ;;  %12359 = vst [vmem:[#allocation45_spill] sm:$0xff] %v9283_v30 }
  0xf8   :  { %v656_v46 = vcombine.low %v648_v39, %v655_v40  ;;  %v675_v47 = vpop.permute.xlu1 %674  ;;  %v673_v49 = vpop.permute.xlu0 %672 }
  0xf9   :  { %v680_v52 = vsel %vm676_vm4, %v675_v47, %v669_v35  ;;  %v677_v53 = vsel %vm676_vm4, %v673_v49, %v675_v47  ;;  %v678_v54 = vsel %vm676_vm4, %v671_v34, %v673_v49 }
  0xfa   :  { %v663_v55 = vrot.slane %v656_v46, %v9164_v26  ;;  %v702_v56 = vmul.f32 %v9246_v37, %v680_v52  ;;  %v704_v57 = vmul.f32 %v9249_v38, %v678_v54  ;;  %v705_v58 = vmul.f32 %v9256_v45, %v677_v53  ;;  %v404_v53 = vld [vmem:[%s8981_s12 + $0x18] sm:$0xf] }
  0xfb   :  { %v1026_v62 = vld [vmem:[#allocation2 + $0x28] sm:$0xff]  ;;  %v1028_v63 = vld [vmem:[#allocation2 + $0x38] sm:$0xff]  ;;  %v1025_v0 = vld [vmem:[#allocation2 + $0x20] sm:$0xff] }
  0xfc   :  { %666 = vst.msk [vmem:[#allocation2 + $0x40] ss:$8 sm:$0xf] %vm9075_vm0, %v663_v55  ;;  %v710_v9 = vcombine.low %v702_v56, %v703_v51  ;;  %v711_v10 = vcombine.low %v704_v57, %v705_v58  ;;  %v744_v14 = vpop.permute.xlu1 %743  ;;  %v742_v15 = vpop.permute.xlu0 %741  ;;  %v1058_v16 = vpack.c.bf16 %v1026_v62, %v1022_v59  ;;  %v1060_v18 = vpack.c.bf16 %v1028_v63, %v1024_v60  ;;  %v1027_v21 = vld [vmem:[#allocation2 + $0x30] sm:$0xff] }
  0xfd   :  { %v1057_v27 = vpack.c.bf16 %v1025_v0, %v1021_v19  ;;  %v1059_v28 = vpack.c.bf16 %v1027_v21, %v1023_v20  ;;  %v752_v33 = vsel %vm749_vm5, %v742_v15, %v744_v14  ;;  %v9305_v58 = vrot.slane %v404_v53, %v9049_v3 }
  0xfe   :  { %v718_v31 = vrot.slane %v710_v9, %v9164_v26  ;;  %v725_v32 = vrot.slane %v711_v10, %v9164_v26  ;;  %1101 = vmatprep.subr.bf16.mxu0 %v1058_v16  ;;  %1142 = vmatprep.subr.bf16.mxu1 %v1060_v18  ;;  %v775_v40 = vmul.f32 %v9272_v61, %v752_v33  ;;  %v405_v16 = vld [vmem:[%s8981_s12 + $0x1c] sm:$0xf] }
  0xff   :  { %1102 = vmatpush1.bf16.msra.mxu0 %v1057_v27  ;;  %1143 = vmatpush1.bf16.msra.mxu1 %v1059_v28  ;;  %12360 = vst [vmem:[#allocation46_spill] sm:$0xff] %v9305_v58  ;;  %v9308_v59 = vrot.slane %v404_v53, %v9052_v4  ;;  %v9311_v60 = vrot.slane %v404_v53, %v9056_v6 }
 0x100   :  { %v726_v34 = vcombine.low %v718_v31, %v725_v32  ;;  %v748_v35 = vpop.permute.xlu1 %747  ;;  %v746_v39 = vpop.permute.xlu0 %745  ;;  %v9318_v9 = vrot.slane %v404_v53, %v9046_v2 }
 0x101   :  { %v753_v41 = vsel %vm749_vm5, %v748_v35, %v742_v15  ;;  %v750_v46 = vsel %vm749_vm5, %v746_v39, %v748_v35  ;;  %v751_v47 = vsel %vm749_vm5, %v744_v14, %v746_v39  ;;  %12361 = vst [vmem:[#allocation47_spill] sm:$0xff] %v9308_v59  ;;  %12362 = vst [vmem:[#allocation48_spill] sm:$0xff] %v9311_v60 }
 0x102   :  { %v733_v49 = vrot.slane %v726_v34, %v9164_v26  ;;  %v778_v50 = vmul.f32 %v9275_v8, %v753_v41  ;;  %v776_v51 = vmul.f32 %v9280_v29, %v751_v47  ;;  %v777_v52 = vmul.f32 %v9283_v30, %v750_v46  ;;  %12363 = vst [vmem:[#allocation49_spill] sm:$0xff] %v9318_v9 }
 0x103   :  { %v1030_v33 = vld [vmem:[#allocation2 + $0x48] sm:$0xff]  ;;  %v1032_v34 = vld [vmem:[#allocation2 + $0x58] sm:$0xff]  ;;  %v9334_v35 = vrot.slane %v405_v16, %v9049_v3  ;;  %v9337_v46 = vrot.slane %v405_v16, %v9052_v4 }
 0x104   :  { %736 = vst.msk [vmem:[#allocation2 + $0x60] ss:$8 sm:$0xf] %vm9075_vm0, %v733_v49  ;;  %v783_v54 = vcombine.low %v775_v40, %v776_v51  ;;  %v784_v55 = vcombine.low %v777_v52, %v778_v50  ;;  %v814_v56 = vpop.permute.xlu1 %813  ;;  %v812_v57 = vpop.permute.xlu0 %811 }
 0x105   :  { %v822_v0 = vsel %vm819_vm6, %v812_v57, %v814_v56  ;;  %12364 = vst [vmem:[#allocation50_spill] sm:$0xff] %v9334_v35  ;;  %12365 = vst [vmem:[#allocation51_spill] sm:$0xff] %v9337_v46 }
 0x106   :  { %v791_v62 = vrot.slane %v783_v54, %v9164_v26  ;;  %v798_v63 = vrot.slane %v784_v55, %v9164_v26  ;;  %v845_v18 = vmul.f32 %v9305_v58, %v822_v0  ;;  %v1029_v54 = vld [vmem:[#allocation2 + $0x40] sm:$0xff]  ;;  %v1031_v55 = vld [vmem:[#allocation2 + $0x50] sm:$0xff]  ;;  %v9345_v0 = vrot.slane %v405_v16, %v9046_v2 }
 0x108   :  { %v799_v10 = vcombine.low %v791_v62, %v798_v63  ;;  %v818_v14 = vpop.permute.xlu1 %817  ;;  %v816_v15 = vpop.permute.xlu0 %815  ;;  %v9342_v63 = vrot.slane %v405_v16, %v9056_v6  ;;  %12367 = vst [vmem:[#allocation53_spill] sm:$0xff] %v9345_v0 }
 0x109   :  { %v823_v19 = vsel %vm819_vm6, %v818_v14, %v812_v57  ;;  %v820_v20 = vsel %vm819_vm6, %v816_v15, %v818_v14  ;;  %v821_v21 = vsel %vm819_vm6, %v814_v56, %v816_v15 }
 0x10a   :  { %v806_v27 = vrot.slane %v799_v10, %v9164_v26  ;;  %v848_v28 = vmul.f32 %v9308_v59, %v823_v19  ;;  %v846_v31 = vmul.f32 %v9311_v60, %v821_v21  ;;  %v847_v32 = vmul.f32 %v9318_v9, %v820_v20  ;;  %12366 = vst [vmem:[#allocation52_spill] sm:$0xff] %v9342_v63  ;;  %v406_v21 = vld [vmem:[%s8981_s12 + $0x20] sm:$0xf]  ;;  %s8792_s12 = smov 119  }
 0x10b   :  { %v1034_v39 = vld [vmem:[#allocation2 + $0x68] sm:$0xff]  ;;  %v1036_v40 = vld [vmem:[#allocation2 + $0x78] sm:$0xff]  ;;  %v1033_v41 = vld [vmem:[#allocation2 + $0x60] sm:$0xff] }
 0x10c   :  { %809 = vst.msk [vmem:[#allocation2 + $0xa0] ss:$8 sm:$0xf] %vm9075_vm0, %v806_v27  ;;  %v853_v47 = vcombine.low %v845_v18, %v846_v31  ;;  %v854_v49 = vcombine.low %v847_v32, %v848_v28  ;;  %v884_v50 = vpop.permute.xlu1 %883  ;;  %v882_v51 = vpop.permute.xlu0 %881  ;;  %v1062_v52 = vpack.c.bf16 %v1034_v39, %v1030_v33  ;;  %v1064_v53 = vpack.c.bf16 %v1036_v40, %v1032_v34  ;;  %v1035_v56 = vld [vmem:[#allocation2 + $0x70] sm:$0xff]  ;;  %v1038_v32 = vld [vmem:[#allocation2 + $0x88] sm:$0xff]  ;;  %v1040_v33 = vld [vmem:[#allocation2 + $0x98] sm:$0xff] }
 0x10d   :  { %v1061_v57 = vpack.c.bf16 %v1033_v41, %v1029_v54  ;;  %v1063_v62 = vpack.c.bf16 %v1035_v56, %v1031_v55  ;;  %v892_v15 = vsel %vm889_vm7, %v882_v51, %v884_v50  ;;  %v9368_v54 = vrot.slane %v406_v21, %v9052_v4 }
 0x10e   :  { %v861_v10 = vrot.slane %v853_v47, %v9164_v26  ;;  %v868_v14 = vrot.slane %v854_v49, %v9164_v26  ;;  %1103 = vmatprep.subr.bf16.mxu0 %v1062_v52  ;;  %1144 = vmatprep.subr.bf16.mxu1 %v1064_v53  ;;  %v915_v27 = vmul.f32 %v9334_v35, %v892_v15  ;;  %v1037_v47 = vld [vmem:[#allocation2 + $0x80] sm:$0xff]  ;;  %v1039_v49 = vld [vmem:[#allocation2 + $0x90] sm:$0xff] }
 0x10f   :  { %1104 = vmatpush1.bf16.msra.mxu0 %v1061_v57  ;;  %1145 = vmatpush1.bf16.msra.mxu1 %v1063_v62  ;;  %12369 = vst [vmem:[#allocation55_spill] sm:$0xff] %v9368_v54 }
 0x110   :  { %v869_v18 = vcombine.low %v861_v10, %v868_v14  ;;  %v888_v19 = vpop.permute.xlu1 %887  ;;  %v886_v20 = vpop.permute.xlu0 %885 }
 0x111   :  { %v893_v16 = vsel %vm889_vm7, %v888_v19, %v882_v51  ;;  %v890_v28 = vsel %vm889_vm7, %v886_v20, %v888_v19  ;;  %v891_v31 = vsel %vm889_vm7, %v884_v50, %v886_v20  ;;  %v9365_v51 = vrot.slane %v406_v21, %v9049_v3 }
 0x112   :  { %v876_v34 = vrot.slane %v869_v18, %v9164_v26  ;;  %v918_v39 = vmul.f32 %v9337_v46, %v893_v16  ;;  %v916_v40 = vmul.f32 %v9342_v63, %v891_v31  ;;  %v917_v41 = vmul.f32 %v9345_v0, %v890_v28 }
 0x113   :  { %12368 = vst [vmem:[#allocation54_spill] sm:$0xff] %v9365_v51  ;;  %v1042_v52 = vld [vmem:[#allocation2 + $0xa8] sm:$0xff]  ;;  %v1044_v53 = vld [vmem:[#allocation2 + $0xb8] sm:$0xff]  ;;  %v1041_v50 = vld [vmem:[#allocation2 + $0xa0] sm:$0xff]  ;;  %v9373_v3 = vrot.slane %v406_v21, %v9056_v6  ;;  %v9376_v20 = vrot.slane %v406_v21, %v9046_v2 }
 0x114   :  { %879 = vst.msk [vmem:[#allocation2 + $0xc0] ss:$8 sm:$0xf] %vm9075_vm0, %v876_v34  ;;  %v923_v55 = vcombine.low %v915_v27, %v916_v40  ;;  %v924_v56 = vcombine.low %v917_v41, %v918_v39  ;;  %v954_v57 = vpop.permute.xlu1 %953  ;;  %v952_v62 = vpop.permute.xlu0 %951  ;;  %v1066_v10 = vpack.c.bf16 %v1042_v52, %v1038_v32  ;;  %v1068_v14 = vpack.c.bf16 %v1044_v53, %v1040_v33  ;;  %v1043_v15 = vld [vmem:[#allocation2 + $0xb0] sm:$0xff] }
 0x115   :  { %v1065_v18 = vpack.c.bf16 %v1041_v50, %v1037_v47  ;;  %v1067_v19 = vpack.c.bf16 %v1043_v15, %v1039_v49  ;;  %12370 = vst [vmem:[#allocation56_spill] sm:$0xff] %v9373_v3  ;;  %12371 = vst [vmem:[#allocation57_spill] sm:$0xff] %v9376_v20  ;;  %v962_v27 = vsel %vm959_vm8, %v952_v62, %v954_v57 }
 0x116   :  { %v931_v4 = vrot.slane %v923_v55, %v9164_v26  ;;  %v938_v16 = vrot.slane %v924_v56, %v9164_v26  ;;  %1105 = vmatprep.subr.bf16.mxu0 %v1066_v10  ;;  %1146 = vmatprep.subr.bf16.mxu1 %v1068_v14  ;;  %v985_v6 = vmul.f32 %v9365_v51, %v962_v27 }
 0x117   :  { %1106 = vmatpush1.bf16.msra.mxu0 %v1065_v18  ;;  %1147 = vmatpush1.bf16.msra.mxu1 %v1067_v19 }
 0x118   :  { %v939_v28 = vcombine.low %v931_v4, %v938_v16  ;;  %v958_v31 = vpop.permute.xlu1 %957  ;;  %v956_v32 = vpop.permute.xlu0 %955 }
 0x119   :  { %v963_v2 = vsel %vm959_vm8, %v958_v31, %v952_v62  ;;  %v960_v21 = vsel %vm959_vm8, %v956_v32, %v958_v31  ;;  %v961_v33 = vsel %vm959_vm8, %v954_v57, %v956_v32 }
 0x11a   :  { %v946_v34 = vrot.slane %v939_v28, %v9164_v26  ;;  %v988_v39 = vmul.f32 %v9368_v54, %v963_v2  ;;  %v986_v40 = vmul.f32 %v9373_v3, %v961_v33  ;;  %v987_v41 = vmul.f32 %v9376_v20, %v960_v21 }
 0x11b   :  { %v1046_v56 = vld [vmem:[#allocation2 + $0xc8] sm:$0xff]  ;;  %v1048_v57 = vld [vmem:[#allocation2 + $0xd8] sm:$0xff]  ;;  %v1045_v62 = vld [vmem:[#allocation2 + $0xc0] sm:$0xff] }
 0x11c   :  { %949 = vst.msk [vmem:[#allocation2 + $0xe0] ss:$8 sm:$0xf] %vm9075_vm0, %v946_v34  ;;  %v993_v47 = vcombine.low %v985_v6, %v986_v40  ;;  %v994_v49 = vcombine.low %v987_v41, %v988_v39  ;;  %v1047_v16 = vld [vmem:[#allocation2 + $0xd0] sm:$0xff]  ;;  %v1077_v40 = vld [vmem:[#allocation4] sm:$0x3] }
 0x11e   :  { %v1001_v52 = vrot.slane %v993_v47, %v9164_v26  ;;  %v1008_v53 = vrot.slane %v994_v49, %v9164_v26 }
 0x120   :  { %v1009_v50 = vcombine.low %v1001_v52, %v1008_v53 }
 0x122   :  { %v1016_v55 = vrot.slane %v1009_v50, %v9164_v26 }
 0x123   :  { %v1050_v10 = vld [vmem:[#allocation2 + $0xe8] sm:$0xff]  ;;  %v1052_v14 = vld [vmem:[#allocation2 + $0xf8] sm:$0xff]  ;;  %v1049_v15 = vld [vmem:[#allocation2 + $0xe0] sm:$0xff] }
 0x124   :  { %1019 = vst.msk [vmem:[#allocation2 + $0x100] ss:$8 sm:$0xf] %vm9075_vm0, %v1016_v55  ;;  %v1070_v18 = vpack.c.bf16 %v1050_v10, %v1046_v56  ;;  %v1072_v19 = vpack.c.bf16 %v1052_v14, %v1048_v57  ;;  %v1069_v4 = vpack.c.bf16 %v1049_v15, %v1045_v62  ;;  %v1051_v27 = vld [vmem:[#allocation2 + $0xf0] sm:$0xff]  ;;  %vm7413_vm0 = vcmask 31744  }
 0x125   :  { %v1071_v28 = vpack.c.bf16 %v1051_v27, %v1047_v16  ;;  %v1408_v27 = vld [vmem:[%s8831_s21] sm:$0xf]  ;;  %s8790_s21 = smov 7  }
 0x126   :  { %1107 = vmatprep.subr.bf16.mxu0 %v1070_v18  ;;  %1148 = vmatprep.subr.bf16.mxu1 %v1072_v19 }
 0x127   :  { %1108 = vmatpush1.bf16.msra.mxu0 %v1069_v4  ;;  %1149 = vmatpush1.bf16.msra.mxu1 %v1071_v28 }
 0x129   :  { %v1082_v41 = vpop.permute.xlu0 %1081 }
 0x12b   :  { %v1054_v26 = vld [vmem:[#allocation2 + $0x108] sm:$0xff]  ;;  %v1056_v31 = vld [vmem:[#allocation2 + $0x118] sm:$0xff]  ;;  %v1053_v32 = vld [vmem:[#allocation2 + $0x100] sm:$0xff] }
 0x12c   :  { %v1074_v6 = vpack.c.bf16 %v1054_v26, %v1054_v26  ;;  %v1076_v2 = vpack.c.bf16 %v1056_v31, %v1056_v31  ;;  %v1073_v21 = vpack.c.bf16 %v1053_v32, %v1053_v32  ;;  %v1055_v33 = vld [vmem:[#allocation2 + $0x110] sm:$0xff] }
 0x12d   :  { %v1075_v11 = vpack.c.bf16 %v1055_v33, %v1055_v33 }
 0x12e   :  { %7752 = vmatprep.subr.msk.bf16.mxu0 %vm1088_vm9, %v1074_v6  ;;  %7754 = vmatprep.subr.msk.bf16.mxu1 %vm1088_vm9, %v1076_v2  ;;  %v1090_v34 = vsel %vm1088_vm9, %v1073_v21, 0 }
 0x12f   :  { %1110 = vmatpush1.bf16.msra.mxu0 %v1090_v34  ;;  %v1096_v39 = vsel %vm1088_vm9, %v1075_v11, 0 }
 0x130   :  { %1151 = vmatpush1.bf16.msra.mxu1 %v1096_v39 }
 0x132   :  { %7753 = vmatmul.mubr.msk.bf16.vlgmr.msra.gmra.mrb[0].mxu0 %vm1084_vm10, %v1077_v40 }
 0x133   :  { %7755 = vmatmul.mubr.msk.bf16.vlgmr.msra.gmra.mrb[0].mxu1 %vm1084_vm10, %v1077_v40  ;;  %1461 = vmatprep.mubr.bf16.mxu0 %v12241_v13 }
 0x134   :  { %1502 = vmatprep.mubr.bf16.mxu1 %v12241_v13 }
 0x205   :  { %v1135_v47 = vpop.f32.mrb[0].mxu0 }
 0x206   :  { %v1136_v49 = vadd.f32 %v1135_v47, %v1082_v41  ;;  %v1176_v52 = vpop.f32.mrb[0].mxu1  ;;  %v1137_v53 = vpop.f32.mrb[1].mxu0 }
 0x207   :  { %v1177_v50 = vadd.f32 %v1176_v52, %v1082_v41  ;;  %v1138_v55 = vadd.f32 %v1137_v53, %v1082_v41  ;;  %v1178_v56 = vpop.f32.mrb[1].mxu1  ;;  %v1139_v57 = vpop.f32.mrb[2].mxu0 }
 0x208   :  { %v1183_v62 = vmax.f32 %v1136_v49, 0.0  ;;  %v1179_v10 = vadd.f32 %v1178_v56, %v1082_v41  ;;  %v1140_v14 = vpop.f32.mrb[3].mxu0  ;;  %v1180_v15 = vpop.f32.mrb[2].mxu1 }
 0x209   :  { %v1185_v18 = vmax.f32 %v1177_v50, 0.0  ;;  %v1184_v19 = vmax.f32 %v1138_v55, 0.0  ;;  %v1181_v4 = vpop.f32.mrb[3].mxu1 }
 0x20a   :  { %1267 = vst [vmem:[#allocation2 + $0x80] sm:$0xf] %v1183_v62  ;;  %v1186_v16 = vmax.f32 %v1179_v10, 0.0  ;;  %1187 = vrot.lane.b32.xlu1 %v1183_v62, %s8777_s0 }
 0x20b   :  { %1269 = vst [vmem:[#allocation2 + $0x90] sm:$0xf] %v1185_v18  ;;  %1268 = vst [vmem:[#allocation2 + $0x88] sm:$0xf] %v1184_v19  ;;  %1191 = vrot.lane.b32.xlu0 %v1185_v18, %s8777_s0 }
 0x20c   :  { %1270 = vst [vmem:[#allocation2 + $0x98] sm:$0xf] %v1186_v16 }
 0x20e   :  { %1189 = vrot.lane.b32.xlu1 %v1184_v19, %s8777_s0 }
 0x20f   :  { %1207 = vrot.lane.b32.xlu0 %v1183_v62, %s8779_s5 }
 0x212   :  { %1193 = vrot.lane.b32.xlu1 %v1186_v16, %s8777_s0 }
 0x213   :  { %1211 = vrot.lane.b32.xlu0 %v1185_v18, %s8779_s5 }
 0x216   :  { %1209 = vrot.lane.b32.xlu1 %v1184_v19, %s8779_s5 }
 0x217   :  { %1227 = vrot.lane.b32.xlu0 %v1183_v62, %s8780_s9 }
 0x21a   :  { %1213 = vrot.lane.b32.xlu1 %v1186_v16, %s8779_s5 }
 0x21b   :  { %1231 = vrot.lane.b32.xlu0 %v1185_v18, %s8780_s9 }
 0x21e   :  { %1229 = vrot.lane.b32.xlu1 %v1184_v19, %s8780_s9 }
 0x21f   :  { %1247 = vrot.lane.b32.xlu0 %v1183_v62, %s8781_s16 }
 0x222   :  { %1233 = vrot.lane.b32.xlu1 %v1186_v16, %s8780_s9 }
 0x223   :  { %1251 = vrot.lane.b32.xlu0 %v1185_v18, %s8781_s16 }
 0x226   :  { %1249 = vrot.lane.b32.xlu1 %v1184_v19, %s8781_s16 }
 0x227   :  { %1271 = vrot.lane.b32.xlu0 %v1183_v62, %s8782_s18 }
 0x22a   :  { %1253 = vrot.lane.b32.xlu1 %v1186_v16, %s8781_s16 }
 0x22b   :  { %1275 = vrot.lane.b32.xlu0 %v1185_v18, %s8782_s18 }
 0x22e   :  { %1273 = vrot.lane.b32.xlu1 %v1184_v19, %s8782_s18 }
 0x22f   :  { %1291 = vrot.lane.b32.xlu0 %v1183_v62, %s8783_s22 }
 0x232   :  { %1277 = vrot.lane.b32.xlu1 %v1186_v16, %s8782_s18 }
 0x233   :  { %1295 = vrot.lane.b32.xlu0 %v1185_v18, %s8783_s22 }
 0x236   :  { %1293 = vrot.lane.b32.xlu1 %v1184_v19, %s8783_s22 }
 0x237   :  { %1311 = vrot.lane.b32.xlu0 %v1183_v62, %s8784_s23 }
 0x23a   :  { %1297 = vrot.lane.b32.xlu1 %v1186_v16, %s8783_s22 }
 0x23b   :  { %1315 = vrot.lane.b32.xlu0 %v1185_v18, %s8784_s23 }
 0x23e   :  { %1313 = vrot.lane.b32.xlu1 %v1184_v19, %s8784_s23 }
 0x23f   :  { %1331 = vrot.lane.b32.xlu0 %v1183_v62, %s8785_s26 }
 0x242   :  { %1317 = vrot.lane.b32.xlu1 %v1186_v16, %s8784_s23 }
 0x243   :  { %1335 = vrot.lane.b32.xlu0 %v1185_v18, %s8785_s26 }
 0x246   :  { %1333 = vrot.lane.b32.xlu1 %v1184_v19, %s8785_s26 }
 0x247   :  { %1411 = vperm.xlu0 %8438, %v1408_v27  }
 0x24a   :  { %1337 = vrot.lane.b32.xlu1 %v1186_v16, %s8785_s26 }
 0x27c   :  { %v1188_v28 = vpop.permute.xlu1 %1187 }
 0x27d   :  { %v1192_v26 = vpop.permute.xlu0 %1191 }
 0x280   :  { %v1190_v31 = vpop.permute.xlu1 %1189 }
 0x281   :  { %v1208_v32 = vpop.permute.xlu0 %1207  ;;  %v1196_v6 = vsel %vm463_vm1, %v1190_v31, %v1192_v26  ;;  %v1197_v2 = vsel %vm463_vm1, %v1188_v28, %v1190_v31 }
 0x282   :  { %v1200_v21 = vmul.f32 %v1197_v2, %v9158_v24  ;;  %v1201_v33 = vmul.f32 %v1196_v6, %v9161_v25 }
 0x284   :  { %1204 = vst [vmem:[#allocation2 + $0x8] sm:$0xf] %v1200_v21  ;;  %1205 = vst [vmem:[#allocation2 + $0x10] sm:$0xf] %v1201_v33  ;;  %v1194_v11 = vpop.permute.xlu1 %1193 }
 0x285   :  { %v1212_v34 = vpop.permute.xlu0 %1211  ;;  %v1195_v39 = vsel %vm463_vm1, %v1192_v26, %v1194_v11  ;;  %v1198_v40 = vsel %vm463_vm1, %v1194_v11, %v1188_v28 }
 0x286   :  { %v1199_v41 = vmul.f32 %v1198_v40, %v9152_v22  ;;  %v1202_v47 = vmul.f32 %v1195_v39, %v9155_v23 }
 0x288   :  { %1203 = vst [vmem:[#allocation2] sm:$0xf] %v1199_v41  ;;  %1206 = vst [vmem:[#allocation2 + $0x18] sm:$0xf] %v1202_v47  ;;  %v1210_v49 = vpop.permute.xlu1 %1209 }
 0x289   :  { %v1228_v52 = vpop.permute.xlu0 %1227  ;;  %v1216_v53 = vsel %vm536_vm2, %v1210_v49, %v1212_v34  ;;  %v1217_v50 = vsel %vm536_vm2, %v1208_v32, %v1210_v49 }
 0x28a   :  { %v1220_v55 = vmul.f32 %v1217_v50, %v9181_v42  ;;  %v1221_v56 = vmul.f32 %v1216_v53, %v9187_v44 }
 0x28b   :  { %v1352_v31 = vld [vmem:[#allocation2 + $0x8] sm:$0xff] }
 0x28c   :  { %1224 = vst [vmem:[#allocation2 + $0x28] sm:$0xf] %v1220_v55  ;;  %1225 = vst [vmem:[#allocation2 + $0x30] sm:$0xf] %v1221_v56  ;;  %v1214_v57 = vpop.permute.xlu1 %1213 }
 0x28d   :  { %v1232_v62 = vpop.permute.xlu0 %1231  ;;  %v1215_v10 = vsel %vm536_vm2, %v1212_v34, %v1214_v57  ;;  %v1218_v14 = vsel %vm536_vm2, %v1214_v57, %v1208_v32  ;;  %v1353_v57 = vld [vmem:[#allocation2 + $0x10] sm:$0xff] }
 0x28e   :  { %v1219_v15 = vmul.f32 %v1218_v14, %v9184_v43  ;;  %v1222_v18 = vmul.f32 %v1215_v10, %v9194_v48 }
 0x28f   :  { %v1351_v40 = vld [vmem:[#allocation2] sm:$0xff]  ;;  %v1354_v49 = vld [vmem:[#allocation2 + $0x18] sm:$0xff] }
 0x290   :  { %1223 = vst [vmem:[#allocation2 + $0x20] sm:$0xf] %v1219_v15  ;;  %1226 = vst [vmem:[#allocation2 + $0x38] sm:$0xf] %v1222_v18  ;;  %v1230_v19 = vpop.permute.xlu1 %1229 }
 0x291   :  { %v1248_v4 = vpop.permute.xlu0 %1247  ;;  %v1236_v16 = vsel %vm606_vm3, %v1230_v19, %v1232_v62  ;;  %v1237_v27 = vsel %vm606_vm3, %v1228_v52, %v1230_v19 }
 0x292   :  { %v1240_v28 = vmul.f32 %v1237_v27, %v9212_v1  ;;  %v1241_v26 = vmul.f32 %v1236_v16, %v9218_v7 }
 0x293   :  { %v1356_v32 = vld [vmem:[#allocation2 + $0x28] sm:$0xff]  ;;  %v1357_v41 = vld [vmem:[#allocation2 + $0x30] sm:$0xff] }
 0x294   :  { %1244 = vst [vmem:[#allocation2 + $0x48] sm:$0xf] %v1240_v28  ;;  %1245 = vst [vmem:[#allocation2 + $0x50] sm:$0xf] %v1241_v26  ;;  %v1234_v6 = vpop.permute.xlu1 %1233  ;;  %v1388_v2 = vpack.c.bf16 %v1356_v32, %v1352_v31  ;;  %v1389_v14 = vpack.c.bf16 %v1357_v41, %v1353_v57 }
 0x295   :  { %v1252_v21 = vpop.permute.xlu0 %1251  ;;  %v1235_v33 = vsel %vm606_vm3, %v1232_v62, %v1234_v6  ;;  %v1238_v11 = vsel %vm606_vm3, %v1234_v6, %v1228_v52 }
 0x296   :  { %v1239_v34 = vmul.f32 %v1238_v11, %v9215_v5  ;;  %v1242_v39 = vmul.f32 %v1235_v33, %v9225_v12  ;;  %1429 = vmatprep.subr.bf16.mxu0 %v1388_v2 }
 0x297   :  { %v1355_v47 = vld [vmem:[#allocation2 + $0x20] sm:$0xff]  ;;  %v1358_v53 = vld [vmem:[#allocation2 + $0x38] sm:$0xff] }
 0x298   :  { %1243 = vst [vmem:[#allocation2 + $0x40] sm:$0xf] %v1239_v34  ;;  %1246 = vst [vmem:[#allocation2 + $0x58] sm:$0xf] %v1242_v39  ;;  %v1250_v50 = vpop.permute.xlu1 %1249  ;;  %v1387_v55 = vpack.c.bf16 %v1355_v47, %v1351_v40  ;;  %v1390_v56 = vpack.c.bf16 %v1358_v53, %v1354_v49 }
 0x299   :  { %v1272_v62 = vpop.permute.xlu0 %1271  ;;  %v1256_v52 = vsel %vm676_vm4, %v1250_v50, %v1252_v21  ;;  %v1257_v10 = vsel %vm676_vm4, %v1248_v4, %v1250_v50 }
 0x29a   :  { %v1260_v15 = vmul.f32 %v1257_v10, %v9243_v36  ;;  %v1261_v18 = vmul.f32 %v1256_v52, %v9249_v38  ;;  %1430 = vmatpush1.bf16.msra.mxu0 %v1387_v55  ;;  %1470 = vmatprep.subr.bf16.mxu1 %v1390_v56 }
 0x29b   :  { %1471 = vmatpush1.bf16.msra.mxu1 %v1389_v14  ;;  %v1360_v34 = vld [vmem:[#allocation2 + $0x48] sm:$0xff] }
 0x29c   :  { %1264 = vst [vmem:[#allocation2 + $0x68] sm:$0xf] %v1260_v15  ;;  %1265 = vst [vmem:[#allocation2 + $0x70] sm:$0xf] %v1261_v18  ;;  %v1254_v19 = vpop.permute.xlu1 %1253 }
 0x29d   :  { %v1276_v16 = vpop.permute.xlu0 %1275  ;;  %v1255_v27 = vsel %vm676_vm4, %v1252_v21, %v1254_v19  ;;  %v1258_v28 = vsel %vm676_vm4, %v1254_v19, %v1248_v4  ;;  %v1361_v19 = vld [vmem:[#allocation2 + $0x50] sm:$0xff] }
 0x29e   :  { %v1259_v26 = vmul.f32 %v1258_v28, %v9246_v37  ;;  %v1262_v31 = vmul.f32 %v1255_v27, %v9256_v45 }
 0x29f   :  { %v1359_v55 = vld [vmem:[#allocation2 + $0x40] sm:$0xff]  ;;  %v1362_v52 = vld [vmem:[#allocation2 + $0x58] sm:$0xff] }
 0x2a0   :  { %1263 = vst [vmem:[#allocation2 + $0x60] sm:$0xf] %v1259_v26  ;;  %1266 = vst [vmem:[#allocation2 + $0x78] sm:$0xf] %v1262_v31  ;;  %v1274_v32 = vpop.permute.xlu1 %1273 }
 0x2a1   :  { %v1292_v6 = vpop.permute.xlu0 %1291  ;;  %v1280_v2 = vsel %vm749_vm5, %v1274_v32, %v1276_v16  ;;  %v1281_v33 = vsel %vm749_vm5, %v1272_v62, %v1274_v32  ;;  %v1367_v32 = vld [vmem:[#allocation2 + $0x80] sm:$0xff] }
 0x2a2   :  { %v1283_v11 = vmul.f32 %v1281_v33, %v9272_v61  ;;  %v1284_v21 = vmul.f32 %v1280_v2, %v9280_v29  ;;  %v1368_v2 = vld [vmem:[#allocation2 + $0x88] sm:$0xff] }
 0x2a3   :  { %v1364_v4 = vld [vmem:[#allocation2 + $0x68] sm:$0xff]  ;;  %v1365_v56 = vld [vmem:[#allocation2 + $0x70] sm:$0xff] }
 0x2a4   :  { %1287 = vst [vmem:[#allocation2 + $0xa0] sm:$0xf] %v1283_v11  ;;  %1288 = vst [vmem:[#allocation2 + $0xa8] sm:$0xf] %v1284_v21  ;;  %v1278_v39 = vpop.permute.xlu1 %1277  ;;  %v1392_v40 = vpack.c.bf16 %v1364_v4, %v1360_v34  ;;  %v1393_v28 = vpack.c.bf16 %v1365_v56, %v1361_v19 }
 0x2a5   :  { %v1296_v41 = vpop.permute.xlu0 %1295  ;;  %v1279_v47 = vsel %vm749_vm5, %v1276_v16, %v1278_v39  ;;  %v1282_v49 = vsel %vm749_vm5, %v1278_v39, %v1272_v62 }
 0x2a6   :  { %v1285_v53 = vmul.f32 %v1279_v47, %v9283_v30  ;;  %v1286_v50 = vmul.f32 %v1282_v49, %v9275_v8  ;;  %1431 = vmatprep.subr.bf16.mxu0 %v1392_v40 }
 0x2a7   :  { %v1363_v57 = vld [vmem:[#allocation2 + $0x60] sm:$0xff]  ;;  %v1366_v10 = vld [vmem:[#allocation2 + $0x78] sm:$0xff] }
 0x2a8   :  { %1289 = vst [vmem:[#allocation2 + $0xb0] sm:$0xf] %v1285_v53  ;;  %1290 = vst [vmem:[#allocation2 + $0xb8] sm:$0xf] %v1286_v50  ;;  %v1294_v14 = vpop.permute.xlu1 %1293  ;;  %v1391_v15 = vpack.c.bf16 %v1363_v57, %v1359_v55  ;;  %v1394_v18 = vpack.c.bf16 %v1366_v10, %v1362_v52  ;;  %v1369_v50 = vld [vmem:[#allocation2 + $0x90] sm:$0xff]  ;;  %v1370_v55 = vld [vmem:[#allocation2 + $0x98] sm:$0xff] }
 0x2a9   :  { %v1312_v16 = vpop.permute.xlu0 %1311  ;;  %v1300_v62 = vsel %vm819_vm6, %v1294_v14, %v1296_v41  ;;  %v1301_v27 = vsel %vm819_vm6, %v1292_v6, %v1294_v14 }
 0x2aa   :  { %v1303_v26 = vmul.f32 %v1301_v27, %v9305_v58  ;;  %v1304_v31 = vmul.f32 %v1300_v62, %v9311_v60  ;;  %1432 = vmatpush1.bf16.msra.mxu0 %v1391_v15  ;;  %1472 = vmatprep.subr.bf16.mxu1 %v1394_v18  ;;  %v8661_v60 = vld [vmem:[%s9031_s24 + $0xec] ss:$16 sps:$4 sm:$0xff]   ;;  %v8659_v58 = vld [vmem:[%s9031_s24 + $0xe8] ss:$16 sps:$4 sm:$0xff]  }
 0x2ab   :  { %1473 = vmatpush1.bf16.msra.mxu1 %v1393_v28  ;;  %v1372_v33 = vld [vmem:[#allocation2 + $0xa8] sm:$0xff]  ;;  %v1371_v11 = vld [vmem:[#allocation2 + $0xa0] sm:$0xff] }
 0x2ac   :  { %1307 = vst [vmem:[#allocation2 + $0xc0] sm:$0xf] %v1303_v26  ;;  %1308 = vst [vmem:[#allocation2 + $0xc8] sm:$0xf] %v1304_v31  ;;  %v1298_v21 = vpop.permute.xlu1 %1297  ;;  %v1396_v34 = vpack.c.bf16 %v1372_v33, %v1368_v2  ;;  %v1395_v4 = vpack.c.bf16 %v1371_v11, %v1367_v32 }
 0x2ad   :  { %v1316_v39 = vpop.permute.xlu0 %1315  ;;  %v1299_v40 = vsel %vm819_vm6, %v1296_v41, %v1298_v21  ;;  %v1302_v47 = vsel %vm819_vm6, %v1298_v21, %v1292_v6 }
 0x2ae   :  { %v1305_v49 = vmul.f32 %v1299_v40, %v9318_v9  ;;  %v1306_v53 = vmul.f32 %v1302_v47, %v9308_v59  ;;  %1433 = vmatprep.subr.bf16.mxu0 %v1396_v34  ;;  %v8655_v59 = vld [vmem:[%s9031_s24 + $0xcc] ss:$16 sps:$4 sm:$0xff]   ;;  %v8653_v9 = vld [vmem:[%s9031_s24 + $0xc8] ss:$16 sps:$4 sm:$0xff]  }
 0x2af   :  { %1434 = vmatpush1.bf16.msra.mxu0 %v1395_v4  ;;  %v1374_v56 = vld [vmem:[#allocation2 + $0xb8] sm:$0xff]  ;;  %v1373_v57 = vld [vmem:[#allocation2 + $0xb0] sm:$0xff] }
 0x2b0   :  { %1309 = vst [vmem:[#allocation2 + $0xd0] sm:$0xf] %v1305_v49  ;;  %1310 = vst [vmem:[#allocation2 + $0xd8] sm:$0xf] %v1306_v53  ;;  %v1314_v52 = vpop.permute.xlu1 %1313  ;;  %v1398_v10 = vpack.c.bf16 %v1374_v56, %v1370_v55  ;;  %v1397_v14 = vpack.c.bf16 %v1373_v57, %v1369_v50 }
 0x2b1   :  { %v1320_v41 = vsel %vm889_vm7, %v1314_v52, %v1316_v39  ;;  %v1321_v6 = vsel %vm889_vm7, %v1312_v16, %v1314_v52  ;;  %v1332_v15 = vpop.permute.xlu0 %1331 }
 0x2b2   :  { %v1323_v18 = vmul.f32 %v1321_v6, %v9334_v35  ;;  %v1324_v19 = vmul.f32 %v1320_v41, %v9342_v63  ;;  %1474 = vmatprep.subr.bf16.mxu1 %v1398_v10  ;;  %v8625_v63 = vld [vmem:[%s9031_s24 + $0x2c] ss:$16 sps:$4 sm:$0xff]   ;;  %v8623_v35 = vld [vmem:[%s9031_s24 + $0x28] ss:$16 sps:$4 sm:$0xff]  }
 0x2b3   :  { %1475 = vmatpush1.bf16.msra.mxu1 %v1397_v14  ;;  %v1376_v4 = vld [vmem:[#allocation2 + $0xc8] sm:$0xff] }
 0x2b4   :  { %1327 = vst [vmem:[#allocation2 + $0xe0] sm:$0xf] %v1323_v18  ;;  %1328 = vst [vmem:[#allocation2 + $0xe8] sm:$0xf] %v1324_v19  ;;  %v1318_v62 = vpop.permute.xlu1 %1317 }
 0x2b5   :  { %v1319_v27 = vsel %vm889_vm7, %v1316_v39, %v1318_v62  ;;  %v1322_v28 = vsel %vm889_vm7, %v1318_v62, %v1312_v16  ;;  %v1336_v32 = vpop.permute.xlu0 %1335  ;;  %v1375_v39 = vld [vmem:[#allocation2 + $0xc0] sm:$0xff] }
 0x2b6   :  { %v1325_v26 = vmul.f32 %v1319_v27, %v9345_v0  ;;  %v1326_v31 = vmul.f32 %v1322_v28, %v9337_v46 }
 0x2b7   :  { %v1378_v52 = vld [vmem:[#allocation2 + $0xd8] sm:$0xff]  ;;  %v1377_v14 = vld [vmem:[#allocation2 + $0xd0] sm:$0xff] }
 0x2b8   :  { %1329 = vst [vmem:[#allocation2 + $0xf0] sm:$0xf] %v1325_v26  ;;  %1330 = vst [vmem:[#allocation2 + $0xf8] sm:$0xf] %v1326_v31  ;;  %v1334_v2 = vpop.permute.xlu1 %1333  ;;  %v1407_v26 = vld [vmem:[%s8826_s17] sm:$0x3] }
 0x2b9   :  { %v1340_v33 = vsel %vm959_vm8, %v1334_v2, %v1336_v32  ;;  %v1341_v11 = vsel %vm959_vm8, %v1332_v15, %v1334_v2  ;;  %s8789_s17 = smov 9  }
 0x2ba   :  { %v1343_v21 = vmul.f32 %v1341_v11, %v9365_v51  ;;  %v1344_v34 = vmul.f32 %v1340_v33, %v9373_v3 }
 0x2bb   :  { %v1380_v16 = vld [vmem:[#allocation2 + $0xe8] sm:$0xff]  ;;  %v1379_v40 = vld [vmem:[#allocation2 + $0xe0] sm:$0xff] }
 0x2bc   :  { %1347 = vst [vmem:[#allocation2 + $0x100] sm:$0xf] %v1343_v21  ;;  %1348 = vst [vmem:[#allocation2 + $0x108] sm:$0xf] %v1344_v34  ;;  %v1338_v47 = vpop.permute.xlu1 %1337  ;;  %v1400_v49 = vpack.c.bf16 %v1380_v16, %v1376_v4  ;;  %v1399_v53 = vpack.c.bf16 %v1379_v40, %v1375_v39 }
 0x2bd   :  { %v1339_v50 = vsel %vm959_vm8, %v1336_v32, %v1338_v47  ;;  %v1342_v55 = vsel %vm959_vm8, %v1338_v47, %v1332_v15 }
 0x2be   :  { %v1345_v56 = vmul.f32 %v1339_v50, %v9376_v20  ;;  %v1346_v57 = vmul.f32 %v1342_v55, %v9368_v54  ;;  %1435 = vmatprep.subr.bf16.mxu0 %v1400_v49 }
 0x2bf   :  { %1436 = vmatpush1.bf16.msra.mxu0 %v1399_v53  ;;  %v1382_v10 = vld [vmem:[#allocation2 + $0xf8] sm:$0xff]  ;;  %v1381_v41 = vld [vmem:[#allocation2 + $0xf0] sm:$0xff] }
 0x2c0   :  { %1349 = vst [vmem:[#allocation2 + $0x110] sm:$0xf] %v1345_v56  ;;  %1350 = vst [vmem:[#allocation2 + $0x118] sm:$0xf] %v1346_v57  ;;  %v1402_v6 = vpack.c.bf16 %v1382_v10, %v1378_v52  ;;  %v1401_v18 = vpack.c.bf16 %v1381_v41, %v1377_v14  ;;  %v8470_v14 = vld [vmem:[%s9001_s6 + $0x40] sm:$0xff]  }
 0x2c1   :  { %v8471_v41 = vld [vmem:[%s9001_s6 + $0xc0] sm:$0xff]  }
 0x2c2   :  { %1476 = vmatprep.subr.bf16.mxu1 %v1402_v6  ;;  %v8472_v6 = vld [vmem:[%s9001_s6] sm:$0xff]  }
 0x2c3   :  { %1477 = vmatpush1.bf16.msra.mxu1 %v1401_v18  ;;  %v1384_v19 = vld [vmem:[#allocation2 + $0x108] sm:$0xff]  ;;  %v1383_v62 = vld [vmem:[#allocation2 + $0x100] sm:$0xff] }
 0x2c4   :  { %v1404_v15 = vpack.c.bf16 %v1384_v19, %v1384_v19  ;;  %v1403_v27 = vpack.c.bf16 %v1383_v62, %v1383_v62  ;;  %v8473_v62 = vld [vmem:[%s9001_s6 + $0x80] sm:$0xff]  }
 0x2c6   :  { %7756 = vmatprep.subr.msk.bf16.mxu0 %vm1088_vm9, %v1404_v15  ;;  %v1418_v28 = vsel %vm1088_vm9, %v1403_v27, 0  ;;  %v1412_v21 = vpop.permute.xlu0 %1411  ;;  %v8474_v15 = vld [vmem:[%s9001_s6 + $0x48] sm:$0xff]  }
 0x2c7   :  { %1438 = vmatpush1.bf16.msra.mxu0 %v1418_v28  ;;  %v1386_v31 = vld [vmem:[#allocation2 + $0x118] sm:$0xff]  ;;  %v1385_v32 = vld [vmem:[#allocation2 + $0x110] sm:$0xff]  ;;  %v8475_v27 = vld [vmem:[%s9001_s6 + $0xc8] sm:$0xff]  }
 0x2c8   :  { %v1406_v2 = vpack.c.bf16 %v1386_v31, %v1386_v31  ;;  %v1405_v33 = vpack.c.bf16 %v1385_v32, %v1385_v32  ;;  %8019 = vmatprep.subr.bf16.mxu0 %v8470_v14  ;;  %v8477_v32 = vld [vmem:[%s9001_s6 + $0x88] sm:$0xff]  }
 0x2c9   :  { %v8490_v14 = vld [vmem:[%s9001_s6 + $0x68] sm:$0xff]  }
 0x2ca   :  { %7757 = vmatmul.mubr.msk.bf16.vlgmr.msra.gmra.mrb[4].mxu0 %vm1084_vm10, %v1407_v26  ;;  %7758 = vmatprep.subr.msk.bf16.mxu1 %vm1088_vm9, %v1406_v2  ;;  %v1424_v11 = vsel %vm1088_vm9, %v1405_v33, 0  ;;  %v8478_v2 = vld [vmem:[%s9001_s6 + $0x50] sm:$0xff]  }
 0x2cb   :  { %1479 = vmatpush1.bf16.msra.mxu1 %v1424_v11  ;;  %8020 = vmatpush3.bf16.msra.mxu0 %v8472_v6  ;;  %v8479_v33 = vld [vmem:[%s9001_s6 + $0xd0] sm:$0xff]   ;;  %v8492_v6 = vld [vmem:[%s9001_s6 + $0x28] sm:$0xff]  }
 0x2cc   :  { %8041 = vmatprep.subr.bf16.mxu1 %v8471_v41  ;;  %8021 = vmatprep.subr.bf16.mxu0 %v8474_v15  ;;  %v8480_v11 = vld [vmem:[%s9001_s6 + $0x10] sm:$0xff]   ;;  %v8491_v41 = vld [vmem:[%s9001_s6 + $0xe8] sm:$0xff]  }
 0x2cd   :  { %v8495_v15 = vld [vmem:[%s9001_s6 + $0xf0] sm:$0xff]  }
 0x2ce   :  { %7759 = vmatmul.mubr.msk.bf16.vlgmr.msra.gmra.mrb[4].mxu1 %vm1084_vm10, %v1407_v26  ;;  %v8476_v26 = vld [vmem:[%s9001_s6 + $0x8] sm:$0xff]  }
 0x2cf   :  { %8042 = vmatpush3.bf16.msra.mxu1 %v8473_v62  ;;  %8022 = vmatpush3.bf16.msra.mxu0 %v8476_v26  ;;  %v8494_v62 = vld [vmem:[%s9001_s6 + $0x70] sm:$0xff]  }
 0x2d0   :  { %8043 = vmatprep.subr.bf16.mxu1 %v8475_v27  ;;  %8023 = vmatprep.subr.bf16.mxu0 %v8478_v2  ;;  %v8496_v27 = vld [vmem:[%s9001_s6 + $0x30] sm:$0xff]  }
 0x2d1   :  { %v8497_v26 = vld [vmem:[%s9001_s6 + $0xb0] sm:$0xff]  }
 0x2d3   :  { %8044 = vmatpush3.bf16.msra.mxu1 %v8477_v32  ;;  %8024 = vmatpush3.bf16.msra.mxu0 %v8480_v11  ;;  %v8499_v11 = vld [vmem:[%s9001_s6 + $0xf8] sm:$0xff]  }
 0x2d4   :  { %8045 = vmatprep.subr.bf16.mxu1 %v8479_v33  ;;  %v8498_v33 = vld [vmem:[%s9001_s6 + $0x78] sm:$0xff]  }
 0x39d   :  { %v1463_v34 = vpop.f32.mrb[4].mxu0 }
 0x39e   :  { %v1464_v4 = vadd.f32 %v1463_v34, %v1412_v21  ;;  %v1465_v16 = vpop.f32.mrb[5].mxu0  ;;  %v8482_v34 = vld [vmem:[%s9001_s6 + $0x58] sm:$0xff]  }
 0x39f   :  { %v1466_v39 = vadd.f32 %v1465_v16, %v1412_v21  ;;  %v1467_v40 = vpop.f32.mrb[6].mxu0  ;;  %8025 = vmatprep.subr.bf16.mxu0 %v8482_v34  ;;  %v8501_v34 = vld [vmem:[%s9001_s6 + $0xb8] sm:$0xff]  }
 0x3a0   :  { %v9544_v47 = vmax.f32 %v1464_v4, 0.0  ;;  %v1468_v49 = vpop.f32.mrb[7].mxu0 }
 0x3a1   :  { %v9546_v53 = vmax.f32 %v1466_v39, 0.0  ;;  %v1504_v50 = vpop.f32.mrb[4].mxu1  ;;  %v8483_v39 = vld [vmem:[%s9001_s6 + $0xd8] sm:$0xff]  }
 0x3a2   :  { %1515 = vst [vmem:[#allocation3 + $0x80] sm:$0xf] %v9544_v47  ;;  %v1505_v55 = vadd.f32 %v1504_v50, %v1412_v21  ;;  %v1506_v56 = vpop.f32.mrb[5].mxu1  ;;  %v8484_v49 = vld [vmem:[%s9001_s6 + $0x18] sm:$0xff]  }
 0x3a3   :  { %1516 = vst [vmem:[#allocation3 + $0x88] sm:$0xf] %v9546_v53  ;;  %v1507_v57 = vadd.f32 %v1506_v56, %v1412_v21  ;;  %v1508_v52 = vpop.f32.mrb[6].mxu1  ;;  %v8439_v10 = vpack.i.bf16 %v9546_v53, %v9544_v47  ;;  %v8481_v21 = vld [vmem:[%s9001_s6 + $0x90] sm:$0xff]   ;;  %v8486_v56 = vld [vmem:[%s9001_s6 + $0x60] sm:$0xff]   ;;  %8026 = vmatpush3.bf16.msra.mxu0 %v8484_v49 }
 0x3a4   :  { %v9555_v18 = vmax.f32 %v1505_v55, 0.0  ;;  %v1509_v19 = vpop.f32.mrb[7].mxu1  ;;  %8046 = vmatpush3.bf16.msra.mxu1 %v8481_v21  ;;  %v8485_v55 = vld [vmem:[%s9001_s6 + $0x98] sm:$0xff]   ;;  %v8488_v52 = vld [vmem:[%s9001_s6 + $0x20] sm:$0xff]   ;;  %8027 = vmatprep.subr.bf16.mxu0 %v8486_v56 }
 0x3a5   :  { %v9560_v28 = vmax.f32 %v1507_v57, 0.0  ;;  %8440 = vrot.lane.b32.xlu1 %v8439_v10, %s8782_s18  ;;  %8047 = vmatprep.subr.bf16.mxu1 %v8483_v39  ;;  %v8487_v57 = vld [vmem:[%s9001_s6 + $0xe0] sm:$0xff]   ;;  %v8493_v19 = vld [vmem:[%s9001_s6 + $0xa8] sm:$0xff]   ;;  %v8500_v21 = vld [vmem:[%s9001_s6 + $0x38] sm:$0xff]  }
 0x3a6   :  { %1517 = vst [vmem:[#allocation3 + $0x90] sm:$0xf] %v9555_v18  ;;  %v8489_v10 = vld [vmem:[%s9001_s6 + $0xa0] sm:$0xff]   ;;  %s8791_s6 = smov 121  }
 0x3a7   :  { %1518 = vst [vmem:[#allocation3 + $0x98] sm:$0xf] %v9560_v28  ;;  %v8444_v31 = vpack.i.bf16 %v9560_v28, %v9555_v18  ;;  %8028 = vmatpush3.bf16.msra.mxu0 %v8488_v52  ;;  %v9596_v49 = vld [vmem:[#allocation3 + $0x60] sm:$0xff] }
 0x3a8   :  { %8048 = vmatpush3.bf16.msra.mxu1 %v8485_v55  ;;  %8029 = vmatprep.subr.bf16.mxu0 %v8490_v14 }
 0x3a9   :  { %8445 = vrot.lane.b32.xlu0 %v8444_v31, %s8782_s18  ;;  %v5170_v4 = vld [vmem:[#allocation3 + $0x80] sm:$0xff]  ;;  %8049 = vmatprep.subr.bf16.mxu1 %v8487_v57 }
 0x3aa   :  { %v5171_v16 = vld [vmem:[#allocation3 + $0x88] sm:$0xff]  ;;  %5590 = vst [vmem:[#allocation2 + $0x300] sm:$0xff] %v5170_v4 }
 0x3ab   :  { %5591 = vst [vmem:[#allocation2 + $0x308] sm:$0xff] %v5171_v16  ;;  %8030 = vmatpush3.bf16.msra.mxu0 %v8492_v6 }
 0x3ac   :  { %8050 = vmatpush3.bf16.msra.mxu1 %v8489_v10  ;;  %8031 = vmatprep.subr.bf16.mxu0 %v8494_v62 }
 0x3ad   :  { %v5172_v40 = vld [vmem:[#allocation3 + $0x90] sm:$0xff]  ;;  %8051 = vmatprep.subr.bf16.mxu1 %v8491_v41 }
 0x3ae   :  { %5592 = vst [vmem:[#allocation2 + $0x310] sm:$0xff] %v5172_v40  ;;  %v5173_v50 = vld [vmem:[#allocation3 + $0x98] sm:$0xff] }
 0x3af   :  { %5593 = vst [vmem:[#allocation2 + $0x318] sm:$0xff] %v5173_v50  ;;  %8032 = vmatpush3.bf16.msra.mxu0 %v8496_v27 }
 0x3b0   :  { %8052 = vmatpush3.bf16.msra.mxu1 %v8493_v19  ;;  %8033 = vmatprep.subr.bf16.mxu0 %v8498_v33 }
 0x3b1   :  { %8053 = vmatprep.subr.bf16.mxu1 %v8495_v15 }
 0x3b3   :  { %8034 = vmatpush3.bf16.msra.mxu0 %v8500_v21 }
 0x3b4   :  { %8054 = vmatpush3.bf16.msra.mxu1 %v8497_v26  ;;  %8190 = vmatprep.subr.bf16.mxu0 %v9596_v49 }
 0x3b5   :  { %8055 = vmatprep.subr.bf16.mxu1 %v8499_v11 }
 0x3b8   :  { %8056 = vmatpush3.bf16.msra.mxu1 %v8501_v34 }
 0x3b9   :  { %8204 = vmatprep.subr.bf16.mxu1 %v9596_v49 }
 0x417   :  { %v8441_v31 = vpop.permute.xlu1 %8440 }
 0x418   :  { %v8443_v32 = vunpack.i.h.bf16 %v8441_v31  ;;  %v8442_v2 = vunpack.i.l.bf16 %v8441_v31 }
 0x41a   :  { %v1529_v40 = vsel %vm749_vm5, %v8442_v2, %v8443_v32 }
 0x41b   :  { %v8446_v4 = vpop.permute.xlu0 %8445  ;;  %v1531_v10 = vmax.f32 %v9544_v47, %v1529_v40 }
 0x41c   :  { %v8448_v16 = vunpack.i.h.bf16 %v8446_v4  ;;  %v8447_v39 = vunpack.i.l.bf16 %v8446_v4 }
 0x41e   :  { %v1527_v50 = vsel %vm749_vm5, %v8447_v39, %v8448_v16  ;;  %v1530_v55 = vsel %vm749_vm5, %v8448_v16, %v8442_v2  ;;  %v1528_v56 = vsel %vm749_vm5, %v8443_v32, %v8447_v39 }
 0x41f   :  { %v1533_v57 = vmax.f32 %v9555_v18, %v1527_v50  ;;  %v1534_v52 = vmax.f32 %v9560_v28, %v1530_v55  ;;  %v1532_v14 = vmax.f32 %v9546_v53, %v1528_v56 }
 0x421   :  { %v8454_v41 = vpack.i.bf16 %v1534_v52, %v1533_v57  ;;  %v8449_v6 = vpack.i.bf16 %v1532_v14, %v1531_v10 }
 0x423   :  { %8455 = vrot.lane.b32.xlu0 %v8454_v41, %s8784_s23  ;;  %8450 = vrot.lane.b32.xlu1 %v8449_v6, %s8784_s23 }
 0x495   :  { %v8456_v19 = vpop.permute.xlu0 %8455  ;;  %v8451_v62 = vpop.permute.xlu1 %8450 }
 0x496   :  { %v8458_v15 = vunpack.i.h.bf16 %v8456_v19  ;;  %v8457_v27 = vunpack.i.l.bf16 %v8456_v19  ;;  %v8453_v26 = vunpack.i.h.bf16 %v8451_v62  ;;  %v8452_v31 = vunpack.i.l.bf16 %v8451_v62  ;;  %v9634_v62 = vld [vmem:[%s8986_s20 + $0x1] ss:$0 sm:$0xff] }
 0x498   :  { %v1543_v18 = vsel %vm889_vm7, %v8457_v27, %v8458_v15  ;;  %v1545_v47 = vsel %vm889_vm7, %v8452_v31, %v8453_v26  ;;  %v1544_v53 = vsel %vm889_vm7, %v8453_v26, %v8457_v27  ;;  %v1546_v28 = vsel %vm889_vm7, %v8458_v15, %v8452_v31  ;;  %v9637_v15 = vld [vmem:[%s8986_s20] ss:$0 sm:$0xff] }
 0x499   :  { %v1548_v32 = vmax.f32 %v1532_v14, %v1544_v53  ;;  %v1550_v2 = vmax.f32 %v1534_v52, %v1546_v28  ;;  %v1547_v33 = vmax.f32 %v1531_v10, %v1545_v47  ;;  %v1549_v11 = vmax.f32 %v1533_v57, %v1543_v18  ;;  %v1987_v57 = vld [vmem:[%s8841_s29] sm:$0xff]  ;;  %s8796_s29 = smov 5  }
 0x49a   :  { %v9642_v47 = vld [vmem:[%s8986_s20 + $0x3] ss:$0 sm:$0xff]  ;;  %v9645_v53 = vld [vmem:[%s8986_s20 + $0x2] ss:$0 sm:$0xff] }
 0x49b   :  { %v1552_v21 = vpack.c.bf16 %v1548_v32, %v1548_v32  ;;  %v1554_v34 = vpack.c.bf16 %v1550_v2, %v1550_v2  ;;  %v1551_v4 = vpack.c.bf16 %v1547_v33, %v1547_v33  ;;  %v1553_v16 = vpack.c.bf16 %v1549_v11, %v1549_v11  ;;  %v9650_v11 = vld [vmem:[%s8986_s20 + $0x6] ss:$0 sm:$0xff] }
 0x49d   :  { %1843 = vmatprep.mubr.bf16.mxu0 %v1552_v21  ;;  %1883 = vmatprep.mubr.bf16.mxu1 %v1554_v34  ;;  %v9653_v21 = vld [vmem:[%s8986_s20 + $0x5] ss:$0 sm:$0xff] }
 0x49e   :  { %1844 = vmatmul.mubr.bf16.vlgmr.msra.gmra.mrb[8].mxu0 %v1551_v4  ;;  %1884 = vmatmul.mubr.bf16.vlgmr.msra.gmra.mrb[8].mxu1 %v1553_v16 }
 0x49f   :  { %8200 = vmatprep.mubr.msk.bf16.mxu0 %vm8794_vm11, %v9596_v49  ;;  %8214 = vmatprep.mubr.msk.bf16.mxu1 %vm8794_vm11, %v9596_v49 }
 0x571   :  { %v8035_v39 = vpop.f32.mrb[8].mxu0  ;;  %v8057_v40 = vpop.f32.mrb[8].mxu1 }
 0x572   :  { %v8036_v50 = vpop.f32.mrb[9].mxu0  ;;  %v8058_v55 = vpop.f32.mrb[9].mxu1 }
 0x573   :  { %v8037_v56 = vadd.f32 %v8036_v50, %v8035_v39  ;;  %v8059_v41 = vadd.f32 %v8058_v55, %v8057_v40  ;;  %v8038_v6 = vpop.f32.mrb[10].mxu0  ;;  %v8060_v19 = vpop.f32.mrb[10].mxu1  ;;  %v9658_v40 = vld [vmem:[%s8986_s20 + $0x8] ss:$0 sm:$0xff]  ;;  %v9661_v50 = vld [vmem:[%s8986_s20 + $0x7] ss:$0 sm:$0xff] }
 0x574   :  { %v8039_v14 = vpop.f32.mrb[11].mxu0  ;;  %v8061_v52 = vpop.f32.mrb[11].mxu1 }
 0x575   :  { %v1886_v10 = vadd.f32 %v8059_v41, %v8037_v56 }
 0x577   :  { %1931 = vst [vmem:[#allocation2 + $0x80] sm:$0xf] %v1886_v10  ;;  %1901 = vrot.lane.b32.xlu0 %v1886_v10, %s8788_s13  ;;  %1891 = vrot.lane.b32.xlu1 %v1886_v10, %s8789_s17 }
 0x57b   :  { %1921 = vrot.lane.b32.xlu0 %v1886_v10, %s8781_s16  ;;  %1911 = vrot.lane.b32.xlu1 %v1886_v10, %s8790_s21 }
 0x57f   :  { %1942 = vrot.lane.b32.xlu0 %v1886_v10, %s8791_s6  ;;  %1932 = vrot.lane.b32.xlu1 %v1886_v10, %s8782_s18 }
 0x583   :  { %1962 = vrot.lane.b32.xlu0 %v1886_v10, %s8792_s12  ;;  %1952 = vrot.lane.b32.xlu1 %v1886_v10, %s8793_s28 }
 0x587   :  { %1990 = vperm.xlu1 %8459, %v1987_v57  }
 0x5e9   :  { %v1902_v27 = vpop.permute.xlu0 %1901  ;;  %v1892_v26 = vpop.permute.xlu1 %1891 }
 0x5ea   :  { %v1909_v31 = vmul.f32 %v9634_v62, %v1902_v27  ;;  %v1899_v18 = vmul.f32 %v9637_v15, %v1892_v26  ;;  %v1976_v26 = vld [vmem:[#allocation2 + $0x80] sm:$0xff] }
 0x5ec   :  { %1910 = vst [vmem:[#allocation2 + $0x20] sm:$0xf] %v1909_v31  ;;  %1900 = vst [vmem:[#allocation2] sm:$0xf] %v1899_v18 }
 0x5ed   :  { %v1922_v28 = vpop.permute.xlu0 %1921  ;;  %v1912_v32 = vpop.permute.xlu1 %1911 }
 0x5ee   :  { %v1929_v2 = vmul.f32 %v9642_v47, %v1922_v28  ;;  %v1919_v33 = vmul.f32 %v9645_v53, %v1912_v32 }
 0x5f0   :  { %1930 = vst [vmem:[#allocation2 + $0x60] sm:$0xf] %v1929_v2  ;;  %1920 = vst [vmem:[#allocation2 + $0x40] sm:$0xf] %v1919_v33 }
 0x5f1   :  { %v1943_v34 = vpop.permute.xlu0 %1942  ;;  %v1933_v4 = vpop.permute.xlu1 %1932 }
 0x5f2   :  { %v1950_v16 = vmul.f32 %v9650_v11, %v1943_v34  ;;  %v1940_v39 = vmul.f32 %v9653_v21, %v1933_v4 }
 0x5f3   :  { %v1972_v55 = vld [vmem:[#allocation2] sm:$0xff] }
 0x5f4   :  { %v1973_v56 = vld [vmem:[#allocation2 + $0x20] sm:$0xff]  ;;  %1951 = vst [vmem:[#allocation2 + $0xc0] sm:$0xf] %v1950_v16  ;;  %1941 = vst [vmem:[#allocation2 + $0xa0] sm:$0xf] %v1940_v39 }
 0x5f5   :  { %v1981_v41 = vpack.c.bf16 %v1973_v56, %v1972_v55  ;;  %v1963_v6 = vpop.permute.xlu0 %1962  ;;  %v1953_v19 = vpop.permute.xlu1 %1952  ;;  %v1986_v16 = vld [vmem:[%s8836_s25] sm:$0xf]  ;;  %s8795_s25 = smov 4  }
 0x5f6   :  { %v1970_v14 = vmul.f32 %v9658_v40, %v1963_v6  ;;  %v1960_v52 = vmul.f32 %v9661_v50, %v1953_v19 }
 0x5f7   :  { %8191 = vmatpush3.bf16.msra.mxu0 %v1981_v41  ;;  %v1974_v10 = vld [vmem:[#allocation2 + $0x40] sm:$0xff] }
 0x5f8   :  { %8192 = vmatprep.subr.bf16.mxu0 %v9596_v49  ;;  %v1975_v57 = vld [vmem:[#allocation2 + $0x60] sm:$0xff]  ;;  %1971 = vst [vmem:[#allocation2 + $0x100] sm:$0xf] %v1970_v14  ;;  %1961 = vst [vmem:[#allocation2 + $0xe0] sm:$0xf] %v1960_v52 }
 0x5f9   :  { %v1982_v27 = vpack.c.bf16 %v1975_v57, %v1974_v10  ;;  %v2088_v52 = vld [vmem:[%s8851_s8] sm:$0xff]  ;;  %s8797_s8 = smov 3  }
 0x5fb   :  { %8193 = vmatpush3.bf16.msra.mxu0 %v1982_v27  ;;  %v1977_v31 = vld [vmem:[#allocation2 + $0xa0] sm:$0xff] }
 0x5fc   :  { %8194 = vmatprep.subr.bf16.mxu0 %v9596_v49  ;;  %v1983_v18 = vpack.c.bf16 %v1977_v31, %v1976_v26  ;;  %v1978_v28 = vld [vmem:[#allocation2 + $0xc0] sm:$0xff] }
 0x5ff   :  { %8195 = vmatpush3.bf16.msra.mxu0 %v1983_v18  ;;  %v1979_v32 = vld [vmem:[#allocation2 + $0xe0] sm:$0xff] }
 0x600   :  { %8196 = vmatprep.subr.bf16.mxu0 %v9596_v49  ;;  %v1980_v2 = vld [vmem:[#allocation2 + $0x100] sm:$0xff]  ;;  %v1984_v33 = vpack.c.bf16 %v1979_v32, %v1978_v28 }
 0x601   :  { %v1985_v34 = vpack.c.bf16 %v1980_v2, %v1980_v2 }
 0x603   :  { %8197 = vmatpush3.bf16.msra.mxu0 %v1984_v33  ;;  %v1997_v4 = vsel %vm1088_vm9, %v1985_v34, 0 }
 0x604   :  { %8198 = vmatprep.subr.bf16.mxu0 %v9596_v49 }
 0x606   :  { %v1991_v39 = vpop.permute.xlu1 %1990 }
 0x607   :  { %8199 = vmatpush3.bf16.msra.mxu0 %v1997_v4 }
 0x608   :  { %8218 = vmatprep.subr.bf16.mxu0 %v9596_v49 }
 0x60a   :  { %8201 = vmatmul.mubr.msk.bf16.vlgmr.msra.gmra.mrb[12].mxu0 %vm1084_vm10, %v1986_v16 }
 0x60b   :  { %8234 = vmatprep.mubr.msk.bf16.mxu0 %vm8794_vm11, %v9596_v49 }
 0x6dd   :  { %v2033_v55 = vpop.f32.mrb[12].mxu0 }
 0x6de   :  { %v2034_v56 = vadd.f32 %v2033_v55, %v1991_v39  ;;  %v8202_v41 = vpop.f32.mrb[13].mxu0 }
 0x6df   :  { %v2036_v6 = vpop.f32.mrb[14].mxu0 }
 0x6e0   :  { %v2039_v19 = vmax.f32 %v2034_v56, 0.0  ;;  %v8203_v14 = vpop.f32.mrb[15].mxu0  ;;  %v2087_v6 = vld [vmem:[%s8846_s3] sm:$0xf]  ;;  %s12372_s3 = sld [smem:[#allocation31_spill]] }
 0x6e1   :  { %v8504_v14 = vld [vmem:[%s9006_s30 + $0x10] sm:$0xff]  }
 0x6e2   :  { %2044 = vrot.lane.b32.xlu1 %v2039_v19, %s8788_s13  ;;  %2040 = vrot.lane.b32.xlu0 %v2039_v19, %s8789_s17 }
 0x6e6   :  { %2052 = vrot.lane.b32.xlu1 %v2039_v19, %s8781_s16  ;;  %2048 = vrot.lane.b32.xlu0 %v2039_v19, %s8790_s21 }
 0x6ea   :  { %2061 = vrot.lane.b32.xlu1 %v2039_v19, %s8791_s6  ;;  %2057 = vrot.lane.b32.xlu0 %v2039_v19, %s8782_s18 }
 0x6ee   :  { %2069 = vrot.lane.b32.xlu1 %v2039_v19, %s8792_s12  ;;  %2065 = vrot.lane.b32.xlu0 %v2039_v19, %s8793_s28 }
 0x6f2   :  { %2091 = vperm.xlu0 %8438, %v2088_v52  }
 0x754   :  { %v2045_v10 = vpop.permute.xlu1 %2044  ;;  %v2041_v57 = vpop.permute.xlu0 %2040 }
 0x755   :  { %v2046_v27 = vmul.f32 %v9634_v62, %v2045_v10  ;;  %v2042_v26 = vmul.f32 %v9637_v15, %v2041_v57 }
 0x757   :  { %v2082_v31 = vpack.c.bf16 %v2046_v27, %v2042_v26 }
 0x758   :  { %v2053_v18 = vpop.permute.xlu1 %2052  ;;  %v2049_v28 = vpop.permute.xlu0 %2048 }
 0x759   :  { %v2054_v32 = vmul.f32 %v9642_v47, %v2053_v18  ;;  %v2050_v2 = vmul.f32 %v9645_v53, %v2049_v28  ;;  %8205 = vmatpush3.bf16.msra.mxu1 %v2082_v31  ;;  %v8505_v31 = vld [vmem:[%s9006_s30 + $0x18] sm:$0xff]   ;;  %v8506_v18 = vld [vmem:[%s9006_s30 + $0x20] sm:$0xff]   ;;  %v8507_v28 = vld [vmem:[%s9006_s30 + $0x28] sm:$0xff]  }
 0x75a   :  { %8206 = vmatprep.subr.bf16.mxu1 %v9596_v49 }
 0x75b   :  { %v2083_v33 = vpack.c.bf16 %v2054_v32, %v2050_v2  ;;  %v8508_v32 = vld [vmem:[%s9006_s30 + $0x30] sm:$0xff]   ;;  %v8509_v2 = vld [vmem:[%s9006_s30 + $0x38] sm:$0xff]  }
 0x75c   :  { %v2062_v34 = vpop.permute.xlu1 %2061  ;;  %v2058_v4 = vpop.permute.xlu0 %2057 }
 0x75d   :  { %v2059_v16 = vmul.f32 %v9653_v21, %v2058_v4  ;;  %8207 = vmatpush3.bf16.msra.mxu1 %v2083_v33  ;;  %v2063_v47 = vmul.f32 %v9650_v11, %v2062_v34  ;;  %v8502_v11 = vld [vmem:[%s9006_s30] sm:$0xff]  }
 0x75e   :  { %8208 = vmatprep.subr.bf16.mxu1 %v9596_v49  ;;  %8219 = vmatpush3.bf16.msra.mxu0 %v8502_v11 }
 0x75f   :  { %v2084_v62 = vpack.c.bf16 %v2059_v16, %v2039_v19  ;;  %8220 = vmatprep.subr.bf16.mxu0 %v9596_v49 }
 0x760   :  { %v2070_v15 = vpop.permute.xlu1 %2069  ;;  %v2066_v39 = vpop.permute.xlu0 %2065 }
 0x761   :  { %v2071_v53 = vmul.f32 %v9658_v40, %v2070_v15  ;;  %v2067_v55 = vmul.f32 %v9661_v50, %v2066_v39  ;;  %8209 = vmatpush3.bf16.msra.mxu1 %v2084_v62  ;;  %v8503_v40 = vld [vmem:[%s9006_s30 + $0x8] sm:$0xff]   ;;  %s8798_s30 = smov 125  }
 0x762   :  { %8210 = vmatprep.subr.bf16.mxu1 %v9596_v49  ;;  %8221 = vmatpush3.bf16.msra.mxu0 %v8503_v40 }
 0x763   :  { %v2085_v56 = vpack.c.bf16 %v2067_v55, %v2063_v47  ;;  %v2086_v21 = vpack.c.bf16 %v2071_v53, %v2071_v53  ;;  %8222 = vmatprep.subr.bf16.mxu0 %v9596_v49  ;;  %v2350_v55 = vld [vmem:[%s8861_s19 + $0x8] sm:$0xff] }
 0x765   :  { %8211 = vmatpush3.bf16.msra.mxu1 %v2085_v56  ;;  %v2098_v41 = vsel %vm1088_vm9, %v2086_v21, 0  ;;  %v2349_v56 = vld [vmem:[%s8861_s19] sm:$0xff]  ;;  %s12373_s19 = sld [smem:[#allocation7_spill]] }
 0x766   :  { %8212 = vmatprep.subr.bf16.mxu1 %v9596_v49  ;;  %8223 = vmatpush3.bf16.msra.mxu0 %v8504_v14  ;;  %v9735_v21 = vld [vmem:[%s12372_s3 + $0x1] ss:$0 sm:$0xff]  ;;  %v9746_v14 = vld [vmem:[%s12372_s3 + $0x2] ss:$0 sm:$0xff] }
 0x767   :  { %8224 = vmatprep.subr.bf16.mxu0 %v9596_v49 }
 0x769   :  { %8213 = vmatpush3.bf16.msra.mxu1 %v2098_v41  ;;  %v9738_v41 = vld [vmem:[%s12372_s3] ss:$0 sm:$0xff] }
 0x76a   :  { %8238 = vmatprep.subr.bf16.mxu1 %v9596_v49  ;;  %8225 = vmatpush3.bf16.msra.mxu0 %v8505_v31 }
 0x76b   :  { %8226 = vmatprep.subr.bf16.mxu0 %v9596_v49 }
 0x76c   :  { %8215 = vmatmul.mubr.msk.bf16.vlgmr.msra.gmra.mrb[12].mxu1 %vm1084_vm10, %v2087_v6 }
 0x76d   :  { %8248 = vmatprep.mubr.msk.bf16.mxu1 %vm8794_vm11, %v9596_v49 }
 0x76e   :  { %8227 = vmatpush3.bf16.msra.mxu0 %v8506_v18  ;;  %v9751_v18 = vld [vmem:[%s12372_s3 + $0x5] ss:$0 sm:$0xff] }
 0x76f   :  { %8228 = vmatprep.subr.bf16.mxu0 %v9596_v49 }
 0x771   :  { %v2092_v50 = vpop.permute.xlu0 %2091 }
 0x772   :  { %8229 = vmatpush3.bf16.msra.mxu0 %v8507_v28 }
 0x773   :  { %8230 = vmatprep.subr.bf16.mxu0 %v9596_v49 }
 0x776   :  { %8231 = vmatpush3.bf16.msra.mxu0 %v8508_v32 }
 0x777   :  { %8232 = vmatprep.subr.bf16.mxu0 %v9596_v49 }
 0x77a   :  { %8233 = vmatpush3.bf16.msra.mxu0 %v8509_v2 }
 0x77b   :  { %2697 = vmatprep.subr.bf16.mxu0 %v12241_v13 }
 0x83f   :  { %v2134_v19 = vpop.f32.mrb[12].mxu1 }
 0x840   :  { %v2135_v52 = vadd.f32 %v2134_v19, %v2092_v50  ;;  %v8216_v10 = vpop.f32.mrb[13].mxu1  ;;  %v9743_v19 = vld [vmem:[%s12372_s3 + $0x3] ss:$0 sm:$0xff] }
 0x841   :  { %v2137_v57 = vpop.f32.mrb[14].mxu1 }
 0x842   :  { %v9707_v27 = vmax.f32 %v2135_v52, 0.0  ;;  %v8217_v26 = vpop.f32.mrb[15].mxu1 }
 0x844   :  { %2141 = vrot.lane.b32.xlu1 %v9707_v27, %s8782_s18 }
 0x8b6   :  { %v2142_v33 = vpop.permute.xlu1 %2141 }
 0x8b7   :  { %v2143_v34 = vmax.f32 %v9707_v27, %v2142_v33 }
 0x8b9   :  { %2144 = vrot.lane.b32.xlu0 %v2143_v34, %s8793_s28 }
 0x92b   :  { %v2145_v4 = vpop.permute.xlu0 %2144 }
 0x92c   :  { %v2146_v16 = vmax.f32 %v2143_v34, %v2145_v4  ;;  %v9756_v34 = vld [vmem:[%s12372_s3 + $0x6] ss:$0 sm:$0xff]  ;;  %v9759_v4 = vld [vmem:[%s12372_s3 + $0x8] ss:$0 sm:$0xff] }
 0x92e   :  { %v2147_v62 = vpack.c.bf16 %v2146_v16, %v2146_v16  ;;  %v9762_v16 = vld [vmem:[%s12372_s3 + $0x7] ss:$0 sm:$0xff] }
 0x930   :  { %8235 = vmatmul.mubr.bf16.vlgmr.msra.gmra.mrb[16].mxu0 %v2147_v62 }
 0xa03   :  { %v2246_v15 = vpop.f32.mrb[16].mxu0 }
 0xa04   :  { %2262 = vrot.lane.b32.xlu0 %v2246_v15, %s8795_s25  ;;  %2252 = vrot.lane.b32.xlu1 %v2246_v15, %s8796_s29  ;;  %v8236_v39 = vpop.f32.mrb[17].mxu0 }
 0xa05   :  { %v2249_v47 = vpop.f32.mrb[18].mxu0 }
 0xa06   :  { %v8237_v53 = vpop.f32.mrb[19].mxu0 }
 0xa08   :  { %2282 = vrot.lane.b32.xlu0 %v2246_v15, %s8781_s16  ;;  %2272 = vrot.lane.b32.xlu1 %v2246_v15, %s8797_s8 }
 0xa0c   :  { %2303 = vrot.lane.b32.xlu0 %v2246_v15, %s8798_s30  ;;  %2293 = vrot.lane.b32.xlu1 %v2246_v15, %s8782_s18 }
 0xa10   :  { %2323 = vrot.lane.b32.xlu0 %v2246_v15, %s8799_s1  ;;  %2313 = vrot.lane.b32.xlu1 %v2246_v15, %s8800_s2 }
 0xa14   :  { %2358 = vperm.xlu0 %8438, %v2350_v55   ;;  %2353 = vperm.xlu1 %8459, %v2349_v56  }
 0xa76   :  { %v2263_v6 = vpop.permute.xlu0 %2262  ;;  %v2253_v11 = vpop.permute.xlu1 %2252 }
 0xa77   :  { %v2270_v40 = vmul.f32 %v9735_v21, %v2263_v6  ;;  %v2260_v50 = vmul.f32 %v9738_v41, %v2253_v11 }
 0xa79   :  { %v2342_v52 = vpack.c.bf16 %v2270_v40, %v2260_v50  ;;  %v8510_v50 = vld [vmem:[%s12373_s19] sm:$0xff]   ;;  %s12378_s19 = sld [smem:[#allocation33_spill]] }
 0xa7a   :  { %v2283_v10 = vpop.permute.xlu0 %2282  ;;  %v2273_v57 = vpop.permute.xlu1 %2272 }
 0xa7b   :  { %v2290_v26 = vmul.f32 %v9743_v19, %v2283_v10  ;;  %v2280_v31 = vmul.f32 %v9746_v14, %v2273_v57  ;;  %8239 = vmatpush3.bf16.msra.mxu1 %v2342_v52 }
 0xa7c   :  { %8240 = vmatprep.subr.bf16.mxu1 %v9596_v49 }
 0xa7d   :  { %v2343_v28 = vpack.c.bf16 %v2290_v26, %v2280_v31 }
 0xa7e   :  { %v2304_v32 = vpop.permute.xlu0 %2303  ;;  %v2294_v2 = vpop.permute.xlu1 %2293 }
 0xa7f   :  { %v2301_v33 = vmul.f32 %v9751_v18, %v2294_v2  ;;  %8241 = vmatpush3.bf16.msra.mxu1 %v2343_v28  ;;  %v2311_v53 = vmul.f32 %v9756_v34, %v2304_v32 }
 0xa80   :  { %8242 = vmatprep.subr.bf16.mxu1 %v9596_v49 }
 0xa81   :  { %v2344_v62 = vpack.c.bf16 %v2301_v33, %v2246_v15 }
 0xa82   :  { %v2324_v39 = vpop.permute.xlu0 %2323  ;;  %v2314_v47 = vpop.permute.xlu1 %2313 }
 0xa83   :  { %v2331_v55 = vmul.f32 %v9759_v4, %v2324_v39  ;;  %v2321_v56 = vmul.f32 %v9762_v16, %v2314_v47  ;;  %8243 = vmatpush3.bf16.msra.mxu1 %v2344_v62  ;;  %v8511_v39 = vld [vmem:[%s12374_s7 + $0x4] ss:$8 sps:$4 sm:$0xff]  }
 0xa84   :  { %8244 = vmatprep.subr.bf16.mxu1 %v9596_v49  ;;  %v2510_v47 = vld [vmem:[%s12375_s10] sm:$0xff] }
 0xa85   :  { %v2345_v6 = vpack.c.bf16 %v2321_v56, %v2311_v53  ;;  %v2346_v11 = vpack.c.bf16 %v2331_v55, %v2331_v55  ;;  %v2511_v53 = vld [vmem:[%s12375_s10 + $0x8] sm:$0xff]  ;;  %s8801_s10 = smov 2  }
 0xa87   :  { %8245 = vmatpush3.bf16.msra.mxu1 %v2345_v6  ;;  %v2370_v40 = vsel %vm1088_vm9, %v2346_v11, 0 }
 0xa88   :  { %8246 = vmatprep.subr.bf16.mxu1 %v9596_v49 }
 0xa8b   :  { %8247 = vmatpush3.bf16.msra.mxu1 %v2370_v40 }
 0xa8c   :  { %2535 = vmatprep.subr.bf16.mxu1 %v12241_v13 }
 0xa8e   :  { %8249 = vmatmul.mubr.msk.bf16.vlgmr.msra.gmra.mrb[16].mxu1 %vm1084_vm10, %v8510_v50 }
 0xa8f   :  { %7822 = vmatprep.mubr.msk.bf16.mxu1 %vm2531_vm12, %v8511_v39 }
 0xa93   :  { %v2354_v15 = vpop.permute.xlu1 %2353  ;;  %v2359_v26 = vpop.permute.xlu0 %2358 }
 0xb61   :  { %v2406_v52 = vpop.f32.mrb[16].mxu1 }
 0xb62   :  { %v2407_v10 = vadd.f32 %v2406_v52, %v2354_v15  ;;  %v8250_v57 = vpop.f32.mrb[17].mxu1 }
 0xb63   :  { %v2409_v31 = vpop.f32.mrb[18].mxu1 }
 0xb64   :  { %v2413_v28 = vmax.f32 %v2407_v10, 0.0  ;;  %v2410_v32 = vadd.f32 %v2409_v31, %v2359_v26  ;;  %v8251_v2 = vpop.f32.mrb[19].mxu1 }
 0xb66   :  { %v2414_v33 = vmax.f32 %v2410_v32, 0.0  ;;  %2415 = vrot.lane.b32.xlu1 %v2413_v28, %s8796_s29 }
 0xb68   :  { %2417 = vrot.lane.b32.xlu0 %v2414_v33, %s8796_s29  ;;  %v2503_v62 = vpack.c.bf16 %v2414_v33, %v2413_v28 }
 0xb6a   :  { %2423 = vrot.lane.b32.xlu1 %v2413_v28, %s8795_s25 }
 0xb6c   :  { %2425 = vrot.lane.b32.xlu0 %v2414_v33, %s8795_s25 }
 0xb6e   :  { %2431 = vrot.lane.b32.xlu1 %v2413_v28, %s8797_s8 }
 0xb70   :  { %2433 = vrot.lane.b32.xlu0 %v2414_v33, %s8797_s8 }
 0xb72   :  { %2439 = vrot.lane.b32.xlu1 %v2413_v28, %s8781_s16 }
 0xb74   :  { %2441 = vrot.lane.b32.xlu0 %v2414_v33, %s8781_s16 }
 0xb76   :  { %2449 = vrot.lane.b32.xlu1 %v2413_v28, %s8782_s18 }
 0xb78   :  { %2451 = vrot.lane.b32.xlu0 %v2414_v33, %s8782_s18 }
 0xb7a   :  { %2457 = vrot.lane.b32.xlu1 %v2413_v28, %s8798_s30 }
 0xb7c   :  { %2459 = vrot.lane.b32.xlu0 %v2414_v33, %s8798_s30 }
 0xb7e   :  { %2465 = vrot.lane.b32.xlu1 %v2413_v28, %s8800_s2 }
 0xb80   :  { %2467 = vrot.lane.b32.xlu0 %v2414_v33, %s8800_s2 }
 0xb82   :  { %2473 = vrot.lane.b32.xlu1 %v2413_v28, %s8799_s1 }
 0xb84   :  { %2475 = vrot.lane.b32.xlu0 %v2414_v33, %s8799_s1 }
 0xb86   :  { %2514 = vperm.xlu1 %8459, %v2510_v47  }
 0xb88   :  { %2519 = vperm.xlu0 %8438, %v2511_v53  }
 0xbd8   :  { %v2416_v55 = vpop.permute.xlu1 %2415 }
 0xbd9   :  { %v2419_v6 = vmul.f32 %v9738_v41, %v2416_v55 }
 0xbda   :  { %v2418_v56 = vpop.permute.xlu0 %2417 }
 0xbdb   :  { %v2420_v11 = vmul.f32 %v9738_v41, %v2418_v56 }
 0xbdc   :  { %v2424_v40 = vpop.permute.xlu1 %2423 }
 0xbdd   :  { %v2499_v50 = vpack.c.bf16 %v2420_v11, %v2419_v6  ;;  %v2427_v52 = vmul.f32 %v9735_v21, %v2424_v40 }
 0xbde   :  { %v2426_v15 = vpop.permute.xlu0 %2425 }
 0xbdf   :  { %v2428_v10 = vmul.f32 %v9735_v21, %v2426_v15  ;;  %2536 = vmatpush1.bf16.msra.mxu1 %v2499_v50 }
 0xbe0   :  { %v2432_v57 = vpop.permute.xlu1 %2431  ;;  %2537 = vmatprep.subr.bf16.mxu1 %v12241_v13 }
 0xbe1   :  { %v2500_v26 = vpack.c.bf16 %v2428_v10, %v2427_v52  ;;  %v2435_v28 = vmul.f32 %v9746_v14, %v2432_v57 }
 0xbe2   :  { %v2434_v31 = vpop.permute.xlu0 %2433 }
 0xbe3   :  { %v2436_v32 = vmul.f32 %v9746_v14, %v2434_v31  ;;  %2538 = vmatpush1.bf16.msra.mxu1 %v2500_v26 }
 0xbe4   :  { %v2440_v2 = vpop.permute.xlu1 %2439  ;;  %2539 = vmatprep.subr.bf16.mxu1 %v12241_v13 }
 0xbe5   :  { %v2501_v33 = vpack.c.bf16 %v2436_v32, %v2435_v28  ;;  %v2443_v47 = vmul.f32 %v9743_v19, %v2440_v2 }
 0xbe6   :  { %v2442_v39 = vpop.permute.xlu0 %2441 }
 0xbe7   :  { %v2444_v53 = vmul.f32 %v9743_v19, %v2442_v39  ;;  %2540 = vmatpush1.bf16.msra.mxu1 %v2501_v33 }
 0xbe8   :  { %v2450_v55 = vpop.permute.xlu1 %2449  ;;  %2541 = vmatprep.subr.bf16.mxu1 %v12241_v13 }
 0xbe9   :  { %v2502_v56 = vpack.c.bf16 %v2444_v53, %v2443_v47  ;;  %v2453_v15 = vmul.f32 %v9751_v18, %v2450_v55 }
 0xbea   :  { %v2452_v6 = vpop.permute.xlu0 %2451 }
 0xbeb   :  { %2542 = vmatpush1.bf16.msra.mxu1 %v2502_v56  ;;  %v2454_v40 = vmul.f32 %v9751_v18, %v2452_v6  ;;  %v8513_v56 = vld [vmem:[%s12374_s7] ss:$8 sps:$4 sm:$0xff]   ;;  %s12379_s7 = sld [smem:[#allocation13_spill]] }
 0xbec   :  { %v2458_v11 = vpop.permute.xlu1 %2457  ;;  %2543 = vmatprep.subr.bf16.mxu1 %v12241_v13 }
 0xbed   :  { %v2504_v10 = vpack.c.bf16 %v2454_v40, %v2453_v15  ;;  %v2461_v31 = vmul.f32 %v9756_v34, %v2458_v11 }
 0xbee   :  { %v2460_v50 = vpop.permute.xlu0 %2459 }
 0xbef   :  { %2544 = vmatpush1.bf16.msra.mxu1 %v2503_v62  ;;  %v2462_v52 = vmul.f32 %v9756_v34, %v2460_v50 }
 0xbf0   :  { %2545 = vmatprep.subr.bf16.mxu1 %v12241_v13  ;;  %v2466_v57 = vpop.permute.xlu1 %2465 }
 0xbf1   :  { %v2505_v32 = vpack.c.bf16 %v2462_v52, %v2461_v31  ;;  %v2469_v33 = vmul.f32 %v9762_v16, %v2466_v57 }
 0xbf2   :  { %v2468_v26 = vpop.permute.xlu0 %2467 }
 0xbf3   :  { %2546 = vmatpush1.bf16.msra.mxu1 %v2504_v10  ;;  %v2470_v28 = vmul.f32 %v9762_v16, %v2468_v26 }
 0xbf4   :  { %2547 = vmatprep.subr.bf16.mxu1 %v12241_v13  ;;  %v2474_v62 = vpop.permute.xlu1 %2473 }
 0xbf5   :  { %v2506_v47 = vpack.c.bf16 %v2470_v28, %v2469_v33  ;;  %v2477_v53 = vmul.f32 %v9759_v4, %v2474_v62  ;;  %v2674_v33 = vld [vmem:[%s12377_s15 + $0x8] sm:$0xff] }
 0xbf6   :  { %v2476_v2 = vpop.permute.xlu0 %2475 }
 0xbf7   :  { %2548 = vmatpush1.bf16.msra.mxu1 %v2505_v32  ;;  %v2478_v39 = vmul.f32 %v9759_v4, %v2476_v2  ;;  %v8514_v32 = vld [vmem:[%s12376_s11 + $0x4] ss:$8 sps:$4 sm:$0xff]  }
 0xbf8   :  { %2549 = vmatprep.subr.bf16.mxu1 %v12241_v13  ;;  %7825 = vmatprep.mubr.msk.bf16.mxu0 %vm2531_vm12, %v8514_v32  ;;  %v2673_v2 = vld [vmem:[%s12377_s15] sm:$0xff]  ;;  %s12381_s15 = sld [smem:[#allocation32_spill]] }
 0xbf9   :  { %v2507_v55 = vpack.c.bf16 %v2478_v39, %v2477_v53 }
 0xbfb   :  { %2550 = vmatpush1.bf16.msra.mxu1 %v2506_v47 }
 0xbfc   :  { %2551 = vmatprep.subr.bf16.mxu1 %v12241_v13 }
 0xbff   :  { %2552 = vmatpush1.bf16.msra.mxu1 %v2507_v55 }
 0xc00   :  { %8252 = vmatprep.subr.bf16.mxu1 %v9596_v49 }
 0xc02   :  { %2568 = vmatmul.mubr.bf16.vlgmr.msra.gmra.mrb[20].mxu1 %v8513_v56 }
 0xc03   :  { %8268 = vmatprep.mubr.msk.bf16.mxu1 %vm8794_vm11, %v9596_v49 }
 0xc05   :  { %v2515_v6 = vpop.permute.xlu1 %2514 }
 0xc07   :  { %v2520_v15 = vpop.permute.xlu0 %2519 }
 0xcd5   :  { %v2569_v11 = vpop.f32.mrb[20].mxu1 }
 0xcd6   :  { %v2570_v40 = vadd.f32 %v2569_v11, %v2515_v6  ;;  %v2571_v50 = vpop.f32.mrb[21].mxu1 }
 0xcd7   :  { %v2572_v52 = vpop.f32.mrb[22].mxu1 }
 0xcd8   :  { %v2576_v10 = vmax.f32 %v2570_v40, 0.0  ;;  %v2573_v57 = vadd.f32 %v2572_v52, %v2520_v15  ;;  %v2574_v26 = vpop.f32.mrb[23].mxu1 }
 0xcda   :  { %v2577_v31 = vmax.f32 %v2573_v57, 0.0  ;;  %2578 = vrot.lane.b32.xlu1 %v2576_v10, %s8796_s29 }
 0xcdc   :  { %2580 = vrot.lane.b32.xlu0 %v2577_v31, %s8796_s29  ;;  %v2666_v28 = vpack.c.bf16 %v2577_v31, %v2576_v10 }
 0xcde   :  { %2586 = vrot.lane.b32.xlu1 %v2576_v10, %s8795_s25 }
 0xce0   :  { %2588 = vrot.lane.b32.xlu0 %v2577_v31, %s8795_s25 }
 0xce2   :  { %2594 = vrot.lane.b32.xlu1 %v2576_v10, %s8797_s8 }
 0xce4   :  { %2596 = vrot.lane.b32.xlu0 %v2577_v31, %s8797_s8 }
 0xce6   :  { %2602 = vrot.lane.b32.xlu1 %v2576_v10, %s8781_s16 }
 0xce8   :  { %2604 = vrot.lane.b32.xlu0 %v2577_v31, %s8781_s16 }
 0xcea   :  { %2612 = vrot.lane.b32.xlu1 %v2576_v10, %s8782_s18 }
 0xcec   :  { %2614 = vrot.lane.b32.xlu0 %v2577_v31, %s8782_s18 }
 0xcee   :  { %2620 = vrot.lane.b32.xlu1 %v2576_v10, %s8798_s30 }
 0xcf0   :  { %2622 = vrot.lane.b32.xlu0 %v2577_v31, %s8798_s30 }
 0xcf2   :  { %2628 = vrot.lane.b32.xlu1 %v2576_v10, %s8800_s2 }
 0xcf4   :  { %2630 = vrot.lane.b32.xlu0 %v2577_v31, %s8800_s2 }
 0xcf6   :  { %2636 = vrot.lane.b32.xlu1 %v2576_v10, %s8799_s1 }
 0xcf8   :  { %2638 = vrot.lane.b32.xlu0 %v2577_v31, %s8799_s1 }
 0xcfa   :  { %2677 = vperm.xlu1 %8459, %v2673_v2  }
 0xcfc   :  { %2682 = vperm.xlu0 %8438, %v2674_v33  }
 0xd4c   :  { %v2579_v62 = vpop.permute.xlu1 %2578 }
 0xd4d   :  { %v2582_v47 = vmul.f32 %v9738_v41, %v2579_v62 }
 0xd4e   :  { %v2581_v39 = vpop.permute.xlu0 %2580 }
 0xd4f   :  { %v2583_v53 = vmul.f32 %v9738_v41, %v2581_v39 }
 0xd50   :  { %v2587_v55 = vpop.permute.xlu1 %2586 }
 0xd51   :  { %v2662_v56 = vpack.c.bf16 %v2583_v53, %v2582_v47  ;;  %v2590_v11 = vmul.f32 %v9735_v21, %v2587_v55 }
 0xd52   :  { %v2589_v6 = vpop.permute.xlu0 %2588 }
 0xd53   :  { %v2591_v40 = vmul.f32 %v9735_v21, %v2589_v6  ;;  %2698 = vmatpush1.bf16.msra.mxu0 %v2662_v56 }
 0xd54   :  { %v2595_v50 = vpop.permute.xlu1 %2594  ;;  %2699 = vmatprep.subr.bf16.mxu0 %v12241_v13 }
 0xd55   :  { %v2663_v15 = vpack.c.bf16 %v2591_v40, %v2590_v11  ;;  %v2598_v10 = vmul.f32 %v9746_v14, %v2595_v50 }
 0xd56   :  { %v2597_v52 = vpop.permute.xlu0 %2596 }
 0xd57   :  { %v2599_v57 = vmul.f32 %v9746_v14, %v2597_v52  ;;  %2700 = vmatpush1.bf16.msra.mxu0 %v2663_v15 }
 0xd58   :  { %v2603_v26 = vpop.permute.xlu1 %2602  ;;  %2701 = vmatprep.subr.bf16.mxu0 %v12241_v13 }
 0xd59   :  { %v2664_v41 = vpack.c.bf16 %v2599_v57, %v2598_v10  ;;  %v2606_v32 = vmul.f32 %v9743_v19, %v2603_v26  ;;  %v8516_v26 = vld [vmem:[%s12376_s11] ss:$8 sps:$4 sm:$0xff]   ;;  %s12380_s11 = sld [smem:[#allocation12_spill]] }
 0xd5a   :  { %v2605_v31 = vpop.permute.xlu0 %2604 }
 0xd5b   :  { %v2607_v21 = vmul.f32 %v9743_v19, %v2605_v31  ;;  %2702 = vmatpush1.bf16.msra.mxu0 %v2664_v41 }
 0xd5c   :  { %v2613_v2 = vpop.permute.xlu1 %2612  ;;  %2703 = vmatprep.subr.bf16.mxu0 %v12241_v13 }
 0xd5d   :  { %v2665_v33 = vpack.c.bf16 %v2607_v21, %v2606_v32  ;;  %v2616_v53 = vmul.f32 %v9751_v18, %v2613_v2 }
 0xd5e   :  { %v2615_v62 = vpop.permute.xlu0 %2614 }
 0xd5f   :  { %2704 = vmatpush1.bf16.msra.mxu0 %v2665_v33  ;;  %v2617_v14 = vmul.f32 %v9751_v18, %v2615_v62  ;;  %v8517_v33 = vld [vmem:[%s12378_s19] sm:$0xff]  }
 0xd60   :  { %v2621_v39 = vpop.permute.xlu1 %2620  ;;  %2705 = vmatprep.subr.bf16.mxu0 %v12241_v13  ;;  %8253 = vmatpush3.bf16.msra.mxu1 %v8517_v33 }
 0xd61   :  { %v2667_v55 = vpack.c.bf16 %v2617_v14, %v2616_v53  ;;  %v2624_v11 = vmul.f32 %v9756_v34, %v2621_v39  ;;  %v8518_v39 = vld [vmem:[%s12378_s19 + $0x8] sm:$0xff]   ;;  %8254 = vmatprep.subr.bf16.mxu1 %v9596_v49 }
 0xd62   :  { %v2623_v47 = vpop.permute.xlu0 %2622 }
 0xd63   :  { %2706 = vmatpush1.bf16.msra.mxu0 %v2666_v28  ;;  %v2625_v19 = vmul.f32 %v9756_v34, %v2623_v47 }
 0xd64   :  { %2707 = vmatprep.subr.bf16.mxu0 %v12241_v13  ;;  %v2629_v56 = vpop.permute.xlu1 %2628  ;;  %8255 = vmatpush3.bf16.msra.mxu1 %v8518_v39  ;;  %v2997_v39 = vld [vmem:[%s12379_s7 + $0x10] sm:$0xff] }
 0xd65   :  { %v2668_v50 = vpack.c.bf16 %v2625_v19, %v2624_v11  ;;  %v2632_v18 = vmul.f32 %v9762_v16, %v2629_v56  ;;  %v8519_v19 = vld [vmem:[%s12378_s19 + $0x10] sm:$0xff]   ;;  %8256 = vmatprep.subr.bf16.mxu1 %v9596_v49  ;;  %v8521_v56 = vld [vmem:[%s12378_s19 + $0x20] sm:$0xff]  }
 0xd66   :  { %v2631_v6 = vpop.permute.xlu0 %2630  ;;  %v8523_v11 = vld [vmem:[%s12378_s19 + $0x30] sm:$0xff]  }
 0xd67   :  { %2708 = vmatpush1.bf16.msra.mxu0 %v2667_v55  ;;  %v2633_v40 = vmul.f32 %v9762_v16, %v2631_v6  ;;  %v8520_v55 = vld [vmem:[%s12378_s19 + $0x18] sm:$0xff]   ;;  %v8522_v6 = vld [vmem:[%s12378_s19 + $0x28] sm:$0xff]  }
 0xd68   :  { %2709 = vmatprep.subr.bf16.mxu0 %v12241_v13  ;;  %v2637_v28 = vpop.permute.xlu1 %2636  ;;  %8257 = vmatpush3.bf16.msra.mxu1 %v8519_v19  ;;  %v2998_v19 = vld [vmem:[%s12379_s7 + $0x18] sm:$0xff] }
 0xd69   :  { %v2669_v10 = vpack.c.bf16 %v2633_v40, %v2632_v18  ;;  %v2640_v34 = vmul.f32 %v9759_v4, %v2637_v28  ;;  %8258 = vmatprep.subr.bf16.mxu1 %v9596_v49  ;;  %v8524_v40 = vld [vmem:[%s12378_s19 + $0x38] sm:$0xff]   ;;  %s8802_s19 = smov 126  }
 0xd6a   :  { %v2639_v15 = vpop.permute.xlu0 %2638 }
 0xd6b   :  { %2710 = vmatpush1.bf16.msra.mxu0 %v2668_v50  ;;  %v2641_v52 = vmul.f32 %v9759_v4, %v2639_v15 }
 0xd6c   :  { %2711 = vmatprep.subr.bf16.mxu0 %v12241_v13  ;;  %8259 = vmatpush3.bf16.msra.mxu1 %v8520_v55  ;;  %v9921_v55 = vld [vmem:[%s12381_s15] ss:$0 sm:$0xff] }
 0xd6d   :  { %v2670_v57 = vpack.c.bf16 %v2641_v52, %v2640_v34  ;;  %8260 = vmatprep.subr.bf16.mxu1 %v9596_v49 }
 0xd6f   :  { %2712 = vmatpush1.bf16.msra.mxu0 %v2669_v10 }
 0xd70   :  { %2713 = vmatprep.subr.bf16.mxu0 %v12241_v13  ;;  %8261 = vmatpush3.bf16.msra.mxu1 %v8521_v56 }
 0xd71   :  { %8262 = vmatprep.subr.bf16.mxu1 %v9596_v49 }
 0xd73   :  { %2714 = vmatpush1.bf16.msra.mxu0 %v2670_v57 }
 0xd74   :  { %3043 = vmatprep.subr.bf16.mxu0 %v12241_v13  ;;  %8263 = vmatpush3.bf16.msra.mxu1 %v8522_v6 }
 0xd75   :  { %8264 = vmatprep.subr.bf16.mxu1 %v9596_v49 }
 0xd76   :  { %2730 = vmatmul.mubr.bf16.vlgmr.msra.gmra.mrb[20].mxu0 %v8516_v26 }
 0xd78   :  { %8265 = vmatpush3.bf16.msra.mxu1 %v8523_v11 }
 0xd79   :  { %v2678_v16 = vpop.permute.xlu1 %2677  ;;  %8266 = vmatprep.subr.bf16.mxu1 %v9596_v49 }
 0xd7b   :  { %v2683_v21 = vpop.permute.xlu0 %2682 }
 0xd7c   :  { %8267 = vmatpush3.bf16.msra.mxu1 %v8524_v40 }
 0xe49   :  { %v2731_v41 = vpop.f32.mrb[20].mxu0 }
 0xe4a   :  { %v2732_v31 = vadd.f32 %v2731_v41, %v2678_v16  ;;  %v2733_v32 = vpop.f32.mrb[21].mxu0 }
 0xe4b   :  { %v2734_v2 = vpop.f32.mrb[22].mxu0 }
 0xe4c   :  { %v2735_v4 = vadd.f32 %v2734_v2, %v2683_v21  ;;  %v2736_v62 = vpop.f32.mrb[23].mxu0  ;;  %v9870_v14 = vmax.f32 %v2732_v31, 0.0 }
 0xe4d   :  { %v2996_v62 = vld [vmem:[%s12379_s7 + $0x8] sm:$0xff] }
 0xe4e   :  { %v9872_v47 = vmax.f32 %v2735_v4, 0.0  ;;  %v2995_v4 = vld [vmem:[%s12379_s7] sm:$0xff]  ;;  %s12382_s7 = sld [smem:[#allocation14_spill]] }
 0xe50   :  { %v8460_v53 = vpack.i.bf16 %v9872_v47, %v9870_v14 }
 0xe52   :  { %8461 = vrot.lane.b32.xlu1 %v8460_v53, %s8782_s18  ;;  %v8525_v53 = vld [vmem:[%s12380_s11 + $0x4] ss:$8 sps:$4 sm:$0xff]  }
 0xe53   :  { %7846 = vmatprep.mubr.msk.bf16.mxu0 %vm2531_vm12, %v8525_v53 }
 0xec4   :  { %v8462_v50 = vpop.permute.xlu1 %8461 }
 0xec5   :  { %v8464_v15 = vunpack.i.h.bf16 %v8462_v50  ;;  %v8463_v18 = vunpack.i.l.bf16 %v8462_v50  ;;  %v9926_v50 = vld [vmem:[%s12381_s15 + $0x1] ss:$0 sm:$0xff] }
 0xec7   :  { %v2745_v28 = vmax.f32 %v9872_v47, %v8464_v15  ;;  %v2744_v52 = vmax.f32 %v9870_v14, %v8463_v18 }
 0xec9   :  { %v8465_v10 = vpack.i.bf16 %v2745_v28, %v2744_v52 }
 0xecb   :  { %8466 = vrot.lane.b32.xlu0 %v8465_v10, %s8800_s2 }
 0xf3d   :  { %v8467_v34 = vpop.permute.xlu0 %8466 }
 0xf3e   :  { %v8469_v57 = vunpack.i.h.bf16 %v8467_v34  ;;  %v8468_v26 = vunpack.i.l.bf16 %v8467_v34  ;;  %v9931_v34 = vld [vmem:[%s12381_s15 + $0x2] ss:$0 sm:$0xff] }
 0xf40   :  { %v2751_v16 = vmax.f32 %v2745_v28, %v8469_v57  ;;  %v2750_v41 = vmax.f32 %v2744_v52, %v8468_v26 }
 0xf42   :  { %v2752_v31 = vpack.c.bf16 %v2751_v16, %v2750_v41 }
 0xf44   :  { %8269 = vmatmul.mubr.bf16.vlgmr.msra.gmra.mrb[24].mxu1 %v2752_v31 }
0x1017   :  { %v9893_v49 = vpop.f32.mrb[24].mxu1 }
0x1018   :  { %2858 = vrot.lane.b32.xlu1 %v9893_v49, %s8797_s8  ;;  %v8270_v32 = vpop.f32.mrb[25].mxu1 }
0x1019   :  { %v2854_v21 = vpop.f32.mrb[26].mxu1 }
0x101a   :  { %2860 = vrot.lane.b32.xlu0 %v2854_v21, %s8797_s8  ;;  %v8271_v2 = vpop.f32.mrb[27].mxu1  ;;  %v2986_v33 = vpack.c.bf16 %v2854_v21, %v9893_v49 }
0x101c   :  { %2872 = vrot.lane.b32.xlu1 %v9893_v49, %s8801_s10 }
0x101e   :  { %2874 = vrot.lane.b32.xlu0 %v2854_v21, %s8801_s10 }
0x1020   :  { %2886 = vrot.lane.b32.xlu1 %v9893_v49, %s8781_s16 }
0x1022   :  { %2888 = vrot.lane.b32.xlu0 %v2854_v21, %s8781_s16 }
0x1024   :  { %2912 = vrot.lane.b32.xlu1 %v9893_v49, %s8782_s18 }
0x1026   :  { %2914 = vrot.lane.b32.xlu0 %v2854_v21, %s8782_s18 }
0x1028   :  { %2936 = vrot.lane.b32.xlu1 %v9893_v49, %s8802_s19 }
0x102a   :  { %2938 = vrot.lane.b32.xlu0 %v2854_v21, %s8802_s19 }
0x102c   :  { %2950 = vrot.lane.b32.xlu1 %v9893_v49, %s8798_s30  ;;  %v9937_v49 = vld [vmem:[%s12381_s15 + $0x3] ss:$0 sm:$0xff] }
0x102e   :  { %2952 = vrot.lane.b32.xlu0 %v2854_v21, %s8798_s30 }
0x1030   :  { %3001 = vperm.xlu1 %8459, %v2995_v4  }
0x1032   :  { %3006 = vperm.xlu0 %8438, %v2996_v62  }
0x1034   :  { %3011 = vperm.xlu1 %8459, %v2997_v39   ;;  %v9944_v39 = vld [vmem:[%s12381_s15 + $0x5] ss:$0 sm:$0xff] }
0x1036   :  { %3016 = vperm.xlu0 %8438, %v2998_v19  }
0x108a   :  { %v2859_v56 = vpop.permute.xlu1 %2858 }
0x108b   :  { %v2868_v11 = vmul.f32 %v9921_v55, %v2859_v56 }
0x108c   :  { %v2861_v6 = vpop.permute.xlu0 %2860 }
0x108d   :  { %v2869_v40 = vmul.f32 %v9921_v55, %v2861_v6  ;;  %v9950_v6 = vld [vmem:[%s12381_s15 + $0x6] ss:$0 sm:$0xff] }
0x108e   :  { %v2873_v15 = vpop.permute.xlu1 %2872 }
0x108f   :  { %v2982_v18 = vpack.c.bf16 %v2869_v40, %v2868_v11  ;;  %v2882_v52 = vmul.f32 %v9926_v50, %v2873_v15 }
0x1090   :  { %v2875_v28 = vpop.permute.xlu0 %2874 }
0x1091   :  { %v2883_v10 = vmul.f32 %v9926_v50, %v2875_v28  ;;  %3044 = vmatpush1.bf16.msra.mxu0 %v2982_v18 }
0x1092   :  { %v2887_v57 = vpop.permute.xlu1 %2886  ;;  %3045 = vmatprep.subr.bf16.mxu0 %v12241_v13 }
0x1093   :  { %v2983_v26 = vpack.c.bf16 %v2883_v10, %v2882_v52  ;;  %v2896_v41 = vmul.f32 %v9931_v34, %v2887_v57  ;;  %v2906_v2 = vmul.f32 %v9937_v49, %v2887_v57  ;;  %v9956_v52 = vld [vmem:[%s12381_s15 + $0x7] ss:$0 sm:$0xff] }
0x1094   :  { %v2889_v16 = vpop.permute.xlu0 %2888 }
0x1095   :  { %v2897_v31 = vmul.f32 %v9931_v34, %v2889_v16  ;;  %3046 = vmatpush1.bf16.msra.mxu0 %v2983_v26  ;;  %v2907_v32 = vmul.f32 %v9937_v49, %v2889_v16  ;;  %v9962_v16 = vld [vmem:[%s12381_s15 + $0x8] ss:$0 sm:$0xff]  ;;  %s12384_s15 = sld [smem:[#allocation16_spill]] }
0x1096   :  { %3047 = vmatprep.subr.bf16.mxu0 %v12241_v13  ;;  %v2913_v53 = vpop.permute.xlu1 %2912 }
0x1097   :  { %v2984_v21 = vpack.c.bf16 %v2897_v31, %v2896_v41  ;;  %v2985_v4 = vpack.c.bf16 %v2907_v32, %v2906_v2  ;;  %v2922_v56 = vmul.f32 %v9944_v39, %v2913_v53  ;;  %v2932_v28 = vmul.f32 %v9950_v6, %v2913_v53  ;;  %v8530_v53 = vld [vmem:[%s12380_s11 + $0x10] ss:$8 sps:$4 sm:$0xff]  }
0x1098   :  { %v2915_v62 = vpop.permute.xlu0 %2914 }
0x1099   :  { %3048 = vmatpush1.bf16.msra.mxu0 %v2984_v21  ;;  %v2923_v19 = vmul.f32 %v9944_v39, %v2915_v62  ;;  %v2933_v40 = vmul.f32 %v9950_v6, %v2915_v62  ;;  %v8528_v62 = vld [vmem:[%s12380_s11 + $0x14] ss:$8 sps:$4 sm:$0xff]  }
0x109a   :  { %3049 = vmatprep.subr.bf16.mxu0 %v12241_v13  ;;  %v2937_v18 = vpop.permute.xlu1 %2936 }
0x109b   :  { %v2987_v15 = vpack.c.bf16 %v2923_v19, %v2922_v56  ;;  %v2988_v10 = vpack.c.bf16 %v2933_v40, %v2932_v28  ;;  %v2946_v26 = vmul.f32 %v9956_v52, %v2937_v18 }
0x109c   :  { %v2939_v11 = vpop.permute.xlu0 %2938 }
0x109d   :  { %3050 = vmatpush1.bf16.msra.mxu0 %v2985_v4  ;;  %v8527_v4 = vld [vmem:[%s12380_s11] ss:$8 sps:$4 sm:$0xff]   ;;  %s12383_s11 = sld [smem:[#allocation15_spill]] }
0x109e   :  { %3051 = vmatprep.subr.bf16.mxu0 %v12241_v13  ;;  %v2951_v41 = vpop.permute.xlu1 %2950 }
0x109f   :  { %v2960_v21 = vmul.f32 %v9962_v16, %v2951_v41 }
0x10a0   :  { %v2953_v57 = vpop.permute.xlu0 %2952 }
0x10a1   :  { %3052 = vmatpush1.bf16.msra.mxu0 %v2986_v33  ;;  %v2947_v33 = vmul.f32 %v9956_v52, %v2939_v11  ;;  %v2961_v31 = vmul.f32 %v9962_v16, %v2953_v57 }
0x10a2   :  { %3053 = vmatprep.subr.bf16.mxu0 %v12241_v13 }
0x10a3   :  { %v2989_v32 = vpack.c.bf16 %v2947_v33, %v2946_v26  ;;  %v2990_v2 = vpack.c.bf16 %v2961_v31, %v2960_v21 }
0x10a5   :  { %3054 = vmatpush1.bf16.msra.mxu0 %v2987_v15 }
0x10a6   :  { %3055 = vmatprep.subr.bf16.mxu0 %v12241_v13 }
0x10a9   :  { %3056 = vmatpush1.bf16.msra.mxu0 %v2988_v10 }
0x10aa   :  { %3057 = vmatprep.subr.bf16.mxu0 %v12241_v13 }
0x10ad   :  { %3058 = vmatpush1.bf16.msra.mxu0 %v2989_v32 }
0x10ae   :  { %3059 = vmatprep.subr.bf16.mxu0 %v12241_v13 }
0x10af   :  { %v3002_v19 = vpop.permute.xlu1 %3001 }
0x10b1   :  { %3060 = vmatpush1.bf16.msra.mxu0 %v2990_v2  ;;  %v3007_v15 = vpop.permute.xlu0 %3006 }
0x10b3   :  { %v3012_v41 = vpop.permute.xlu1 %3011 }
0x10b4   :  { %3076 = vmatmul.mubr.bf16.vlgmr.msra.gmra.mrb[24].mxu0 %v8527_v4 }
0x10b5   :  { %7847 = vmatprep.mubr.msk.bf16.mxu0 %vm2531_vm12, %v8528_v62  ;;  %v3017_v2 = vpop.permute.xlu0 %3016 }
0x10bc   :  { %3084 = vmatmul.mubr.bf16.gmra.mrb[28].mxu0 %v8530_v53 }
0x1187   :  { %v3077_v56 = vpop.f32.mrb[24].mxu0 }
0x1188   :  { %v3078_v11 = vadd.f32 %v3077_v56, %v3002_v19  ;;  %v3079_v40 = vpop.f32.mrb[25].mxu0 }
0x1189   :  { %v3080_v18 = vpop.f32.mrb[26].mxu0  ;;  %v8533_v40 = vld [vmem:[%s12382_s7 + $0x4] ss:$12 sps:$4 sm:$0xff]  }
0x118a   :  { %v3092_v28 = vmax.f32 %v3078_v11, 0.0  ;;  %v3081_v33 = vadd.f32 %v3080_v18, %v3007_v15  ;;  %v3082_v10 = vpop.f32.mrb[27].mxu0  ;;  %3367 = vmatprep.mubr.bf16.mxu1 %v8533_v40  ;;  %v8536_v15 = vld [vmem:[%s12382_s7 + $0x8] ss:$12 sps:$4 sm:$0xff]   ;;  %v3274_v18 = vld [vmem:[%s12383_s11] sm:$0xff] }
0x118b   :  { %8276 = vmatprep.mubr.msk.bf16.mxu0 %vm3328_vm13, %v8536_v15  ;;  %v3276_v10 = vld [vmem:[%s12383_s11 + $0x10] sm:$0xff] }
0x118c   :  { %v3093_v57 = vmax.f32 %v3081_v33, 0.0  ;;  %3096 = vrot.lane.b32.xlu1 %v3092_v28, %s8797_s8  ;;  %v3275_v33 = vld [vmem:[%s12383_s11 + $0x8] sm:$0xff] }
0x118e   :  { %3098 = vrot.lane.b32.xlu0 %v3093_v57, %s8797_s8  ;;  %v3256_v26 = vpack.c.bf16 %v3093_v57, %v3092_v28 }
0x118f   :  { %v3085_v31 = vpop.f32.mrb[28].mxu0 }
0x1190   :  { %v3086_v32 = vadd.f32 %v3085_v31, %v3012_v41  ;;  %v3087_v21 = vpop.f32.mrb[29].mxu0  ;;  %3156 = vrot.lane.b32.xlu1 %v3092_v28, %s8782_s18  ;;  %8099 = vmatprep.subr.bf16.mxu1 %v3256_v26  ;;  %v3277_v26 = vld [vmem:[%s12383_s11 + $0x18] sm:$0xff]  ;;  %s12389_s11 = sld [smem:[#allocation34_spill]] }
0x1191   :  { %v3088_v4 = vpop.f32.mrb[30].mxu0 }
0x1192   :  { %v3089_v62 = vadd.f32 %v3088_v4, %v3017_v2  ;;  %3158 = vrot.lane.b32.xlu0 %v3093_v57, %s8782_s18  ;;  %v3090_v53 = vpop.f32.mrb[31].mxu0  ;;  %v3094_v19 = vmax.f32 %v3086_v32, 0.0 }
0x1194   :  { %v3095_v56 = vmax.f32 %v3089_v62, 0.0  ;;  %3112 = vrot.lane.b32.xlu1 %v3092_v28, %s8801_s10 }
0x1196   :  { %3114 = vrot.lane.b32.xlu0 %v3093_v57, %s8801_s10  ;;  %v3257_v11 = vpack.c.bf16 %v3095_v56, %v3094_v19 }
0x1198   :  { %3100 = vrot.lane.b32.xlu1 %v3094_v19, %s8797_s8 }
0x119a   :  { %3102 = vrot.lane.b32.xlu0 %v3095_v56, %s8797_s8 }
0x119c   :  { %3160 = vrot.lane.b32.xlu1 %v3094_v19, %s8782_s18 }
0x119e   :  { %3162 = vrot.lane.b32.xlu0 %v3095_v56, %s8782_s18 }
0x11a0   :  { %3116 = vrot.lane.b32.xlu1 %v3094_v19, %s8801_s10 }
0x11a2   :  { %3118 = vrot.lane.b32.xlu0 %v3095_v56, %s8801_s10 }
0x11a4   :  { %3128 = vrot.lane.b32.xlu1 %v3092_v28, %s8781_s16 }
0x11a6   :  { %3130 = vrot.lane.b32.xlu0 %v3093_v57, %s8781_s16 }
0x11a8   :  { %3132 = vrot.lane.b32.xlu1 %v3094_v19, %s8781_s16 }
0x11aa   :  { %3134 = vrot.lane.b32.xlu0 %v3095_v56, %s8781_s16 }
0x11ac   :  { %3180 = vrot.lane.b32.xlu1 %v3092_v28, %s8802_s19 }
0x11ae   :  { %3182 = vrot.lane.b32.xlu0 %v3093_v57, %s8802_s19 }
0x11b0   :  { %3184 = vrot.lane.b32.xlu1 %v3094_v19, %s8802_s19 }
0x11b2   :  { %3186 = vrot.lane.b32.xlu0 %v3095_v56, %s8802_s19 }
0x11b4   :  { %3196 = vrot.lane.b32.xlu1 %v3092_v28, %s8798_s30 }
0x11b6   :  { %3198 = vrot.lane.b32.xlu0 %v3093_v57, %s8798_s30 }
0x11b8   :  { %3200 = vrot.lane.b32.xlu1 %v3094_v19, %s8798_s30 }
0x11ba   :  { %3202 = vrot.lane.b32.xlu0 %v3095_v56, %s8798_s30 }
0x11bc   :  { %3280 = vperm.xlu1 %8459, %v3274_v18  }
0x11be   :  { %3285 = vperm.xlu0 %8438, %v3275_v33  }
0x11c0   :  { %3290 = vperm.xlu1 %8459, %v3276_v10  }
0x11c2   :  { %3295 = vperm.xlu0 %8438, %v3277_v26  }
0x11fe   :  { %v3097_v41 = vpop.permute.xlu1 %3096 }
0x11ff   :  { %v3104_v28 = vmul.f32 %v9921_v55, %v3097_v41 }
0x1200   :  { %v3099_v31 = vpop.permute.xlu0 %3098 }
0x1201   :  { %v3105_v32 = vmul.f32 %v9921_v55, %v3099_v31 }
0x1202   :  { %v3157_v21 = vpop.permute.xlu1 %3156 }
0x1203   :  { %v3248_v57 = vpack.c.bf16 %v3105_v32, %v3104_v28  ;;  %v3164_v18 = vmul.f32 %v9944_v39, %v3157_v21 }
0x1204   :  { %v3159_v2 = vpop.permute.xlu0 %3158 }
0x1205   :  { %8100 = vmatpush3.bf16.msra.mxu1 %v3248_v57  ;;  %v3165_v19 = vmul.f32 %v9944_v39, %v3159_v2 }
0x1206   :  { %v3113_v4 = vpop.permute.xlu1 %3112  ;;  %8101 = vmatprep.subr.bf16.mxu1 %v3257_v11 }
0x1207   :  { %v3258_v31 = vpack.c.bf16 %v3165_v19, %v3164_v18  ;;  %v3120_v28 = vmul.f32 %v9926_v50, %v3113_v4  ;;  %v3172_v19 = vmul.f32 %v9950_v6, %v3157_v21 }
0x1208   :  { %v3115_v62 = vpop.permute.xlu0 %3114 }
0x1209   :  { %v3121_v10 = vmul.f32 %v9926_v50, %v3115_v62 }
0x120a   :  { %v3101_v53 = vpop.permute.xlu1 %3100 }
0x120b   :  { %v3106_v40 = vmul.f32 %v9921_v55, %v3101_v53  ;;  %v3250_v53 = vpack.c.bf16 %v3121_v10, %v3120_v28 }
0x120c   :  { %v3103_v56 = vpop.permute.xlu0 %3102 }
0x120d   :  { %v3107_v15 = vmul.f32 %v9921_v55, %v3103_v56  ;;  %v3173_v56 = vmul.f32 %v9950_v6, %v3159_v2 }
0x120e   :  { %v3161_v33 = vpop.permute.xlu1 %3160 }
0x120f   :  { %v3249_v26 = vpack.c.bf16 %v3107_v15, %v3106_v40  ;;  %v3166_v11 = vmul.f32 %v9944_v39, %v3161_v33  ;;  %v3174_v2 = vmul.f32 %v9950_v6, %v3161_v33 }
0x1210   :  { %v3163_v41 = vpop.permute.xlu0 %3162 }
0x1211   :  { %v3167_v32 = vmul.f32 %v9944_v39, %v3163_v41  ;;  %8102 = vmatpush3.bf16.msra.mxu1 %v3249_v26  ;;  %v3175_v15 = vmul.f32 %v9950_v6, %v3163_v41  ;;  %v3260_v26 = vpack.c.bf16 %v3173_v56, %v3172_v19 }
0x1212   :  { %v3117_v57 = vpop.permute.xlu1 %3116  ;;  %8103 = vmatprep.subr.bf16.mxu1 %v3258_v31 }
0x1213   :  { %v3259_v13 = vpack.c.bf16 %v3167_v32, %v3166_v11  ;;  %v3122_v20 = vmul.f32 %v9926_v50, %v3117_v57  ;;  %v3261_v32 = vpack.c.bf16 %v3175_v15, %v3174_v2 }
0x1214   :  { %v3119_v54 = vpop.permute.xlu0 %3118 }
0x1215   :  { %v3123_v62 = vmul.f32 %v9926_v50, %v3119_v54  ;;  %8104 = vmatpush3.bf16.msra.mxu1 %v3250_v53 }
0x1216   :  { %v3129_v4 = vpop.permute.xlu1 %3128  ;;  %8105 = vmatprep.subr.bf16.mxu1 %v3259_v13 }
0x1217   :  { %v3251_v40 = vpack.c.bf16 %v3123_v62, %v3122_v20  ;;  %v3136_v10 = vmul.f32 %v9931_v34, %v3129_v4  ;;  %v3144_v62 = vmul.f32 %v9937_v49, %v3129_v4 }
0x1218   :  { %v3131_v18 = vpop.permute.xlu0 %3130 }
0x1219   :  { %v3137_v31 = vmul.f32 %v9931_v34, %v3131_v18  ;;  %8106 = vmatpush3.bf16.msra.mxu1 %v3251_v40  ;;  %v3145_v57 = vmul.f32 %v9937_v49, %v3131_v18 }
0x121a   :  { %v3133_v28 = vpop.permute.xlu1 %3132  ;;  %8107 = vmatprep.subr.bf16.mxu1 %v3260_v26 }
0x121b   :  { %v3252_v54 = vpack.c.bf16 %v3137_v31, %v3136_v10  ;;  %v3138_v21 = vmul.f32 %v9931_v34, %v3133_v28  ;;  %v3254_v10 = vpack.c.bf16 %v3145_v57, %v3144_v62  ;;  %v3146_v2 = vmul.f32 %v9937_v49, %v3133_v28  ;;  %v8534_v57 = vld [vmem:[%s12382_s7 + $0x1c] ss:$12 sps:$4 sm:$0xff]  }
0x121c   :  { %v3135_v11 = vpop.permute.xlu0 %3134 }
0x121d   :  { %v3139_v13 = vmul.f32 %v9931_v34, %v3135_v11  ;;  %8108 = vmatpush3.bf16.msra.mxu1 %v3252_v54  ;;  %v3147_v15 = vmul.f32 %v9937_v49, %v3135_v11  ;;  %v8531_v11 = vld [vmem:[%s12382_s7] ss:$12 sps:$4 sm:$0xff]  }
0x121e   :  { %v3181_v20 = vpop.permute.xlu1 %3180  ;;  %8109 = vmatprep.subr.bf16.mxu1 %v3261_v32 }
0x121f   :  { %v3253_v41 = vpack.c.bf16 %v3139_v13, %v3138_v21  ;;  %v3188_v56 = vmul.f32 %v9956_v52, %v3181_v20  ;;  %v3255_v4 = vpack.c.bf16 %v3147_v15, %v3146_v2 }
0x1220   :  { %v3183_v53 = vpop.permute.xlu0 %3182 }
0x1221   :  { %v3189_v33 = vmul.f32 %v9956_v52, %v3183_v53  ;;  %8110 = vmatpush3.bf16.msra.mxu1 %v3253_v41 }
0x1222   :  { %v3185_v19 = vpop.permute.xlu1 %3184 }
0x1223   :  { %v3262_v40 = vpack.c.bf16 %v3189_v33, %v3188_v56  ;;  %v3190_v31 = vmul.f32 %v9956_v52, %v3185_v19  ;;  %v8537_v19 = vld [vmem:[%s12382_s7 + $0x18] ss:$12 sps:$4 sm:$0xff]  }
0x1224   :  { %v3187_v26 = vpop.permute.xlu0 %3186 }
0x1225   :  { %v3191_v18 = vmul.f32 %v9956_v52, %v3187_v26  ;;  %8111 = vmatprep.subr.bf16.mxu1 %v3262_v40  ;;  %v8538_v40 = vld [vmem:[%s12382_s7 + $0x20] ss:$12 sps:$4 sm:$0xff]   ;;  %s12385_s7 = sld [smem:[#allocation17_spill]] }
0x1226   :  { %v3197_v54 = vpop.permute.xlu1 %3196  ;;  %8112 = vmatpush3.bf16.msra.mxu1 %v3254_v10 }
0x1227   :  { %v3263_v32 = vpack.c.bf16 %v3191_v18, %v3190_v31  ;;  %v3204_v13 = vmul.f32 %v9962_v16, %v3197_v54 }
0x1228   :  { %v3199_v21 = vpop.permute.xlu0 %3198 }
0x1229   :  { %v3205_v20 = vmul.f32 %v9962_v16, %v3199_v21  ;;  %8113 = vmatprep.subr.bf16.mxu1 %v3263_v32 }
0x122a   :  { %v3201_v41 = vpop.permute.xlu1 %3200  ;;  %8114 = vmatpush3.bf16.msra.mxu1 %v3255_v4 }
0x122b   :  { %v3264_v53 = vpack.c.bf16 %v3205_v20, %v3204_v13  ;;  %v3206_v28 = vmul.f32 %v9962_v16, %v3201_v41 }
0x122c   :  { %v3203_v56 = vpop.permute.xlu0 %3202 }
0x122d   :  { %v3207_v33 = vmul.f32 %v9962_v16, %v3203_v56  ;;  %3368 = vmatmul.mubr.bf16.vlgmr.msra.gmra.mrb[28].mxu1 %v8531_v11  ;;  %8272 = vmatprep.subr.bf16.mxu0 %v3264_v53 }
0x122e   :  { %8273 = vmatpush3.bf16.msra.mxu0 %v3264_v53  ;;  %3375 = vmatprep.mubr.bf16.mxu1 %v8534_v57 }
0x122f   :  { %v3265_v62 = vpack.c.bf16 %v3207_v33, %v3206_v28 }
0x1231   :  { %8274 = vmatprep.subr.bf16.mxu0 %v3265_v62 }
0x1232   :  { %8275 = vmatpush3.bf16.msra.mxu0 %v3265_v62 }
0x1235   :  { %3376 = vmatmul.mubr.bf16.gmra.mrb[32].mxu1 %v8537_v19  ;;  %8277 = vmatmul.mubr.msk.bf16.vlgmr.msra.gmra.mrb[32].mxu0 %vm3328_vm13, %v8538_v40 }
0x123b   :  { %v3281_v26 = vpop.permute.xlu1 %3280 }
0x123d   :  { %v3286_v32 = vpop.permute.xlu0 %3285 }
0x123f   :  { %v3291_v21 = vpop.permute.xlu1 %3290 }
0x1241   :  { %v3296_v51 = vpop.permute.xlu0 %3295 }
0x1300   :  { %v8115_v15 = vpop.f32.mrb[28].mxu1 }
0x1301   :  { %v8116_v10 = vpop.f32.mrb[29].mxu1 }
0x1302   :  { %v8117_v31 = vadd.f32 %v8116_v10, %v8115_v15  ;;  %v8118_v18 = vpop.f32.mrb[30].mxu1 }
0x1303   :  { %v8119_v2 = vpop.f32.mrb[31].mxu1 }
0x1304   :  { %v8120_v54 = vadd.f32 %v8119_v2, %v8118_v18  ;;  %v3370_v20 = vadd.f32 %v8117_v31, %v3281_v26 }
0x1306   :  { %v3373_v33 = vadd.f32 %v8120_v54, %v3286_v32  ;;  %v8544_v32 = vld [vmem:[%s12384_s15 + $0x8] ss:$12 sps:$4 sm:$0xff]  }
0x1307   :  { %8284 = vmatprep.mubr.msk.bf16.mxu1 %vm3328_vm13, %v8544_v32 }
0x1308   :  { %v8121_v4 = vpop.f32.mrb[32].mxu1  ;;  %v8278_v13 = vpop.f32.mrb[32].mxu0 }
0x1309   :  { %v8122_v11 = vpop.f32.mrb[33].mxu1  ;;  %v3418_v41 = vpop.f32.mrb[33].mxu0 }
0x130a   :  { %v8123_v57 = vadd.f32 %v8122_v11, %v8121_v4  ;;  %v3419_v53 = vadd.f32 %v3418_v41, %v3370_v20  ;;  %v8124_v56 = vpop.f32.mrb[34].mxu1  ;;  %v8279_v28 = vpop.f32.mrb[34].mxu0  ;;  %v3617_v11 = vld [vmem:[%s12385_s7 + $0x10] sm:$0xff]  ;;  %v3618_v41 = vld [vmem:[%s12385_s7 + $0x18] sm:$0xff] }
0x130b   :  { %v8125_v62 = vpop.f32.mrb[35].mxu1  ;;  %v3421_v19 = vpop.f32.mrb[35].mxu0 }
0x130c   :  { %v3378_v40 = vadd.f32 %v8123_v57, %v3291_v21  ;;  %v3433_v3 = vmax.f32 %v3419_v53, 0.0  ;;  %v8126_v15 = vadd.f32 %v8125_v62, %v8124_v56  ;;  %v3422_v10 = vadd.f32 %v3421_v19, %v3373_v33  ;;  %v3615_v21 = vld [vmem:[%s12385_s7] sm:$0xff] }
0x130e   :  { %v3427_v18 = vadd.f32 %v8278_v13, %v3378_v40  ;;  %v3381_v2 = vadd.f32 %v8126_v15, %v3296_v51  ;;  %v3434_v46 = vmax.f32 %v3422_v10, 0.0  ;;  %3437 = vrot.lane.b32.xlu1 %v3433_v3, %s8797_s8  ;;  %v8541_v51 = vld [vmem:[%s12384_s15 + $0x4] ss:$12 sps:$4 sm:$0xff]   ;;  %v3616_v13 = vld [vmem:[%s12385_s7 + $0x8] sm:$0xff] }
0x130f   :  { %3707 = vmatprep.mubr.bf16.mxu0 %v8541_v51 }
0x1310   :  { %v3430_v26 = vadd.f32 %v8279_v28, %v3381_v2  ;;  %3439 = vrot.lane.b32.xlu0 %v3434_v46, %s8797_s8  ;;  %v3597_v31 = vpack.c.bf16 %v3434_v46, %v3433_v3  ;;  %v3435_v4 = vmax.f32 %v3427_v18, 0.0 }
0x1312   :  { %v3436_v20 = vmax.f32 %v3430_v26, 0.0  ;;  %3497 = vrot.lane.b32.xlu1 %v3433_v3, %s8782_s18  ;;  %8131 = vmatprep.subr.bf16.mxu0 %v3597_v31 }
0x1314   :  { %3499 = vrot.lane.b32.xlu0 %v3434_v46, %s8782_s18  ;;  %v3598_v54 = vpack.c.bf16 %v3436_v20, %v3435_v4 }
0x1316   :  { %3453 = vrot.lane.b32.xlu1 %v3433_v3, %s8801_s10 }
0x1318   :  { %3455 = vrot.lane.b32.xlu0 %v3434_v46, %s8801_s10 }
0x131a   :  { %3441 = vrot.lane.b32.xlu1 %v3435_v4, %s8797_s8 }
0x131c   :  { %3443 = vrot.lane.b32.xlu0 %v3436_v20, %s8797_s8 }
0x131e   :  { %3501 = vrot.lane.b32.xlu1 %v3435_v4, %s8782_s18 }
0x1320   :  { %3503 = vrot.lane.b32.xlu0 %v3436_v20, %s8782_s18 }
0x1322   :  { %3457 = vrot.lane.b32.xlu1 %v3435_v4, %s8801_s10 }
0x1324   :  { %3459 = vrot.lane.b32.xlu0 %v3436_v20, %s8801_s10  ;;  %s12386_s10 = sld [smem:[#allocation19_spill]] }
0x1326   :  { %3469 = vrot.lane.b32.xlu1 %v3433_v3, %s8781_s16 }
0x1328   :  { %3471 = vrot.lane.b32.xlu0 %v3434_v46, %s8781_s16 }
0x132a   :  { %3473 = vrot.lane.b32.xlu1 %v3435_v4, %s8781_s16  ;;  %v3781_v57 = vld [vmem:[%s12386_s10] sm:$0xff]  ;;  %v3782_v53 = vld [vmem:[%s12386_s10 + $0x8] sm:$0xff] }
0x132c   :  { %3475 = vrot.lane.b32.xlu0 %v3436_v20, %s8781_s16 }
0x132e   :  { %3521 = vrot.lane.b32.xlu1 %v3433_v3, %s8802_s19 }
0x1330   :  { %3523 = vrot.lane.b32.xlu0 %v3434_v46, %s8802_s19 }
0x1332   :  { %3525 = vrot.lane.b32.xlu1 %v3435_v4, %s8802_s19 }
0x1334   :  { %3527 = vrot.lane.b32.xlu0 %v3436_v20, %s8802_s19  ;;  %s12388_s19 = sld [smem:[#allocation18_spill]] }
0x1336   :  { %3537 = vrot.lane.b32.xlu1 %v3433_v3, %s8798_s30 }
0x1338   :  { %3539 = vrot.lane.b32.xlu0 %v3434_v46, %s8798_s30 }
0x133a   :  { %3541 = vrot.lane.b32.xlu1 %v3435_v4, %s8798_s30 }
0x133c   :  { %3543 = vrot.lane.b32.xlu0 %v3436_v20, %s8798_s30 }
0x133e   :  { %3621 = vperm.xlu1 %8459, %v3615_v21  }
0x1340   :  { %3626 = vperm.xlu0 %8438, %v3616_v13  }
0x1342   :  { %3631 = vperm.xlu1 %8459, %v3617_v11  }
0x1344   :  { %3636 = vperm.xlu0 %8438, %v3618_v41  }
0x1346   :  { %3785 = vperm.xlu1 %8459, %v3781_v57  }
0x1348   :  { %3790 = vperm.xlu0 %8438, %v3782_v53  }
0x1380   :  { %v3438_v3 = vpop.permute.xlu1 %3437 }
0x1381   :  { %v3445_v56 = vmul.f32 %v9921_v55, %v3438_v3 }
0x1382   :  { %v3440_v46 = vpop.permute.xlu0 %3439 }
0x1383   :  { %v3446_v28 = vmul.f32 %v9921_v55, %v3440_v46 }
0x1384   :  { %v3498_v33 = vpop.permute.xlu1 %3497 }
0x1385   :  { %v3589_v62 = vpack.c.bf16 %v3446_v28, %v3445_v56  ;;  %v3505_v4 = vmul.f32 %v9944_v39, %v3498_v33 }
0x1386   :  { %v3500_v19 = vpop.permute.xlu0 %3499 }
0x1387   :  { %8132 = vmatpush3.bf16.msra.mxu0 %v3589_v62  ;;  %v3506_v18 = vmul.f32 %v9944_v39, %v3500_v19  ;;  %v3513_v62 = vmul.f32 %v9950_v6, %v3498_v33 }
0x1388   :  { %v3454_v40 = vpop.permute.xlu1 %3453  ;;  %8133 = vmatprep.subr.bf16.mxu0 %v3598_v54 }
0x1389   :  { %v3599_v13 = vpack.c.bf16 %v3506_v18, %v3505_v4  ;;  %v3461_v11 = vmul.f32 %v9926_v50, %v3454_v40 }
0x138a   :  { %v3456_v15 = vpop.permute.xlu0 %3455 }
0x138b   :  { %v3462_v51 = vmul.f32 %v9926_v50, %v3456_v15 }
0x138c   :  { %v3442_v10 = vpop.permute.xlu1 %3441 }
0x138d   :  { %v3447_v26 = vmul.f32 %v9921_v55, %v3442_v10  ;;  %v3591_v53 = vpack.c.bf16 %v3462_v51, %v3461_v11 }
0x138e   :  { %v3444_v2 = vpop.permute.xlu0 %3443 }
0x138f   :  { %v3448_v31 = vmul.f32 %v9921_v55, %v3444_v2  ;;  %v3514_v55 = vmul.f32 %v9950_v6, %v3500_v19 }
0x1390   :  { %v3502_v20 = vpop.permute.xlu1 %3501 }
0x1391   :  { %v3590_v32 = vpack.c.bf16 %v3448_v31, %v3447_v26  ;;  %v3507_v54 = vmul.f32 %v9944_v39, %v3502_v20  ;;  %v3601_v18 = vpack.c.bf16 %v3514_v55, %v3513_v62  ;;  %v3515_v19 = vmul.f32 %v9950_v6, %v3502_v20 }
0x1392   :  { %v3504_v21 = vpop.permute.xlu0 %3503 }
0x1393   :  { %v3508_v41 = vmul.f32 %v9944_v39, %v3504_v21  ;;  %8134 = vmatpush3.bf16.msra.mxu0 %v3590_v32  ;;  %v3516_v39 = vmul.f32 %v9950_v6, %v3504_v21 }
0x1394   :  { %v3458_v57 = vpop.permute.xlu1 %3457  ;;  %8135 = vmatprep.subr.bf16.mxu0 %v3599_v13 }
0x1395   :  { %v3600_v3 = vpack.c.bf16 %v3508_v41, %v3507_v54  ;;  %v3463_v56 = vmul.f32 %v9926_v50, %v3458_v57  ;;  %v3602_v51 = vpack.c.bf16 %v3516_v39, %v3515_v19  ;;  %v8542_v19 = vld [vmem:[%s12384_s15 + $0x1c] ss:$12 sps:$4 sm:$0xff]  }
0x1396   :  { %v3460_v46 = vpop.permute.xlu0 %3459 }
0x1397   :  { %v3464_v28 = vmul.f32 %v9926_v50, %v3460_v46  ;;  %8136 = vmatpush3.bf16.msra.mxu0 %v3591_v53 }
0x1398   :  { %v3470_v40 = vpop.permute.xlu1 %3469  ;;  %8137 = vmatprep.subr.bf16.mxu0 %v3600_v3 }
0x1399   :  { %v3592_v15 = vpack.c.bf16 %v3464_v28, %v3463_v56  ;;  %v3477_v2 = vmul.f32 %v9931_v34, %v3470_v40  ;;  %v3485_v20 = vmul.f32 %v9937_v49, %v3470_v40 }
0x139a   :  { %v3472_v10 = vpop.permute.xlu0 %3471 }
0x139b   :  { %v3478_v26 = vmul.f32 %v9931_v34, %v3472_v10  ;;  %8138 = vmatpush3.bf16.msra.mxu0 %v3592_v15  ;;  %v3486_v11 = vmul.f32 %v9937_v49, %v3472_v10 }
0x139c   :  { %v3474_v31 = vpop.permute.xlu1 %3473  ;;  %8139 = vmatprep.subr.bf16.mxu0 %v3601_v18 }
0x139d   :  { %v3593_v50 = vpack.c.bf16 %v3478_v26, %v3477_v2  ;;  %v3479_v33 = vmul.f32 %v9931_v34, %v3474_v31  ;;  %v3595_v55 = vpack.c.bf16 %v3486_v11, %v3485_v20  ;;  %v3487_v28 = vmul.f32 %v9937_v49, %v3474_v31  ;;  %v8539_v2 = vld [vmem:[%s12384_s15] ss:$12 sps:$4 sm:$0xff]  }
0x139e   :  { %v3476_v4 = vpop.permute.xlu0 %3475 }
0x139f   :  { %v3480_v32 = vmul.f32 %v9931_v34, %v3476_v4  ;;  %8140 = vmatpush3.bf16.msra.mxu0 %v3593_v50  ;;  %v3488_v3 = vmul.f32 %v9937_v49, %v3476_v4 }
0x13a0   :  { %v3522_v21 = vpop.permute.xlu1 %3521  ;;  %8141 = vmatprep.subr.bf16.mxu0 %v3602_v51  ;;  %v8545_v51 = vld [vmem:[%s12384_s15 + $0x18] ss:$12 sps:$4 sm:$0xff]  }
0x13a1   :  { %v3594_v13 = vpack.c.bf16 %v3480_v32, %v3479_v33  ;;  %v3529_v41 = vmul.f32 %v9956_v52, %v3522_v21  ;;  %v3596_v40 = vpack.c.bf16 %v3488_v3, %v3487_v28  ;;  %v8546_v33 = vld [vmem:[%s12384_s15 + $0x20] ss:$12 sps:$4 sm:$0xff]   ;;  %s12391_s15 = sld [smem:[#allocation21_spill]] }
0x13a2   :  { %v3524_v54 = vpop.permute.xlu0 %3523  ;;  %v10109_v32 = vld [vmem:[#allocation3 + $0x60] sm:$0xff] }
0x13a3   :  { %v3530_v6 = vmul.f32 %v9956_v52, %v3524_v54  ;;  %8142 = vmatpush3.bf16.msra.mxu0 %v3594_v13 }
0x13a4   :  { %v3526_v57 = vpop.permute.xlu1 %3525 }
0x13a5   :  { %v3603_v53 = vpack.c.bf16 %v3530_v6, %v3529_v41  ;;  %v3531_v46 = vmul.f32 %v9956_v52, %v3526_v57 }
0x13a6   :  { %v3528_v34 = vpop.permute.xlu0 %3527 }
0x13a7   :  { %v3532_v56 = vmul.f32 %v9956_v52, %v3528_v34  ;;  %8143 = vmatprep.subr.bf16.mxu0 %v3603_v53 }
0x13a8   :  { %v3538_v62 = vpop.permute.xlu1 %3537  ;;  %8144 = vmatpush3.bf16.msra.mxu0 %v3595_v55 }
0x13a9   :  { %v3604_v15 = vpack.c.bf16 %v3532_v56, %v3531_v46  ;;  %v3545_v10 = vmul.f32 %v9962_v16, %v3538_v62 }
0x13aa   :  { %v3540_v39 = vpop.permute.xlu0 %3539 }
0x13ab   :  { %v3546_v18 = vmul.f32 %v9962_v16, %v3540_v39  ;;  %8145 = vmatprep.subr.bf16.mxu0 %v3604_v15 }
0x13ac   :  { %v3542_v26 = vpop.permute.xlu1 %3541  ;;  %8146 = vmatpush3.bf16.msra.mxu0 %v3596_v40 }
0x13ad   :  { %v3605_v52 = vpack.c.bf16 %v3546_v18, %v3545_v10  ;;  %v3547_v49 = vmul.f32 %v9962_v16, %v3542_v26 }
0x13ae   :  { %v3544_v50 = vpop.permute.xlu0 %3543 }
0x13af   :  { %v3548_v31 = vmul.f32 %v9962_v16, %v3544_v50  ;;  %3708 = vmatmul.mubr.bf16.vlgmr.msra.gmra.mrb[36].mxu0 %v8539_v2  ;;  %8280 = vmatprep.subr.bf16.mxu1 %v3605_v52  ;;  %v12387_v16 = vmov 0  }
0x13b0   :  { %8281 = vmatpush3.bf16.msra.mxu1 %v3605_v52  ;;  %3715 = vmatprep.mubr.bf16.mxu0 %v8542_v19 }
0x13b1   :  { %v3606_v4 = vpack.c.bf16 %v3548_v31, %v3547_v49 }
0x13b3   :  { %8282 = vmatprep.subr.bf16.mxu1 %v3606_v4 }
0x13b4   :  { %8283 = vmatpush3.bf16.msra.mxu1 %v3606_v4 }
0x13b5   :  { %8288 = vmatprep.subr.bf16.mxu1 %v10109_v32 }
0x13b7   :  { %3716 = vmatmul.mubr.bf16.gmra.mrb[40].mxu0 %v8545_v51  ;;  %8285 = vmatmul.mubr.msk.bf16.vlgmr.msra.gmra.mrb[36].mxu1 %vm3328_vm13, %v8546_v33 }
0x13b8   :  { %8292 = vmatprep.mubr.msk.bf16.mxu1 %vm8794_vm11, %v10109_v32  ;;  %4175 = vmatprep.mubr.bf16.mxu0 %v12387_v16 }
0x13bd   :  { %v3622_v13 = vpop.permute.xlu1 %3621 }
0x13bf   :  { %v3627_v57 = vpop.permute.xlu0 %3626 }
0x13c1   :  { %v3632_v53 = vpop.permute.xlu1 %3631 }
0x13c3   :  { %v3637_v52 = vpop.permute.xlu0 %3636 }
0x1482   :  { %v8147_v21 = vpop.f32.mrb[36].mxu0 }
0x1483   :  { %v8148_v11 = vpop.f32.mrb[37].mxu0 }
0x1484   :  { %v8149_v54 = vadd.f32 %v8148_v11, %v8147_v21  ;;  %v8150_v41 = vpop.f32.mrb[38].mxu0 }
0x1485   :  { %v8151_v6 = vpop.f32.mrb[39].mxu0 }
0x1486   :  { %v8152_v20 = vadd.f32 %v8151_v6, %v8150_v41  ;;  %v3710_v55 = vadd.f32 %v8149_v54, %v3622_v13  ;;  %v8547_v54 = vld [vmem:[%s12388_s19] sm:$0xff]   ;;  %v8549_v6 = vld [vmem:[%s12389_s11 + $0x8] sm:$0xff]  }
0x1487   :  { %v8548_v41 = vld [vmem:[%s12389_s11] sm:$0xff]  }
0x1488   :  { %v3713_v40 = vadd.f32 %v8152_v20, %v3627_v57  ;;  %v8550_v20 = vld [vmem:[%s12389_s11 + $0x10] sm:$0xff]   ;;  %v8551_v57 = vld [vmem:[%s12389_s11 + $0x18] sm:$0xff]  }
0x148a   :  { %v8153_v3 = vpop.f32.mrb[40].mxu0  ;;  %v8286_v34 = vpop.f32.mrb[36].mxu1 }
0x148b   :  { %v8154_v46 = vpop.f32.mrb[41].mxu0  ;;  %v3758_v56 = vpop.f32.mrb[37].mxu1 }
0x148c   :  { %v8155_v28 = vadd.f32 %v8154_v46, %v8153_v3  ;;  %v3759_v62 = vadd.f32 %v3758_v56, %v3710_v55  ;;  %v8156_v15 = vpop.f32.mrb[42].mxu0  ;;  %v8287_v39 = vpop.f32.mrb[38].mxu1  ;;  %v8553_v3 = vld [vmem:[%s12389_s11 + $0x28] sm:$0xff]   ;;  %v8555_v55 = vld [vmem:[%s12389_s11 + $0x38] sm:$0xff]   ;;  %v8556_v46 = vld [vmem:[%s9026_s27] ss:$16 sps:$4 sm:$0xff]  }
0x148d   :  { %v8157_v10 = vpop.f32.mrb[43].mxu0  ;;  %v3761_v18 = vpop.f32.mrb[39].mxu1  ;;  %v8558_v56 = vld [vmem:[%s9026_s27 + $0x4] ss:$16 sps:$4 sm:$0xff]  }
0x148e   :  { %v3718_v2 = vadd.f32 %v8155_v28, %v3632_v53  ;;  %v8158_v26 = vadd.f32 %v8157_v10, %v8156_v15  ;;  %v3762_v19 = vadd.f32 %v3761_v18, %v3713_v40  ;;  %v3773_v49 = vmax.f32 %v3759_v62, 0.0  ;;  %v8552_v53 = vld [vmem:[%s12389_s11 + $0x20] sm:$0xff]   ;;  %v8561_v28 = vld [vmem:[%s9026_s27 + $0xc] ss:$16 sps:$4 sm:$0xff]   ;;  %4143 = vmatprep.subr.bf16.mxu0 %v8558_v56  ;;  %v8577_v56 = vld [vmem:[%s9026_s27 + $0x68] ss:$16 sps:$4 sm:$0xff]  }
0x148f   :  { %v8564_v62 = vld [vmem:[%s9026_s27 + $0x24] ss:$16 sps:$4 sm:$0xff]   ;;  %4144 = vmatpush1.bf16.msra.mxu0 %v8556_v46  ;;  %v8562_v15 = vld [vmem:[%s9026_s27 + $0x20] ss:$16 sps:$4 sm:$0xff]   ;;  %v8579_v46 = vld [vmem:[%s9026_s27 + $0x6c] ss:$16 sps:$4 sm:$0xff]  }
0x1490   :  { %v3767_v50 = vadd.f32 %v8286_v34, %v3718_v2  ;;  %v3721_v31 = vadd.f32 %v8158_v26, %v3637_v52  ;;  %v3774_v4 = vmax.f32 %v3762_v19, 0.0  ;;  %v8554_v34 = vld [vmem:[%s12389_s11 + $0x30] sm:$0xff]   ;;  %4145 = vmatprep.subr.bf16.mxu0 %v8564_v62  ;;  %v8583_v62 = vld [vmem:[%s9026_s27 + $0x88] ss:$16 sps:$4 sm:$0xff]  }
0x1491   :  { %v8568_v40 = vld [vmem:[%s9026_s27 + $0x40] ss:$16 sps:$4 sm:$0xff]   ;;  %v8576_v10 = vld [vmem:[%s9026_s27 + $0x64] ss:$16 sps:$4 sm:$0xff]  }
0x1492   :  { %v3770_v51 = vadd.f32 %v8287_v39, %v3721_v31  ;;  %v3779_v33 = vpack.c.bf16 %v3774_v4, %v3773_v49  ;;  %v3775_v21 = vmax.f32 %v3767_v50, 0.0  ;;  %v8570_v39 = vld [vmem:[%s9026_s27 + $0x44] ss:$16 sps:$4 sm:$0xff]   ;;  %v8574_v18 = vld [vmem:[%s9026_s27 + $0x60] ss:$16 sps:$4 sm:$0xff]   ;;  %v3786_v31 = vpop.permute.xlu1 %3785 }
0x1493   :  { %4146 = vmatpush1.bf16.msra.mxu0 %v8562_v15  ;;  %v8582_v2 = vld [vmem:[%s9026_s27 + $0x84] ss:$16 sps:$4 sm:$0xff]   ;;  %v8580_v26 = vld [vmem:[%s9026_s27 + $0x80] ss:$16 sps:$4 sm:$0xff]   ;;  %v8591_v15 = vld [vmem:[%s9026_s27 + $0xac] ss:$16 sps:$4 sm:$0xff]  }
0x1494   :  { %v3776_v13 = vmax.f32 %v3770_v51, 0.0  ;;  %8289 = vmatpush3.bf16.msra.mxu1 %v3779_v33  ;;  %4147 = vmatprep.subr.bf16.mxu0 %v8570_v39  ;;  %v8588_v19 = vld [vmem:[%s9026_s27 + $0xa4] ss:$16 sps:$4 sm:$0xff]   ;;  %v8586_v52 = vld [vmem:[%s9026_s27 + $0xa0] ss:$16 sps:$4 sm:$0xff]  }
0x1495   :  { %8290 = vmatprep.subr.bf16.mxu1 %v10109_v32  ;;  %v8594_v50 = vld [vmem:[%s9026_s27 + $0xc4] ss:$16 sps:$4 sm:$0xff]   ;;  %v8592_v49 = vld [vmem:[%s9026_s27 + $0xc0] ss:$16 sps:$4 sm:$0xff]   ;;  %v8589_v39 = vld [vmem:[%s9026_s27 + $0xa8] ss:$16 sps:$4 sm:$0xff]  }
0x1496   :  { %v3780_v11 = vpack.c.bf16 %v3776_v13, %v3775_v21  ;;  %v3791_v21 = vpop.permute.xlu0 %3790 }
0x1497   :  { %4148 = vmatpush1.bf16.msra.mxu0 %v8568_v40  ;;  %v8597_v40 = vld [vmem:[%s9026_s27 + $0xcc] ss:$16 sps:$4 sm:$0xff]  }
0x1498   :  { %8291 = vmatpush3.bf16.msra.mxu1 %v3780_v11  ;;  %4149 = vmatprep.subr.bf16.mxu0 %v8576_v10  ;;  %v8595_v10 = vld [vmem:[%s9026_s27 + $0xc8] ss:$16 sps:$4 sm:$0xff]  }
0x1499   :  { %8296 = vmatprep.subr.bf16.mxu1 %v10109_v32 }
0x149b   :  { %8293 = vmatmul.mubr.msk.bf16.vlgmr.msra.gmra.mrb[40].mxu1 %vm3328_vm13, %v8547_v54  ;;  %4150 = vmatpush1.bf16.msra.mxu0 %v8574_v18  ;;  %v8598_v18 = vld [vmem:[%s9026_s27 + $0xe0] ss:$16 sps:$4 sm:$0xff]  }
0x149c   :  { %8297 = vmatpush3.bf16.msra.mxu1 %v8548_v41  ;;  %8312 = vmatprep.mubr.msk.bf16.mxu1 %vm8794_vm11, %v10109_v32 }
0x149d   :  { %8298 = vmatprep.subr.bf16.mxu1 %v10109_v32  ;;  %4151 = vmatprep.subr.bf16.mxu0 %v8582_v2  ;;  %v8600_v2 = vld [vmem:[%s9026_s27 + $0xe4] ss:$16 sps:$4 sm:$0xff]  }
0x149f   :  { %4152 = vmatpush1.bf16.msra.mxu0 %v8580_v26  ;;  %v8601_v26 = vld [vmem:[%s9026_s27 + $0xe8] ss:$16 sps:$4 sm:$0xff]  }
0x14a0   :  { %8299 = vmatpush3.bf16.msra.mxu1 %v8549_v6  ;;  %4153 = vmatprep.subr.bf16.mxu0 %v8588_v19  ;;  %v8603_v19 = vld [vmem:[%s9026_s27 + $0xec] ss:$16 sps:$4 sm:$0xff]  }
0x14a1   :  { %8300 = vmatprep.subr.bf16.mxu1 %v10109_v32 }
0x14a3   :  { %4154 = vmatpush1.bf16.msra.mxu0 %v8586_v52 }
0x14a4   :  { %8301 = vmatpush3.bf16.msra.mxu1 %v8550_v20  ;;  %4155 = vmatprep.subr.bf16.mxu0 %v8594_v50  ;;  %v8559_v20 = vld [vmem:[%s9026_s27 + $0x8] ss:$16 sps:$4 sm:$0xff]  }
0x14a5   :  { %8302 = vmatprep.subr.bf16.mxu1 %v10109_v32 }
0x14a7   :  { %4156 = vmatpush1.bf16.msra.mxu0 %v8592_v49 }
0x14a8   :  { %8303 = vmatpush3.bf16.msra.mxu1 %v8551_v57  ;;  %4157 = vmatprep.subr.bf16.mxu0 %v8600_v2 }
0x14a9   :  { %8304 = vmatprep.subr.bf16.mxu1 %v10109_v32 }
0x14ab   :  { %4158 = vmatpush1.bf16.msra.mxu0 %v8598_v18 }
0x14ac   :  { %8305 = vmatpush3.bf16.msra.mxu1 %v8552_v53  ;;  %v8567_v53 = vld [vmem:[%s9026_s27 + $0x2c] ss:$16 sps:$4 sm:$0xff]   ;;  %4348 = vmatprep.subr.bf16.mxu0 %v12387_v16 }
0x14ad   :  { %8306 = vmatprep.subr.bf16.mxu1 %v10109_v32 }
0x14b0   :  { %8307 = vmatpush3.bf16.msra.mxu1 %v8553_v3  ;;  %v8565_v3 = vld [vmem:[%s9026_s27 + $0x28] ss:$16 sps:$4 sm:$0xff]  }
0x14b1   :  { %8308 = vmatprep.subr.bf16.mxu1 %v10109_v32 }
0x14b4   :  { %8309 = vmatpush3.bf16.msra.mxu1 %v8554_v34  ;;  %v8573_v34 = vld [vmem:[%s9026_s27 + $0x4c] ss:$16 sps:$4 sm:$0xff]  }
0x14b5   :  { %8310 = vmatprep.subr.bf16.mxu1 %v10109_v32 }
0x14b8   :  { %8311 = vmatpush3.bf16.msra.mxu1 %v8555_v55  ;;  %v8571_v55 = vld [vmem:[%s9026_s27 + $0x48] ss:$16 sps:$4 sm:$0xff]  }
0x14b9   :  { %4186 = vmatprep.subr.bf16.mxu1 %v8561_v28  ;;  %v8585_v28 = vld [vmem:[%s9026_s27 + $0x8c] ss:$16 sps:$4 sm:$0xff]   ;;  %s12390_s27 = sld [smem:[#allocation20_spill]] }
0x156e   :  { %v3835_v4 = vpop.f32.mrb[40].mxu1 }
0x156f   :  { %v3836_v51 = vadd.f32 %v3835_v4, %v3786_v31  ;;  %v8294_v33 = vpop.f32.mrb[41].mxu1 }
0x1570   :  { %v3838_v13 = vpop.f32.mrb[42].mxu1 }
0x1571   :  { %v3839_v11 = vadd.f32 %v3838_v13, %v3791_v21  ;;  %v8295_v54 = vpop.f32.mrb[43].mxu1  ;;  %v3842_v41 = vmax.f32 %v3836_v51, 0.0  ;;  %v4333_v13 = vld [vmem:[%s12391_s15] sm:$0xff] }
0x1572   :  { %v8607_v54 = vld [vmem:[%s9021_s14 + $0x8] sm:$0xff]  }
0x1573   :  { %v3843_v6 = vmax.f32 %v3839_v11, 0.0  ;;  %v8606_v11 = vld [vmem:[%s9021_s14] sm:$0xff]  }
0x1575   :  { %v3844_v57 = vpack.c.bf16 %v3843_v6, %v3842_v41  ;;  %v8608_v41 = vld [vmem:[%s9021_s14 + $0x10] sm:$0xff]   ;;  %v8609_v6 = vld [vmem:[%s9021_s14 + $0x18] sm:$0xff]  }
0x1577   :  { %8313 = vmatmul.mubr.bf16.vlgmr.msra.gmra.mrb[44].mxu1 %v3844_v57  ;;  %v8611_v57 = vld [vmem:[%s9021_s14 + $0x28] sm:$0xff]  }
0x1578   :  { %4187 = vmatpush1.bf16.msra.mxu1 %v8559_v20  ;;  %4218 = vmatprep.mubr.bf16.mxu1 %v12387_v16  ;;  %v8610_v20 = vld [vmem:[%s9021_s14 + $0x20] sm:$0xff]  }
0x1579   :  { %4188 = vmatprep.subr.bf16.mxu1 %v8567_v53 }
0x157c   :  { %4189 = vmatpush1.bf16.msra.mxu1 %v8565_v3 }
0x157d   :  { %4190 = vmatprep.subr.bf16.mxu1 %v8573_v34  ;;  %v8675_v34 = vld [vmem:[%s12372_s3] ss:$0 sm:$0xff] }
0x1580   :  { %4191 = vmatpush1.bf16.msra.mxu1 %v8571_v55 }
0x1581   :  { %4192 = vmatprep.subr.bf16.mxu1 %v8579_v46 }
0x1584   :  { %4193 = vmatpush1.bf16.msra.mxu1 %v8577_v56 }
0x1585   :  { %4194 = vmatprep.subr.bf16.mxu1 %v8585_v28 }
0x1588   :  { %4195 = vmatpush1.bf16.msra.mxu1 %v8583_v62 }
0x1589   :  { %4196 = vmatprep.subr.bf16.mxu1 %v8591_v15  ;;  %v8676_v15 = vld [vmem:[%s12372_s3 + $0x1] ss:$0 sm:$0xff] }
0x158c   :  { %4197 = vmatpush1.bf16.msra.mxu1 %v8589_v39 }
0x158d   :  { %4198 = vmatprep.subr.bf16.mxu1 %v8597_v40 }
0x1590   :  { %4199 = vmatpush1.bf16.msra.mxu1 %v8595_v10 }
0x1591   :  { %4200 = vmatprep.subr.bf16.mxu1 %v8603_v19 }
0x1594   :  { %4201 = vmatpush1.bf16.msra.mxu1 %v8601_v26  ;;  %v8677_v26 = vld [vmem:[%s12372_s3 + $0x2] ss:$0 sm:$0xff] }
0x1595   :  { %8316 = vmatprep.subr.bf16.mxu1 %v10109_v32 }
0x164a   :  { %v3943_v52 = vpop.f32.mrb[44].mxu1 }
0x164b   :  { %v10173_v50 = vadd.f32 %v3943_v52, %v9870_v14  ;;  %v8314_v49 = vpop.f32.mrb[45].mxu1  ;;  %v10211_v14 = vld [vmem:[%s12390_s27] sm:$0xff] }
0x164c   :  { %v3946_v31 = vpop.f32.mrb[46].mxu1 }
0x164d   :  { %v3950_v4 = vpack.c.bf16 %v3946_v31, %v3943_v52  ;;  %v10176_v51 = vadd.f32 %v3946_v31, %v9872_v47  ;;  %4239 = vrot.lane.b32.xlu1 %v10173_v50, %s8796_s29  ;;  %v8315_v33 = vpop.f32.mrb[47].mxu1  ;;  %v7907_v47 = vcombine.high %v10211_v14, %v10211_v14 }
0x164e   :  { %v8678_v33 = vld [vmem:[%s12372_s3 + $0x3] ss:$0 sm:$0xff] }
0x164f   :  { %4241 = vrot.lane.b32.xlu0 %v10176_v51, %s8796_s29  ;;  %4176 = vmatmul.mubr.bf16.vlgmr.msra.gmra.mrb[44].mxu0 %v3950_v4  ;;  %v4327_v21 = vpack.c.bf16 %v10176_v51, %v10173_v50 }
0x1650   :  { %4219 = vmatmul.mubr.bf16.vlgmr.msra.gmra.mrb[48].mxu1 %v3950_v4  ;;  %7908 = vmatprep.mubr.msk.bf16.mxu0 %vm2531_vm12, %v7907_v47 }
0x1651   :  { %4247 = vrot.lane.b32.xlu1 %v10173_v50, %s8795_s25  ;;  %8332 = vmatprep.mubr.msk.bf16.mxu1 %vm8794_vm11, %v10109_v32 }
0x1652   :  { %8317 = vmatpush3.bf16.msra.mxu1 %v8606_v11 }
0x1653   :  { %4249 = vrot.lane.b32.xlu0 %v10176_v51, %s8795_s25  ;;  %8318 = vmatprep.subr.bf16.mxu1 %v10109_v32 }
0x1655   :  { %4255 = vrot.lane.b32.xlu1 %v10173_v50, %s8797_s8 }
0x1656   :  { %8319 = vmatpush3.bf16.msra.mxu1 %v8607_v54 }
0x1657   :  { %4257 = vrot.lane.b32.xlu0 %v10176_v51, %s8797_s8  ;;  %8320 = vmatprep.subr.bf16.mxu1 %v10109_v32 }
0x1659   :  { %4263 = vrot.lane.b32.xlu1 %v10173_v50, %s8781_s16 }
0x165a   :  { %8321 = vmatpush3.bf16.msra.mxu1 %v8608_v41 }
0x165b   :  { %4265 = vrot.lane.b32.xlu0 %v10176_v51, %s8781_s16  ;;  %8322 = vmatprep.subr.bf16.mxu1 %v10109_v32 }
0x165d   :  { %4273 = vrot.lane.b32.xlu1 %v10173_v50, %s8782_s18 }
0x165e   :  { %8323 = vmatpush3.bf16.msra.mxu1 %v8609_v6 }
0x165f   :  { %4275 = vrot.lane.b32.xlu0 %v10176_v51, %s8782_s18  ;;  %8324 = vmatprep.subr.bf16.mxu1 %v10109_v32 }
0x1661   :  { %4281 = vrot.lane.b32.xlu1 %v10173_v50, %s8798_s30 }
0x1662   :  { %8325 = vmatpush3.bf16.msra.mxu1 %v8610_v20  ;;  %v8679_v20 = vld [vmem:[%s12372_s3 + $0x5] ss:$0 sm:$0xff] }
0x1663   :  { %4283 = vrot.lane.b32.xlu0 %v10176_v51, %s8798_s30  ;;  %8326 = vmatprep.subr.bf16.mxu1 %v10109_v32 }
0x1665   :  { %4289 = vrot.lane.b32.xlu1 %v10173_v50, %s8800_s2 }
0x1666   :  { %8327 = vmatpush3.bf16.msra.mxu1 %v8611_v57 }
0x1667   :  { %4291 = vrot.lane.b32.xlu0 %v10176_v51, %s8800_s2  ;;  %8328 = vmatprep.subr.bf16.mxu1 %v10109_v32 }
0x1669   :  { %4297 = vrot.lane.b32.xlu1 %v10173_v50, %s8799_s1 }
0x166b   :  { %4299 = vrot.lane.b32.xlu0 %v10176_v51, %s8799_s1  ;;  %v8682_v51 = vld [vmem:[%s12372_s3 + $0x8] ss:$0 sm:$0xff] }
0x166d   :  { %4336 = vperm.xlu1 %8459, %v4333_v13  }
0x16bf   :  { %v4240_v53 = vpop.permute.xlu1 %4239 }
0x16c0   :  { %v4243_v55 = vmul.f32 %v8675_v34, %v4240_v53 }
0x16c1   :  { %v4242_v3 = vpop.permute.xlu0 %4241 }
0x16c2   :  { %v4244_v46 = vmul.f32 %v8675_v34, %v4242_v3  ;;  %v8680_v34 = vld [vmem:[%s12372_s3 + $0x6] ss:$0 sm:$0xff] }
0x16c3   :  { %v4248_v56 = vpop.permute.xlu1 %4247 }
0x16c4   :  { %v4323_v28 = vpack.c.bf16 %v4244_v46, %v4243_v55  ;;  %v4251_v39 = vmul.f32 %v8676_v15, %v4248_v56 }
0x16c5   :  { %v4250_v62 = vpop.permute.xlu0 %4249 }
0x16c6   :  { %v4252_v40 = vmul.f32 %v8676_v15, %v4250_v62  ;;  %4349 = vmatpush1.bf16.msra.mxu0 %v4323_v28  ;;  %v8681_v15 = vld [vmem:[%s12372_s3 + $0x7] ss:$0 sm:$0xff] }
0x16c7   :  { %v4256_v10 = vpop.permute.xlu1 %4255  ;;  %4350 = vmatprep.subr.bf16.mxu0 %v12387_v16 }
0x16c8   :  { %v4324_v18 = vpack.c.bf16 %v4252_v40, %v4251_v39  ;;  %v4259_v19 = vmul.f32 %v8677_v26, %v4256_v10 }
0x16c9   :  { %v4258_v2 = vpop.permute.xlu0 %4257 }
0x16ca   :  { %v4260_v52 = vmul.f32 %v8677_v26, %v4258_v2  ;;  %4351 = vmatpush1.bf16.msra.mxu0 %v4324_v18 }
0x16cb   :  { %v4264_v49 = vpop.permute.xlu1 %4263  ;;  %4352 = vmatprep.subr.bf16.mxu0 %v12387_v16 }
0x16cc   :  { %v4325_v31 = vpack.c.bf16 %v4260_v52, %v4259_v19  ;;  %v4267_v47 = vmul.f32 %v8678_v33, %v4264_v49  ;;  %v7906_v52 = vcombine.low %v10211_v14, %v10211_v14 }
0x16cd   :  { %v4266_v4 = vpop.permute.xlu0 %4265 }
0x16ce   :  { %v4268_v13 = vmul.f32 %v8678_v33, %v4266_v4  ;;  %4353 = vmatpush1.bf16.msra.mxu0 %v4325_v31 }
0x16cf   :  { %v4274_v11 = vpop.permute.xlu1 %4273  ;;  %4354 = vmatprep.subr.bf16.mxu0 %v12387_v16 }
0x16d0   :  { %v4326_v54 = vpack.c.bf16 %v4268_v13, %v4267_v47  ;;  %v4277_v3 = vmul.f32 %v8679_v20, %v4274_v11 }
0x16d1   :  { %v4276_v41 = vpop.permute.xlu0 %4275 }
0x16d2   :  { %4355 = vmatpush1.bf16.msra.mxu0 %v4326_v54  ;;  %v4278_v57 = vmul.f32 %v8679_v20, %v4276_v41  ;;  %v8612_v54 = vld [vmem:[%s9021_s14 + $0x30] sm:$0xff]   ;;  %v8613_v41 = vld [vmem:[%s9021_s14 + $0x38] sm:$0xff]   ;;  %s12392_s14 = sld [smem:[#allocation23_spill]] }
0x16d3   :  { %v4282_v6 = vpop.permute.xlu1 %4281  ;;  %4356 = vmatprep.subr.bf16.mxu0 %v12387_v16  ;;  %8329 = vmatpush3.bf16.msra.mxu1 %v8612_v54  ;;  %v10294_v20 = vld [vmem:[%s9031_s24 + $0x4] ss:$16 sps:$4 sm:$0xff]  }
0x16d4   :  { %v4328_v46 = vpack.c.bf16 %v4278_v57, %v4277_v3  ;;  %v4285_v62 = vmul.f32 %v8680_v34, %v4282_v6  ;;  %8330 = vmatprep.subr.bf16.mxu1 %v10109_v32  ;;  %v10291_v6 = vld [vmem:[%s9031_s24] ss:$16 sps:$4 sm:$0xff]   ;;  %v10297_v57 = vld [vmem:[%s9031_s24 + $0xc] ss:$16 sps:$4 sm:$0xff]  }
0x16d5   :  { %v4284_v53 = vpop.permute.xlu0 %4283  ;;  %v10306_v3 = vld [vmem:[%s9031_s24 + $0x20] ss:$16 sps:$4 sm:$0xff]  }
0x16d6   :  { %4357 = vmatpush1.bf16.msra.mxu0 %v4327_v21  ;;  %v4286_v55 = vmul.f32 %v8680_v34, %v4284_v53  ;;  %v10300_v53 = vld [vmem:[%s9031_s24 + $0x24] ss:$16 sps:$4 sm:$0xff]  }
0x16d7   :  { %4358 = vmatprep.subr.bf16.mxu0 %v12387_v16  ;;  %v4290_v56 = vpop.permute.xlu1 %4289  ;;  %8331 = vmatpush3.bf16.msra.mxu1 %v8613_v41  ;;  %v10310_v34 = vld [vmem:[%s9031_s24 + $0x44] ss:$16 sps:$4 sm:$0xff]   ;;  %v8617_v41 = vld [vmem:[%s9031_s24 + $0x8] ss:$16 sps:$4 sm:$0xff]  }
0x16d8   :  { %v4329_v40 = vpack.c.bf16 %v4286_v55, %v4285_v62  ;;  %v4293_v18 = vmul.f32 %v8681_v15, %v4290_v56  ;;  %4728 = vmatprep.subr.bf16.mxu1 %v10297_v57  ;;  %v10314_v55 = vld [vmem:[%s9031_s24 + $0x40] ss:$16 sps:$4 sm:$0xff]  }
0x16d9   :  { %v4292_v28 = vpop.permute.xlu0 %4291  ;;  %v10322_v56 = vld [vmem:[%s9031_s24 + $0x60] ss:$16 sps:$4 sm:$0xff]  }
0x16da   :  { %4359 = vmatpush1.bf16.msra.mxu0 %v4328_v46  ;;  %v4294_v39 = vmul.f32 %v8681_v15, %v4292_v28  ;;  %v10318_v46 = vld [vmem:[%s9031_s24 + $0x64] ss:$16 sps:$4 sm:$0xff]   ;;  %v10330_v62 = vld [vmem:[%s9031_s24 + $0x80] ss:$16 sps:$4 sm:$0xff]  }
0x16db   :  { %4360 = vmatprep.subr.bf16.mxu0 %v12387_v16  ;;  %v4298_v50 = vpop.permute.xlu1 %4297  ;;  %v10326_v28 = vld [vmem:[%s9031_s24 + $0x84] ss:$16 sps:$4 sm:$0xff]  }
0x16dc   :  { %v4330_v2 = vpack.c.bf16 %v4294_v39, %v4293_v18  ;;  %v4301_v26 = vmul.f32 %v8682_v51, %v4298_v50  ;;  %v10334_v15 = vld [vmem:[%s9031_s24 + $0xa4] ss:$16 sps:$4 sm:$0xff]   ;;  %v10338_v39 = vld [vmem:[%s9031_s24 + $0xa0] ss:$16 sps:$4 sm:$0xff]  }
0x16dd   :  { %v4300_v10 = vpop.permute.xlu0 %4299  ;;  %v10350_v18 = vld [vmem:[%s9031_s24 + $0xe4] ss:$16 sps:$4 sm:$0xff]   ;;  %v10354_v50 = vld [vmem:[%s9031_s24 + $0xe0] ss:$16 sps:$4 sm:$0xff]  }
0x16de   :  { %4361 = vmatpush1.bf16.msra.mxu0 %v4329_v40  ;;  %v4302_v21 = vmul.f32 %v8682_v51, %v4300_v10  ;;  %v10342_v40 = vld [vmem:[%s9031_s24 + $0xc4] ss:$16 sps:$4 sm:$0xff]   ;;  %v10346_v10 = vld [vmem:[%s9031_s24 + $0xc0] ss:$16 sps:$4 sm:$0xff]  }
0x16df   :  { %4362 = vmatprep.subr.bf16.mxu0 %v12387_v16 }
0x16e0   :  { %v4331_v19 = vpack.c.bf16 %v4302_v21, %v4301_v26 }
0x16e2   :  { %4363 = vmatpush1.bf16.msra.mxu0 %v4330_v2 }
0x16e3   :  { %4364 = vmatprep.subr.bf16.mxu0 %v12387_v16 }
0x16e6   :  { %4365 = vmatpush1.bf16.msra.mxu0 %v4331_v19 }
0x16e7   :  { %4687 = vmatprep.subr.bf16.mxu0 %v10294_v20 }
0x16e9   :  { %4381 = vmatmul.mubr.bf16.vlgmr.msra.gmra.mrb[48].mxu0 %v7906_v52 }
0x16ea   :  { %4719 = vmatprep.mubr.bf16.mxu0 %v12387_v16  ;;  %4688 = vmatpush1.bf16.msra.mxu0 %v10291_v6 }
0x16eb   :  { %4689 = vmatprep.subr.bf16.mxu0 %v10300_v53 }
0x16ec   :  { %v4337_v51 = vpop.permute.xlu1 %4336 }
0x16ee   :  { %4690 = vmatpush1.bf16.msra.mxu0 %v10306_v3 }
0x16ef   :  { %4691 = vmatprep.subr.bf16.mxu0 %v10310_v34 }
0x16f2   :  { %4692 = vmatpush1.bf16.msra.mxu0 %v10314_v55 }
0x16f3   :  { %4693 = vmatprep.subr.bf16.mxu0 %v10318_v46 }
0x16f6   :  { %4694 = vmatpush1.bf16.msra.mxu0 %v10322_v56 }
0x16f7   :  { %4695 = vmatprep.subr.bf16.mxu0 %v10326_v28 }
0x16fa   :  { %4696 = vmatpush1.bf16.msra.mxu0 %v10330_v62 }
0x16fb   :  { %4697 = vmatprep.subr.bf16.mxu0 %v10334_v15 }
0x16fe   :  { %4698 = vmatpush1.bf16.msra.mxu0 %v10338_v39 }
0x16ff   :  { %4699 = vmatprep.subr.bf16.mxu0 %v10342_v40 }
0x1702   :  { %4700 = vmatpush1.bf16.msra.mxu0 %v10346_v10 }
0x1703   :  { %4701 = vmatprep.subr.bf16.mxu0 %v10350_v18 }
0x1706   :  { %4702 = vmatpush1.bf16.msra.mxu0 %v10354_v50 }
0x1707   :  { %8336 = vmatprep.subr.bf16.mxu0 %v10109_v32 }
0x1722   :  { %v10255_v49 = vpop.f32.mrb[44].mxu0 }
0x1723   :  { %4229 = vst [vmem:[#allocation3] sm:$0xff] %v10255_v49  ;;  %v10258_v31 = vpop.f32.mrb[48].mxu1  ;;  %v10260_v4 = vpop.f32.mrb[45].mxu0  ;;  %5574 = vst [vmem:[#allocation2 + $0x280] sm:$0xff] %v10255_v49 }
0x1724   :  { %4231 = vst [vmem:[#allocation3 + $0x10] sm:$0xff] %v10258_v31  ;;  %4230 = vst [vmem:[#allocation3 + $0x8] sm:$0xff] %v10260_v4  ;;  %v10265_v33 = vpop.f32.mrb[49].mxu1  ;;  %v10267_v14 = vpop.f32.mrb[46].mxu0 }
0x1725   :  { %5575 = vst [vmem:[#allocation2 + $0x288] sm:$0xff] %v10260_v4  ;;  %5576 = vst [vmem:[#allocation2 + $0x290] sm:$0xff] %v10258_v31  ;;  %v10273_v47 = vpop.f32.mrb[50].mxu1  ;;  %v10275_v13 = vpop.f32.mrb[47].mxu0 }
0x1726   :  { %4232 = vst [vmem:[#allocation3 + $0x18] sm:$0xff] %v10265_v33  ;;  %4233 = vst [vmem:[#allocation3 + $0x20] sm:$0xff] %v10267_v14  ;;  %v10281_v11 = vpop.f32.mrb[51].mxu1 }
0x1727   :  { %5578 = vst [vmem:[#allocation2 + $0x2a0] sm:$0xff] %v10267_v14  ;;  %5577 = vst [vmem:[#allocation2 + $0x298] sm:$0xff] %v10265_v33 }
0x1728   :  { %4235 = vst [vmem:[#allocation3 + $0x30] sm:$0xff] %v10273_v47  ;;  %4234 = vst [vmem:[#allocation3 + $0x28] sm:$0xff] %v10275_v13 }
0x1729   :  { %5579 = vst [vmem:[#allocation2 + $0x2a8] sm:$0xff] %v10275_v13  ;;  %5580 = vst [vmem:[#allocation2 + $0x2b0] sm:$0xff] %v10273_v47 }
0x172a   :  { %4236 = vst [vmem:[#allocation3 + $0x38] sm:$0xff] %v10281_v11  ;;  %5581 = vst [vmem:[#allocation2 + $0x2b8] sm:$0xff] %v10281_v11 }
0x17bc   :  { %v4382_v21 = vpop.f32.mrb[48].mxu0 }
0x17bd   :  { %v4383_v2 = vadd.f32 %v4382_v21, %v4337_v51  ;;  %v4384_v26 = vpop.f32.mrb[49].mxu0  ;;  %v8631_v51 = vld [vmem:[%s9031_s24 + $0x4c] ss:$16 sps:$4 sm:$0xff]   ;;  %v8629_v21 = vld [vmem:[%s9031_s24 + $0x48] ss:$16 sps:$4 sm:$0xff]  }
0x17be   :  { %v4385_v19 = vpop.f32.mrb[50].mxu0  ;;  %v8635_v26 = vld [vmem:[%s9031_s24 + $0x68] ss:$16 sps:$4 sm:$0xff]  }
0x17bf   :  { %v4388_v52 = vmax.f32 %v4383_v2, 0.0  ;;  %v4386_v54 = vpop.f32.mrb[51].mxu0  ;;  %v8637_v2 = vld [vmem:[%s9031_s24 + $0x6c] ss:$16 sps:$4 sm:$0xff]   ;;  %v8641_v19 = vld [vmem:[%s9031_s24 + $0x88] ss:$16 sps:$4 sm:$0xff]  }
0x17c0   :  { %v8647_v54 = vld [vmem:[%s9031_s24 + $0xa8] ss:$16 sps:$4 sm:$0xff]  }
0x17c1   :  { %v4389_v0 = vpack.c.bf16 %v4388_v52, %v4388_v52  ;;  %v8649_v52 = vld [vmem:[%s9031_s24 + $0xac] ss:$16 sps:$4 sm:$0xff]  }
0x17c3   :  { %8333 = vmatmul.mubr.bf16.vlgmr.msra.gmra.mrb[52].mxu1 %v4389_v0  ;;  %v8643_v0 = vld [vmem:[%s9031_s24 + $0x8c] ss:$16 sps:$4 sm:$0xff]   ;;  %s12393_s24 = sld [smem:[#allocation22_spill]] }
0x17c4   :  { %4729 = vmatpush1.bf16.msra.mxu1 %v8617_v41  ;;  %4760 = vmatprep.mubr.bf16.mxu1 %v12387_v16 }
0x17c5   :  { %4730 = vmatprep.subr.bf16.mxu1 %v8625_v63 }
0x17c8   :  { %4731 = vmatpush1.bf16.msra.mxu1 %v8623_v35 }
0x17c9   :  { %4732 = vmatprep.subr.bf16.mxu1 %v8631_v51 }
0x17cc   :  { %4733 = vmatpush1.bf16.msra.mxu1 %v8629_v21 }
0x17cd   :  { %4734 = vmatprep.subr.bf16.mxu1 %v8637_v2 }
0x17d0   :  { %4735 = vmatpush1.bf16.msra.mxu1 %v8635_v26 }
0x17d1   :  { %4736 = vmatprep.subr.bf16.mxu1 %v8643_v0 }
0x17d4   :  { %4737 = vmatpush1.bf16.msra.mxu1 %v8641_v19 }
0x17d5   :  { %4738 = vmatprep.subr.bf16.mxu1 %v8649_v52 }
0x17d8   :  { %4739 = vmatpush1.bf16.msra.mxu1 %v8647_v54 }
0x17d9   :  { %4740 = vmatprep.subr.bf16.mxu1 %v8655_v59 }
0x17dc   :  { %4741 = vmatpush1.bf16.msra.mxu1 %v8653_v9 }
0x17dd   :  { %4742 = vmatprep.subr.bf16.mxu1 %v8661_v60 }
0x17e0   :  { %4743 = vmatpush1.bf16.msra.mxu1 %v8659_v58 }
0x17e1   :  { %5109 = vmatprep.subr.bf16.mxu1 %v10297_v57 }
0x1896   :  { %v4488_v8 = vpop.f32.mrb[52].mxu1 }
0x1897   :  { %v4494_v30 = vpack.c.bf16 %v4488_v8, %v4488_v8  ;;  %v10377_v29 = vadd.f32 %v4488_v8, %v9707_v27  ;;  %v8334_v61 = vpop.f32.mrb[53].mxu1  ;;  %v10423_v8 = vld [vmem:[#allocation2 + $0x310] sm:$0xff] }
0x1898   :  { %v4491_v45 = vpop.f32.mrb[54].mxu1  ;;  %v10419_v61 = vld [vmem:[#allocation2 + $0x308] sm:$0xff] }
0x1899   :  { %4778 = vrot.lane.b32.xlu1 %v10377_v29, %s8788_s13  ;;  %4774 = vrot.lane.b32.xlu0 %v10377_v29, %s8789_s17  ;;  %v8335_v37 = vpop.f32.mrb[55].mxu1  ;;  %v10415_v45 = vld [vmem:[#allocation2 + $0x300] sm:$0xff]  ;;  %s12413_s13 = sld [smem:[#allocation25_spill]]  ;;  %s12440_s17 = sld [smem:[#allocation26_spill]] }
0x189a   :  { %4720 = vmatmul.mubr.bf16.vlgmr.msra.gmra.mrb[52].mxu0 %v4494_v30  ;;  %4761 = vmatmul.mubr.bf16.vlgmr.msra.gmra.mrb[56].mxu1 %v4494_v30  ;;  %v4822_v37 = vld [vmem:[%s12392_s14] sm:$0xf]  ;;  %v10427_v30 = vld [vmem:[#allocation2 + $0x318] sm:$0xff] }
0x189b   :  { %5110 = vmatpush1.bf16.msra.mxu1 %v8617_v41  ;;  %8346 = vmatprep.mubr.msk.bf16.mxu0 %vm8794_vm11, %v10109_v32 }
0x189c   :  { %5111 = vmatprep.subr.bf16.mxu1 %v8625_v63  ;;  %5141 = vmatprep.mubr.bf16.mxu1 %v12387_v16 }
0x189d   :  { %4786 = vrot.lane.b32.xlu1 %v10377_v29, %s8781_s16  ;;  %4782 = vrot.lane.b32.xlu0 %v10377_v29, %s8790_s21  ;;  %s12441_s21 = sld [smem:[#allocation27_spill]] }
0x189f   :  { %5112 = vmatpush1.bf16.msra.mxu1 %v8623_v35  ;;  %v8688_v35 = vld [vmem:[%s8986_s20] ss:$0 sm:$0xff] }
0x18a0   :  { %5113 = vmatprep.subr.bf16.mxu1 %v8631_v51  ;;  %v8689_v51 = vld [vmem:[%s8986_s20 + $0x3] ss:$0 sm:$0xff] }
0x18a1   :  { %4795 = vrot.lane.b32.xlu1 %v10377_v29, %s8791_s6  ;;  %4791 = vrot.lane.b32.xlu0 %v10377_v29, %s8782_s18 }
0x18a3   :  { %5114 = vmatpush1.bf16.msra.mxu1 %v8629_v21 }
0x18a4   :  { %5115 = vmatprep.subr.bf16.mxu1 %v8637_v2  ;;  %v8690_v2 = vld [vmem:[%s8986_s20 + $0x2] ss:$0 sm:$0xff] }
0x18a5   :  { %4803 = vrot.lane.b32.xlu1 %v10377_v29, %s8792_s12  ;;  %4799 = vrot.lane.b32.xlu0 %v10377_v29, %s8793_s28 }
0x18a7   :  { %5116 = vmatpush1.bf16.msra.mxu1 %v8635_v26 }
0x18a8   :  { %5117 = vmatprep.subr.bf16.mxu1 %v8643_v0 }
0x18a9   :  { %5174 = vrot.lane.b32.xlu1 %v10255_v49, %s8777_s0  ;;  %4825 = vperm.xlu0 %8438, %v4822_v37  }
0x18ab   :  { %5118 = vmatpush1.bf16.msra.mxu1 %v8641_v19 }
0x18ac   :  { %5119 = vmatprep.subr.bf16.mxu1 %v8649_v52 }
0x18ad   :  { %5184 = vrot.lane.b32.xlu1 %v10260_v4, %s8777_s0  ;;  %5176 = vrot.lane.b32.xlu0 %v10267_v14, %s8777_s0 }
0x18af   :  { %5120 = vmatpush1.bf16.msra.mxu1 %v8647_v54  ;;  %v8691_v54 = vld [vmem:[%s8986_s20 + $0x5] ss:$0 sm:$0xff] }
0x18b0   :  { %5121 = vmatprep.subr.bf16.mxu1 %v8655_v59 }
0x18b1   :  { %5194 = vrot.lane.b32.xlu1 %v10258_v31, %s8777_s0  ;;  %5186 = vrot.lane.b32.xlu0 %v10275_v13, %s8777_s0 }
0x18b3   :  { %5122 = vmatpush1.bf16.msra.mxu1 %v8653_v9 }
0x18b4   :  { %5123 = vmatprep.subr.bf16.mxu1 %v8661_v60  ;;  %v8687_v60 = vld [vmem:[%s8986_s20 + $0x1] ss:$0 sm:$0xff] }
0x18b5   :  { %5204 = vrot.lane.b32.xlu1 %v10265_v33, %s8777_s0  ;;  %5196 = vrot.lane.b32.xlu0 %v10273_v47, %s8777_s0 }
0x18b7   :  { %5124 = vmatpush1.bf16.msra.mxu1 %v8659_v58 }
0x18b9   :  { %5206 = vrot.lane.b32.xlu0 %v10281_v11, %s8777_s0  ;;  %5182 = vrot.lane.b32.xlu1 %v10415_v45, %s8777_s0 }
0x18bd   :  { %5192 = vrot.lane.b32.xlu0 %v10419_v61, %s8777_s0  ;;  %5202 = vrot.lane.b32.xlu1 %v10423_v8, %s8777_s0 }
0x18c1   :  { %5212 = vrot.lane.b32.xlu0 %v10427_v30, %s8777_s0  ;;  %5274 = vrot.lane.b32.xlu1 %v10255_v49, %s8779_s5 }
0x18c5   :  { %5284 = vrot.lane.b32.xlu0 %v10260_v4, %s8779_s5  ;;  %5294 = vrot.lane.b32.xlu1 %v10258_v31, %s8779_s5 }
0x18c9   :  { %5304 = vrot.lane.b32.xlu0 %v10265_v33, %s8779_s5  ;;  %5276 = vrot.lane.b32.xlu1 %v10267_v14, %s8779_s5 }
0x18cd   :  { %5282 = vrot.lane.b32.xlu0 %v10415_v45, %s8779_s5  ;;  %5286 = vrot.lane.b32.xlu1 %v10275_v13, %s8779_s5 }
0x18d1   :  { %5292 = vrot.lane.b32.xlu0 %v10419_v61, %s8779_s5  ;;  %5296 = vrot.lane.b32.xlu1 %v10273_v47, %s8779_s5 }
0x18d5   :  { %5302 = vrot.lane.b32.xlu0 %v10423_v8, %s8779_s5  ;;  %5306 = vrot.lane.b32.xlu1 %v10281_v11, %s8779_s5 }
0x18d9   :  { %5312 = vrot.lane.b32.xlu0 %v10427_v30, %s8779_s5  ;;  %5374 = vrot.lane.b32.xlu1 %v10255_v49, %s8780_s9 }
0x18dd   :  { %5376 = vrot.lane.b32.xlu0 %v10267_v14, %s8780_s9  ;;  %5384 = vrot.lane.b32.xlu1 %v10260_v4, %s8780_s9 }
0x18e1   :  { %5386 = vrot.lane.b32.xlu0 %v10275_v13, %s8780_s9  ;;  %5394 = vrot.lane.b32.xlu1 %v10258_v31, %s8780_s9 }
0x18e5   :  { %5396 = vrot.lane.b32.xlu0 %v10273_v47, %s8780_s9  ;;  %5404 = vrot.lane.b32.xlu1 %v10265_v33, %s8780_s9 }
0x18e9   :  { %5406 = vrot.lane.b32.xlu0 %v10281_v11, %s8780_s9  ;;  %5382 = vrot.lane.b32.xlu1 %v10415_v45, %s8780_s9 }
0x18ed   :  { %5392 = vrot.lane.b32.xlu0 %v10419_v61, %s8780_s9  ;;  %5402 = vrot.lane.b32.xlu1 %v10423_v8, %s8780_s9 }
0x18f1   :  { %5412 = vrot.lane.b32.xlu0 %v10427_v30, %s8780_s9  ;;  %5474 = vrot.lane.b32.xlu1 %v10255_v49, %s8781_s16 }
0x18f5   :  { %5484 = vrot.lane.b32.xlu0 %v10260_v4, %s8781_s16  ;;  %5494 = vrot.lane.b32.xlu1 %v10258_v31, %s8781_s16 }
0x18f9   :  { %5504 = vrot.lane.b32.xlu0 %v10265_v33, %s8781_s16  ;;  %5476 = vrot.lane.b32.xlu1 %v10267_v14, %s8781_s16 }
0x18fd   :  { %5482 = vrot.lane.b32.xlu0 %v10415_v45, %s8781_s16  ;;  %5486 = vrot.lane.b32.xlu1 %v10275_v13, %s8781_s16 }
0x1901   :  { %5492 = vrot.lane.b32.xlu0 %v10419_v61, %s8781_s16  ;;  %5496 = vrot.lane.b32.xlu1 %v10273_v47, %s8781_s16 }
0x1905   :  { %5502 = vrot.lane.b32.xlu0 %v10423_v8, %s8781_s16  ;;  %5506 = vrot.lane.b32.xlu1 %v10281_v11, %s8781_s16 }
0x1909   :  { %5512 = vrot.lane.b32.xlu0 %v10427_v30, %s8781_s16  ;;  %5594 = vrot.lane.b32.xlu1 %v10255_v49, %s8782_s18 }
0x190b   :  { %v4779_v58 = vpop.permute.xlu1 %4778  ;;  %v4775_v59 = vpop.permute.xlu0 %4774 }
0x190c   :  { %v4780_v9 = vmul.f32 %v8687_v60, %v4779_v58  ;;  %v4776_v63 = vmul.f32 %v8688_v35, %v4775_v59 }
0x190d   :  { %5604 = vrot.lane.b32.xlu0 %v10260_v4, %s8782_s18  ;;  %5614 = vrot.lane.b32.xlu1 %v10258_v31, %s8782_s18 }
0x190e   :  { %v4816_v27 = vpack.c.bf16 %v4780_v9, %v4776_v63  ;;  %v8692_v9 = vld [vmem:[%s8986_s20 + $0x6] ss:$0 sm:$0xff]  ;;  %v8693_v63 = vld [vmem:[%s8986_s20 + $0x8] ss:$0 sm:$0xff] }
0x190f   :  { %v4787_v57 = vpop.permute.xlu1 %4786  ;;  %v4783_v41 = vpop.permute.xlu0 %4782 }
0x1910   :  { %v4788_v21 = vmul.f32 %v8689_v51, %v4787_v57  ;;  %v4784_v26 = vmul.f32 %v8690_v2, %v4783_v41  ;;  %8337 = vmatpush3.bf16.msra.mxu0 %v4816_v27  ;;  %v8694_v57 = vld [vmem:[%s8986_s20 + $0x7] ss:$0 sm:$0xff]  ;;  %s12412_s20 = sld [smem:[#allocation24_spill]] }
0x1911   :  { %5624 = vrot.lane.b32.xlu0 %v10265_v33, %s8782_s18  ;;  %5596 = vrot.lane.b32.xlu1 %v10267_v14, %s8782_s18 }
0x1912   :  { %8338 = vmatprep.subr.bf16.mxu0 %v10109_v32  ;;  %v4817_v0 = vpack.c.bf16 %v4788_v21, %v4784_v26 }
0x1913   :  { %v4796_v19 = vpop.permute.xlu1 %4795  ;;  %v4792_v52 = vpop.permute.xlu0 %4791 }
0x1914   :  { %v4793_v37 = vmul.f32 %v8691_v54, %v4792_v52  ;;  %8339 = vmatpush3.bf16.msra.mxu0 %v4817_v0  ;;  %v4797_v35 = vmul.f32 %v8692_v9, %v4796_v19  ;;  %v4821_v0 = vld [vmem:[%s12393_s24] sm:$0x3] }
0x1915   :  { %5602 = vrot.lane.b32.xlu0 %v10415_v45, %s8782_s18  ;;  %5606 = vrot.lane.b32.xlu1 %v10275_v13, %s8782_s18 }
0x1916   :  { %8340 = vmatprep.subr.bf16.mxu0 %v10109_v32  ;;  %v4818_v58 = vpack.c.bf16 %v4793_v37, %v10377_v29 }
0x1917   :  { %v4804_v59 = vpop.permute.xlu1 %4803  ;;  %v4800_v60 = vpop.permute.xlu0 %4799 }
0x1918   :  { %v4805_v27 = vmul.f32 %v8693_v63, %v4804_v59  ;;  %v4801_v41 = vmul.f32 %v8694_v57, %v4800_v60  ;;  %8341 = vmatpush3.bf16.msra.mxu0 %v4818_v58 }
0x1919   :  { %5612 = vrot.lane.b32.xlu0 %v10419_v61, %s8782_s18  ;;  %5616 = vrot.lane.b32.xlu1 %v10273_v47, %s8782_s18 }
0x191a   :  { %8342 = vmatprep.subr.bf16.mxu0 %v10109_v32  ;;  %v4819_v51 = vpack.c.bf16 %v4801_v41, %v4797_v35  ;;  %v4820_v21 = vpack.c.bf16 %v4805_v27, %v4805_v27 }
0x191b   :  { %v5175_v29 = vpop.permute.xlu1 %5174 }
0x191c   :  { %8343 = vmatpush3.bf16.msra.mxu0 %v4819_v51  ;;  %v4832_v26 = vsel %vm1088_vm9, %v4820_v21, 0 }
0x191d   :  { %5622 = vrot.lane.b32.xlu0 %v10423_v8, %s8782_s18  ;;  %5626 = vrot.lane.b32.xlu1 %v10281_v11, %s8782_s18 }
0x191e   :  { %8344 = vmatprep.subr.bf16.mxu0 %v10109_v32 }
0x191f   :  { %v5185_v2 = vpop.permute.xlu1 %5184 }
0x1920   :  { %8345 = vmatpush3.bf16.msra.mxu0 %v4832_v26 }
0x1921   :  { %5632 = vrot.lane.b32.xlu0 %v10427_v30, %s8782_s18  ;;  %5694 = vrot.lane.b32.xlu1 %v10255_v49, %s8783_s22 }
0x1922   :  { %5068 = vmatprep.subr.bf16.mxu0 %v10294_v20 }
0x1923   :  { %v5195_v19 = vpop.permute.xlu1 %5194  ;;  %8347 = vmatmul.mubr.msk.bf16.vlgmr.msra.gmra.mrb[56].mxu0 %vm1084_vm10, %v4821_v0 }
0x1924   :  { %v5219_v52 = vsel %vm463_vm1, %v5185_v2, %v5195_v19  ;;  %5069 = vmatpush1.bf16.msra.mxu0 %v10291_v6  ;;  %5100 = vmatprep.mubr.bf16.mxu0 %v12387_v16 }
0x1925   :  { %v5236_v32 = vmul.f32 %v5219_v52, %v9161_v25  ;;  %5696 = vrot.lane.b32.xlu0 %v10267_v14, %s8783_s22  ;;  %5704 = vrot.lane.b32.xlu1 %v10260_v4, %s8783_s22 }
0x1926   :  { %5070 = vmatprep.subr.bf16.mxu0 %v10300_v53 }
0x1927   :  { %5256 = vst [vmem:[#allocation2 + $0x10] sm:$0xff] %v5236_v32  ;;  %v5205_v20 = vpop.permute.xlu1 %5204 }
0x1928   :  { %v5229_v54 = vsel %vm463_vm1, %v5205_v20, %v5175_v29  ;;  %v10558_v37 = vpop.permute.xlu0 %4825  ;;  %5071 = vmatpush1.bf16.msra.mxu0 %v10306_v3 }
0x1929   :  { %v5234_v6 = vmul.f32 %v5229_v54, %v9152_v22  ;;  %5706 = vrot.lane.b32.xlu0 %v10275_v13, %s8783_s22  ;;  %5714 = vrot.lane.b32.xlu1 %v10258_v31, %s8783_s22 }
0x192a   :  { %5072 = vmatprep.subr.bf16.mxu0 %v10310_v34 }
0x192b   :  { %5254 = vst [vmem:[#allocation2] sm:$0xff] %v5234_v6  ;;  %v5183_v53 = vpop.permute.xlu1 %5182 }
0x192c   :  { %v10567_v58 = vpop.permute.xlu0 %5176  ;;  %5073 = vmatpush1.bf16.msra.mxu0 %v10314_v55 }
0x192d   :  { %5716 = vrot.lane.b32.xlu0 %v10273_v47, %s8783_s22  ;;  %5724 = vrot.lane.b32.xlu1 %v10265_v33, %s8783_s22 }
0x192e   :  { %5074 = vmatprep.subr.bf16.mxu0 %v10318_v46 }
0x192f   :  { %v5203_v3 = vpop.permute.xlu1 %5202 }
0x1930   :  { %v10575_v59 = vpop.permute.xlu0 %5186  ;;  %5075 = vmatpush1.bf16.msra.mxu0 %v10322_v56 }
0x1931   :  { %5726 = vrot.lane.b32.xlu0 %v10281_v11, %s8783_s22  ;;  %5702 = vrot.lane.b32.xlu1 %v10415_v45, %s8783_s22  ;;  %v5214_v11 = vsel %vm463_vm1, %v5195_v19, %v5205_v20  ;;  %v5225_v56 = vsel %vm463_vm1, %v10567_v58, %v10575_v59 }
0x1932   :  { %5076 = vmatprep.subr.bf16.mxu0 %v10326_v28  ;;  %v5994_v16 = vld [vmem:[#allocation2] sm:$0xff] }
0x1933   :  { %v10583_v34 = vpop.permute.xlu1 %5274 }
0x1934   :  { %v10585_v47 = vpop.permute.xlu0 %5196  ;;  %5077 = vmatpush1.bf16.msra.mxu0 %v10330_v62  ;;  %v5237_v62 = vmul.f32 %v5214_v11, %v9155_v23 }
0x1935   :  { %5712 = vrot.lane.b32.xlu0 %v10419_v61, %s8783_s22  ;;  %5722 = vrot.lane.b32.xlu1 %v10423_v8, %s8783_s22  ;;  %v5239_v61 = vmul.f32 %v5225_v56, %v9158_v24 }
0x1936   :  { %5078 = vmatprep.subr.bf16.mxu0 %v10334_v15 }
0x1937   :  { %v5295_v55 = vpop.permute.xlu1 %5294 }
0x1938   :  { %v10595_v46 = vpop.permute.xlu0 %5206  ;;  %5079 = vmatpush1.bf16.msra.mxu0 %v10338_v39  ;;  %v5224_v39 = vsel %vm463_vm1, %v5175_v29, %v5185_v2 }
0x1939   :  { %v5215_v28 = vsel %vm463_vm1, %v10585_v47, %v10595_v46  ;;  %5732 = vrot.lane.b32.xlu0 %v10427_v30, %s8783_s22  ;;  %5794 = vrot.lane.b32.xlu1 %v10255_v49, %s8784_s23 }
0x193a   :  { %v5241_v15 = vmul.f32 %v5215_v28, %v9155_v23  ;;  %5080 = vmatprep.subr.bf16.mxu0 %v10342_v40  ;;  %v5235_v40 = vmul.f32 %v5224_v39, %v9158_v24 }
0x193b   :  { %v5277_v45 = vpop.permute.xlu1 %5276 }
0x193c   :  { %v5193_v8 = vpop.permute.xlu0 %5192  ;;  %5081 = vmatpush1.bf16.msra.mxu0 %v10346_v10  ;;  %v6177_v60 = vpack.c.bf16 %v5241_v15, %v5237_v62 }
0x193d   :  { %v5223_v30 = vsel %vm463_vm1, %v5193_v8, %v5203_v3  ;;  %v5228_v49 = vsel %vm463_vm1, %v5183_v53, %v5193_v8  ;;  %5804 = vrot.lane.b32.xlu0 %v10260_v4, %s8784_s23  ;;  %5814 = vrot.lane.b32.xlu1 %v10258_v31, %s8784_s23  ;;  %v6175_v4 = vpack.c.bf16 %v5239_v61, %v5235_v40 }
0x193e   :  { %v5251_v9 = vmul.f32 %v5228_v49, %v9158_v24  ;;  %v5252_v35 = vmul.f32 %v5223_v30, %v9161_v25  ;;  %6399 = vmatprep.subr.bf16.mxu1 %v6177_v60  ;;  %5082 = vmatprep.subr.bf16.mxu0 %v10350_v18 }
0x193f   :  { %v5287_v10 = vpop.permute.xlu1 %5286 }
0x1940   :  { %5271 = vst [vmem:[#allocation2 + $0x88] sm:$0xff] %v5251_v9  ;;  %5272 = vst [vmem:[#allocation2 + $0x90] sm:$0xff] %v5252_v35  ;;  %v5325_v63 = vsel %vm536_vm2, %v5277_v45, %v5287_v10  ;;  %v5213_v27 = vpop.permute.xlu0 %5212  ;;  %5083 = vmatpush1.bf16.msra.mxu0 %v10354_v50 }
0x1941   :  { %v5339_v31 = vmul.f32 %v5325_v63, %v9181_v42  ;;  %v5218_v57 = vsel %vm463_vm1, %v5203_v3, %v5213_v27  ;;  %v5233_v41 = vsel %vm463_vm1, %v5213_v27, %v5183_v53  ;;  %5824 = vrot.lane.b32.xlu0 %v10265_v33, %s8784_s23  ;;  %5796 = vrot.lane.b32.xlu1 %v10267_v14, %s8784_s23 }
0x1942   :  { %v5250_v18 = vmul.f32 %v5233_v41, %v9152_v22  ;;  %v5253_v51 = vmul.f32 %v5218_v57, %v9155_v23  ;;  %6313 = vmatprep.subr.bf16.mxu0 %v6175_v4 }
0x1943   :  { %5359 = vst [vmem:[#allocation2 + $0xc8] sm:$0xff] %v5339_v31  ;;  %v5297_v50 = vpop.permute.xlu1 %5296 }
0x1944   :  { %5270 = vst [vmem:[#allocation2 + $0x80] sm:$0xff] %v5250_v18  ;;  %5273 = vst [vmem:[#allocation2 + $0x98] sm:$0xff] %v5253_v51  ;;  %v5320_v29 = vsel %vm536_vm2, %v5287_v10, %v5297_v50  ;;  %v5285_v21 = vpop.permute.xlu0 %5284 }
0x1945   :  { %v5340_v2 = vmul.f32 %v5320_v29, %v9187_v44  ;;  %v5319_v33 = vsel %vm536_vm2, %v5285_v21, %v5295_v55  ;;  %v5324_v14 = vsel %vm536_vm2, %v10583_v34, %v5285_v21  ;;  %5806 = vrot.lane.b32.xlu1 %v10275_v13, %s8784_s23 }
0x1946   :  { %v5335_v26 = vmul.f32 %v5324_v14, %v9181_v42  ;;  %v5336_v0 = vmul.f32 %v5319_v33, %v9187_v44 }
0x1947   :  { %5360 = vst [vmem:[#allocation2 + $0xd0] sm:$0xff] %v5340_v2  ;;  %v5307_v19 = vpop.permute.xlu1 %5306 }
0x1948   :  { %5355 = vst [vmem:[#allocation2 + $0xa8] sm:$0xff] %v5335_v26  ;;  %5356 = vst [vmem:[#allocation2 + $0xb0] sm:$0xff] %v5336_v0  ;;  %v5315_v52 = vsel %vm536_vm2, %v5297_v50, %v5307_v19  ;;  %v5330_v32 = vsel %vm536_vm2, %v5307_v19, %v5277_v45  ;;  %v5305_v20 = vpop.permute.xlu0 %5304 }
0x1949   :  { %v5338_v54 = vmul.f32 %v5330_v32, %v9184_v43  ;;  %v5341_v6 = vmul.f32 %v5315_v52, %v9194_v48  ;;  %v5314_v13 = vsel %vm536_vm2, %v5295_v55, %v5305_v20  ;;  %v5329_v53 = vsel %vm536_vm2, %v5305_v20, %v10583_v34 }
0x194a   :  { %v5334_v3 = vmul.f32 %v5329_v53, %v9184_v43  ;;  %v5337_v11 = vmul.f32 %v5314_v13, %v9194_v48 }
0x194b   :  { %5358 = vst [vmem:[#allocation2 + $0xc0] sm:$0xff] %v5338_v54  ;;  %5361 = vst [vmem:[#allocation2 + $0xd8] sm:$0xff] %v5341_v6  ;;  %v5375_v56 = vpop.permute.xlu1 %5374 }
0x194c   :  { %5354 = vst [vmem:[#allocation2 + $0xa0] sm:$0xff] %v5334_v3  ;;  %5357 = vst [vmem:[#allocation2 + $0xb8] sm:$0xff] %v5337_v11  ;;  %v5283_v28 = vpop.permute.xlu0 %5282 }
0x194f   :  { %v5385_v62 = vpop.permute.xlu1 %5384 }
0x1950   :  { %v5424_v15 = vsel %vm606_vm3, %v5375_v56, %v5385_v62  ;;  %v5293_v39 = vpop.permute.xlu0 %5292 }
0x1951   :  { %v5435_v55 = vmul.f32 %v5424_v15, %v9212_v1  ;;  %v5328_v34 = vsel %vm536_vm2, %v5283_v28, %v5293_v39 }
0x1952   :  { %v5351_v45 = vmul.f32 %v5328_v34, %v9181_v42 }
0x1953   :  { %5455 = vst [vmem:[#allocation2 + $0x148] sm:$0xff] %v5435_v55  ;;  %v5395_v61 = vpop.permute.xlu1 %5394 }
0x1954   :  { %5371 = vst [vmem:[#allocation2 + $0x128] sm:$0xff] %v5351_v45  ;;  %v5419_v8 = vsel %vm606_vm3, %v5385_v62, %v5395_v61  ;;  %v5303_v60 = vpop.permute.xlu0 %5302 }
0x1955   :  { %v5436_v30 = vmul.f32 %v5419_v8, %v9218_v7  ;;  %v5323_v49 = vsel %vm536_vm2, %v5293_v39, %v5303_v60 }
0x1956   :  { %v5352_v40 = vmul.f32 %v5323_v49, %v9187_v44 }
0x1957   :  { %5456 = vst [vmem:[#allocation2 + $0x150] sm:$0xff] %v5436_v30  ;;  %v5405_v9 = vpop.permute.xlu1 %5404 }
0x1958   :  { %5372 = vst [vmem:[#allocation2 + $0x130] sm:$0xff] %v5352_v40  ;;  %v5414_v35 = vsel %vm606_vm3, %v5395_v61, %v5405_v9  ;;  %v5429_v10 = vsel %vm606_vm3, %v5405_v9, %v5375_v56  ;;  %v5313_v63 = vpop.permute.xlu0 %5312 }
0x1959   :  { %v5434_v27 = vmul.f32 %v5429_v10, %v9215_v5  ;;  %v5437_v4 = vmul.f32 %v5414_v35, %v9225_v12  ;;  %v5318_v31 = vsel %vm536_vm2, %v5303_v60, %v5313_v63  ;;  %v5333_v57 = vsel %vm536_vm2, %v5313_v63, %v5283_v28 }
0x195a   :  { %v5350_v41 = vmul.f32 %v5333_v57, %v9184_v43  ;;  %v5353_v18 = vmul.f32 %v5318_v31, %v9194_v48 }
0x195b   :  { %5454 = vst [vmem:[#allocation2 + $0x140] sm:$0xff] %v5434_v27  ;;  %5457 = vst [vmem:[#allocation2 + $0x158] sm:$0xff] %v5437_v4  ;;  %v5383_v51 = vpop.permute.xlu1 %5382 }
0x195c   :  { %5370 = vst [vmem:[#allocation2 + $0x120] sm:$0xff] %v5350_v41  ;;  %5373 = vst [vmem:[#allocation2 + $0x138] sm:$0xff] %v5353_v18  ;;  %v5377_v50 = vpop.permute.xlu0 %5376 }
0x195f   :  { %v5403_v29 = vpop.permute.xlu1 %5402 }
0x1960   :  { %v5387_v21 = vpop.permute.xlu0 %5386 }
0x1961   :  { %v5425_v2 = vsel %vm606_vm3, %v5377_v50, %v5387_v21 }
0x1962   :  { %v5439_v33 = vmul.f32 %v5425_v2, %v9212_v1 }
0x1963   :  { %v10695_v14 = vpop.permute.xlu1 %5474 }
0x1964   :  { %5459 = vst [vmem:[#allocation2 + $0x168] sm:$0xff] %v5439_v33  ;;  %v5397_v26 = vpop.permute.xlu0 %5396 }
0x1965   :  { %v5420_v0 = vsel %vm606_vm3, %v5387_v21, %v5397_v26 }
0x1966   :  { %v5440_v19 = vmul.f32 %v5420_v0, %v9218_v7 }
0x1967   :  { %v5495_v52 = vpop.permute.xlu1 %5494 }
0x1968   :  { %5460 = vst [vmem:[#allocation2 + $0x170] sm:$0xff] %v5440_v19  ;;  %v5407_v32 = vpop.permute.xlu0 %5406 }
0x1969   :  { %v5415_v20 = vsel %vm606_vm3, %v5397_v26, %v5407_v32  ;;  %v5430_v54 = vsel %vm606_vm3, %v5407_v32, %v5377_v50  ;;  %v12394_v32 = vld [vmem:[#allocation39_spill] sm:$0xff] }
0x196a   :  { %v5438_v6 = vmul.f32 %v5430_v54, %v9215_v5  ;;  %v5441_v13 = vmul.f32 %v5415_v20, %v9225_v12  ;;  %v12395_v54 = vld [vmem:[#allocation41_spill] sm:$0xff] }
0x196b   :  { %v5477_v53 = vpop.permute.xlu1 %5476 }
0x196c   :  { %5458 = vst [vmem:[#allocation2 + $0x160] sm:$0xff] %v5438_v6  ;;  %5461 = vst [vmem:[#allocation2 + $0x178] sm:$0xff] %v5441_v13  ;;  %v5393_v3 = vpop.permute.xlu0 %5392 }
0x196d   :  { %v10706_v11 = vpop.f32.mrb[52].mxu0  ;;  %v10708_v56 = vpop.f32.mrb[56].mxu1  ;;  %v5423_v28 = vsel %vm606_vm3, %v5393_v3, %v5403_v29  ;;  %v5428_v62 = vsel %vm606_vm3, %v5383_v51, %v5393_v3 }
0x196e   :  { %v5451_v15 = vmul.f32 %v5428_v62, %v9212_v1  ;;  %v5452_v39 = vmul.f32 %v5423_v28, %v9218_v7  ;;  %v10716_v55 = vpop.f32.mrb[53].mxu0  ;;  %v10718_v34 = vpop.f32.mrb[57].mxu1  ;;  %5582 = vst [vmem:[#allocation2 + $0x2c0] sm:$0xff] %v10706_v11  ;;  %5278 = vrot.lane.b32.xlu0 %v10706_v11, %s8779_s5  ;;  %5178 = vrot.lane.b32.xlu1 %v10706_v11, %s8777_s0  ;;  %5584 = vst [vmem:[#allocation2 + $0x2d0] sm:$0xff] %v10708_v56 }
0x196f   :  { %v4725_v45 = vpop.f32.mrb[54].mxu0  ;;  %v4766_v61 = vpop.f32.mrb[58].mxu1  ;;  %5583 = vst [vmem:[#allocation2 + $0x2c8] sm:$0xff] %v10716_v55  ;;  %5585 = vst [vmem:[#allocation2 + $0x2d8] sm:$0xff] %v10718_v34 }
0x1970   :  { %5471 = vst [vmem:[#allocation2 + $0x1c8] sm:$0xff] %v5451_v15  ;;  %5472 = vst [vmem:[#allocation2 + $0x1d0] sm:$0xff] %v5452_v39  ;;  %v4726_v8 = vpop.f32.mrb[55].mxu0  ;;  %v4767_v60 = vpop.f32.mrb[59].mxu1 }
0x1971   :  { %v5487_v30 = vpop.permute.xlu1 %5486  ;;  %v5413_v49 = vpop.permute.xlu0 %5412 }
0x1972   :  { %v5525_v40 = vsel %vm676_vm4, %v5477_v53, %v5487_v30  ;;  %v5418_v9 = vsel %vm606_vm3, %v5403_v29, %v5413_v49  ;;  %v5433_v35 = vsel %vm606_vm3, %v5413_v49, %v5383_v51  ;;  %5298 = vrot.lane.b32.xlu0 %v10708_v56, %s8779_s5  ;;  %5198 = vrot.lane.b32.xlu1 %v10708_v56, %s8777_s0 }
0x1973   :  { %v5539_v10 = vmul.f32 %v5525_v40, %v9243_v36  ;;  %v5450_v63 = vmul.f32 %v5433_v35, %v9215_v5  ;;  %v5453_v27 = vmul.f32 %v5418_v9, %v9225_v12  ;;  %v12396_v35 = vld [vmem:[#allocation42_spill] sm:$0xff] }
0x1975   :  { %5559 = vst [vmem:[#allocation2 + $0x208] sm:$0xff] %v5539_v10  ;;  %5470 = vst [vmem:[#allocation2 + $0x1c0] sm:$0xff] %v5450_v63  ;;  %v5497_v4 = vpop.permute.xlu1 %5496  ;;  %v5485_v31 = vpop.permute.xlu0 %5484 }
0x1976   :  { %5473 = vst [vmem:[#allocation2 + $0x1d8] sm:$0xff] %v5453_v27  ;;  %v5520_v57 = vsel %vm676_vm4, %v5487_v30, %v5497_v4  ;;  %v5519_v41 = vsel %vm676_vm4, %v5485_v31, %v5495_v52  ;;  %v5524_v18 = vsel %vm676_vm4, %v10695_v14, %v5485_v31  ;;  %5478 = vrot.lane.b32.xlu0 %v10706_v11, %s8781_s16 }
0x1977   :  { %5378 = vrot.lane.b32.xlu1 %v10706_v11, %s8780_s9  ;;  %v5540_v51 = vmul.f32 %v5520_v57, %v9249_v38  ;;  %v5535_v50 = vmul.f32 %v5524_v18, %v9243_v36  ;;  %v5536_v29 = vmul.f32 %v5519_v41, %v9249_v38 }
0x1979   :  { %5560 = vst [vmem:[#allocation2 + $0x210] sm:$0xff] %v5540_v51  ;;  %5555 = vst [vmem:[#allocation2 + $0x1e8] sm:$0xff] %v5535_v50  ;;  %v5507_v21 = vpop.permute.xlu1 %5506  ;;  %v5505_v2 = vpop.permute.xlu0 %5504  ;;  %v12397_v51 = vld [vmem:[#allocation44_spill] sm:$0xff] }
0x197a   :  { %5556 = vst [vmem:[#allocation2 + $0x1f0] sm:$0xff] %v5536_v29  ;;  %v5515_v33 = vsel %vm676_vm4, %v5497_v4, %v5507_v21  ;;  %v5530_v26 = vsel %vm676_vm4, %v5507_v21, %v5477_v53  ;;  %v5514_v0 = vsel %vm676_vm4, %v5495_v52, %v5505_v2  ;;  %v5529_v19 = vsel %vm676_vm4, %v5505_v2, %v10695_v14 }
0x197b   :  { %5498 = vrot.lane.b32.xlu0 %v10708_v56, %s8781_s16  ;;  %v5538_v20 = vmul.f32 %v5530_v26, %v12394_v32  ;;  %v5541_v6 = vmul.f32 %v5515_v33, %v12395_v54  ;;  %v5534_v13 = vmul.f32 %v5529_v19, %v12394_v32  ;;  %v5537_v3 = vmul.f32 %v5514_v0, %v12395_v54 }
0x197c   :  { %5398 = vrot.lane.b32.xlu1 %v10708_v56, %s8780_s9 }
0x197d   :  { %5558 = vst [vmem:[#allocation2 + $0x200] sm:$0xff] %v5538_v20  ;;  %5561 = vst [vmem:[#allocation2 + $0x218] sm:$0xff] %v5541_v6  ;;  %v5595_v52 = vpop.permute.xlu1 %5594  ;;  %v5483_v14 = vpop.permute.xlu0 %5482  ;;  %v12398_v6 = vld [vmem:[#allocation45_spill] sm:$0xff] }
0x197e   :  { %5554 = vst [vmem:[#allocation2 + $0x1e0] sm:$0xff] %v5534_v13  ;;  %5557 = vst [vmem:[#allocation2 + $0x1f8] sm:$0xff] %v5537_v3  ;;  %v12399_v3 = vld [vmem:[#allocation43_spill] sm:$0xff] }
0x197f   :  { %5598 = vrot.lane.b32.xlu0 %v10706_v11, %s8782_s18 }
0x1980   :  { %5698 = vrot.lane.b32.xlu1 %v10706_v11, %s8783_s22 }
0x1981   :  { %v5615_v53 = vpop.permute.xlu1 %5614  ;;  %v5493_v28 = vpop.permute.xlu0 %5492 }
0x1982   :  { %v5528_v62 = vsel %vm676_vm4, %v5483_v14, %v5493_v28 }
0x1983   :  { %5618 = vrot.lane.b32.xlu0 %v10708_v56, %s8782_s18  ;;  %v5551_v15 = vmul.f32 %v5528_v62, %v9243_v36 }
0x1984   :  { %5718 = vrot.lane.b32.xlu1 %v10708_v56, %s8783_s22 }
0x1985   :  { %5571 = vst [vmem:[#allocation2 + $0x268] sm:$0xff] %v5551_v15  ;;  %v5597_v39 = vpop.permute.xlu1 %5596  ;;  %v5503_v45 = vpop.permute.xlu0 %5502 }
0x1986   :  { %v5523_v61 = vsel %vm676_vm4, %v5493_v28, %v5503_v45 }
0x1987   :  { %5798 = vrot.lane.b32.xlu0 %v10706_v11, %s8784_s23  ;;  %v5552_v8 = vmul.f32 %v5523_v61, %v9249_v38 }
0x1988   :  { %5188 = vrot.lane.b32.xlu1 %v10716_v55, %s8777_s0 }
0x1989   :  { %5572 = vst [vmem:[#allocation2 + $0x270] sm:$0xff] %v5552_v8  ;;  %v5607_v60 = vpop.permute.xlu1 %5606  ;;  %v5513_v30 = vpop.permute.xlu0 %5512  ;;  %v12400_v8 = vld [vmem:[#allocation46_spill] sm:$0xff] }
0x198a   :  { %v5645_v49 = vsel %vm749_vm5, %v5597_v39, %v5607_v60  ;;  %v5518_v40 = vsel %vm676_vm4, %v5503_v45, %v5513_v30  ;;  %v5533_v9 = vsel %vm676_vm4, %v5513_v30, %v5483_v14 }
0x198b   :  { %5288 = vrot.lane.b32.xlu0 %v10716_v55, %s8779_s5  ;;  %v5658_v10 = vmul.f32 %v5645_v49, %v12396_v35  ;;  %v5550_v63 = vmul.f32 %v5533_v9, %v12394_v32  ;;  %v5553_v27 = vmul.f32 %v5518_v40, %v12395_v54 }
0x198c   :  { %5208 = vrot.lane.b32.xlu1 %v10718_v34, %s8777_s0 }
0x198d   :  { %5678 = vst [vmem:[#allocation2 + $0x340] sm:$0xff] %v5658_v10  ;;  %5570 = vst [vmem:[#allocation2 + $0x260] sm:$0xff] %v5550_v63  ;;  %v5617_v4 = vpop.permute.xlu1 %5616  ;;  %v5605_v31 = vpop.permute.xlu0 %5604  ;;  %v12401_v63 = vld [vmem:[#allocation48_spill] sm:$0xff] }
0x198e   :  { %5573 = vst [vmem:[#allocation2 + $0x278] sm:$0xff] %v5553_v27  ;;  %v5640_v57 = vsel %vm749_vm5, %v5607_v60, %v5617_v4  ;;  %v5639_v41 = vsel %vm749_vm5, %v5605_v31, %v5615_v53  ;;  %v5644_v18 = vsel %vm749_vm5, %v5595_v52, %v5605_v31 }
0x198f   :  { %5308 = vrot.lane.b32.xlu0 %v10718_v34, %s8779_s5  ;;  %v5659_v50 = vmul.f32 %v5640_v57, %v12397_v51  ;;  %v5654_v29 = vmul.f32 %v5644_v18, %v12396_v35  ;;  %v5655_v21 = vmul.f32 %v5639_v41, %v12397_v51 }
0x1990   :  { %5388 = vrot.lane.b32.xlu1 %v10716_v55, %s8780_s9 }
0x1991   :  { %5679 = vst [vmem:[#allocation2 + $0x348] sm:$0xff] %v5659_v50  ;;  %5674 = vst [vmem:[#allocation2 + $0x320] sm:$0xff] %v5654_v29  ;;  %v5627_v2 = vpop.permute.xlu1 %5626  ;;  %v5625_v33 = vpop.permute.xlu0 %5624 }
0x1992   :  { %5675 = vst [vmem:[#allocation2 + $0x328] sm:$0xff] %v5655_v21  ;;  %v5635_v26 = vsel %vm749_vm5, %v5617_v4, %v5627_v2  ;;  %v5650_v0 = vsel %vm749_vm5, %v5627_v2, %v5597_v39  ;;  %v5634_v19 = vsel %vm749_vm5, %v5615_v53, %v5625_v33  ;;  %v5649_v20 = vsel %vm749_vm5, %v5625_v33, %v5595_v52  ;;  %v12402_v21 = vld [vmem:[#allocation49_spill] sm:$0xff]  ;;  %v12403_v33 = vld [vmem:[#allocation47_spill] sm:$0xff] }
0x1993   :  { %5488 = vrot.lane.b32.xlu0 %v10716_v55, %s8781_s16  ;;  %v5660_v13 = vmul.f32 %v5635_v26, %v12398_v6  ;;  %v5661_v14 = vmul.f32 %v5650_v0, %v12399_v3  ;;  %v5656_v28 = vmul.f32 %v5634_v19, %v12398_v6  ;;  %v5657_v62 = vmul.f32 %v5649_v20, %v12399_v3 }
0x1994   :  { %5408 = vrot.lane.b32.xlu1 %v10718_v34, %s8780_s9 }
0x1995   :  { %5680 = vst [vmem:[#allocation2 + $0x350] sm:$0xff] %v5660_v13  ;;  %5681 = vst [vmem:[#allocation2 + $0x358] sm:$0xff] %v5661_v14  ;;  %v5695_v53 = vpop.permute.xlu1 %5694  ;;  %v5603_v52 = vpop.permute.xlu0 %5602 }
0x1996   :  { %5676 = vst [vmem:[#allocation2 + $0x330] sm:$0xff] %v5656_v28  ;;  %5677 = vst [vmem:[#allocation2 + $0x338] sm:$0xff] %v5657_v62 }
0x1997   :  { %5508 = vrot.lane.b32.xlu0 %v10718_v34, %s8781_s16 }
0x1998   :  { %5708 = vrot.lane.b32.xlu1 %v10716_v55, %s8783_s22 }
0x1999   :  { %v5705_v15 = vpop.permute.xlu1 %5704  ;;  %v5613_v39 = vpop.permute.xlu0 %5612 }
0x199a   :  { %v5744_v45 = vsel %vm819_vm6, %v5695_v53, %v5705_v15  ;;  %v5648_v61 = vsel %vm749_vm5, %v5603_v52, %v5613_v39 }
0x199b   :  { %5608 = vrot.lane.b32.xlu0 %v10716_v55, %s8782_s18  ;;  %v5754_v60 = vmul.f32 %v5744_v45, %v12400_v8  ;;  %v5670_v30 = vmul.f32 %v5648_v61, %v12396_v35 }
0x199c   :  { %5728 = vrot.lane.b32.xlu1 %v10718_v34, %s8783_s22 }
0x199d   :  { %5774 = vst [vmem:[#allocation2 + $0x3c0] sm:$0xff] %v5754_v60  ;;  %5690 = vst [vmem:[#allocation2 + $0x3a0] sm:$0xff] %v5670_v30  ;;  %v5715_v49 = vpop.permute.xlu1 %5714  ;;  %v5623_v40 = vpop.permute.xlu0 %5622 }
0x199e   :  { %v5739_v9 = vsel %vm819_vm6, %v5705_v15, %v5715_v49  ;;  %v5643_v10 = vsel %vm749_vm5, %v5613_v39, %v5623_v40 }
0x199f   :  { %5628 = vrot.lane.b32.xlu0 %v10718_v34, %s8782_s18  ;;  %v5755_v27 = vmul.f32 %v5739_v9, %v12401_v63  ;;  %v5671_v4 = vmul.f32 %v5643_v10, %v12397_v51 }
0x19a1   :  { %5775 = vst [vmem:[#allocation2 + $0x3c8] sm:$0xff] %v5755_v27  ;;  %5691 = vst [vmem:[#allocation2 + $0x3a8] sm:$0xff] %v5671_v4  ;;  %v5725_v31 = vpop.permute.xlu1 %5724  ;;  %v5633_v57 = vpop.permute.xlu0 %5632 }
0x19a2   :  { %v5734_v41 = vsel %vm819_vm6, %v5715_v49, %v5725_v31  ;;  %v5749_v18 = vsel %vm819_vm6, %v5725_v31, %v5695_v53  ;;  %v5638_v50 = vsel %vm749_vm5, %v5623_v40, %v5633_v57  ;;  %v5653_v29 = vsel %vm749_vm5, %v5633_v57, %v5603_v52 }
0x19a3   :  { %v5756_v2 = vmul.f32 %v5734_v41, %v12402_v21  ;;  %v5757_v26 = vmul.f32 %v5749_v18, %v12403_v33  ;;  %v5672_v0 = vmul.f32 %v5638_v50, %v12398_v6  ;;  %v5673_v19 = vmul.f32 %v5653_v29, %v12399_v3 }
0x19a5   :  { %5776 = vst [vmem:[#allocation2 + $0x3d0] sm:$0xff] %v5756_v2  ;;  %5777 = vst [vmem:[#allocation2 + $0x3d8] sm:$0xff] %v5757_v26  ;;  %v5703_v20 = vpop.permute.xlu1 %5702  ;;  %v5697_v13 = vpop.permute.xlu0 %5696 }
0x19a6   :  { %5692 = vst [vmem:[#allocation2 + $0x3b0] sm:$0xff] %v5672_v0  ;;  %5693 = vst [vmem:[#allocation2 + $0x3b8] sm:$0xff] %v5673_v19  ;;  %v12404_v0 = vld [vmem:[#allocation50_spill] sm:$0xff] }
0x19a9   :  { %v5723_v14 = vpop.permute.xlu1 %5722  ;;  %v5707_v28 = vpop.permute.xlu0 %5706 }
0x19aa   :  { %v5745_v62 = vsel %vm819_vm6, %v5697_v13, %v5707_v28 }
0x19ab   :  { %v5758_v53 = vmul.f32 %v5745_v62, %v12400_v8 }
0x19ad   :  { %5778 = vst [vmem:[#allocation2 + $0x3e0] sm:$0xff] %v5758_v53  ;;  %v5795_v52 = vpop.permute.xlu1 %5794  ;;  %v5717_v15 = vpop.permute.xlu0 %5716 }
0x19ae   :  { %v5740_v39 = vsel %vm819_vm6, %v5707_v28, %v5717_v15 }
0x19af   :  { %v5759_v45 = vmul.f32 %v5740_v39, %v12401_v63  ;;  %v12405_v39 = vld [vmem:[#allocation52_spill] sm:$0xff] }
0x19b1   :  { %5779 = vst [vmem:[#allocation2 + $0x3e8] sm:$0xff] %v5759_v45  ;;  %v5815_v61 = vpop.permute.xlu1 %5814  ;;  %v5727_v60 = vpop.permute.xlu0 %5726 }
0x19b2   :  { %v5735_v30 = vsel %vm819_vm6, %v5717_v15, %v5727_v60  ;;  %v5750_v49 = vsel %vm819_vm6, %v5727_v60, %v5697_v13 }
0x19b3   :  { %v5760_v40 = vmul.f32 %v5735_v30, %v12402_v21  ;;  %v5761_v9 = vmul.f32 %v5750_v49, %v12403_v33  ;;  %v12406_v49 = vld [vmem:[#allocation53_spill] sm:$0xff] }
0x19b5   :  { %5780 = vst [vmem:[#allocation2 + $0x3f0] sm:$0xff] %v5760_v40  ;;  %5781 = vst [vmem:[#allocation2 + $0x3f8] sm:$0xff] %v5761_v9  ;;  %v10878_v10 = vpop.permute.xlu1 %5796  ;;  %v5713_v27 = vpop.permute.xlu0 %5712  ;;  %v12407_v9 = vld [vmem:[#allocation51_spill] sm:$0xff] }
0x19b6   :  { %v5743_v4 = vsel %vm819_vm6, %v5713_v27, %v5723_v14  ;;  %v5748_v31 = vsel %vm819_vm6, %v5703_v20, %v5713_v27 }
0x19b7   :  { %v5770_v57 = vmul.f32 %v5748_v31, %v12400_v8  ;;  %v5771_v41 = vmul.f32 %v5743_v4, %v12401_v63 }
0x19b9   :  { %5790 = vst [vmem:[#allocation2 + $0x440] sm:$0xff] %v5770_v57  ;;  %5791 = vst [vmem:[#allocation2 + $0x448] sm:$0xff] %v5771_v41  ;;  %v10886_v18 = vpop.permute.xlu1 %5806  ;;  %v5733_v50 = vpop.permute.xlu0 %5732 }
0x19ba   :  { %v5845_v29 = vsel %vm889_vm7, %v10878_v10, %v10886_v18  ;;  %v5738_v2 = vsel %vm819_vm6, %v5723_v14, %v5733_v50  ;;  %v5753_v26 = vsel %vm819_vm6, %v5733_v50, %v5703_v20 }
0x19bb   :  { %v5858_v19 = vmul.f32 %v5845_v29, %v12404_v0  ;;  %v5772_v13 = vmul.f32 %v5738_v2, %v12402_v21  ;;  %v5773_v28 = vmul.f32 %v5753_v26, %v12403_v33 }
0x19bd   :  { %5878 = vst [vmem:[#allocation2 + $0x480] sm:$0xff] %v5858_v19  ;;  %5792 = vst [vmem:[#allocation2 + $0x450] sm:$0xff] %v5772_v13  ;;  %v5805_v62 = vpop.permute.xlu0 %5804  ;;  %v5230_v13 = vsel %vm463_vm1, %v10595_v46, %v10567_v58 }
0x19be   :  { %5793 = vst [vmem:[#allocation2 + $0x458] sm:$0xff] %v5773_v28  ;;  %v5839_v53 = vsel %vm889_vm7, %v5805_v62, %v5815_v61  ;;  %v5844_v15 = vsel %vm889_vm7, %v5795_v52, %v5805_v62  ;;  %v5220_v62 = vsel %vm463_vm1, %v10575_v59, %v10585_v47  ;;  %v5996_v47 = vld [vmem:[#allocation2 + $0x10] sm:$0xff] }
0x19bf   :  { %v5854_v14 = vmul.f32 %v5844_v15, %v12404_v0  ;;  %v5855_v20 = vmul.f32 %v5839_v53, %v12405_v39 }
0x19c1   :  { %5874 = vst [vmem:[#allocation2 + $0x460] sm:$0xff] %v5854_v14  ;;  %5875 = vst [vmem:[#allocation2 + $0x468] sm:$0xff] %v5855_v20  ;;  %v5825_v45 = vpop.permute.xlu0 %5824  ;;  %v5238_v20 = vmul.f32 %v5230_v13, %v9152_v22 }
0x19c2   :  { %v5834_v60 = vsel %vm889_vm7, %v5815_v61, %v5825_v45  ;;  %v5849_v30 = vsel %vm889_vm7, %v5825_v45, %v5795_v52 }
0x19c3   :  { %v5856_v40 = vmul.f32 %v5834_v60, %v12406_v49  ;;  %v5857_v27 = vmul.f32 %v5849_v30, %v12407_v9  ;;  %v5240_v30 = vmul.f32 %v5220_v62, %v9161_v25  ;;  %v6174_v59 = vpack.c.bf16 %v5238_v20, %v5994_v16 }
0x19c5   :  { %5876 = vst [vmem:[#allocation2 + $0x470] sm:$0xff] %v5856_v40  ;;  %5877 = vst [vmem:[#allocation2 + $0x478] sm:$0xff] %v5857_v27 }
0x19e0   :  { %v10911_v4 = vpop.permute.xlu0 %5278  ;;  %v10913_v31 = vpop.permute.xlu1 %5178 }
0x19e4   :  { %v10915_v57 = vpop.permute.xlu0 %5298  ;;  %v10917_v41 = vpop.permute.xlu1 %5198 }
0x19e8   :  { %v10919_v50 = vpop.permute.xlu0 %5478 }
0x19e9   :  { %v10921_v61 = vpop.permute.xlu1 %5378 }
0x19ed   :  { %v10923_v29 = vpop.permute.xlu0 %5498 }
0x19ee   :  { %v10925_v52 = vpop.permute.xlu1 %5398 }
0x19f1   :  { %v5599_v2 = vpop.permute.xlu0 %5598 }
0x19f2   :  { %v5699_v26 = vpop.permute.xlu1 %5698 }
0x19f5   :  { %v5619_v19 = vpop.permute.xlu0 %5618 }
0x19f6   :  { %v5719_v28 = vpop.permute.xlu1 %5718  ;;  %v4868_v53 = vpop.f32.mrb[56].mxu0 }
0x19f7   :  { %v4869_v15 = vadd.f32 %v4868_v53, %v10558_v37  ;;  %v8348_v14 = vpop.f32.mrb[57].mxu0  ;;  %v6176_v37 = vpack.c.bf16 %v5240_v30, %v5996_v47 }
0x19f8   :  { %v4871_v60 = vpop.f32.mrb[58].mxu0 }
0x19f9   :  { %v10937_v45 = vpop.permute.xlu0 %5798  ;;  %v4874_v40 = vmax.f32 %v4869_v15, 0.0  ;;  %v8349_v58 = vpop.f32.mrb[59].mxu0 }
0x19fa   :  { %v10940_v27 = vpop.permute.xlu1 %5188 }
0x19fb   :  { %v4875_v46 = vpack.c.bf16 %v4874_v40, %v4874_v40 }
0x19fd   :  { %v10942_v32 = vpop.permute.xlu0 %5288  ;;  %5101 = vmatmul.mubr.bf16.vlgmr.msra.gmra.mrb[60].mxu0 %v4875_v46  ;;  %5142 = vmatmul.mubr.bf16.vlgmr.msra.gmra.mrb[60].mxu1 %v4875_v46 }
0x19fe   :  { %v10944_v38 = vpop.permute.xlu1 %5208  ;;  %6314 = vmatpush1.bf16.msra.mxu0 %v6174_v59  ;;  %6400 = vmatpush1.bf16.msra.mxu1 %v6176_v37 }
0x1a01   :  { %v10946_v13 = vpop.permute.xlu0 %5308 }
0x1a02   :  { %v10948_v62 = vpop.permute.xlu1 %5388 }
0x1a05   :  { %v10950_v53 = vpop.permute.xlu0 %5488 }
0x1a06   :  { %v10952_v15 = vpop.permute.xlu1 %5408 }
0x1a09   :  { %v10954_v14 = vpop.permute.xlu0 %5508 }
0x1a0a   :  { %v5709_v60 = vpop.permute.xlu1 %5708 }
0x1a0b   :  { %v5741_v16 = vsel %vm819_vm6, %v5709_v60, %v5719_v28  ;;  %v5746_v20 = vsel %vm819_vm6, %v5699_v26, %v5709_v60 }
0x1a0c   :  { %v5762_v30 = vmul.f32 %v5746_v20, %v12400_v8  ;;  %v5763_v40 = vmul.f32 %v5741_v16, %v12401_v63  ;;  %v8705_v63 = vld [vmem:[#allocation3 + $0x18] sm:$0xff]  ;;  %v8706_v8 = vld [vmem:[#allocation3 + $0x28] sm:$0xff] }
0x1a0d   :  { %v5609_v58 = vpop.permute.xlu0 %5608 }
0x1a0e   :  { %5782 = vst [vmem:[#allocation2 + $0x400] sm:$0xff] %v5762_v30  ;;  %5783 = vst [vmem:[#allocation2 + $0x408] sm:$0xff] %v5763_v40  ;;  %v5641_v46 = vsel %vm749_vm5, %v5609_v58, %v5619_v19  ;;  %v5646_v59 = vsel %vm749_vm5, %v5599_v2, %v5609_v58  ;;  %v5729_v47 = vpop.permute.xlu1 %5728 }
0x1a0f   :  { %v10967_v37 = vmul.f32 %v5646_v59, %v12396_v35  ;;  %v10970_v54 = vmul.f32 %v5641_v46, %v12397_v51  ;;  %v5736_v60 = vsel %vm819_vm6, %v5719_v28, %v5729_v47  ;;  %v5751_v16 = vsel %vm819_vm6, %v5729_v47, %v5699_v26 }
0x1a10   :  { %v5764_v20 = vmul.f32 %v5736_v60, %v12402_v21  ;;  %v5765_v30 = vmul.f32 %v5751_v16, %v12403_v33 }
0x1a11   :  { %12408 = vst [vmem:[#allocation50_spill] sm:$0xff] %v10967_v37  ;;  %12409 = vst [vmem:[#allocation52_spill] sm:$0xff] %v10970_v54  ;;  %v5629_v40 = vpop.permute.xlu0 %5628 }
0x1a12   :  { %5784 = vst [vmem:[#allocation2 + $0x410] sm:$0xff] %v5764_v20  ;;  %5785 = vst [vmem:[#allocation2 + $0x418] sm:$0xff] %v5765_v30  ;;  %v5636_v58 = vsel %vm749_vm5, %v5619_v19, %v5629_v40  ;;  %v5651_v46 = vsel %vm749_vm5, %v5629_v40, %v5599_v2 }
0x1a13   :  { %v10983_v59 = vmul.f32 %v5636_v58, %v12398_v6  ;;  %v10986_v28 = vmul.f32 %v5651_v46, %v12399_v3  ;;  %v8696_v46 = vld [vmem:[#allocation3 + $0x38] sm:$0xff] }
0x1a15   :  { %12410 = vst [vmem:[#allocation58_spill] sm:$0xff] %v10983_v59  ;;  %12411 = vst [vmem:[#allocation59_spill] sm:$0xff] %v10986_v28 }
0x1ad0   :  { %v5102_v26 = vpop.f32.mrb[60].mxu0  ;;  %v5143_v47 = vpop.f32.mrb[60].mxu1 }
0x1ad1   :  { %5150 = vst [vmem:[#allocation3 + $0x60] sm:$0xf] %v5102_v26  ;;  %5152 = vst [vmem:[#allocation3 + $0x70] sm:$0xf] %v5143_v47  ;;  %v5104_v60 = vpop.f32.mrb[61].mxu0  ;;  %v5145_v16 = vpop.f32.mrb[61].mxu1 }
0x1ad2   :  { %5151 = vst [vmem:[#allocation3 + $0x68] sm:$0xf] %v5104_v60  ;;  %5153 = vst [vmem:[#allocation3 + $0x78] sm:$0xf] %v5145_v16  ;;  %v5106_v20 = vpop.f32.mrb[62].mxu0  ;;  %v5147_v30 = vpop.f32.mrb[62].mxu1 }
0x1ad3   :  { %v5107_v19 = vpop.f32.mrb[63].mxu0  ;;  %v5148_v33 = vpop.f32.mrb[63].mxu1  ;;  %v8697_v26 = vld [vmem:[#allocation3] sm:$0xff]  ;;  %v8699_v60 = vld [vmem:[#allocation2 + $0x308] sm:$0xff]  ;;  %v8700_v16 = vld [vmem:[#allocation2 + $0x310] sm:$0xff] }
0x1ad4   :  { %v8695_v33 = vld [vmem:[#allocation3 + $0x30] sm:$0xff]  ;;  %v8698_v47 = vld [vmem:[#allocation2 + $0x300] sm:$0xff]  ;;  %v8701_v20 = vld [vmem:[#allocation3 + $0x8] sm:$0xff] }
0x1ad5   :  { %v8702_v30 = vld [vmem:[#allocation2 + $0x318] sm:$0xff]  ;;  %v8703_v19 = vld [vmem:[#allocation3 + $0x10] sm:$0xff] }
0x1ad8   :  { %v10988_v21 = vld [vmem:[#allocation3 + $0x60] sm:$0xff]  ;;  %v10990_v2 = vld [vmem:[#allocation3 + $0x70] sm:$0xff] }
0x1ad9   :  { %5180 = vrot.lane.b32.xlu0 %v10988_v21, %s8777_s0  ;;  %5280 = vrot.lane.b32.xlu1 %v10988_v21, %s8779_s5  ;;  %v10996_v40 = vld [vmem:[#allocation3 + $0x68] sm:$0xff]  ;;  %v10998_v58 = vld [vmem:[#allocation3 + $0x78] sm:$0xff] }
0x1add   :  { %5200 = vrot.lane.b32.xlu0 %v10990_v2, %s8777_s0  ;;  %5300 = vrot.lane.b32.xlu1 %v10990_v2, %s8779_s5 }
0x1ae1   :  { %5380 = vrot.lane.b32.xlu0 %v10988_v21, %s8780_s9  ;;  %5480 = vrot.lane.b32.xlu1 %v10988_v21, %s8781_s16 }
0x1ae5   :  { %5400 = vrot.lane.b32.xlu0 %v10990_v2, %s8780_s9  ;;  %5500 = vrot.lane.b32.xlu1 %v10990_v2, %s8781_s16 }
0x1ae9   :  { %5700 = vrot.lane.b32.xlu0 %v10988_v21, %s8783_s22  ;;  %5600 = vrot.lane.b32.xlu1 %v10988_v21, %s8782_s18 }
0x1aed   :  { %5720 = vrot.lane.b32.xlu0 %v10990_v2, %s8783_s22  ;;  %5620 = vrot.lane.b32.xlu1 %v10990_v2, %s8782_s18 }
0x1af1   :  { %5190 = vrot.lane.b32.xlu0 %v10996_v40, %s8777_s0  ;;  %5816 = vrot.lane.b32.xlu1 %v8695_v33, %s8784_s23 }
0x1af5   :  { %5210 = vrot.lane.b32.xlu0 %v10998_v58, %s8777_s0  ;;  %5826 = vrot.lane.b32.xlu1 %v8696_v46, %s8784_s23 }
0x1af9   :  { %5808 = vrot.lane.b32.xlu0 %v10716_v55, %s8784_s23  ;;  %5290 = vrot.lane.b32.xlu1 %v10996_v40, %s8779_s5 }
0x1afd   :  { %5818 = vrot.lane.b32.xlu0 %v10708_v56, %s8784_s23  ;;  %5310 = vrot.lane.b32.xlu1 %v10998_v58, %s8779_s5 }
0x1b01   :  { %5828 = vrot.lane.b32.xlu0 %v10718_v34, %s8784_s23  ;;  %5800 = vrot.lane.b32.xlu1 %v10988_v21, %s8784_s23 }
0x1b05   :  { %5390 = vrot.lane.b32.xlu0 %v10996_v40, %s8780_s9  ;;  %5820 = vrot.lane.b32.xlu1 %v10990_v2, %s8784_s23 }
0x1b09   :  { %5410 = vrot.lane.b32.xlu0 %v10998_v58, %s8780_s9  ;;  %5894 = vrot.lane.b32.xlu1 %v8697_v26, %s8785_s26  ;;  %v8704_v26 = vld [vmem:[#allocation3 + $0x20] sm:$0xff] }
0x1b0d   :  { %5802 = vrot.lane.b32.xlu0 %v8698_v47, %s8784_s23  ;;  %5490 = vrot.lane.b32.xlu1 %v10996_v40, %s8781_s16 }
0x1b11   :  { %5812 = vrot.lane.b32.xlu0 %v8699_v60, %s8784_s23  ;;  %5510 = vrot.lane.b32.xlu1 %v10998_v58, %s8781_s16 }
0x1b15   :  { %5822 = vrot.lane.b32.xlu0 %v8700_v16, %s8784_s23  ;;  %5904 = vrot.lane.b32.xlu1 %v8701_v20, %s8785_s26  ;;  %v8664_v20 = vld [vmem:[%s12412_s20 + $0x4] ss:$12 sps:$4 sm:$0xff]  }
0x1b16   :  { %6345 = vmatprep.mubr.bf16.mxu0 %v8664_v20  ;;  %6431 = vmatprep.mubr.bf16.mxu1 %v8664_v20  ;;  %v5226_v20 = vsel %vm463_vm1, %v10913_v31, %v10940_v27 }
0x1b17   :  { %v5243_v3 = vmul.f32 %v5226_v20, %v9158_v24 }
0x1b19   :  { %5832 = vrot.lane.b32.xlu0 %v8702_v30, %s8784_s23  ;;  %5914 = vrot.lane.b32.xlu1 %v8703_v19, %s8785_s26 }
0x1b1d   :  { %5896 = vrot.lane.b32.xlu0 %v8704_v26, %s8785_s26  ;;  %5924 = vrot.lane.b32.xlu1 %v8705_v63, %s8785_s26 }
0x1b21   :  { %5906 = vrot.lane.b32.xlu0 %v8706_v8, %s8785_s26  ;;  %5610 = vrot.lane.b32.xlu1 %v10996_v40, %s8782_s18 }
0x1b25   :  { %5916 = vrot.lane.b32.xlu0 %v8695_v33, %s8785_s26  ;;  %5630 = vrot.lane.b32.xlu1 %v10998_v58, %s8782_s18 }
0x1b29   :  { %5926 = vrot.lane.b32.xlu0 %v8696_v46, %s8785_s26  ;;  %5898 = vrot.lane.b32.xlu1 %v10706_v11, %s8785_s26  ;;  %v6270_v11 = vld [vmem:[%s12413_s13] sm:$0xff] }
0x1b2d   :  { %5710 = vrot.lane.b32.xlu0 %v10996_v40, %s8783_s22  ;;  %5908 = vrot.lane.b32.xlu1 %v10716_v55, %s8785_s26 }
0x1b31   :  { %5730 = vrot.lane.b32.xlu0 %v10998_v58, %s8783_s22  ;;  %5918 = vrot.lane.b32.xlu1 %v10708_v56, %s8785_s26  ;;  %v6271_v56 = vld [vmem:[%s12413_s13 + $0x8] sm:$0xff] }
0x1b35   :  { %5900 = vrot.lane.b32.xlu0 %v10988_v21, %s8785_s26  ;;  %5810 = vrot.lane.b32.xlu1 %v10996_v40, %s8784_s23 }
0x1b39   :  { %5920 = vrot.lane.b32.xlu0 %v10990_v2, %s8785_s26  ;;  %5830 = vrot.lane.b32.xlu1 %v10998_v58, %s8784_s23 }
0x1b3d   :  { %5912 = vrot.lane.b32.xlu0 %v8699_v60, %s8785_s26  ;;  %5928 = vrot.lane.b32.xlu1 %v10718_v34, %s8785_s26 }
0x1b41   :  { %5910 = vrot.lane.b32.xlu0 %v10996_v40, %s8785_s26  ;;  %5902 = vrot.lane.b32.xlu1 %v8698_v47, %s8785_s26 }
0x1b45   :  { %5930 = vrot.lane.b32.xlu0 %v10998_v58, %s8785_s26  ;;  %5922 = vrot.lane.b32.xlu1 %v8700_v16, %s8785_s26 }
0x1b49   :  { %5932 = vrot.lane.b32.xlu0 %v8702_v30, %s8785_s26  ;;  %6274 = vperm.xlu1 %8459, %v6270_v11   ;;  %v5216_v11 = vsel %vm463_vm1, %v10917_v41, %v10944_v38 }
0x1b4b   :  { %v5181_v55 = vpop.permute.xlu0 %5180  ;;  %v11095_v8 = vpop.permute.xlu1 %5280 }
0x1b4d   :  { %6279 = vperm.xlu0 %8438, %v6271_v56  }
0x1b4f   :  { %v5201_v34 = vpop.permute.xlu0 %5200  ;;  %v11097_v63 = vpop.permute.xlu1 %5300 }
0x1b53   :  { %v11099_v33 = vpop.permute.xlu0 %5380  ;;  %v11101_v46 = vpop.permute.xlu1 %5480 }
0x1b57   :  { %v11103_v47 = vpop.permute.xlu0 %5400  ;;  %v11105_v60 = vpop.permute.xlu1 %5500 }
0x1b5b   :  { %v11107_v16 = vpop.permute.xlu0 %5700  ;;  %v11109_v30 = vpop.permute.xlu1 %5600 }
0x1b5c   :  { %12414 = vst [vmem:[#allocation60_spill] sm:$0xff] %v11107_v16  ;;  %v5231_v16 = vsel %vm463_vm1, %v10944_v38, %v10913_v31  ;;  %v5221_v38 = vsel %vm463_vm1, %v10940_v27, %v10917_v41  ;;  %v5326_v31 = vsel %vm536_vm2, %v10911_v4, %v10942_v32 }
0x1b5f   :  { %v11111_v19 = vpop.permute.xlu0 %5720  ;;  %v11113_v26 = vpop.permute.xlu1 %5620 }
0x1b60   :  { %12415 = vst [vmem:[#allocation61_spill] sm:$0xff] %v11111_v19 }
0x1b63   :  { %v5191_v56 = vpop.permute.xlu0 %5190  ;;  %v5817_v59 = vpop.permute.xlu1 %5816 }
0x1b64   :  { %v5222_v19 = vsel %vm463_vm1, %v5191_v56, %v5201_v34  ;;  %v5227_v37 = vsel %vm463_vm1, %v5181_v55, %v5191_v56  ;;  %v5840_v28 = vsel %vm889_vm7, %v10886_v18, %v5817_v59  ;;  %v5242_v56 = vmul.f32 %v5231_v16, %v9152_v22 }
0x1b65   :  { %v5247_v6 = vmul.f32 %v5227_v37, %v9158_v24  ;;  %v11137_v54 = vmul.f32 %v5840_v28, %v12405_v39  ;;  %v5245_v18 = vmul.f32 %v5216_v11, %v9155_v23  ;;  %v5248_v20 = vmul.f32 %v5222_v19, %v9161_v25  ;;  %v6017_v11 = vld [vmem:[#allocation2 + $0xb8] sm:$0xff] }
0x1b67   :  { %12416 = vst [vmem:[#allocation62_spill] sm:$0xff] %v11137_v54  ;;  %v5211_v37 = vpop.permute.xlu0 %5210  ;;  %v5827_v24 = vpop.permute.xlu1 %5826  ;;  %v6179_v28 = vpack.c.bf16 %v5247_v6, %v5243_v3  ;;  %v6015_v54 = vld [vmem:[#allocation2 + $0xa8] sm:$0xff] }
0x1b68   :  { %v5217_v51 = vsel %vm463_vm1, %v5201_v34, %v5211_v37  ;;  %v5232_v41 = vsel %vm463_vm1, %v5211_v37, %v5181_v55  ;;  %v5835_v27 = vsel %vm889_vm7, %v5817_v59, %v5827_v24  ;;  %v5850_v16 = vsel %vm889_vm7, %v5827_v24, %v10878_v10  ;;  %v6011_v55 = vld [vmem:[#allocation2 + $0x88] sm:$0xff]  ;;  %v6013_v59 = vld [vmem:[#allocation2 + $0x98] sm:$0xff] }
0x1b69   :  { %v5246_v19 = vmul.f32 %v5232_v41, %v9152_v22  ;;  %v5249_v35 = vmul.f32 %v5217_v51, %v9155_v23  ;;  %v11162_v6 = vmul.f32 %v5835_v27, %v12406_v49  ;;  %v11165_v3 = vmul.f32 %v5850_v16, %v12407_v9  ;;  %6315 = vmatprep.subr.bf16.mxu0 %v6179_v28  ;;  %v6016_v16 = vld [vmem:[#allocation2 + $0xb0] sm:$0xff] }
0x1b6a   :  { %v5244_v34 = vmul.f32 %v5221_v38, %v9161_v25  ;;  %v5316_v24 = vsel %vm536_vm2, %v10915_v57, %v10946_v13  ;;  %v6183_v10 = vpack.c.bf16 %v6015_v54, %v6011_v55  ;;  %v5343_v37 = vmul.f32 %v5326_v31, %v9181_v42  ;;  %v6014_v55 = vld [vmem:[#allocation2 + $0xa0] sm:$0xff] }
0x1b6b   :  { %v5809_v51 = vpop.permute.xlu0 %5808  ;;  %v5291_v41 = vpop.permute.xlu1 %5290  ;;  %v6178_v27 = vpack.c.bf16 %v5246_v19, %v5242_v56  ;;  %v6181_v23 = vpack.c.bf16 %v5249_v35, %v5245_v18  ;;  %v6185_v22 = vpack.c.bf16 %v6017_v11, %v6013_v59  ;;  %v5321_v38 = vsel %vm536_vm2, %v10942_v32, %v10915_v57  ;;  %v6012_v57 = vld [vmem:[#allocation2 + $0x90] sm:$0xff] }
0x1b6c   :  { %v5331_v28 = vsel %vm536_vm2, %v10946_v13, %v10911_v4  ;;  %v5846_v54 = vsel %vm889_vm7, %v10937_v45, %v5809_v51  ;;  %v6180_v31 = vpack.c.bf16 %v5248_v20, %v5244_v34  ;;  %v5345_v35 = vmul.f32 %v5316_v24, %v9194_v48  ;;  %v6010_v4 = vld [vmem:[#allocation2 + $0x80] sm:$0xff]  ;;  %v6019_v13 = vld [vmem:[#allocation2 + $0xc8] sm:$0xff] }
0x1b6d   :  { %v11186_v56 = vmul.f32 %v5846_v54, %v12404_v0  ;;  %v5327_v32 = vsel %vm536_vm2, %v11095_v8, %v5291_v41  ;;  %6316 = vmatpush1.bf16.msra.mxu0 %v6178_v27  ;;  %6401 = vmatprep.subr.bf16.mxu1 %v6181_v23  ;;  %v6184_v18 = vpack.c.bf16 %v6016_v16, %v6012_v57  ;;  %v6021_v16 = vld [vmem:[#allocation2 + $0xd8] sm:$0xff] }
0x1b6e   :  { %6317 = vmatprep.subr.bf16.mxu0 %v6183_v10  ;;  %6402 = vmatpush1.bf16.msra.mxu1 %v6180_v31  ;;  %v5344_v20 = vmul.f32 %v5321_v38, %v9187_v44  ;;  %v5342_v11 = vmul.f32 %v5331_v28, %v9184_v43  ;;  %v6182_v24 = vpack.c.bf16 %v6014_v55, %v6010_v4  ;;  %v6018_v28 = vld [vmem:[#allocation2 + $0xc0] sm:$0xff]  ;;  %v6020_v31 = vld [vmem:[#allocation2 + $0xd0] sm:$0xff]  ;;  %v6031_v4 = vld [vmem:[#allocation2 + $0x128] sm:$0xff] }
0x1b6f   :  { %v5819_v19 = vpop.permute.xlu0 %5818  ;;  %v5311_v34 = vpop.permute.xlu1 %5310  ;;  %6403 = vmatprep.subr.bf16.mxu1 %v6185_v22  ;;  %v6187_v59 = vpack.c.bf16 %v5343_v37, %v6019_v13  ;;  %v5347_v54 = vmul.f32 %v5327_v32, %v9181_v42  ;;  %v5322_v22 = vsel %vm536_vm2, %v5291_v41, %v11097_v63 }
0x1b70   :  { %v5841_v23 = vsel %vm889_vm7, %v5809_v51, %v5819_v19  ;;  %v5317_v10 = vsel %vm536_vm2, %v11097_v63, %v5311_v34  ;;  %v5332_v27 = vsel %vm536_vm2, %v5311_v34, %v11095_v8  ;;  %v6189_v51 = vpack.c.bf16 %v5345_v35, %v6021_v16  ;;  %v6033_v34 = vld [vmem:[#allocation2 + $0x138] sm:$0xff]  ;;  %v6035_v16 = vld [vmem:[#allocation2 + $0x148] sm:$0xff] }
0x1b71   :  { %v11206_v37 = vmul.f32 %v5841_v23, %v12405_v39  ;;  %v5349_v38 = vmul.f32 %v5317_v10, %v9194_v48  ;;  %6318 = vmatpush1.bf16.msra.mxu0 %v6182_v24  ;;  %v5346_v55 = vmul.f32 %v5332_v27, %v9184_v43  ;;  %v6186_v57 = vpack.c.bf16 %v5342_v11, %v6018_v28  ;;  %v6030_v23 = vld [vmem:[#allocation2 + $0x120] sm:$0xff] }
0x1b72   :  { %6319 = vmatprep.subr.bf16.mxu0 %v6187_v59  ;;  %6404 = vmatpush1.bf16.msra.mxu1 %v6184_v18  ;;  %v6188_v63 = vpack.c.bf16 %v5344_v20, %v6020_v31  ;;  %v5348_v41 = vmul.f32 %v5322_v22, %v9187_v44  ;;  %v6191_v18 = vpack.c.bf16 %v6031_v4, %v5347_v54  ;;  %v6039_v20 = vld [vmem:[#allocation2 + $0x168] sm:$0xff]  ;;  %v6032_v22 = vld [vmem:[#allocation2 + $0x130] sm:$0xff] }
0x1b73   :  { %v5829_v32 = vpop.permute.xlu0 %5828  ;;  %v11210_v8 = vpop.permute.xlu1 %5800  ;;  %6405 = vmatprep.subr.bf16.mxu1 %v6189_v51  ;;  %v6193_v11 = vpack.c.bf16 %v6033_v34, %v5349_v38  ;;  %v6190_v27 = vpack.c.bf16 %v6030_v23, %v5346_v55  ;;  %v6040_v51 = vld [vmem:[#allocation2 + $0x170] sm:$0xff]  ;;  %v6195_v28 = vpack.c.bf16 %v6039_v20, %v6035_v16  ;;  %v6055_v4 = vld [vmem:[#allocation2 + $0x1e8] sm:$0xff]  ;;  %v5416_v34 = vsel %vm606_vm3, %v10925_v52, %v10952_v15 }
0x1b74   :  { %v5836_v13 = vsel %vm889_vm7, %v5819_v19, %v5829_v32  ;;  %v5851_v35 = vsel %vm889_vm7, %v5829_v32, %v10937_v45  ;;  %v5426_v19 = vsel %vm606_vm3, %v10921_v61, %v10948_v62  ;;  %v6041_v45 = vld [vmem:[#allocation2 + $0x178] sm:$0xff]  ;;  %v6192_v31 = vpack.c.bf16 %v6032_v22, %v5348_v41 }
0x1b75   :  { %v11219_v24 = vmul.f32 %v5836_v13, %v12406_v49  ;;  %v11222_v59 = vmul.f32 %v5851_v35, %v12407_v9  ;;  %6320 = vmatpush1.bf16.msra.mxu0 %v6186_v57  ;;  %v6037_v32 = vld [vmem:[#allocation2 + $0x158] sm:$0xff]  ;;  %v6038_v57 = vld [vmem:[#allocation2 + $0x160] sm:$0xff]  ;;  %v5431_v41 = vsel %vm606_vm3, %v10952_v15, %v10921_v61  ;;  %v5421_v23 = vsel %vm606_vm3, %v10948_v62, %v10925_v52 }
0x1b76   :  { %6321 = vmatprep.subr.bf16.mxu0 %v6191_v18  ;;  %6406 = vmatpush1.bf16.msra.mxu1 %v6188_v63  ;;  %v5443_v63 = vmul.f32 %v5426_v19, %v9212_v1  ;;  %v6197_v35 = vpack.c.bf16 %v6041_v45, %v6037_v32  ;;  %v6036_v18 = vld [vmem:[#allocation2 + $0x150] sm:$0xff]  ;;  %v6051_v19 = vld [vmem:[#allocation2 + $0x1c8] sm:$0xff]  ;;  %v5526_v61 = vsel %vm676_vm4, %v10919_v50, %v10950_v53 }
0x1b77   :  { %v5391_v54 = vpop.permute.xlu0 %5390  ;;  %v11228_v10 = vpop.permute.xlu1 %5820  ;;  %6407 = vmatprep.subr.bf16.mxu1 %v6193_v11  ;;  %v6034_v11 = vld [vmem:[#allocation2 + $0x140] sm:$0xff]  ;;  %v6196_v20 = vpack.c.bf16 %v6040_v51, %v6036_v18  ;;  %v6203_v22 = vpack.c.bf16 %v6055_v4, %v6051_v19  ;;  %v5442_v62 = vmul.f32 %v5431_v41, %v9215_v5  ;;  %v5444_v4 = vmul.f32 %v5421_v23, %v9218_v7  ;;  %v6056_v19 = vld [vmem:[#allocation2 + $0x1f0] sm:$0xff] }
0x1b78   :  { %v5427_v38 = vsel %vm606_vm3, %v11099_v33, %v5391_v54  ;;  %v5422_v13 = vsel %vm606_vm3, %v5391_v54, %v11103_v47  ;;  %v5531_v41 = vsel %vm676_vm4, %v10954_v14, %v10919_v50  ;;  %v12417_v23 = vld [vmem:[#allocation41_spill] sm:$0xff]  ;;  %v6050_v50 = vld [vmem:[#allocation2 + $0x1c0] sm:$0xff] }
0x1b79   :  { %v5447_v55 = vmul.f32 %v5427_v38, %v9212_v1  ;;  %6322 = vmatpush1.bf16.msra.mxu0 %v6190_v27  ;;  %v6194_v27 = vpack.c.bf16 %v6038_v57, %v6034_v11  ;;  %v6057_v38 = vld [vmem:[#allocation2 + $0x1f8] sm:$0xff]  ;;  %v5448_v15 = vmul.f32 %v5422_v13, %v9218_v7  ;;  %v5543_v13 = vmul.f32 %v5526_v61, %v9243_v36 }
0x1b7a   :  { %6323 = vmatprep.subr.bf16.mxu0 %v6195_v28  ;;  %6408 = vmatpush1.bf16.msra.mxu1 %v6192_v31  ;;  %v5445_v28 = vmul.f32 %v5416_v34, %v9225_v12  ;;  %v6053_v57 = vld [vmem:[#allocation2 + $0x1d8] sm:$0xff] }
0x1b7b   :  { %v5411_v45 = vpop.permute.xlu0 %5410  ;;  %v11250_v54 = vpop.permute.xlu1 %5894  ;;  %6409 = vmatprep.subr.bf16.mxu1 %v6197_v35  ;;  %v6199_v16 = vpack.c.bf16 %v5447_v55, %v5443_v63  ;;  %v5521_v63 = vsel %vm676_vm4, %v10950_v53, %v10923_v29  ;;  %v6200_v53 = vpack.c.bf16 %v5448_v15, %v5444_v4 }
0x1b7c   :  { %v5417_v51 = vsel %vm606_vm3, %v11103_v47, %v5411_v45  ;;  %v5432_v52 = vsel %vm606_vm3, %v5411_v45, %v11099_v33  ;;  %v5516_v47 = vsel %vm676_vm4, %v10923_v29, %v10954_v14  ;;  %v6205_v33 = vpack.c.bf16 %v6057_v38, %v6053_v57  ;;  %v6052_v14 = vld [vmem:[#allocation2 + $0x1d0] sm:$0xff] }
0x1b7d   :  { %v5446_v31 = vmul.f32 %v5432_v52, %v9215_v5  ;;  %v5449_v32 = vmul.f32 %v5417_v51, %v9225_v12  ;;  %6324 = vmatpush1.bf16.msra.mxu0 %v6194_v27  ;;  %v5545_v45 = vmul.f32 %v5516_v47, %v12417_v23  ;;  %v12419_v51 = vld [vmem:[#allocation39_spill] sm:$0xff] }
0x1b7e   :  { %6325 = vmatprep.subr.bf16.mxu0 %v6199_v16  ;;  %6410 = vmatpush1.bf16.msra.mxu1 %v6196_v20  ;;  %v6054_v20 = vld [vmem:[#allocation2 + $0x1e0] sm:$0xff]  ;;  %v12418_v16 = vld [vmem:[#allocation40_spill] sm:$0xff]  ;;  %v5542_v52 = vmul.f32 %v5531_v41, %v12419_v51 }
0x1b7f   :  { %v11277_v55 = vpop.permute.xlu0 %5802  ;;  %v5491_v35 = vpop.permute.xlu1 %5490  ;;  %v6198_v18 = vpack.c.bf16 %v5446_v31, %v5442_v62  ;;  %v6201_v34 = vpack.c.bf16 %v5449_v32, %v5445_v28  ;;  %v5544_v61 = vmul.f32 %v5521_v63, %v12418_v16  ;;  %v6202_v28 = vpack.c.bf16 %v6054_v20, %v6050_v50  ;;  %v6059_v31 = vld [vmem:[#allocation2 + $0x208] sm:$0xff]  ;;  %v6061_v63 = vld [vmem:[#allocation2 + $0x218] sm:$0xff]  ;;  %v6058_v41 = vld [vmem:[#allocation2 + $0x200] sm:$0xff] }
0x1b80   :  { %v5522_v11 = vsel %vm676_vm4, %v5491_v35, %v11105_v60  ;;  %v5527_v29 = vsel %vm676_vm4, %v11101_v46, %v5491_v35  ;;  %v6204_v32 = vpack.c.bf16 %v6056_v19, %v6052_v14  ;;  %v6207_v47 = vpack.c.bf16 %v5543_v13, %v6059_v31  ;;  %v6073_v14 = vld [vmem:[#allocation2 + $0x278] sm:$0xff] }
0x1b81   :  { %v5547_v27 = vmul.f32 %v5527_v29, %v9243_v36  ;;  %v11292_v38 = vmul.f32 %v5522_v11, %v12418_v16  ;;  %6326 = vmatpush1.bf16.msra.mxu0 %v6198_v18  ;;  %6411 = vmatprep.subr.bf16.mxu1 %v6201_v34  ;;  %v6209_v34 = vpack.c.bf16 %v5545_v45, %v6061_v63  ;;  %v6079_v45 = vld [vmem:[#allocation2 + $0x2a8] sm:$0xff] }
0x1b82   :  { %6327 = vmatprep.subr.bf16.mxu0 %v6203_v22  ;;  %6412 = vmatpush1.bf16.msra.mxu1 %v6200_v53  ;;  %v6206_v29 = vpack.c.bf16 %v5542_v52, %v6058_v41  ;;  %v6071_v53 = vld [vmem:[#allocation2 + $0x268] sm:$0xff] }
0x1b83   :  { %v5813_v15 = vpop.permute.xlu0 %5812  ;;  %v5511_v62 = vpop.permute.xlu1 %5510  ;;  %6413 = vmatprep.subr.bf16.mxu1 %v6205_v33  ;;  %v6211_v19 = vpack.c.bf16 %v6071_v53, %v5547_v27  ;;  %v6078_v53 = vld [vmem:[#allocation2 + $0x2a0] sm:$0xff] }
0x1b84   :  { %v5848_v57 = vsel %vm889_vm7, %v11277_v55, %v5813_v15  ;;  %v5517_v22 = vsel %vm676_vm4, %v11105_v60, %v5511_v62  ;;  %v5532_v4 = vsel %vm676_vm4, %v5511_v62, %v11101_v46  ;;  %v6060_v46 = vld [vmem:[#allocation2 + $0x210] sm:$0xff] }
0x1b85   :  { %v11306_v35 = vmul.f32 %v5848_v57, %v12404_v0  ;;  %v5546_v33 = vmul.f32 %v5532_v4, %v12419_v51  ;;  %v5549_v18 = vmul.f32 %v5517_v22, %v12417_v23  ;;  %6328 = vmatpush1.bf16.msra.mxu0 %v6202_v28  ;;  %v6208_v50 = vpack.c.bf16 %v5544_v61, %v6060_v46  ;;  %v12420_v28 = vld [vmem:[#allocation54_spill] sm:$0xff]  ;;  %v6123_v51 = vld [vmem:[#allocation2 + $0x408] sm:$0xff] }
0x1b86   :  { %6329 = vmatprep.subr.bf16.mxu0 %v6207_v47  ;;  %6414 = vmatpush1.bf16.msra.mxu1 %v6204_v32  ;;  %v6070_v32 = vld [vmem:[#allocation2 + $0x260] sm:$0xff]  ;;  %v6081_v57 = vld [vmem:[#allocation2 + $0x2b8] sm:$0xff]  ;;  %v6072_v47 = vld [vmem:[#allocation2 + $0x270] sm:$0xff] }
0x1b87   :  { %v5823_v11 = vpop.permute.xlu0 %5822  ;;  %v5905_v60 = vpop.permute.xlu1 %5904  ;;  %6415 = vmatprep.subr.bf16.mxu1 %v6209_v34  ;;  %v6213_v52 = vpack.c.bf16 %v6073_v14, %v5549_v18  ;;  %v6210_v27 = vpack.c.bf16 %v6070_v32, %v5546_v33  ;;  %v6212_v41 = vpack.c.bf16 %v6072_v47, %v11292_v38  ;;  %v6083_v14 = vld [vmem:[#allocation2 + $0x2c8] sm:$0xff] }
0x1b88   :  { %v5843_v13 = vsel %vm889_vm7, %v5813_v15, %v5823_v11  ;;  %v5944_v20 = vsel %vm959_vm8, %v11250_v54, %v5905_v60  ;;  %v6075_v15 = vld [vmem:[#allocation2 + $0x288] sm:$0xff] }
0x1b89   :  { %v11316_v62 = vmul.f32 %v5843_v13, %v12405_v39  ;;  %v11319_v31 = vmul.f32 %v5944_v20, %v12420_v28  ;;  %6330 = vmatpush1.bf16.msra.mxu0 %v6206_v29  ;;  %v6215_v61 = vpack.c.bf16 %v6079_v45, %v6075_v15  ;;  %v6077_v29 = vld [vmem:[#allocation2 + $0x298] sm:$0xff]  ;;  %v12421_v13 = vld [vmem:[#allocation56_spill] sm:$0xff]  ;;  %v6219_v15 = vpack.c.bf16 %v10996_v40, %v6083_v14 }
0x1b8a   :  { %6331 = vmatprep.subr.bf16.mxu0 %v6211_v19  ;;  %6416 = vmatpush1.bf16.msra.mxu1 %v6208_v50  ;;  %v6080_v19 = vld [vmem:[#allocation2 + $0x2b0] sm:$0xff]  ;;  %v6093_v14 = vld [vmem:[#allocation2 + $0x318] sm:$0xff] }
0x1b8b   :  { %v5833_v22 = vpop.permute.xlu0 %5832  ;;  %v5915_v4 = vpop.permute.xlu1 %5914  ;;  %6417 = vmatprep.subr.bf16.mxu1 %v6213_v52  ;;  %v6076_v45 = vld [vmem:[#allocation2 + $0x290] sm:$0xff] }
0x1b8c   :  { %v5838_v63 = vsel %vm889_vm7, %v5823_v11, %v5833_v22  ;;  %v5853_v34 = vsel %vm889_vm7, %v5833_v22, %v11277_v55  ;;  %v5939_v18 = vsel %vm959_vm8, %v5905_v60, %v5915_v4  ;;  %v6217_v11 = vpack.c.bf16 %v6081_v57, %v6077_v29  ;;  %v6074_v55 = vld [vmem:[#allocation2 + $0x280] sm:$0xff]  ;;  %v6085_v22 = vld [vmem:[#allocation2 + $0x2d8] sm:$0xff] }
0x1b8d   :  { %v11330_v46 = vmul.f32 %v5838_v63, %v12406_v49  ;;  %v11333_v33 = vmul.f32 %v5853_v34, %v12407_v9  ;;  %v11336_v20 = vmul.f32 %v5939_v18, %v12421_v13  ;;  %6332 = vmatpush1.bf16.msra.mxu0 %v6210_v27  ;;  %v6214_v50 = vpack.c.bf16 %v6078_v53, %v6074_v55  ;;  %v6095_v27 = vld [vmem:[#allocation2 + $0x328] sm:$0xff]  ;;  %v6097_v29 = vld [vmem:[#allocation2 + $0x338] sm:$0xff] }
0x1b8e   :  { %6333 = vmatprep.subr.bf16.mxu0 %v6215_v61  ;;  %6418 = vmatpush1.bf16.msra.mxu1 %v6212_v41  ;;  %v6216_v57 = vpack.c.bf16 %v6080_v19, %v6076_v45  ;;  %v12422_v61 = vld [vmem:[#allocation57_spill] sm:$0xff]  ;;  %v12423_v63 = vld [vmem:[#allocation55_spill] sm:$0xff]  ;;  %v6221_v18 = vpack.c.bf16 %v10998_v58, %v6085_v22 }
0x1b8f   :  { %v11338_v60 = vpop.permute.xlu0 %5896  ;;  %v5925_v38 = vpop.permute.xlu1 %5924  ;;  %6419 = vmatprep.subr.bf16.mxu1 %v6217_v11  ;;  %v6091_v41 = vld [vmem:[#allocation2 + $0x308] sm:$0xff]  ;;  %v6084_v19 = vld [vmem:[#allocation2 + $0x2d0] sm:$0xff]  ;;  %v6094_v45 = vld [vmem:[#allocation2 + $0x320] sm:$0xff] }
0x1b90   :  { %v5934_v52 = vsel %vm959_vm8, %v5915_v4, %v5925_v38  ;;  %v5949_v32 = vsel %vm959_vm8, %v5925_v38, %v11250_v54  ;;  %v6082_v4 = vld [vmem:[#allocation2 + $0x2c0] sm:$0xff]  ;;  %v6223_v11 = vpack.c.bf16 %v6095_v27, %v6091_v41  ;;  %v6225_v27 = vpack.c.bf16 %v6097_v29, %v6093_v14  ;;  %v12427_v14 = vld [vmem:[#allocation45_spill] sm:$0xff] }
0x1b91   :  { %v11347_v47 = vmul.f32 %v5934_v52, %v12422_v61  ;;  %v11350_v34 = vmul.f32 %v5949_v32, %v12423_v63  ;;  %6334 = vmatpush1.bf16.msra.mxu0 %v6214_v50  ;;  %v6218_v40 = vpack.c.bf16 %v10988_v21, %v6082_v4  ;;  %v6220_v50 = vpack.c.bf16 %v10990_v2, %v6084_v19  ;;  %v6096_v52 = vld [vmem:[#allocation2 + $0x330] sm:$0xff]  ;;  %v12424_v32 = vld [vmem:[#allocation42_spill] sm:$0xff]  ;;  %v6099_v19 = vld [vmem:[#allocation2 + $0x348] sm:$0xff] }
0x1b92   :  { %6335 = vmatprep.subr.bf16.mxu0 %v6219_v15  ;;  %6420 = vmatpush1.bf16.msra.mxu1 %v6216_v57  ;;  %v12425_v57 = vld [vmem:[#allocation44_spill] sm:$0xff] }
0x1b93   :  { %v5907_v54 = vpop.permute.xlu0 %5906  ;;  %v5611_v53 = vpop.permute.xlu1 %5610  ;;  %6421 = vmatprep.subr.bf16.mxu1 %v6221_v18  ;;  %v6090_v18 = vld [vmem:[#allocation2 + $0x300] sm:$0xff]  ;;  %v6092_v4 = vld [vmem:[#allocation2 + $0x310] sm:$0xff] }
0x1b94   :  { %v5945_v55 = vsel %vm959_vm8, %v11338_v60, %v5907_v54  ;;  %v5642_v58 = vsel %vm749_vm5, %v5611_v53, %v11113_v26  ;;  %v5647_v38 = vsel %vm749_vm5, %v11109_v30, %v5611_v53  ;;  %v6222_v2 = vpack.c.bf16 %v6094_v45, %v6090_v18 }
0x1b95   :  { %v11365_v21 = vmul.f32 %v5945_v55, %v12420_v28  ;;  %v11368_v15 = vmul.f32 %v5647_v38, %v12424_v32  ;;  %v5667_v22 = vmul.f32 %v5642_v58, %v12425_v57  ;;  %6336 = vmatpush1.bf16.msra.mxu0 %v6218_v40  ;;  %v6224_v23 = vpack.c.bf16 %v6096_v52, %v6092_v4  ;;  %v12426_v40 = vld [vmem:[#allocation52_spill] sm:$0xff]  ;;  %v6101_v58 = vld [vmem:[#allocation2 + $0x358] sm:$0xff]  ;;  %v12428_v52 = vld [vmem:[#allocation43_spill] sm:$0xff] }
0x1b96   :  { %6337 = vmatprep.subr.bf16.mxu0 %v6223_v11  ;;  %6422 = vmatpush1.bf16.msra.mxu1 %v6220_v50  ;;  %v6227_v11 = vpack.c.bf16 %v12426_v40, %v6099_v19  ;;  %v6111_v19 = vld [vmem:[#allocation2 + $0x3a8] sm:$0xff]  ;;  %v6100_v40 = vld [vmem:[#allocation2 + $0x350] sm:$0xff] }
0x1b97   :  { %v5917_v41 = vpop.permute.xlu0 %5916  ;;  %v5631_v53 = vpop.permute.xlu1 %5630  ;;  %6423 = vmatprep.subr.bf16.mxu1 %v6225_v27  ;;  %v6120_v32 = vld [vmem:[#allocation2 + $0x3f0] sm:$0xff] }
0x1b98   :  { %v5940_v55 = vsel %vm959_vm8, %v5907_v54, %v5917_v41  ;;  %v5637_v38 = vsel %vm749_vm5, %v11113_v26, %v5631_v53  ;;  %v5652_v29 = vsel %vm749_vm5, %v5631_v53, %v11109_v30  ;;  %v12429_v54 = vld [vmem:[#allocation59_spill] sm:$0xff]  ;;  %v12430_v30 = vld [vmem:[#allocation50_spill] sm:$0xff] }
0x1b99   :  { %v11381_v50 = vmul.f32 %v5940_v55, %v12421_v13  ;;  %v5668_v45 = vmul.f32 %v5637_v38, %v12427_v14  ;;  %v5669_v27 = vmul.f32 %v5652_v29, %v12428_v52  ;;  %6338 = vmatpush1.bf16.msra.mxu0 %v6222_v2  ;;  %v6229_v18 = vpack.c.bf16 %v12429_v54, %v6101_v58  ;;  %v6098_v26 = vld [vmem:[#allocation2 + $0x340] sm:$0xff]  ;;  %v6119_v58 = vld [vmem:[#allocation2 + $0x3e8] sm:$0xff]  ;;  %v6121_v52 = vld [vmem:[#allocation2 + $0x3f8] sm:$0xff] }
0x1b9a   :  { %6339 = vmatprep.subr.bf16.mxu0 %v6227_v11  ;;  %6424 = vmatpush1.bf16.msra.mxu1 %v6224_v23  ;;  %v6226_v53 = vpack.c.bf16 %v12430_v30, %v6098_v26  ;;  %v6231_v38 = vpack.c.bf16 %v6111_v19, %v5667_v22  ;;  %v12431_v29 = vld [vmem:[#allocation58_spill] sm:$0xff]  ;;  %v6115_v30 = vld [vmem:[#allocation2 + $0x3c8] sm:$0xff]  ;;  %v6112_v19 = vld [vmem:[#allocation2 + $0x3b0] sm:$0xff] }
0x1b9b   :  { %v5927_v4 = vpop.permute.xlu0 %5926  ;;  %v11386_v57 = vpop.permute.xlu1 %5898  ;;  %6425 = vmatprep.subr.bf16.mxu1 %v6229_v18  ;;  %v6228_v11 = vpack.c.bf16 %v12431_v29, %v6100_v40  ;;  %v6113_v23 = vld [vmem:[#allocation2 + $0x3b8] sm:$0xff] }
0x1b9c   :  { %v5935_v55 = vsel %vm959_vm8, %v5917_v41, %v5927_v4  ;;  %v5950_v2 = vsel %vm959_vm8, %v5927_v4, %v11338_v60  ;;  %v6233_v26 = vpack.c.bf16 %v6113_v23, %v5669_v27  ;;  %v6110_v41 = vld [vmem:[#allocation2 + $0x3a0] sm:$0xff]  ;;  %v6235_v4 = vpack.c.bf16 %v6119_v58, %v6115_v30  ;;  %v12432_v40 = vld [vmem:[#allocation61_spill] sm:$0xff] }
0x1b9d   :  { %v11396_v54 = vmul.f32 %v5935_v55, %v12422_v61  ;;  %v11399_v18 = vmul.f32 %v5950_v2, %v12423_v63  ;;  %6340 = vmatpush1.bf16.msra.mxu0 %v6226_v53  ;;  %v6230_v22 = vpack.c.bf16 %v6110_v41, %v11368_v15  ;;  %v12433_v2 = vld [vmem:[#allocation60_spill] sm:$0xff]  ;;  %v6117_v29 = vld [vmem:[#allocation2 + $0x3d8] sm:$0xff] }
0x1b9e   :  { %6341 = vmatprep.subr.bf16.mxu0 %v6231_v38  ;;  %6426 = vmatpush1.bf16.msra.mxu1 %v6228_v11  ;;  %v6232_v38 = vpack.c.bf16 %v6112_v19, %v5668_v45  ;;  %v6118_v11 = vld [vmem:[#allocation2 + $0x3e0] sm:$0xff]  ;;  %v12435_v15 = vld [vmem:[#allocation48_spill] sm:$0xff]  ;;  %v6237_v30 = vpack.c.bf16 %v6121_v52, %v6117_v29 }
0x1b9f   :  { %v5711_v14 = vpop.permute.xlu0 %5710  ;;  %v5909_v60 = vpop.permute.xlu1 %5908  ;;  %6427 = vmatprep.subr.bf16.mxu1 %v6233_v26  ;;  %v12434_v23 = vld [vmem:[#allocation46_spill] sm:$0xff] }
0x1ba0   :  { %v5742_v55 = vsel %vm819_vm6, %v5711_v14, %v12432_v40  ;;  %v5747_v27 = vsel %vm819_vm6, %v12433_v2, %v5711_v14  ;;  %v5946_v53 = vsel %vm959_vm8, %v11386_v57, %v5909_v60  ;;  %v6114_v14 = vld [vmem:[#allocation2 + $0x3c0] sm:$0xff] }
0x1ba1   :  { %v5766_v26 = vmul.f32 %v5747_v27, %v12434_v23  ;;  %v5767_v58 = vmul.f32 %v5742_v55, %v12435_v15  ;;  %v11414_v41 = vmul.f32 %v5946_v53, %v12420_v28  ;;  %6342 = vmatpush1.bf16.msra.mxu0 %v6230_v22  ;;  %v6234_v45 = vpack.c.bf16 %v6118_v11, %v6114_v14  ;;  %v6116_v27 = vld [vmem:[#allocation2 + $0x3d0] sm:$0xff]  ;;  %v8662_v53 = vld [vmem:[%s12412_s20] ss:$12 sps:$4 sm:$0xff]   ;;  %v6125_v14 = vld [vmem:[#allocation2 + $0x418] sm:$0xff] }
0x1ba2   :  { %6343 = vmatprep.subr.bf16.mxu0 %v6235_v4  ;;  %6428 = vmatpush1.bf16.msra.mxu1 %v6232_v38  ;;  %v6236_v4 = vpack.c.bf16 %v6120_v32, %v6116_v27  ;;  %v12436_v38 = vld [vmem:[#allocation49_spill] sm:$0xff]  ;;  %v6131_v27 = vld [vmem:[#allocation2 + $0x448] sm:$0xff] }
0x1ba3   :  { %v5731_v16 = vpop.permute.xlu0 %5730  ;;  %v11416_v36 = vpop.permute.xlu1 %5918  ;;  %6429 = vmatprep.subr.bf16.mxu1 %v6237_v30  ;;  %v6239_v19 = vpack.c.bf16 %v5767_v58, %v6123_v51  ;;  %v12437_v30 = vld [vmem:[#allocation47_spill] sm:$0xff] }
0x1ba4   :  { %v5737_v55 = vsel %vm819_vm6, %v12432_v40, %v5731_v16  ;;  %v5752_v52 = vsel %vm819_vm6, %v5731_v16, %v12433_v2  ;;  %v5941_v22 = vsel %vm959_vm8, %v5909_v60, %v11416_v36  ;;  %v6135_v58 = vld [vmem:[#allocation2 + $0x468] sm:$0xff]  ;;  %v6122_v40 = vld [vmem:[#allocation2 + $0x400] sm:$0xff]  ;;  %v6124_v16 = vld [vmem:[#allocation2 + $0x410] sm:$0xff] }
0x1ba5   :  { %v5768_v29 = vmul.f32 %v5737_v55, %v12436_v38  ;;  %v5769_v11 = vmul.f32 %v5752_v52, %v12437_v30  ;;  %v11431_v51 = vmul.f32 %v5941_v22, %v12421_v13  ;;  %6344 = vmatpush1.bf16.msra.mxu0 %v6234_v45  ;;  %v6238_v60 = vpack.c.bf16 %v5766_v26, %v6122_v40  ;;  %v6137_v55 = vld [vmem:[#allocation2 + $0x478] sm:$0xff]  ;;  %v6134_v22 = vld [vmem:[#allocation2 + $0x460] sm:$0xff]  ;;  %v6136_v40 = vld [vmem:[#allocation2 + $0x470] sm:$0xff] }
0x1ba6   :  { %6356 = vmatprep.subr.bf16.mxu0 %v6239_v19  ;;  %6430 = vmatpush1.bf16.msra.mxu1 %v6236_v4  ;;  %v6243_v19 = vpack.c.bf16 %v6135_v58, %v6131_v27  ;;  %v6133_v26 = vld [vmem:[#allocation2 + $0x458] sm:$0xff]  ;;  %v6132_v27 = vld [vmem:[#allocation2 + $0x450] sm:$0xff] }
0x1ba7   :  { %v11433_v2 = vpop.permute.xlu0 %5900  ;;  %v5811_v15 = vpop.permute.xlu1 %5810  ;;  %v6241_v32 = vpack.c.bf16 %v5769_v11, %v6125_v14  ;;  %v6240_v23 = vpack.c.bf16 %v5768_v29, %v6124_v16  ;;  %v6245_v29 = vpack.c.bf16 %v6137_v55, %v6133_v26  ;;  %v6130_v11 = vld [vmem:[#allocation2 + $0x440] sm:$0xff] }
0x1ba8   :  { %v5842_v52 = vsel %vm889_vm7, %v5811_v15, %v11228_v10  ;;  %v5847_v45 = vsel %vm889_vm7, %v11210_v8, %v5811_v15  ;;  %6346 = vmatmul.mubr.bf16.vlgmr.msra.gmra.mrb[64].mxu0 %v8662_v53  ;;  %v6242_v38 = vpack.c.bf16 %v6134_v22, %v6130_v11  ;;  %v12438_v15 = vmov 0  }
0x1ba9   :  { %v5866_v4 = vmul.f32 %v5847_v45, %v12404_v0  ;;  %v5867_v30 = vmul.f32 %v5842_v52, %v12405_v39  ;;  %6357 = vmatpush1.bf16.msra.mxu0 %v6238_v60  ;;  %6442 = vmatprep.subr.bf16.mxu1 %v6241_v32  ;;  %v12439_v32 = vld [vmem:[#allocation62_spill] sm:$0xff]  ;;  %v6244_v52 = vpack.c.bf16 %v6136_v40, %v6132_v27 }
0x1baa   :  { %6358 = vmatprep.subr.bf16.mxu0 %v6243_v19  ;;  %6432 = vmatmul.mubr.bf16.vlgmr.msra.gmra.mrb[64].mxu1 %v8662_v53  ;;  %v6247_v53 = vpack.c.bf16 %v11206_v37, %v12439_v32  ;;  %v6138_v45 = vld [vmem:[#allocation2 + $0x480] sm:$0xff]  ;;  %v6254_v32 = vpack.c.bf16 %v11365_v21, %v11319_v31  ;;  %v6256_v31 = vpack.c.bf16 %v11396_v54, %v11347_v47 }
0x1bab   :  { %v5921_v14 = vpop.permute.xlu0 %5920  ;;  %v5831_v16 = vpop.permute.xlu1 %5830  ;;  %6443 = vmatpush1.bf16.msra.mxu1 %v6240_v23  ;;  %6388 = vmatprep.mubr.bf16.mxu0 %v12438_v15  ;;  %v6246_v22 = vpack.c.bf16 %v11186_v56, %v6138_v45  ;;  %v6250_v40 = vpack.c.bf16 %v11306_v35, %v5866_v4 }
0x1bac   :  { %v5837_v58 = vsel %vm889_vm7, %v11228_v10, %v5831_v16  ;;  %v5852_v60 = vsel %vm889_vm7, %v5831_v16, %v11210_v8  ;;  %6444 = vmatprep.subr.bf16.mxu1 %v6245_v29  ;;  %6474 = vmatprep.mubr.bf16.mxu1 %v12438_v15  ;;  %v6249_v10 = vpack.c.bf16 %v11222_v59, %v11165_v3 }
0x1bad   :  { %v5868_v23 = vmul.f32 %v5837_v58, %v12406_v49  ;;  %v5869_v55 = vmul.f32 %v5852_v60, %v12407_v9  ;;  %6359 = vmatpush1.bf16.msra.mxu0 %v6242_v38  ;;  %v6251_v38 = vpack.c.bf16 %v11316_v62, %v5867_v30  ;;  %v6248_v59 = vpack.c.bf16 %v11219_v24, %v11162_v6 }
0x1bae   :  { %6360 = vmatprep.subr.bf16.mxu0 %v6247_v53  ;;  %v6255_v6 = vpack.c.bf16 %v11381_v50, %v11336_v20  ;;  %v6257_v16 = vpack.c.bf16 %v11399_v18, %v11350_v34 }
0x1baf   :  { %v5913_v19 = vpop.permute.xlu0 %5912  ;;  %v5929_v8 = vpop.permute.xlu1 %5928  ;;  %6445 = vmatpush1.bf16.msra.mxu1 %v6244_v52  ;;  %v6253_v56 = vpack.c.bf16 %v11333_v33, %v5869_v55  ;;  %v6252_v4 = vpack.c.bf16 %v11330_v46, %v5868_v23 }
0x1bb0   :  { %v5936_v37 = vsel %vm959_vm8, %v11416_v36, %v5929_v8  ;;  %v5951_v26 = vsel %vm959_vm8, %v5929_v8, %v11386_v57  ;;  %6446 = vmatprep.subr.bf16.mxu1 %v6249_v10  ;;  %v8665_v8 = vld [vmem:[%s12412_s20 + $0x8] ss:$12 sps:$4 sm:$0xff]  }
0x1bb1   :  { %v5964_v29 = vmul.f32 %v5936_v37, %v12422_v61  ;;  %v5965_v3 = vmul.f32 %v5951_v26, %v12423_v63  ;;  %6361 = vmatpush1.bf16.msra.mxu0 %v6246_v22 }
0x1bb2   :  { %6362 = vmatprep.subr.bf16.mxu0 %v6251_v38 }
0x1bb3   :  { %v5911_v11 = vpop.permute.xlu0 %5910  ;;  %v5903_v36 = vpop.permute.xlu1 %5902  ;;  %6447 = vmatpush1.bf16.msra.mxu1 %v6248_v59 }
0x1bb4   :  { %v5942_v57 = vsel %vm959_vm8, %v5911_v11, %v5921_v14  ;;  %v5947_v62 = vsel %vm959_vm8, %v11433_v2, %v5911_v11  ;;  %v5948_v30 = vsel %vm959_vm8, %v5903_v36, %v5913_v19  ;;  %6448 = vmatprep.subr.bf16.mxu1 %v6253_v56 }
0x1bb5   :  { %v5966_v24 = vmul.f32 %v5947_v62, %v12420_v28  ;;  %v5967_v33 = vmul.f32 %v5942_v57, %v12421_v13  ;;  %v5970_v35 = vmul.f32 %v5948_v30, %v12420_v28  ;;  %6363 = vmatpush1.bf16.msra.mxu0 %v6250_v40 }
0x1bb6   :  { %6364 = vmatprep.subr.bf16.mxu0 %v6255_v6 }
0x1bb7   :  { %v5931_v58 = vpop.permute.xlu0 %5930  ;;  %v5923_v60 = vpop.permute.xlu1 %5922  ;;  %6449 = vmatpush1.bf16.msra.mxu1 %v6252_v4  ;;  %v6259_v20 = vpack.c.bf16 %v5967_v33, %v11431_v51  ;;  %v6258_v51 = vpack.c.bf16 %v5966_v24, %v11414_v41  ;;  %v6262_v10 = vpack.c.bf16 %v5970_v35, %v5970_v35 }
0x1bb8   :  { %v5937_v50 = vsel %vm959_vm8, %v5921_v14, %v5931_v58  ;;  %v5952_v53 = vsel %vm959_vm8, %v5931_v58, %v11433_v2  ;;  %v5943_v46 = vsel %vm959_vm8, %v5913_v19, %v5923_v60  ;;  %6450 = vmatprep.subr.bf16.mxu1 %v6257_v16 }
0x1bb9   :  { %v5968_v34 = vmul.f32 %v5937_v50, %v12422_v61  ;;  %v5969_v18 = vmul.f32 %v5952_v53, %v12423_v63  ;;  %v5971_v27 = vmul.f32 %v5943_v46, %v12421_v13  ;;  %6365 = vmatpush1.bf16.msra.mxu0 %v6254_v32  ;;  %v6302_v19 = vsel %vm1088_vm9, %v6262_v10, 0  ;;  %v12447_v46 = vld [vmem:[#allocation37_spill] sm:$0xff] }
0x1bba   :  { %6366 = vmatprep.subr.bf16.mxu0 %v6259_v20 }
0x1bbb   :  { %v5933_v21 = vpop.permute.xlu0 %5932  ;;  %6451 = vmatpush1.bf16.msra.mxu1 %v6256_v31  ;;  %v6261_v2 = vpack.c.bf16 %v5969_v18, %v5965_v3  ;;  %v6263_v14 = vpack.c.bf16 %v5971_v27, %v5971_v27  ;;  %v6260_v23 = vpack.c.bf16 %v5968_v34, %v5964_v29 }
0x1bbc   :  { %v5938_v55 = vsel %vm959_vm8, %v5923_v60, %v5933_v21  ;;  %v5953_v52 = vsel %vm959_vm8, %v5933_v21, %v5903_v36  ;;  %v11662_v21 = vld.sshfl [vmem:[%s12440_s17] sm:$0x33 pattern:$0x76325410] }
0x1bbd   :  { %v5972_v45 = vmul.f32 %v5938_v55, %v12422_v61  ;;  %v5973_v47 = vmul.f32 %v5953_v52, %v12423_v63  ;;  %6367 = vmatpush1.bf16.msra.mxu0 %v6258_v51  ;;  %6452 = vmatprep.subr.bf16.mxu1 %v6261_v2  ;;  %12442 = vst [vmem:[#allocation52_spill] sm:$0xff] %v11662_v21  ;;  %v6930_v52 = vld [vmem:[%s12441_s21] sm:$0xf] }
0x1bbe   :  { %7985 = vmatprep.subr.msk.bf16.mxu0 %vm1088_vm9, %v6263_v14  ;;  %v6944_v51 = vcombine.high %v11662_v21, %v11662_v21 }
0x1bbf   :  { %6453 = vmatpush1.bf16.msra.mxu1 %v6260_v23  ;;  %v6265_v54 = vpack.c.bf16 %v5973_v47, %v5973_v47  ;;  %v6264_v41 = vpack.c.bf16 %v5972_v45, %v5972_v45 }
0x1bc1   :  { %6369 = vmatpush1.bf16.msra.mxu0 %v6302_v19  ;;  %7987 = vmatprep.subr.msk.bf16.mxu1 %vm1088_vm9, %v6265_v54  ;;  %v6308_v22 = vsel %vm1088_vm9, %v6264_v41, 0 }
0x1bc3   :  { %6455 = vmatpush1.bf16.msra.mxu1 %v6308_v22 }
0x1bc4   :  { %7986 = vmatmul.mubr.msk.bf16.vlgmr.msra.gmra.mrb[64].mxu0 %vm6297_vm14, %v8665_v8 }
0x1bc5   :  { %7990 = vmatprep.mubr.msk.bf16.mxu0 %vm2531_vm12, %v6944_v51 }
0x1bc6   :  { %7988 = vmatmul.mubr.msk.bf16.vlgmr.msra.gmra.mrb[64].mxu1 %vm6297_vm14, %v8665_v8 }
0x1bc7   :  { %7991 = vmatprep.mubr.msk.bf16.mxu1 %vm2531_vm12, %v6944_v51 }
0x1bc8   :  { %v6275_v37 = vpop.permute.xlu1 %6274 }
0x1bcc   :  { %v6280_v38 = vpop.permute.xlu0 %6279 }
0x1c97   :  { %v6390_v26 = vpop.f32.mrb[64].mxu0 }
0x1c98   :  { %v8350_v29 = vadd.f32 %v6390_v26, %v6275_v37  ;;  %v6392_v3 = vpop.f32.mrb[65].mxu0 }
0x1c99   :  { %v8351_v59 = vadd.f32 %v6392_v3, %v6275_v37  ;;  %v6476_v56 = vpop.f32.mrb[64].mxu1  ;;  %v6394_v11 = vpop.f32.mrb[66].mxu0 }
0x1c9a   :  { %v11513_v36 = vmax.f32 %v8350_v29, 0.0  ;;  %v8354_v40 = vadd.f32 %v6476_v56, %v6275_v37  ;;  %v8352_v57 = vadd.f32 %v6394_v11, %v6280_v38  ;;  %v6478_v62 = vpop.f32.mrb[65].mxu1  ;;  %v6396_v30 = vpop.f32.mrb[67].mxu0 }
0x1c9b   :  { %v11515_v6 = vmax.f32 %v8351_v59, 0.0  ;;  %v8355_v24 = vadd.f32 %v6478_v62, %v6275_v37  ;;  %v8353_v33 = vadd.f32 %v6396_v30, %v6280_v38  ;;  %v6480_v35 = vpop.f32.mrb[66].mxu1 }
0x1c9c   :  { %6653 = vst [vmem:[#allocation2 + $0x100] sm:$0xff] %v11513_v36  ;;  %v11518_v4 = vmax.f32 %v8354_v40, 0.0  ;;  %v11520_v16 = vmax.f32 %v8352_v57, 0.0  ;;  %v8356_v58 = vadd.f32 %v6480_v35, %v6280_v38  ;;  %v6482_v60 = vpop.f32.mrb[67].mxu1  ;;  %6493 = vrot.lane.b32.xlu1 %v11513_v36, %s8777_s0 }
0x1c9d   :  { %6654 = vst [vmem:[#allocation2 + $0x108] sm:$0xff] %v11515_v6  ;;  %v11525_v32 = vmax.f32 %v8355_v24, 0.0  ;;  %v11527_v20 = vmax.f32 %v8353_v33, 0.0  ;;  %v8357_v50 = vadd.f32 %v6482_v60, %v6280_v38 }
0x1c9e   :  { %6655 = vst [vmem:[#allocation2 + $0x110] sm:$0xff] %v11518_v4  ;;  %6657 = vst [vmem:[#allocation2 + $0x120] sm:$0xff] %v11520_v16  ;;  %v11531_v53 = vmax.f32 %v8356_v58, 0.0  ;;  %6495 = vrot.lane.b32.xlu0 %v11520_v16, %s8777_s0 }
0x1c9f   :  { %6656 = vst [vmem:[#allocation2 + $0x118] sm:$0xff] %v11525_v32  ;;  %6658 = vst [vmem:[#allocation2 + $0x128] sm:$0xff] %v11527_v20  ;;  %v11539_v34 = vmax.f32 %v8357_v50, 0.0 }
0x1ca0   :  { %6659 = vst [vmem:[#allocation2 + $0x130] sm:$0xff] %v11531_v53  ;;  %6501 = vrot.lane.b32.xlu1 %v11518_v4, %s8777_s0 }
0x1ca1   :  { %6660 = vst [vmem:[#allocation2 + $0x138] sm:$0xff] %v11539_v34 }
0x1ca2   :  { %6503 = vrot.lane.b32.xlu0 %v11531_v53, %s8777_s0 }
0x1ca4   :  { %6533 = vrot.lane.b32.xlu1 %v11513_v36, %s8779_s5 }
0x1ca6   :  { %6535 = vrot.lane.b32.xlu0 %v11520_v16, %s8779_s5 }
0x1ca8   :  { %6541 = vrot.lane.b32.xlu1 %v11518_v4, %s8779_s5 }
0x1caa   :  { %6543 = vrot.lane.b32.xlu0 %v11531_v53, %s8779_s5 }
0x1cac   :  { %6573 = vrot.lane.b32.xlu1 %v11513_v36, %s8780_s9 }
0x1cae   :  { %6575 = vrot.lane.b32.xlu0 %v11520_v16, %s8780_s9 }
0x1cb0   :  { %6581 = vrot.lane.b32.xlu1 %v11518_v4, %s8780_s9 }
0x1cb2   :  { %6583 = vrot.lane.b32.xlu0 %v11531_v53, %s8780_s9 }
0x1cb4   :  { %6613 = vrot.lane.b32.xlu1 %v11513_v36, %s8781_s16 }
0x1cb6   :  { %6615 = vrot.lane.b32.xlu0 %v11520_v16, %s8781_s16 }
0x1cb8   :  { %6621 = vrot.lane.b32.xlu1 %v11518_v4, %s8781_s16 }
0x1cba   :  { %6623 = vrot.lane.b32.xlu0 %v11531_v53, %s8781_s16 }
0x1cbc   :  { %6661 = vrot.lane.b32.xlu1 %v11513_v36, %s8782_s18 }
0x1cbe   :  { %6663 = vrot.lane.b32.xlu0 %v11520_v16, %s8782_s18 }
0x1cc0   :  { %6669 = vrot.lane.b32.xlu1 %v11518_v4, %s8782_s18 }
0x1cc2   :  { %6671 = vrot.lane.b32.xlu0 %v11531_v53, %s8782_s18 }
0x1cc4   :  { %6701 = vrot.lane.b32.xlu1 %v11513_v36, %s8783_s22 }
0x1cc6   :  { %6703 = vrot.lane.b32.xlu0 %v11520_v16, %s8783_s22 }
0x1cc8   :  { %6709 = vrot.lane.b32.xlu1 %v11518_v4, %s8783_s22 }
0x1cca   :  { %6711 = vrot.lane.b32.xlu0 %v11531_v53, %s8783_s22 }
0x1ccc   :  { %6741 = vrot.lane.b32.xlu1 %v11513_v36, %s8784_s23 }
0x1cce   :  { %6743 = vrot.lane.b32.xlu0 %v11520_v16, %s8784_s23 }
0x1cd0   :  { %6749 = vrot.lane.b32.xlu1 %v11518_v4, %s8784_s23 }
0x1cd2   :  { %6751 = vrot.lane.b32.xlu0 %v11531_v53, %s8784_s23 }
0x1cd4   :  { %6781 = vrot.lane.b32.xlu1 %v11513_v36, %s8785_s26 }
0x1cd6   :  { %6783 = vrot.lane.b32.xlu0 %v11520_v16, %s8785_s26 }
0x1cd8   :  { %6789 = vrot.lane.b32.xlu1 %v11518_v4, %s8785_s26 }
0x1cda   :  { %6791 = vrot.lane.b32.xlu0 %v11531_v53, %s8785_s26 }
0x1cdc   :  { %6497 = vrot.lane.b32.xlu1 %v11515_v6, %s8777_s0 }
0x1cde   :  { %6499 = vrot.lane.b32.xlu0 %v11527_v20, %s8777_s0 }
0x1ce0   :  { %6505 = vrot.lane.b32.xlu1 %v11525_v32, %s8777_s0 }
0x1ce2   :  { %6507 = vrot.lane.b32.xlu0 %v11539_v34, %s8777_s0 }
0x1ce4   :  { %6537 = vrot.lane.b32.xlu1 %v11515_v6, %s8779_s5 }
0x1ce6   :  { %6539 = vrot.lane.b32.xlu0 %v11527_v20, %s8779_s5 }
0x1ce8   :  { %6545 = vrot.lane.b32.xlu1 %v11525_v32, %s8779_s5 }
0x1cea   :  { %6547 = vrot.lane.b32.xlu0 %v11539_v34, %s8779_s5 }
0x1cec   :  { %6577 = vrot.lane.b32.xlu1 %v11515_v6, %s8780_s9 }
0x1cee   :  { %6579 = vrot.lane.b32.xlu0 %v11527_v20, %s8780_s9 }
0x1cf0   :  { %6585 = vrot.lane.b32.xlu1 %v11525_v32, %s8780_s9 }
0x1cf2   :  { %6587 = vrot.lane.b32.xlu0 %v11539_v34, %s8780_s9 }
0x1cf4   :  { %6617 = vrot.lane.b32.xlu1 %v11515_v6, %s8781_s16 }
0x1cf6   :  { %6619 = vrot.lane.b32.xlu0 %v11527_v20, %s8781_s16 }
0x1cf8   :  { %6625 = vrot.lane.b32.xlu1 %v11525_v32, %s8781_s16 }
0x1cfa   :  { %6627 = vrot.lane.b32.xlu0 %v11539_v34, %s8781_s16 }
0x1cfc   :  { %6665 = vrot.lane.b32.xlu1 %v11515_v6, %s8782_s18 }
0x1cfe   :  { %6667 = vrot.lane.b32.xlu0 %v11527_v20, %s8782_s18 }
0x1d00   :  { %6673 = vrot.lane.b32.xlu1 %v11525_v32, %s8782_s18 }
0x1d02   :  { %6675 = vrot.lane.b32.xlu0 %v11539_v34, %s8782_s18 }
0x1d04   :  { %6705 = vrot.lane.b32.xlu1 %v11515_v6, %s8783_s22 }
0x1d06   :  { %6707 = vrot.lane.b32.xlu0 %v11527_v20, %s8783_s22 }
0x1d08   :  { %6713 = vrot.lane.b32.xlu1 %v11525_v32, %s8783_s22 }
0x1d0a   :  { %6715 = vrot.lane.b32.xlu0 %v11539_v34, %s8783_s22 }
0x1d0c   :  { %6745 = vrot.lane.b32.xlu1 %v11515_v6, %s8784_s23 }
0x1d0e   :  { %6747 = vrot.lane.b32.xlu0 %v11527_v20, %s8784_s23  ;;  %v6494_v27 = vpop.permute.xlu1 %6493 }
0x1d10   :  { %v11657_v31 = vpop.permute.xlu0 %6495  ;;  %6753 = vrot.lane.b32.xlu1 %v11525_v32, %s8784_s23 }
0x1d12   :  { %6755 = vrot.lane.b32.xlu0 %v11539_v34, %s8784_s23  ;;  %v6502_v2 = vpop.permute.xlu1 %6501 }
0x1d14   :  { %v6504_v14 = vpop.permute.xlu0 %6503  ;;  %6785 = vrot.lane.b32.xlu1 %v11515_v6, %s8785_s26 }
0x1d16   :  { %6787 = vrot.lane.b32.xlu0 %v11527_v20, %s8785_s26  ;;  %v11674_v23 = vpop.permute.xlu1 %6533 }
0x1d18   :  { %v11676_v55 = vpop.permute.xlu0 %6535  ;;  %6793 = vrot.lane.b32.xlu1 %v11525_v32, %s8785_s26 }
0x1d1a   :  { %6795 = vrot.lane.b32.xlu0 %v11539_v34, %s8785_s26  ;;  %v11683_v10 = vpop.permute.xlu1 %6541 }
0x1d1c   :  { %v11685_v45 = vpop.permute.xlu0 %6543  ;;  %6933 = vperm.xlu1 %8459, %v6930_v52  }
0x1d1e   :  { %v11687_v47 = vpop.permute.xlu1 %6573 }
0x1d20   :  { %v11689_v54 = vpop.permute.xlu0 %6575 }
0x1d22   :  { %v11691_v41 = vpop.permute.xlu1 %6581 }
0x1d24   :  { %v11693_v19 = vpop.permute.xlu0 %6583 }
0x1d26   :  { %v11695_v8 = vpop.permute.xlu1 %6613 }
0x1d28   :  { %v11697_v22 = vpop.permute.xlu0 %6615 }
0x1d2a   :  { %v11699_v37 = vpop.permute.xlu1 %6621 }
0x1d2c   :  { %v11701_v26 = vpop.permute.xlu0 %6623 }
0x1d2e   :  { %v11703_v38 = vpop.permute.xlu1 %6661 }
0x1d30   :  { %v11705_v29 = vpop.permute.xlu0 %6663 }
0x1d32   :  { %v11707_v3 = vpop.permute.xlu1 %6669 }
0x1d34   :  { %v11709_v59 = vpop.permute.xlu0 %6671 }
0x1d36   :  { %v11711_v56 = vpop.permute.xlu1 %6701 }
0x1d38   :  { %v11713_v11 = vpop.permute.xlu0 %6703 }
0x1d3a   :  { %v11715_v40 = vpop.permute.xlu1 %6709 }
0x1d3c   :  { %v11717_v57 = vpop.permute.xlu0 %6711 }
0x1d3e   :  { %v11719_v62 = vpop.permute.xlu1 %6741 }
0x1d40   :  { %v11721_v30 = vpop.permute.xlu0 %6743 }
0x1d42   :  { %v11723_v24 = vpop.permute.xlu1 %6749 }
0x1d44   :  { %v11725_v33 = vpop.permute.xlu0 %6751 }
0x1d46   :  { %v11727_v35 = vpop.permute.xlu1 %6781 }
0x1d47   :  { %12443 = vst [vmem:[#allocation59_spill] sm:$0xff] %v11727_v35 }
0x1d48   :  { %v11729_v58 = vpop.permute.xlu0 %6783 }
0x1d49   :  { %12444 = vst [vmem:[#allocation50_spill] sm:$0xff] %v11729_v58 }
0x1d4a   :  { %v11731_v60 = vpop.permute.xlu1 %6789 }
0x1d4b   :  { %12445 = vst [vmem:[#allocation58_spill] sm:$0xff] %v11731_v60  ;;  %v12449_v60 = vld [vmem:[#allocation36_spill] sm:$0xff] }
0x1d4c   :  { %v11733_v50 = vpop.permute.xlu0 %6791 }
0x1d4d   :  { %12446 = vst [vmem:[#allocation61_spill] sm:$0xff] %v11733_v50 }
0x1d4e   :  { %v6498_v51 = vpop.permute.xlu1 %6497 }
0x1d4f   :  { %v6511_v52 = vsel %vm463_vm1, %v6498_v51, %v6502_v2  ;;  %v6513_v18 = vsel %vm463_vm1, %v6494_v27, %v6498_v51 }
0x1d50   :  { %v6518_v15 = vmul.f32 %v6513_v18, %v12447_v46  ;;  %v6519_v21 = vmul.f32 %v6511_v52, %v9161_v25  ;;  %v6500_v63 = vpop.permute.xlu0 %6499  ;;  %v12448_v52 = vld [vmem:[#allocation35_spill] sm:$0xff] }
0x1d51   :  { %v6512_v61 = vsel %vm463_vm1, %v6500_v63, %v6504_v14  ;;  %v6514_v58 = vsel %vm463_vm1, %v11657_v31, %v6500_v63 }
0x1d52   :  { %6526 = vst [vmem:[#allocation2 + $0x8] sm:$0xff] %v6518_v15  ;;  %6527 = vst [vmem:[#allocation2 + $0x10] sm:$0xff] %v6519_v21  ;;  %v6522_v50 = vmul.f32 %v6514_v58, %v12447_v46  ;;  %v6523_v13 = vmul.f32 %v6512_v61, %v9161_v25  ;;  %v6506_v28 = vpop.permute.xlu1 %6505 }
0x1d53   :  { %v6509_v18 = vsel %vm463_vm1, %v6502_v2, %v6506_v28  ;;  %v6515_v51 = vsel %vm463_vm1, %v6506_v28, %v6494_v27 }
0x1d54   :  { %6530 = vst [vmem:[#allocation2 + $0x28] sm:$0xff] %v6522_v50  ;;  %6531 = vst [vmem:[#allocation2 + $0x30] sm:$0xff] %v6523_v13  ;;  %v6517_v35 = vmul.f32 %v6515_v51, %v12448_v52  ;;  %v6520_v9 = vmul.f32 %v6509_v18, %v12449_v60  ;;  %v6508_v63 = vpop.permute.xlu0 %6507  ;;  %v6894_v49 = vpack.c.bf16 %v6522_v50, %v6518_v15 }
0x1d55   :  { %v6510_v58 = vsel %vm463_vm1, %v6504_v14, %v6508_v63  ;;  %v6516_v61 = vsel %vm463_vm1, %v6508_v63, %v11657_v31 }
0x1d56   :  { %6525 = vst [vmem:[#allocation2] sm:$0xff] %v6517_v35  ;;  %6528 = vst [vmem:[#allocation2 + $0x18] sm:$0xff] %v6520_v9  ;;  %v6521_v2 = vmul.f32 %v6516_v61, %v12448_v52  ;;  %v6524_v28 = vmul.f32 %v6510_v58, %v12449_v60  ;;  %v6538_v27 = vpop.permute.xlu1 %6537  ;;  %6949 = vmatprep.subr.bf16.mxu0 %v6894_v49  ;;  %v6895_v61 = vpack.c.bf16 %v6523_v13, %v6519_v21 }
0x1d57   :  { %v6551_v18 = vsel %vm536_vm2, %v6538_v27, %v11683_v10  ;;  %v6553_v15 = vsel %vm536_vm2, %v11674_v23, %v6538_v27 }
0x1d58   :  { %6529 = vst [vmem:[#allocation2 + $0x20] sm:$0xff] %v6521_v2  ;;  %6532 = vst [vmem:[#allocation2 + $0x38] sm:$0xff] %v6524_v28  ;;  %v6558_v31 = vmul.f32 %v6553_v15, %v9181_v42  ;;  %v6559_v14 = vmul.f32 %v6551_v18, %v9187_v44  ;;  %v6540_v50 = vpop.permute.xlu0 %6539  ;;  %v6893_v51 = vpack.c.bf16 %v6521_v2, %v6517_v35 }
0x1d59   :  { %v6896_v63 = vpack.c.bf16 %v6524_v28, %v6520_v9  ;;  %v6552_v49 = vsel %vm536_vm2, %v6540_v50, %v11685_v45  ;;  %v6554_v58 = vsel %vm536_vm2, %v11676_v55, %v6540_v50 }
0x1d5a   :  { %6566 = vst [vmem:[#allocation2 + $0x48] sm:$0xff] %v6558_v31  ;;  %6567 = vst [vmem:[#allocation2 + $0x50] sm:$0xff] %v6559_v14  ;;  %v6562_v27 = vmul.f32 %v6554_v58, %v9181_v42  ;;  %v6563_v15 = vmul.f32 %v6552_v49, %v9187_v44  ;;  %v6546_v60 = vpop.permute.xlu1 %6545  ;;  %6950 = vmatpush1.bf16.msra.mxu0 %v6893_v51 }
0x1d5b   :  { %6990 = vmatprep.subr.bf16.mxu1 %v6896_v63  ;;  %v6549_v9 = vsel %vm536_vm2, %v11683_v10, %v6546_v60  ;;  %v6555_v35 = vsel %vm536_vm2, %v6546_v60, %v11674_v23 }
0x1d5c   :  { %6991 = vmatpush1.bf16.msra.mxu1 %v6895_v61  ;;  %6570 = vst [vmem:[#allocation2 + $0x68] sm:$0xff] %v6562_v27  ;;  %6571 = vst [vmem:[#allocation2 + $0x70] sm:$0xff] %v6563_v15  ;;  %v6557_v13 = vmul.f32 %v6555_v35, %v9184_v43  ;;  %v6560_v21 = vmul.f32 %v6549_v9, %v9194_v48  ;;  %v6548_v2 = vpop.permute.xlu0 %6547  ;;  %v6898_v28 = vpack.c.bf16 %v6562_v27, %v6558_v31 }
0x1d5d   :  { %v6550_v18 = vsel %vm536_vm2, %v11685_v45, %v6548_v2  ;;  %v6556_v10 = vsel %vm536_vm2, %v6548_v2, %v11676_v55  ;;  %v6899_v9 = vpack.c.bf16 %v6563_v15, %v6559_v14 }
0x1d5e   :  { %6565 = vst [vmem:[#allocation2 + $0x40] sm:$0xff] %v6557_v13  ;;  %6568 = vst [vmem:[#allocation2 + $0x58] sm:$0xff] %v6560_v21  ;;  %v6561_v23 = vmul.f32 %v6556_v10, %v9184_v43  ;;  %v6564_v60 = vmul.f32 %v6550_v18, %v9194_v48  ;;  %v6578_v50 = vpop.permute.xlu1 %6577  ;;  %6951 = vmatprep.subr.bf16.mxu0 %v6898_v28 }
0x1d5f   :  { %v6591_v31 = vsel %vm606_vm3, %v6578_v50, %v11691_v41  ;;  %v6593_v45 = vsel %vm606_vm3, %v11687_v47, %v6578_v50 }
0x1d60   :  { %6569 = vst [vmem:[#allocation2 + $0x60] sm:$0xff] %v6561_v23  ;;  %6572 = vst [vmem:[#allocation2 + $0x78] sm:$0xff] %v6564_v60  ;;  %v6598_v55 = vmul.f32 %v6593_v45, %v9212_v1  ;;  %v6599_v51 = vmul.f32 %v6591_v31, %v9218_v7  ;;  %v6580_v63 = vpop.permute.xlu0 %6579  ;;  %v6897_v49 = vpack.c.bf16 %v6561_v23, %v6557_v13  ;;  %v12450_v45 = vld [vmem:[#allocation38_spill] sm:$0xff] }
0x1d61   :  { %v6900_v58 = vpack.c.bf16 %v6564_v60, %v6560_v21  ;;  %v6592_v61 = vsel %vm606_vm3, %v6580_v63, %v11693_v19  ;;  %v6594_v27 = vsel %vm606_vm3, %v11689_v54, %v6580_v63 }
0x1d62   :  { %6606 = vst [vmem:[#allocation2 + $0x88] sm:$0xff] %v6598_v55  ;;  %6607 = vst [vmem:[#allocation2 + $0x90] sm:$0xff] %v6599_v51  ;;  %v6602_v35 = vmul.f32 %v6594_v27, %v9212_v1  ;;  %v6603_v2 = vmul.f32 %v6592_v61, %v9218_v7  ;;  %v6586_v28 = vpop.permute.xlu1 %6585  ;;  %6952 = vmatpush1.bf16.msra.mxu0 %v6897_v49 }
0x1d63   :  { %6992 = vmatprep.subr.bf16.mxu1 %v6900_v58  ;;  %v6589_v13 = vsel %vm606_vm3, %v11691_v41, %v6586_v28  ;;  %v6595_v21 = vsel %vm606_vm3, %v6586_v28, %v11687_v47 }
0x1d64   :  { %6993 = vmatpush1.bf16.msra.mxu1 %v6899_v9  ;;  %6610 = vst [vmem:[#allocation2 + $0xa8] sm:$0xff] %v6602_v35  ;;  %6611 = vst [vmem:[#allocation2 + $0xb0] sm:$0xff] %v6603_v2  ;;  %v6597_v14 = vmul.f32 %v6595_v21, %v9215_v5  ;;  %v6600_v15 = vmul.f32 %v6589_v13, %v9225_v12  ;;  %v6588_v18 = vpop.permute.xlu0 %6587  ;;  %v6902_v10 = vpack.c.bf16 %v6602_v35, %v6598_v55  ;;  %v12451_v55 = vld [vmem:[#allocation40_spill] sm:$0xff] }
0x1d65   :  { %v6590_v23 = vsel %vm606_vm3, %v11693_v19, %v6588_v18  ;;  %v6596_v41 = vsel %vm606_vm3, %v6588_v18, %v11689_v54  ;;  %v6903_v35 = vpack.c.bf16 %v6603_v2, %v6599_v51  ;;  %v12452_v51 = vld [vmem:[#allocation39_spill] sm:$0xff]  ;;  %v12453_v18 = vld [vmem:[#allocation41_spill] sm:$0xff] }
0x1d66   :  { %6605 = vst [vmem:[#allocation2 + $0x80] sm:$0xff] %v6597_v14  ;;  %6608 = vst [vmem:[#allocation2 + $0x98] sm:$0xff] %v6600_v15  ;;  %v6601_v47 = vmul.f32 %v6596_v41, %v9215_v5  ;;  %v6604_v60 = vmul.f32 %v6590_v23, %v9225_v12  ;;  %v6618_v50 = vpop.permute.xlu1 %6617  ;;  %6953 = vmatprep.subr.bf16.mxu0 %v6902_v10 }
0x1d67   :  { %v6631_v31 = vsel %vm676_vm4, %v6618_v50, %v11699_v37  ;;  %v6633_v19 = vsel %vm676_vm4, %v11695_v8, %v6618_v50 }
0x1d68   :  { %6609 = vst [vmem:[#allocation2 + $0xa0] sm:$0xff] %v6601_v47  ;;  %6612 = vst [vmem:[#allocation2 + $0xb8] sm:$0xff] %v6604_v60  ;;  %v6638_v54 = vmul.f32 %v6633_v19, %v12450_v45  ;;  %v6639_v63 = vmul.f32 %v6631_v31, %v12451_v55  ;;  %v6620_v49 = vpop.permute.xlu0 %6619  ;;  %v6901_v58 = vpack.c.bf16 %v6601_v47, %v6597_v14  ;;  %v12454_v19 = vld [vmem:[#allocation42_spill] sm:$0xff] }
0x1d69   :  { %v6904_v61 = vpack.c.bf16 %v6604_v60, %v6600_v15  ;;  %v6632_v27 = vsel %vm676_vm4, %v6620_v49, %v11701_v26  ;;  %v6634_v9 = vsel %vm676_vm4, %v11697_v22, %v6620_v49 }
0x1d6a   :  { %6646 = vst [vmem:[#allocation2 + $0xc8] sm:$0xff] %v6638_v54  ;;  %6647 = vst [vmem:[#allocation2 + $0xd0] sm:$0xff] %v6639_v63  ;;  %v6642_v28 = vmul.f32 %v6634_v9, %v12450_v45  ;;  %v6643_v13 = vmul.f32 %v6632_v27, %v12451_v55  ;;  %v6626_v21 = vpop.permute.xlu1 %6625  ;;  %6954 = vmatpush1.bf16.msra.mxu0 %v6901_v58 }
0x1d6b   :  { %6994 = vmatprep.subr.bf16.mxu1 %v6904_v61  ;;  %v6629_v14 = vsel %vm676_vm4, %v11699_v37, %v6626_v21  ;;  %v6635_v15 = vsel %vm676_vm4, %v6626_v21, %v11695_v8 }
0x1d6c   :  { %6995 = vmatpush1.bf16.msra.mxu1 %v6903_v35  ;;  %6650 = vst [vmem:[#allocation2 + $0xe8] sm:$0xff] %v6642_v28  ;;  %6651 = vst [vmem:[#allocation2 + $0xf0] sm:$0xff] %v6643_v13  ;;  %v6637_v2 = vmul.f32 %v6635_v15, %v12452_v51  ;;  %v6640_v10 = vmul.f32 %v6629_v14, %v12453_v18  ;;  %v6628_v23 = vpop.permute.xlu0 %6627  ;;  %v6906_v41 = vpack.c.bf16 %v6642_v28, %v6638_v54  ;;  %v12455_v54 = vld [vmem:[#allocation44_spill] sm:$0xff] }
0x1d6d   :  { %v6630_v47 = vsel %vm676_vm4, %v11701_v26, %v6628_v23  ;;  %v6636_v37 = vsel %vm676_vm4, %v6628_v23, %v11697_v22  ;;  %v6910_v28 = vpack.c.bf16 %v11527_v20, %v11515_v6  ;;  %v6907_v21 = vpack.c.bf16 %v6643_v13, %v6639_v63  ;;  %v12456_v20 = vld [vmem:[#allocation45_spill] sm:$0xff]  ;;  %v12457_v13 = vld [vmem:[#allocation43_spill] sm:$0xff] }
0x1d6e   :  { %6645 = vst [vmem:[#allocation2 + $0xc0] sm:$0xff] %v6637_v2  ;;  %6648 = vst [vmem:[#allocation2 + $0xd8] sm:$0xff] %v6640_v10  ;;  %v6641_v8 = vmul.f32 %v6636_v37, %v12452_v51  ;;  %v6644_v60 = vmul.f32 %v6630_v47, %v12453_v18  ;;  %v6666_v50 = vpop.permute.xlu1 %6665  ;;  %6955 = vmatprep.subr.bf16.mxu0 %v6906_v41 }
0x1d6f   :  { %v6679_v31 = vsel %vm749_vm5, %v6666_v50, %v11707_v3  ;;  %v6681_v26 = vsel %vm749_vm5, %v11703_v38, %v6666_v50 }
0x1d70   :  { %6649 = vst [vmem:[#allocation2 + $0xe0] sm:$0xff] %v6641_v8  ;;  %6652 = vst [vmem:[#allocation2 + $0xf8] sm:$0xff] %v6644_v60  ;;  %v6685_v22 = vmul.f32 %v6681_v26, %v12454_v19  ;;  %v6686_v49 = vmul.f32 %v6679_v31, %v12455_v54  ;;  %v6668_v58 = vpop.permute.xlu0 %6667  ;;  %v6905_v61 = vpack.c.bf16 %v6641_v8, %v6637_v2  ;;  %v12460_v26 = vld [vmem:[#allocation46_spill] sm:$0xff] }
0x1d71   :  { %v6908_v27 = vpack.c.bf16 %v6644_v60, %v6640_v10  ;;  %v6680_v9 = vsel %vm749_vm5, %v6668_v58, %v11709_v59  ;;  %v6682_v35 = vsel %vm749_vm5, %v11705_v29, %v6668_v58  ;;  %v6912_v10 = vpack.c.bf16 %v11539_v34, %v11525_v32 }
0x1d72   :  { %6693 = vst [vmem:[#allocation2 + $0x140] sm:$0xff] %v6685_v22  ;;  %6694 = vst [vmem:[#allocation2 + $0x148] sm:$0xff] %v6686_v49  ;;  %v6689_v14 = vmul.f32 %v6682_v35, %v12454_v19  ;;  %v6690_v15 = vmul.f32 %v6680_v9, %v12455_v54  ;;  %v6674_v2 = vpop.permute.xlu1 %6673  ;;  %6956 = vmatpush1.bf16.msra.mxu0 %v6905_v61  ;;  %v12458_v60 = vpack.c.bf16 %v11520_v16, %v11513_v36  ;;  %v12461_v36 = vld [vmem:[#allocation48_spill] sm:$0xff] }
0x1d73   :  { %6996 = vmatprep.subr.bf16.mxu1 %v6908_v27  ;;  %v6677_v23 = vsel %vm749_vm5, %v11707_v3, %v6674_v2  ;;  %v6683_v6 = vsel %vm749_vm5, %v6674_v2, %v11703_v38  ;;  %6957 = vmatprep.subr.bf16.mxu0 %v6910_v28  ;;  %v12463_v2 = vld [vmem:[#allocation47_spill] sm:$0xff] }
0x1d74   :  { %6997 = vmatpush1.bf16.msra.mxu1 %v6907_v21  ;;  %6697 = vst [vmem:[#allocation2 + $0x160] sm:$0xff] %v6689_v14  ;;  %6698 = vst [vmem:[#allocation2 + $0x168] sm:$0xff] %v6690_v15  ;;  %v6687_v63 = vmul.f32 %v6677_v23, %v12456_v20  ;;  %v6688_v41 = vmul.f32 %v6683_v6, %v12457_v13  ;;  %v6676_v47 = vpop.permute.xlu0 %6675  ;;  %v6914_v37 = vpack.c.bf16 %v6690_v15, %v6686_v49 }
0x1d75   :  { %6998 = vmatprep.subr.bf16.mxu1 %v6912_v10  ;;  %v6678_v32 = vsel %vm749_vm5, %v11709_v59, %v6676_v47  ;;  %v6684_v34 = vsel %vm749_vm5, %v6676_v47, %v11705_v29  ;;  %v12459_v29 = vpack.c.bf16 %v11531_v53, %v11518_v4  ;;  %v6913_v31 = vpack.c.bf16 %v6689_v14, %v6685_v22  ;;  %v12462_v14 = vld [vmem:[#allocation49_spill] sm:$0xff] }
0x1d76   :  { %6695 = vst [vmem:[#allocation2 + $0x150] sm:$0xff] %v6687_v63  ;;  %6696 = vst [vmem:[#allocation2 + $0x158] sm:$0xff] %v6688_v41  ;;  %v6691_v38 = vmul.f32 %v6678_v32, %v12456_v20  ;;  %v6692_v3 = vmul.f32 %v6684_v34, %v12457_v13  ;;  %v6706_v8 = vpop.permute.xlu1 %6705  ;;  %6958 = vmatpush1.bf16.msra.mxu0 %v12458_v60 }
0x1d77   :  { %v6719_v50 = vsel %vm819_vm6, %v6706_v8, %v11715_v40  ;;  %v6721_v59 = vsel %vm819_vm6, %v11711_v56, %v6706_v8  ;;  %6959 = vmatprep.subr.bf16.mxu0 %v6914_v37 }
0x1d78   :  { %6999 = vmatpush1.bf16.msra.mxu1 %v12459_v29  ;;  %6699 = vst [vmem:[#allocation2 + $0x170] sm:$0xff] %v6691_v38  ;;  %6700 = vst [vmem:[#allocation2 + $0x178] sm:$0xff] %v6692_v3  ;;  %v6725_v49 = vmul.f32 %v6721_v59, %v12460_v26  ;;  %v6726_v16 = vmul.f32 %v6719_v50, %v12461_v36  ;;  %v6708_v58 = vpop.permute.xlu0 %6707  ;;  %v6916_v61 = vpack.c.bf16 %v6692_v3, %v6688_v41 }
0x1d79   :  { %v6915_v27 = vpack.c.bf16 %v6691_v38, %v6687_v63  ;;  %v6720_v9 = vsel %vm819_vm6, %v6708_v58, %v11717_v57  ;;  %v6722_v35 = vsel %vm819_vm6, %v11713_v11, %v6708_v58  ;;  %v12464_v58 = vld [vmem:[#allocation53_spill] sm:$0xff] }
0x1d7a   :  { %v6729_v4 = vmul.f32 %v6722_v35, %v12460_v26  ;;  %v6730_v53 = vmul.f32 %v6720_v9, %v12461_v36  ;;  %v6714_v22 = vpop.permute.xlu1 %6713  ;;  %7000 = vmatprep.subr.bf16.mxu1 %v6916_v61  ;;  %6960 = vmatpush1.bf16.msra.mxu0 %v6913_v31 }
0x1d7b   :  { %v6717_v28 = vsel %vm819_vm6, %v11715_v40, %v6714_v22  ;;  %v6723_v21 = vsel %vm819_vm6, %v6714_v22, %v11711_v56 }
0x1d7c   :  { %7001 = vmatpush1.bf16.msra.mxu1 %v6915_v27  ;;  %v6727_v15 = vmul.f32 %v6717_v28, %v12462_v14  ;;  %v6728_v10 = vmul.f32 %v6723_v21, %v12463_v2  ;;  %v6716_v23 = vpop.permute.xlu0 %6715  ;;  %v6918_v6 = vpack.c.bf16 %v6730_v53, %v6726_v16  ;;  %v6917_v63 = vpack.c.bf16 %v6729_v4, %v6725_v49  ;;  %v12465_v27 = vld [vmem:[#allocation51_spill] sm:$0xff] }
0x1d7d   :  { %v6718_v41 = vsel %vm819_vm6, %v11717_v57, %v6716_v23  ;;  %v6724_v40 = vsel %vm819_vm6, %v6716_v23, %v11713_v11  ;;  %v12467_v23 = vld [vmem:[#allocation59_spill] sm:$0xff] }
0x1d7e   :  { %v6731_v47 = vmul.f32 %v6718_v41, %v12462_v14  ;;  %v6732_v56 = vmul.f32 %v6724_v40, %v12463_v2  ;;  %v6746_v37 = vpop.permute.xlu1 %6745  ;;  %6961 = vmatprep.subr.bf16.mxu0 %v6918_v6 }
0x1d7f   :  { %v6759_v32 = vsel %vm889_vm7, %v6746_v37, %v11723_v24  ;;  %v6761_v34 = vsel %vm889_vm7, %v11719_v62, %v6746_v37  ;;  %6962 = vmatpush1.bf16.msra.mxu0 %v6917_v63  ;;  %v12469_v63 = vld [vmem:[#allocation56_spill] sm:$0xff]  ;;  %v12470_v37 = vld [vmem:[#allocation61_spill] sm:$0xff] }
0x1d80   :  { %v6765_v57 = vmul.f32 %v6761_v34, %v12404_v0  ;;  %v6766_v38 = vmul.f32 %v6759_v32, %v12405_v39  ;;  %v6748_v11 = vpop.permute.xlu0 %6747  ;;  %v6920_v3 = vpack.c.bf16 %v6732_v56, %v6728_v10  ;;  %v6919_v8 = vpack.c.bf16 %v6731_v47, %v6727_v15  ;;  %v12466_v15 = vld [vmem:[#allocation58_spill] sm:$0xff] }
0x1d81   :  { %v6760_v60 = vsel %vm889_vm7, %v6748_v11, %v11725_v33  ;;  %v6762_v50 = vsel %vm889_vm7, %v11721_v30, %v6748_v11  ;;  %v12471_v34 = vld [vmem:[#allocation50_spill] sm:$0xff] }
0x1d82   :  { %6773 = vst [vmem:[#allocation2 + $0x1c0] sm:$0xff] %v6765_v57  ;;  %6774 = vst [vmem:[#allocation2 + $0x1c8] sm:$0xff] %v6766_v38  ;;  %v6769_v59 = vmul.f32 %v6762_v50, %v12404_v0  ;;  %v6770_v29 = vmul.f32 %v6760_v60, %v12405_v39  ;;  %v6754_v31 = vpop.permute.xlu1 %6753  ;;  %7002 = vmatprep.subr.bf16.mxu1 %v6920_v3  ;;  %v12472_v50 = vld [vmem:[#allocation57_spill] sm:$0xff] }
0x1d83   :  { %v6757_v49 = vsel %vm889_vm7, %v11723_v24, %v6754_v31  ;;  %v6763_v16 = vsel %vm889_vm7, %v6754_v31, %v11719_v62  ;;  %7003 = vmatpush1.bf16.msra.mxu1 %v6919_v8 }
0x1d84   :  { %6777 = vst [vmem:[#allocation2 + $0x1e0] sm:$0xff] %v6769_v59  ;;  %6778 = vst [vmem:[#allocation2 + $0x1e8] sm:$0xff] %v6770_v29  ;;  %v6767_v61 = vmul.f32 %v6757_v49, %v12464_v58  ;;  %v6768_v9 = vmul.f32 %v6763_v16, %v12465_v27  ;;  %v6756_v35 = vpop.permute.xlu0 %6755  ;;  %v6922_v4 = vpack.c.bf16 %v6770_v29, %v6766_v38  ;;  %v12473_v29 = vld [vmem:[#allocation55_spill] sm:$0xff] }
0x1d85   :  { %v6921_v53 = vpack.c.bf16 %v6769_v59, %v6765_v57  ;;  %v6758_v22 = vsel %vm889_vm7, %v11725_v33, %v6756_v35  ;;  %v6764_v24 = vsel %vm889_vm7, %v6756_v35, %v11721_v30  ;;  %v12468_v30 = vld [vmem:[#allocation54_spill] sm:$0xff] }
0x1d86   :  { %6775 = vst [vmem:[#allocation2 + $0x1d0] sm:$0xff] %v6767_v61  ;;  %6776 = vst [vmem:[#allocation2 + $0x1d8] sm:$0xff] %v6768_v9  ;;  %v6771_v62 = vmul.f32 %v6758_v22, %v12464_v58  ;;  %v6772_v28 = vmul.f32 %v6764_v24, %v12465_v27  ;;  %v6786_v21 = vpop.permute.xlu1 %6785  ;;  %6963 = vmatprep.subr.bf16.mxu0 %v6922_v4 }
0x1d87   :  { %v6799_v10 = vsel %vm959_vm8, %v6786_v21, %v12466_v15  ;;  %v6801_v33 = vsel %vm959_vm8, %v12467_v23, %v6786_v21  ;;  %6964 = vmatpush1.bf16.msra.mxu0 %v6921_v53 }
0x1d88   :  { %6779 = vst [vmem:[#allocation2 + $0x1f0] sm:$0xff] %v6771_v62  ;;  %6780 = vst [vmem:[#allocation2 + $0x1f8] sm:$0xff] %v6772_v28  ;;  %v6805_v6 = vmul.f32 %v6801_v33, %v12468_v30  ;;  %v6806_v41 = vmul.f32 %v6799_v10, %v12469_v63  ;;  %v6788_v40 = vpop.permute.xlu0 %6787  ;;  %v6924_v47 = vpack.c.bf16 %v6772_v28, %v6768_v9  ;;  %v12475_v28 = vmov 0  }
0x1d89   :  { %v6923_v56 = vpack.c.bf16 %v6771_v62, %v6767_v61  ;;  %v6800_v32 = vsel %vm959_vm8, %v6788_v40, %v12470_v37  ;;  %v6802_v57 = vsel %vm959_vm8, %v12471_v34, %v6788_v40  ;;  %v12474_v62 = vld [vmem:[#allocation52_spill] sm:$0xff] }
0x1d8a   :  { %6813 = vst [vmem:[#allocation2 + $0x200] sm:$0xff] %v6805_v6  ;;  %6814 = vst [vmem:[#allocation2 + $0x208] sm:$0xff] %v6806_v41  ;;  %v6809_v38 = vmul.f32 %v6802_v57, %v12468_v30  ;;  %v6810_v11 = vmul.f32 %v6800_v32, %v12469_v63  ;;  %v6794_v3 = vpop.permute.xlu1 %6793  ;;  %7004 = vmatprep.subr.bf16.mxu1 %v6924_v47 }
0x1d8b   :  { %v6797_v8 = vsel %vm959_vm8, %v12466_v15, %v6794_v3  ;;  %v6803_v60 = vsel %vm959_vm8, %v6794_v3, %v12467_v23  ;;  %7005 = vmatpush1.bf16.msra.mxu1 %v6923_v56 }
0x1d8c   :  { %v6807_v59 = vmul.f32 %v6797_v8, %v12472_v50  ;;  %v6808_v31 = vmul.f32 %v6803_v60, %v12473_v29  ;;  %v6796_v49 = vpop.permute.xlu0 %6795  ;;  %v6926_v16 = vpack.c.bf16 %v6810_v11, %v6806_v41  ;;  %v6925_v61 = vpack.c.bf16 %v6809_v38, %v6805_v6 }
0x1d8d   :  { %v6798_v9 = vsel %vm959_vm8, %v12470_v37, %v6796_v49  ;;  %v6804_v35 = vsel %vm959_vm8, %v6796_v49, %v12471_v34 }
0x1d8e   :  { %6815 = vst [vmem:[#allocation2 + $0x210] sm:$0xff] %v6807_v59  ;;  %6816 = vst [vmem:[#allocation2 + $0x218] sm:$0xff] %v6808_v31  ;;  %v6811_v4 = vmul.f32 %v6798_v9, %v12472_v50  ;;  %v6812_v53 = vmul.f32 %v6804_v35, %v12473_v29  ;;  %6965 = vmatprep.subr.bf16.mxu0 %v6926_v16 }
0x1d8f   :  { %6966 = vmatpush1.bf16.msra.mxu0 %v6925_v61 }
0x1d90   :  { %v6928_v22 = vpack.c.bf16 %v6812_v53, %v6808_v31  ;;  %v6927_v24 = vpack.c.bf16 %v6811_v4, %v6807_v59 }
0x1d92   :  { %6982 = vmatmul.mubr.bf16.vlgmr.msra.gmra.mrb[68].mxu0 %v12474_v62  ;;  %7006 = vmatprep.subr.bf16.mxu1 %v6928_v22 }
0x1d93   :  { %7007 = vmatpush1.bf16.msra.mxu1 %v6927_v24  ;;  %7309 = vmatprep.mubr.bf16.mxu0 %v12475_v28  ;;  %v12477_v24 = vld [vmem:[#allocation36_spill] sm:$0xff] }
0x1d96   :  { %7023 = vmatmul.mubr.bf16.vlgmr.msra.gmra.mrb[68].mxu1 %v12474_v62 }
0x1d97   :  { %7350 = vmatprep.mubr.bf16.mxu1 %v12475_v28 }
0x1d9b   :  { %v6934_v21 = vpop.permute.xlu1 %6933 }
0x1e65   :  { %v6983_v15 = vpop.f32.mrb[68].mxu0 }
0x1e66   :  { %v6984_v10 = vadd.f32 %v6983_v15, %v6934_v21  ;;  %v6985_v23 = vpop.f32.mrb[69].mxu0 }
0x1e67   :  { %v6986_v33 = vadd.f32 %v6985_v23, %v6934_v21  ;;  %v6987_v6 = vpop.f32.mrb[70].mxu0 }
0x1e68   :  { %v7031_v41 = vmax.f32 %v6984_v10, 0.0  ;;  %v6988_v40 = vpop.f32.mrb[71].mxu0 }
0x1e69   :  { %v7032_v47 = vmax.f32 %v6986_v33, 0.0  ;;  %v7024_v56 = vpop.f32.mrb[68].mxu1 }
0x1e6a   :  { %7115 = vst [vmem:[#allocation2 + $0x80] sm:$0xf] %v7031_v41  ;;  %v7025_v37 = vadd.f32 %v7024_v56, %v6934_v21  ;;  %v7026_v32 = vpop.f32.mrb[69].mxu1  ;;  %7035 = vrot.lane.b32.xlu0 %v7031_v41, %s8777_s0 }
0x1e6b   :  { %7116 = vst [vmem:[#allocation2 + $0x88] sm:$0xf] %v7032_v47  ;;  %v7027_v34 = vadd.f32 %v7026_v32, %v6934_v21  ;;  %7037 = vrot.lane.b32.xlu1 %v7032_v47, %s8777_s0  ;;  %v7028_v57 = vpop.f32.mrb[70].mxu1 }
0x1e6c   :  { %v7033_v38 = vmax.f32 %v7025_v37, 0.0  ;;  %v7029_v11 = vpop.f32.mrb[71].mxu1 }
0x1e6d   :  { %v7034_v3 = vmax.f32 %v7027_v34, 0.0 }
0x1e6e   :  { %7117 = vst [vmem:[#allocation2 + $0x90] sm:$0xf] %v7033_v38  ;;  %7039 = vrot.lane.b32.xlu0 %v7033_v38, %s8777_s0 }
0x1e6f   :  { %7118 = vst [vmem:[#allocation2 + $0x98] sm:$0xf] %v7034_v3  ;;  %7041 = vrot.lane.b32.xlu1 %v7034_v3, %s8777_s0  ;;  %s12476_s0 = sld [smem:[#allocation29_spill]] }
0x1e72   :  { %7055 = vrot.lane.b32.xlu0 %v7031_v41, %s8779_s5 }
0x1e73   :  { %7057 = vrot.lane.b32.xlu1 %v7032_v47, %s8779_s5 }
0x1e75   :  { %v7256_v8 = vld [vmem:[%s12476_s0] sm:$0xf] }
0x1e76   :  { %7059 = vrot.lane.b32.xlu0 %v7033_v38, %s8779_s5 }
0x1e77   :  { %7061 = vrot.lane.b32.xlu1 %v7034_v3, %s8779_s5  ;;  %s12478_s5 = sld [smem:[#allocation28_spill]] }
0x1e7a   :  { %7075 = vrot.lane.b32.xlu0 %v7031_v41, %s8780_s9 }
0x1e7b   :  { %7077 = vrot.lane.b32.xlu1 %v7032_v47, %s8780_s9 }
0x1e7e   :  { %7079 = vrot.lane.b32.xlu0 %v7033_v38, %s8780_s9 }
0x1e7f   :  { %7081 = vrot.lane.b32.xlu1 %v7034_v3, %s8780_s9  ;;  %s12479_s9 = sld [smem:[#allocation30_spill]] }
0x1e82   :  { %7095 = vrot.lane.b32.xlu0 %v7031_v41, %s8781_s16 }
0x1e83   :  { %7097 = vrot.lane.b32.xlu1 %v7032_v47, %s8781_s16 }
0x1e86   :  { %7099 = vrot.lane.b32.xlu0 %v7033_v38, %s8781_s16 }
0x1e87   :  { %7101 = vrot.lane.b32.xlu1 %v7034_v3, %s8781_s16 }
0x1e8a   :  { %7119 = vrot.lane.b32.xlu0 %v7031_v41, %s8782_s18 }
0x1e8b   :  { %7121 = vrot.lane.b32.xlu1 %v7032_v47, %s8782_s18 }
0x1e8e   :  { %7123 = vrot.lane.b32.xlu0 %v7033_v38, %s8782_s18 }
0x1e8f   :  { %7125 = vrot.lane.b32.xlu1 %v7034_v3, %s8782_s18 }
0x1e92   :  { %7139 = vrot.lane.b32.xlu0 %v7031_v41, %s8783_s22 }
0x1e93   :  { %7141 = vrot.lane.b32.xlu1 %v7032_v47, %s8783_s22 }
0x1e96   :  { %7143 = vrot.lane.b32.xlu0 %v7033_v38, %s8783_s22 }
0x1e97   :  { %7145 = vrot.lane.b32.xlu1 %v7034_v3, %s8783_s22 }
0x1e9a   :  { %7159 = vrot.lane.b32.xlu0 %v7031_v41, %s8784_s23 }
0x1e9b   :  { %7161 = vrot.lane.b32.xlu1 %v7032_v47, %s8784_s23 }
0x1e9e   :  { %7163 = vrot.lane.b32.xlu0 %v7033_v38, %s8784_s23 }
0x1e9f   :  { %7165 = vrot.lane.b32.xlu1 %v7034_v3, %s8784_s23 }
0x1ea2   :  { %7179 = vrot.lane.b32.xlu0 %v7031_v41, %s8785_s26 }
0x1ea3   :  { %7181 = vrot.lane.b32.xlu1 %v7032_v47, %s8785_s26 }
0x1ea6   :  { %7183 = vrot.lane.b32.xlu0 %v7033_v38, %s8785_s26 }
0x1ea7   :  { %7185 = vrot.lane.b32.xlu1 %v7034_v3, %s8785_s26 }
0x1eaa   :  { %7259 = vperm.xlu0 %8438, %v7256_v8  }
0x1edc   :  { %v7036_v60 = vpop.permute.xlu0 %7035 }
0x1edd   :  { %v7038_v59 = vpop.permute.xlu1 %7037 }
0x1ede   :  { %v7045_v31 = vsel %vm463_vm1, %v7036_v60, %v7038_v59 }
0x1edf   :  { %v7048_v49 = vmul.f32 %v7045_v31, %v12447_v46 }
0x1ee0   :  { %v7040_v16 = vpop.permute.xlu0 %7039 }
0x1ee1   :  { %7052 = vst [vmem:[#allocation2 + $0x8] sm:$0xf] %v7048_v49  ;;  %v7044_v61 = vsel %vm463_vm1, %v7038_v59, %v7040_v16  ;;  %v7042_v9 = vpop.permute.xlu1 %7041 }
0x1ee2   :  { %v7049_v35 = vmul.f32 %v7044_v61, %v9161_v25  ;;  %v7043_v4 = vsel %vm463_vm1, %v7040_v16, %v7042_v9  ;;  %v7046_v53 = vsel %vm463_vm1, %v7042_v9, %v7036_v60 }
0x1ee3   :  { %v7047_v22 = vmul.f32 %v7046_v53, %v12448_v52  ;;  %v7050_v62 = vmul.f32 %v7043_v4, %v12477_v24 }
0x1ee4   :  { %7053 = vst [vmem:[#allocation2 + $0x10] sm:$0xf] %v7049_v35  ;;  %v7056_v46 = vpop.permute.xlu0 %7055 }
0x1ee5   :  { %7051 = vst [vmem:[#allocation2] sm:$0xf] %v7047_v22  ;;  %7054 = vst [vmem:[#allocation2 + $0x18] sm:$0xf] %v7050_v62  ;;  %v7058_v21 = vpop.permute.xlu1 %7057 }
0x1ee6   :  { %v7065_v15 = vsel %vm536_vm2, %v7056_v46, %v7058_v21 }
0x1ee7   :  { %v7068_v25 = vmul.f32 %v7065_v15, %v9181_v42 }
0x1ee8   :  { %v7060_v10 = vpop.permute.xlu0 %7059  ;;  %v7200_v34 = vld [vmem:[#allocation2 + $0x8] sm:$0xff] }
0x1ee9   :  { %7072 = vst [vmem:[#allocation2 + $0x28] sm:$0xf] %v7068_v25  ;;  %v7064_v23 = vsel %vm536_vm2, %v7058_v21, %v7060_v10  ;;  %v7062_v33 = vpop.permute.xlu1 %7061 }
0x1eea   :  { %v7069_v52 = vmul.f32 %v7064_v23, %v9187_v44  ;;  %v7063_v6 = vsel %vm536_vm2, %v7060_v10, %v7062_v33  ;;  %v7066_v41 = vsel %vm536_vm2, %v7062_v33, %v7056_v46 }
0x1eeb   :  { %v7067_v40 = vmul.f32 %v7066_v41, %v9184_v43  ;;  %v7070_v47 = vmul.f32 %v7063_v6, %v9194_v48  ;;  %v7201_v53 = vld [vmem:[#allocation2 + $0x10] sm:$0xff] }
0x1eec   :  { %7073 = vst [vmem:[#allocation2 + $0x30] sm:$0xf] %v7069_v52  ;;  %v7076_v42 = vpop.permute.xlu0 %7075  ;;  %v7199_v59 = vld [vmem:[#allocation2] sm:$0xff]  ;;  %v7202_v61 = vld [vmem:[#allocation2 + $0x18] sm:$0xff] }
0x1eed   :  { %7071 = vst [vmem:[#allocation2 + $0x20] sm:$0xf] %v7067_v40  ;;  %7074 = vst [vmem:[#allocation2 + $0x38] sm:$0xf] %v7070_v47  ;;  %v7078_v56 = vpop.permute.xlu1 %7077 }
0x1eee   :  { %v7085_v37 = vsel %vm606_vm3, %v7076_v42, %v7078_v56 }
0x1eef   :  { %v7088_v44 = vmul.f32 %v7085_v37, %v9212_v1 }
0x1ef0   :  { %v7080_v32 = vpop.permute.xlu0 %7079  ;;  %v7204_v57 = vld [vmem:[#allocation2 + $0x28] sm:$0xff] }
0x1ef1   :  { %7092 = vst [vmem:[#allocation2 + $0x48] sm:$0xf] %v7088_v44  ;;  %v7084_v38 = vsel %vm606_vm3, %v7078_v56, %v7080_v32  ;;  %v7082_v43 = vpop.permute.xlu1 %7081  ;;  %v7236_v11 = vpack.c.bf16 %v7204_v57, %v7200_v34 }
0x1ef2   :  { %v7089_v48 = vmul.f32 %v7084_v38, %v9218_v7  ;;  %v7083_v3 = vsel %vm606_vm3, %v7080_v32, %v7082_v43  ;;  %v7086_v8 = vsel %vm606_vm3, %v7082_v43, %v7076_v42 }
0x1ef3   :  { %v7087_v60 = vmul.f32 %v7086_v8, %v9215_v5  ;;  %v7090_v1 = vmul.f32 %v7083_v3, %v9225_v12  ;;  %7277 = vmatprep.subr.bf16.mxu0 %v7236_v11  ;;  %v7205_v31 = vld [vmem:[#allocation2 + $0x30] sm:$0xff] }
0x1ef4   :  { %7093 = vst [vmem:[#allocation2 + $0x50] sm:$0xf] %v7089_v48  ;;  %v7096_v49 = vpop.permute.xlu0 %7095  ;;  %v7203_v16 = vld [vmem:[#allocation2 + $0x20] sm:$0xff]  ;;  %v7206_v9 = vld [vmem:[#allocation2 + $0x38] sm:$0xff]  ;;  %v7237_v5 = vpack.c.bf16 %v7205_v31, %v7201_v53 }
0x1ef5   :  { %7091 = vst [vmem:[#allocation2 + $0x40] sm:$0xf] %v7087_v60  ;;  %7094 = vst [vmem:[#allocation2 + $0x58] sm:$0xf] %v7090_v1  ;;  %v7098_v7 = vpop.permute.xlu1 %7097  ;;  %v7235_v35 = vpack.c.bf16 %v7203_v16, %v7199_v59  ;;  %v7238_v4 = vpack.c.bf16 %v7206_v9, %v7202_v61  ;;  %v7215_v9 = vld [vmem:[#allocation2 + $0x80] sm:$0xff] }
0x1ef6   :  { %v7105_v22 = vsel %vm676_vm4, %v7096_v49, %v7098_v7 }
0x1ef7   :  { %v7108_v12 = vmul.f32 %v7105_v22, %v12450_v45  ;;  %7278 = vmatpush1.bf16.msra.mxu0 %v7235_v35  ;;  %7318 = vmatprep.subr.bf16.mxu1 %v7238_v4  ;;  %v7216_v4 = vld [vmem:[#allocation2 + $0x88] sm:$0xff]  ;;  %v7217_v22 = vld [vmem:[#allocation2 + $0x90] sm:$0xff] }
0x1ef8   :  { %7319 = vmatpush1.bf16.msra.mxu1 %v7237_v5  ;;  %v7100_v24 = vpop.permute.xlu0 %7099  ;;  %v7208_v41 = vld [vmem:[#allocation2 + $0x48] sm:$0xff] }
0x1ef9   :  { %7112 = vst [vmem:[#allocation2 + $0x68] sm:$0xf] %v7108_v12  ;;  %v7104_v62 = vsel %vm676_vm4, %v7098_v7, %v7100_v24  ;;  %v7102_v46 = vpop.permute.xlu1 %7101 }
0x1efa   :  { %v7109_v21 = vmul.f32 %v7104_v62, %v12451_v55  ;;  %v7103_v15 = vsel %vm676_vm4, %v7100_v24, %v7102_v46  ;;  %v7106_v25 = vsel %vm676_vm4, %v7102_v46, %v7096_v49  ;;  %v7218_v24 = vld [vmem:[#allocation2 + $0x98] sm:$0xff] }
0x1efb   :  { %v7107_v10 = vmul.f32 %v7106_v25, %v12452_v51  ;;  %v7110_v45 = vmul.f32 %v7103_v15, %v12453_v18  ;;  %v7209_v8 = vld [vmem:[#allocation2 + $0x50] sm:$0xff] }
0x1efc   :  { %7113 = vst [vmem:[#allocation2 + $0x70] sm:$0xf] %v7109_v21  ;;  %v7120_v23 = vpop.permute.xlu0 %7119  ;;  %v7207_v32 = vld [vmem:[#allocation2 + $0x40] sm:$0xff]  ;;  %v7210_v43 = vld [vmem:[#allocation2 + $0x58] sm:$0xff] }
0x1efd   :  { %7111 = vst [vmem:[#allocation2 + $0x60] sm:$0xf] %v7107_v10  ;;  %7114 = vst [vmem:[#allocation2 + $0x78] sm:$0xf] %v7110_v45  ;;  %v7122_v33 = vpop.permute.xlu1 %7121 }
0x1efe   :  { %v7129_v52 = vsel %vm749_vm5, %v7120_v23, %v7122_v33 }
0x1eff   :  { %v7131_v55 = vmul.f32 %v7129_v52, %v12454_v19 }
0x1f00   :  { %v7124_v6 = vpop.permute.xlu0 %7123  ;;  %v7212_v40 = vld [vmem:[#allocation2 + $0x68] sm:$0xff] }
0x1f01   :  { %7135 = vst [vmem:[#allocation2 + $0xa0] sm:$0xf] %v7131_v55  ;;  %v7128_v47 = vsel %vm749_vm5, %v7122_v33, %v7124_v6  ;;  %v7126_v51 = vpop.permute.xlu1 %7125  ;;  %v7240_v42 = vpack.c.bf16 %v7212_v40, %v7208_v41 }
0x1f02   :  { %v7132_v18 = vmul.f32 %v7128_v47, %v12455_v54  ;;  %v7127_v56 = vsel %vm749_vm5, %v7124_v6, %v7126_v51  ;;  %v7130_v37 = vsel %vm749_vm5, %v7126_v51, %v7120_v23 }
0x1f03   :  { %v7133_v44 = vmul.f32 %v7127_v56, %v12456_v20  ;;  %v7134_v19 = vmul.f32 %v7130_v37, %v12457_v13  ;;  %7279 = vmatprep.subr.bf16.mxu0 %v7240_v42  ;;  %v7213_v34 = vld [vmem:[#allocation2 + $0x70] sm:$0xff] }
0x1f04   :  { %7136 = vst [vmem:[#allocation2 + $0xa8] sm:$0xf] %v7132_v18  ;;  %v7140_v57 = vpop.permute.xlu0 %7139  ;;  %v7211_v38 = vld [vmem:[#allocation2 + $0x60] sm:$0xff]  ;;  %v7214_v11 = vld [vmem:[#allocation2 + $0x78] sm:$0xff]  ;;  %v7241_v20 = vpack.c.bf16 %v7213_v34, %v7209_v8 }
0x1f05   :  { %7137 = vst [vmem:[#allocation2 + $0xb0] sm:$0xf] %v7133_v44  ;;  %7138 = vst [vmem:[#allocation2 + $0xb8] sm:$0xf] %v7134_v19  ;;  %v7142_v54 = vpop.permute.xlu1 %7141  ;;  %v7239_v48 = vpack.c.bf16 %v7211_v38, %v7207_v32  ;;  %v7242_v3 = vpack.c.bf16 %v7214_v11, %v7210_v43 }
0x1f06   :  { %v7149_v60 = vsel %vm819_vm6, %v7140_v57, %v7142_v54 }
0x1f07   :  { %v7151_v13 = vmul.f32 %v7149_v60, %v12460_v26  ;;  %7280 = vmatpush1.bf16.msra.mxu0 %v7239_v48  ;;  %7320 = vmatprep.subr.bf16.mxu1 %v7242_v3 }
0x1f08   :  { %7321 = vmatpush1.bf16.msra.mxu1 %v7241_v20  ;;  %v7144_v1 = vpop.permute.xlu0 %7143  ;;  %v7219_v7 = vld [vmem:[#allocation2 + $0xa0] sm:$0xff] }
0x1f09   :  { %7155 = vst [vmem:[#allocation2 + $0xc0] sm:$0xf] %v7151_v13  ;;  %v7148_v59 = vsel %vm819_vm6, %v7142_v54, %v7144_v1  ;;  %v7146_v31 = vpop.permute.xlu1 %7145  ;;  %v7243_v21 = vpack.c.bf16 %v7219_v7, %v7215_v9 }
0x1f0a   :  { %v7152_v49 = vmul.f32 %v7148_v59, %v12461_v36  ;;  %v7147_v16 = vsel %vm819_vm6, %v7144_v1, %v7146_v31  ;;  %v7150_v61 = vsel %vm819_vm6, %v7146_v31, %v7140_v57 }
0x1f0b   :  { %v7153_v26 = vmul.f32 %v7147_v16, %v12462_v14  ;;  %v7154_v35 = vmul.f32 %v7150_v61, %v12463_v2  ;;  %v7220_v53 = vld [vmem:[#allocation2 + $0xa8] sm:$0xff] }
0x1f0c   :  { %7156 = vst [vmem:[#allocation2 + $0xc8] sm:$0xf] %v7152_v49  ;;  %v7160_v5 = vpop.permute.xlu0 %7159  ;;  %v7244_v12 = vpack.c.bf16 %v7220_v53, %v7216_v4  ;;  %v7222_v36 = vld [vmem:[#allocation2 + $0xb8] sm:$0xff]  ;;  %v7221_v62 = vld [vmem:[#allocation2 + $0xb0] sm:$0xff]  ;;  %v7255_v49 = vld [vmem:[%s12478_s5] sm:$0x3] }
0x1f0d   :  { %7157 = vst [vmem:[#allocation2 + $0xd0] sm:$0xf] %v7153_v26  ;;  %7158 = vst [vmem:[#allocation2 + $0xd8] sm:$0xf] %v7154_v35  ;;  %v7162_v46 = vpop.permute.xlu1 %7161  ;;  %v7246_v15 = vpack.c.bf16 %v7222_v36, %v7218_v24  ;;  %v7245_v25 = vpack.c.bf16 %v7221_v62, %v7217_v22 }
0x1f0e   :  { %v7169_v14 = vsel %vm889_vm7, %v7160_v5, %v7162_v46  ;;  %7281 = vmatprep.subr.bf16.mxu0 %v7244_v12 }
0x1f0f   :  { %v7171_v2 = vmul.f32 %v7169_v14, %v12404_v0  ;;  %7282 = vmatpush1.bf16.msra.mxu0 %v7243_v21  ;;  %7322 = vmatprep.subr.bf16.mxu1 %v7246_v15 }
0x1f10   :  { %7323 = vmatpush1.bf16.msra.mxu1 %v7245_v25  ;;  %v7164_v10 = vpop.permute.xlu0 %7163  ;;  %v7223_v37 = vld [vmem:[#allocation2 + $0xc0] sm:$0xff] }
0x1f11   :  { %7175 = vst [vmem:[#allocation2 + $0xe0] sm:$0xf] %v7171_v2  ;;  %v7168_v45 = vsel %vm889_vm7, %v7162_v46, %v7164_v10  ;;  %v7166_v23 = vpop.permute.xlu1 %7165 }
0x1f12   :  { %v7172_v33 = vmul.f32 %v7168_v45, %v12405_v39  ;;  %v7167_v52 = vsel %vm889_vm7, %v7164_v10, %v7166_v23  ;;  %v7170_v55 = vsel %vm889_vm7, %v7166_v23, %v7160_v5 }
0x1f13   :  { %v7173_v6 = vmul.f32 %v7167_v52, %v12464_v58  ;;  %v7174_v0 = vmul.f32 %v7170_v55, %v12465_v27  ;;  %v7224_v32 = vld [vmem:[#allocation2 + $0xc8] sm:$0xff]  ;;  %v8668_v55 = vld [vmem:[%s12479_s9 + $0x10] sm:$0xff]  }
0x1f14   :  { %7176 = vst [vmem:[#allocation2 + $0xe8] sm:$0xf] %v7172_v33  ;;  %v7180_v41 = vpop.permute.xlu0 %7179  ;;  %v7226_v57 = vld [vmem:[#allocation2 + $0xd8] sm:$0xff]  ;;  %v7225_v11 = vld [vmem:[#allocation2 + $0xd0] sm:$0xff]  ;;  %v8666_v33 = vld [vmem:[%s12479_s9] sm:$0xff]  }
0x1f15   :  { %7177 = vst [vmem:[#allocation2 + $0xf0] sm:$0xf] %v7173_v6  ;;  %7178 = vst [vmem:[#allocation2 + $0xf8] sm:$0xf] %v7174_v0  ;;  %v7182_v40 = vpop.permute.xlu1 %7181  ;;  %v8667_v52 = vld [vmem:[%s12479_s9 + $0x8] sm:$0xff]   ;;  %v8669_v6 = vld [vmem:[%s12479_s9 + $0x18] sm:$0xff]  }
0x1f16   :  { %v7189_v47 = vsel %vm959_vm8, %v7180_v41, %v7182_v40  ;;  %v8670_v0 = vld [vmem:[%s12479_s9 + $0x20] sm:$0xff]  }
0x1f17   :  { %v7191_v39 = vmul.f32 %v7189_v47, %v12468_v30 }
0x1f18   :  { %v7184_v51 = vpop.permute.xlu0 %7183  ;;  %v7227_v44 = vld [vmem:[#allocation2 + $0xe0] sm:$0xff] }
0x1f19   :  { %7195 = vst [vmem:[#allocation2 + $0x100] sm:$0xf] %v7191_v39  ;;  %v7188_v42 = vsel %vm959_vm8, %v7182_v40, %v7184_v51  ;;  %v7186_v18 = vpop.permute.xlu1 %7185  ;;  %v7247_v54 = vpack.c.bf16 %v7227_v44, %v7223_v37  ;;  %v8672_v40 = vld [vmem:[%s12479_s9 + $0x30] ss:$0 sps:$4 sm:$0xff]  }
0x1f1a   :  { %v7192_v58 = vmul.f32 %v7188_v42, %v12469_v63  ;;  %v7187_v27 = vsel %vm959_vm8, %v7184_v51, %v7186_v18  ;;  %v7190_v56 = vsel %vm959_vm8, %v7186_v18, %v7180_v41  ;;  %v8671_v41 = vld [vmem:[%s12479_s9 + $0x28] sm:$0xff]  }
0x1f1b   :  { %v7193_v19 = vmul.f32 %v7187_v27, %v12472_v50  ;;  %v7194_v30 = vmul.f32 %v7190_v56, %v12473_v29  ;;  %v7228_v34 = vld [vmem:[#allocation2 + $0xe8] sm:$0xff] }
0x1f1c   :  { %7196 = vst [vmem:[#allocation2 + $0x108] sm:$0xf] %v7192_v58  ;;  %v7248_v38 = vpack.c.bf16 %v7228_v34, %v7224_v32  ;;  %v7230_v43 = vld [vmem:[#allocation2 + $0xf8] sm:$0xff]  ;;  %v7229_v63 = vld [vmem:[#allocation2 + $0xf0] sm:$0xff] }
0x1f1d   :  { %7197 = vst [vmem:[#allocation2 + $0x110] sm:$0xf] %v7193_v19  ;;  %7198 = vst [vmem:[#allocation2 + $0x118] sm:$0xf] %v7194_v30  ;;  %v7250_v48 = vpack.c.bf16 %v7230_v43, %v7226_v57  ;;  %v7249_v17 = vpack.c.bf16 %v7229_v63, %v7225_v11 }
0x1f1e   :  { %7283 = vmatprep.subr.bf16.mxu0 %v7248_v38 }
0x1f1f   :  { %7284 = vmatpush1.bf16.msra.mxu0 %v7247_v54  ;;  %7324 = vmatprep.subr.bf16.mxu1 %v7250_v48 }
0x1f20   :  { %7325 = vmatpush1.bf16.msra.mxu1 %v7249_v17  ;;  %v7231_v50 = vld [vmem:[#allocation2 + $0x100] sm:$0xff] }
0x1f21   :  { %v7251_v29 = vpack.c.bf16 %v7231_v50, %v7231_v50 }
0x1f23   :  { %v7232_v3 = vld [vmem:[#allocation2 + $0x108] sm:$0xff]  ;;  %v7266_v59 = vsel %vm1088_vm9, %v7251_v29, 0 }
0x1f24   :  { %v7252_v8 = vpack.c.bf16 %v7232_v3, %v7232_v3  ;;  %v7234_v60 = vld [vmem:[#allocation2 + $0x118] sm:$0xff]  ;;  %v7233_v20 = vld [vmem:[#allocation2 + $0x110] sm:$0xff] }
0x1f25   :  { %v7254_v13 = vpack.c.bf16 %v7234_v60, %v7234_v60  ;;  %v7253_v1 = vpack.c.bf16 %v7233_v20, %v7233_v20 }
0x1f26   :  { %7992 = vmatprep.subr.msk.bf16.mxu0 %vm1088_vm9, %v7252_v8 }
0x1f27   :  { %7286 = vmatpush1.bf16.msra.mxu0 %v7266_v59  ;;  %7994 = vmatprep.subr.msk.bf16.mxu1 %vm1088_vm9, %v7254_v13  ;;  %v7272_v31 = vsel %vm1088_vm9, %v7253_v1, 0 }
0x1f28   :  { %7327 = vmatpush1.bf16.msra.mxu1 %v7272_v31 }
0x1f29   :  { %v7260_v16 = vpop.permute.xlu0 %7259 }
0x1f2a   :  { %7993 = vmatmul.mubr.msk.bf16.vlgmr.msra.gmra.mrb[72].mxu0 %vm1084_vm10, %v7255_v49 }
0x1f2b   :  { %7995 = vmatmul.mubr.msk.bf16.vlgmr.msra.gmra.mrb[72].mxu1 %vm1084_vm10, %v7255_v49  ;;  %7480 = vmatprep.mubr.bf16.mxu0 %v12475_v28 }
0x1f2c   :  { %7581 = vmatprep.mubr.bf16.mxu1 %v12475_v28 }
0x1ffd   :  { %v7311_v61 = vpop.f32.mrb[72].mxu0 }
0x1ffe   :  { %v7312_v9 = vadd.f32 %v7311_v61, %v7260_v16  ;;  %v7313_v7 = vpop.f32.mrb[73].mxu0  ;;  %v7352_v26 = vpop.f32.mrb[72].mxu1 }
0x1fff   :  { %v7314_v35 = vadd.f32 %v7313_v7, %v7260_v16  ;;  %v7353_v4 = vadd.f32 %v7352_v26, %v7260_v16  ;;  %v7354_v53 = vpop.f32.mrb[73].mxu1  ;;  %v7315_v22 = vpop.f32.mrb[74].mxu0 }
0x2000   :  { %v7359_v5 = vmax.f32 %v7312_v9, 0.0  ;;  %v7355_v12 = vadd.f32 %v7354_v53, %v7260_v16  ;;  %v7356_v24 = vpop.f32.mrb[74].mxu1  ;;  %v7316_v36 = vpop.f32.mrb[75].mxu0 }
0x2001   :  { %v7360_v62 = vmax.f32 %v7314_v35, 0.0  ;;  %v7361_v46 = vmax.f32 %v7353_v4, 0.0  ;;  %v7357_v21 = vpop.f32.mrb[75].mxu1 }
0x2002   :  { %v7376_v15 = vpack.c.bf16 %v7359_v5, %v7359_v5  ;;  %v7362_v25 = vmax.f32 %v7355_v12, 0.0 }
0x2003   :  { %v7377_v14 = vpack.c.bf16 %v7360_v62, %v7360_v62  ;;  %v7378_v2 = vpack.c.bf16 %v7361_v46, %v7361_v46 }
0x2004   :  { %v7379_v10 = vpack.c.bf16 %v7362_v25, %v7362_v25  ;;  %v7437_v45 = vsel %vm7435_vm15, %v7376_v15, 0 }
0x2005   :  { %8003 = vmatprep.subr.msk.bf16.mxu0 %vm7435_vm15, %v7377_v14  ;;  %v7443_v23 = vsel %vm7435_vm15, %v7378_v2, 0 }
0x2006   :  { %7449 = vmatpush1.bf16.msra.mxu0 %v7437_v45  ;;  %8011 = vmatprep.subr.msk.bf16.mxu1 %vm7435_vm15, %v7379_v10 }
0x2007   :  { %7550 = vmatpush1.bf16.msra.mxu1 %v7443_v23 }
0x2009   :  { %8004 = vmatmul.mubr.msk.bf16.vlgmr.msra.gmra.mrb[76].mxu0 %vm7413_vm0, %v8666_v33 }
0x200a   :  { %8012 = vmatmul.mubr.msk.bf16.vlgmr.msra.gmra.mrb[76].mxu1 %vm7413_vm0, %v8666_v33  ;;  %7490 = vmatprep.mubr.bf16.mxu0 %v12475_v28 }
0x200b   :  { %7591 = vmatprep.mubr.bf16.mxu1 %v12475_v28 }
0x2011   :  { %8005 = vmatmul.mubr.msk.bf16.gmra.mrb[80].mxu0 %vm7413_vm0, %v8667_v52 }
0x2012   :  { %8013 = vmatmul.mubr.msk.bf16.gmra.mrb[80].mxu1 %vm7413_vm0, %v8667_v52  ;;  %7500 = vmatprep.mubr.bf16.mxu0 %v12475_v28 }
0x2013   :  { %7601 = vmatprep.mubr.bf16.mxu1 %v12475_v28 }
0x2019   :  { %8006 = vmatmul.mubr.msk.bf16.gmra.mrb[84].mxu0 %vm7413_vm0, %v8668_v55 }
0x201a   :  { %8014 = vmatmul.mubr.msk.bf16.gmra.mrb[84].mxu1 %vm7413_vm0, %v8668_v55  ;;  %7510 = vmatprep.mubr.bf16.mxu0 %v12475_v28 }
0x201b   :  { %7611 = vmatprep.mubr.bf16.mxu1 %v12475_v28 }
0x2021   :  { %8007 = vmatmul.mubr.msk.bf16.gmra.mrb[88].mxu0 %vm7413_vm0, %v8669_v6 }
0x2022   :  { %8015 = vmatmul.mubr.msk.bf16.gmra.mrb[88].mxu1 %vm7413_vm0, %v8669_v6  ;;  %7520 = vmatprep.mubr.bf16.mxu0 %v12475_v28 }
0x2023   :  { %7621 = vmatprep.mubr.bf16.mxu1 %v12475_v28 }
0x2029   :  { %8008 = vmatmul.mubr.msk.bf16.gmra.mrb[92].mxu0 %vm7413_vm0, %v8670_v0 }
0x202a   :  { %8016 = vmatmul.mubr.msk.bf16.gmra.mrb[92].mxu1 %vm7413_vm0, %v8670_v0  ;;  %7530 = vmatprep.mubr.bf16.mxu0 %v12475_v28 }
0x202b   :  { %7631 = vmatprep.mubr.bf16.mxu1 %v12475_v28 }
0x2031   :  { %8009 = vmatmul.mubr.msk.bf16.gmra.mrb[96].mxu0 %vm7413_vm0, %v8671_v41 }
0x2032   :  { %8017 = vmatmul.mubr.msk.bf16.gmra.mrb[96].mxu1 %vm7413_vm0, %v8671_v41  ;;  %7540 = vmatprep.mubr.bf16.mxu0 %v12475_v28 }
0x2033   :  { %7641 = vmatprep.mubr.bf16.mxu1 %v12475_v28 }
0x2039   :  { %8010 = vmatmul.mubr.msk.bf16.gmra.mrb[100].mxu0 %vm7413_vm0, %v8672_v40 }
0x203a   :  { %8018 = vmatmul.mubr.msk.bf16.gmra.mrb[100].mxu1 %vm7413_vm0, %v8672_v40 }
0x20dc   :  { %v7482_v47 = vpop.f32.mrb[76].mxu0 }
0x20dd   :  { %7650 = vst [vmem:[%s9036_s4] sm:$0xff] %v7482_v47  ;;  %v7583_v39 = vpop.f32.mrb[76].mxu1  ;;  %v7484_v51 = vpop.f32.mrb[77].mxu0 }
0x20de   :  { %7652 = vst [vmem:[%s9036_s4 + $0x10] sm:$0xff] %v7583_v39  ;;  %7651 = vst [vmem:[%s9036_s4 + $0x8] sm:$0xff] %v7484_v51  ;;  %v7585_v42 = vpop.f32.mrb[77].mxu1  ;;  %v7486_v18 = vpop.f32.mrb[78].mxu0 }
0x20df   :  { %7653 = vst [vmem:[%s9036_s4 + $0x18] sm:$0xff] %v7585_v42  ;;  %7654 = vst [vmem:[%s9036_s4 + $0x20] sm:$0xff] %v7486_v18  ;;  %v7587_v28 = vpop.f32.mrb[78].mxu1  ;;  %v7488_v58 = vpop.f32.mrb[79].mxu0 }
0x20e0   :  { %7656 = vst [vmem:[%s9036_s4 + $0x30] sm:$0xff] %v7587_v28  ;;  %7655 = vst [vmem:[%s9036_s4 + $0x28] sm:$0xff] %v7488_v58  ;;  %v7589_v27 = vpop.f32.mrb[79].mxu1 }
0x20e1   :  { %7657 = vst [vmem:[%s9036_s4 + $0x38] sm:$0xff] %v7589_v27 }
0x20e4   :  { %v7492_v56 = vpop.f32.mrb[80].mxu0 }
0x20e5   :  { %7658 = vst [vmem:[%s9036_s4 + $0x40] sm:$0xff] %v7492_v56  ;;  %v7593_v37 = vpop.f32.mrb[80].mxu1  ;;  %v7494_v44 = vpop.f32.mrb[81].mxu0 }
0x20e6   :  { %7660 = vst [vmem:[%s9036_s4 + $0x50] sm:$0xff] %v7593_v37  ;;  %7659 = vst [vmem:[%s9036_s4 + $0x48] sm:$0xff] %v7494_v44  ;;  %v7595_v19 = vpop.f32.mrb[81].mxu1  ;;  %v7496_v30 = vpop.f32.mrb[82].mxu0 }
0x20e7   :  { %7661 = vst [vmem:[%s9036_s4 + $0x58] sm:$0xff] %v7595_v19  ;;  %7662 = vst [vmem:[%s9036_s4 + $0x60] sm:$0xff] %v7496_v30  ;;  %v7597_v32 = vpop.f32.mrb[82].mxu1  ;;  %v7498_v34 = vpop.f32.mrb[83].mxu0 }
0x20e8   :  { %7664 = vst [vmem:[%s9036_s4 + $0x70] sm:$0xff] %v7597_v32  ;;  %7663 = vst [vmem:[%s9036_s4 + $0x68] sm:$0xff] %v7498_v34  ;;  %v7599_v57 = vpop.f32.mrb[83].mxu1 }
0x20e9   :  { %7665 = vst [vmem:[%s9036_s4 + $0x78] sm:$0xff] %v7599_v57 }
0x20ec   :  { %v7502_v38 = vpop.f32.mrb[84].mxu0 }
0x20ed   :  { %7666 = vst [vmem:[%s9036_s4 + $0x80] sm:$0xff] %v7502_v38  ;;  %v7603_v43 = vpop.f32.mrb[84].mxu1  ;;  %v7504_v11 = vpop.f32.mrb[85].mxu0 }
0x20ee   :  { %7668 = vst [vmem:[%s9036_s4 + $0x90] sm:$0xff] %v7603_v43  ;;  %7667 = vst [vmem:[%s9036_s4 + $0x88] sm:$0xff] %v7504_v11  ;;  %v7605_v63 = vpop.f32.mrb[85].mxu1  ;;  %v7506_v54 = vpop.f32.mrb[86].mxu0 }
0x20ef   :  { %7669 = vst [vmem:[%s9036_s4 + $0x98] sm:$0xff] %v7605_v63  ;;  %7670 = vst [vmem:[%s9036_s4 + $0xa0] sm:$0xff] %v7506_v54  ;;  %v7607_v48 = vpop.f32.mrb[86].mxu1  ;;  %v7508_v17 = vpop.f32.mrb[87].mxu0 }
0x20f0   :  { %7672 = vst [vmem:[%s9036_s4 + $0xb0] sm:$0xff] %v7607_v48  ;;  %7671 = vst [vmem:[%s9036_s4 + $0xa8] sm:$0xff] %v7508_v17  ;;  %v7609_v50 = vpop.f32.mrb[87].mxu1 }
0x20f1   :  { %7673 = vst [vmem:[%s9036_s4 + $0xb8] sm:$0xff] %v7609_v50 }
0x20f4   :  { %v7512_v29 = vpop.f32.mrb[88].mxu0 }
0x20f5   :  { %7674 = vst [vmem:[%s9036_s4 + $0xc0] sm:$0xff] %v7512_v29  ;;  %v7613_v3 = vpop.f32.mrb[88].mxu1  ;;  %v7514_v8 = vpop.f32.mrb[89].mxu0 }
0x20f6   :  { %7676 = vst [vmem:[%s9036_s4 + $0xd0] sm:$0xff] %v7613_v3  ;;  %7675 = vst [vmem:[%s9036_s4 + $0xc8] sm:$0xff] %v7514_v8  ;;  %v7615_v60 = vpop.f32.mrb[89].mxu1  ;;  %v7516_v20 = vpop.f32.mrb[90].mxu0 }
0x20f7   :  { %7677 = vst [vmem:[%s9036_s4 + $0xd8] sm:$0xff] %v7615_v60  ;;  %7678 = vst [vmem:[%s9036_s4 + $0xe0] sm:$0xff] %v7516_v20  ;;  %v7617_v13 = vpop.f32.mrb[90].mxu1  ;;  %v7518_v1 = vpop.f32.mrb[91].mxu0 }
0x20f8   :  { %7680 = vst [vmem:[%s9036_s4 + $0xf0] sm:$0xff] %v7617_v13  ;;  %7679 = vst [vmem:[%s9036_s4 + $0xe8] sm:$0xff] %v7518_v1  ;;  %v7619_v59 = vpop.f32.mrb[91].mxu1 }
0x20f9   :  { %7681 = vst [vmem:[%s9036_s4 + $0xf8] sm:$0xff] %v7619_v59 }
0x20fc   :  { %v7522_v31 = vpop.f32.mrb[92].mxu0 }
0x20fd   :  { %7682 = vst [vmem:[%s9036_s4 + $0x100] sm:$0xff] %v7522_v31  ;;  %v7623_v49 = vpop.f32.mrb[92].mxu1  ;;  %v7524_v16 = vpop.f32.mrb[93].mxu0 }
0x20fe   :  { %7684 = vst [vmem:[%s9036_s4 + $0x110] sm:$0xff] %v7623_v49  ;;  %7683 = vst [vmem:[%s9036_s4 + $0x108] sm:$0xff] %v7524_v16  ;;  %v7625_v61 = vpop.f32.mrb[93].mxu1  ;;  %v7526_v9 = vpop.f32.mrb[94].mxu0 }
0x20ff   :  { %7685 = vst [vmem:[%s9036_s4 + $0x118] sm:$0xff] %v7625_v61  ;;  %7686 = vst [vmem:[%s9036_s4 + $0x120] sm:$0xff] %v7526_v9  ;;  %v7627_v7 = vpop.f32.mrb[94].mxu1  ;;  %v7528_v26 = vpop.f32.mrb[95].mxu0 }
0x2100   :  { %7688 = vst [vmem:[%s9036_s4 + $0x130] sm:$0xff] %v7627_v7  ;;  %7687 = vst [vmem:[%s9036_s4 + $0x128] sm:$0xff] %v7528_v26  ;;  %v7629_v35 = vpop.f32.mrb[95].mxu1 }
0x2101   :  { %7689 = vst [vmem:[%s9036_s4 + $0x138] sm:$0xff] %v7629_v35 }
0x2104   :  { %v7532_v4 = vpop.f32.mrb[96].mxu0 }
0x2105   :  { %7690 = vst [vmem:[%s9036_s4 + $0x140] sm:$0xff] %v7532_v4  ;;  %v7633_v53 = vpop.f32.mrb[96].mxu1  ;;  %v7534_v22 = vpop.f32.mrb[97].mxu0 }
0x2106   :  { %7692 = vst [vmem:[%s9036_s4 + $0x150] sm:$0xff] %v7633_v53  ;;  %7691 = vst [vmem:[%s9036_s4 + $0x148] sm:$0xff] %v7534_v22  ;;  %v7635_v5 = vpop.f32.mrb[97].mxu1  ;;  %v7536_v12 = vpop.f32.mrb[98].mxu0 }
0x2107   :  { %7693 = vst [vmem:[%s9036_s4 + $0x158] sm:$0xff] %v7635_v5  ;;  %7694 = vst [vmem:[%s9036_s4 + $0x160] sm:$0xff] %v7536_v12  ;;  %v7637_v24 = vpop.f32.mrb[98].mxu1  ;;  %v7538_v36 = vpop.f32.mrb[99].mxu0 }
0x2108   :  { %7696 = vst [vmem:[%s9036_s4 + $0x170] sm:$0xff] %v7637_v24  ;;  %7695 = vst [vmem:[%s9036_s4 + $0x168] sm:$0xff] %v7538_v36  ;;  %v7639_v62 = vpop.f32.mrb[99].mxu1 }
0x2109   :  { %7697 = vst [vmem:[%s9036_s4 + $0x178] sm:$0xff] %v7639_v62 }
0x210c   :  { %v7542_v46 = vpop.f32.mrb[100].mxu0 }
0x210d   :  { %7698 = vst [vmem:[%s9036_s4 + $0x180] sm:$0xff] %v7542_v46  ;;  %v7643_v21 = vpop.f32.mrb[100].mxu1  ;;  %v7544_v15 = vpop.f32.mrb[101].mxu0 }
0x210e   :  { %7700 = vst [vmem:[%s9036_s4 + $0x190] sm:$0xff] %v7643_v21  ;;  %7699 = vst [vmem:[%s9036_s4 + $0x188] sm:$0xff] %v7544_v15  ;;  %v7645_v25 = vpop.f32.mrb[101].mxu1  ;;  %v7546_v14 = vpop.f32.mrb[102].mxu0 }
0x210f   :  { %7701 = vst [vmem:[%s9036_s4 + $0x198] sm:$0xff] %v7645_v25  ;;  %v7647_v2 = vpop.f32.mrb[102].mxu1  ;;  %v7547_v10 = vpop.f32.mrb[103].mxu0 }
0x2110   :  { %v7648_v45 = vpop.f32.mrb[103].mxu1 }
0x2111   :  { %7706 = vsyncpa [#allocation5], 1 }

</bundles_post_ra>
